<compile_context>
chip_gen: v6e
topology: v6e:2x2x1
jax: 0.10.0
libtpu: 0.0.40
codegen_flags: <defaults>
</compile_context>

<pallas_src>
import functools

import jax
import jax.numpy as jnp
from jax.experimental import pallas as pl
from jax.experimental.pallas import tpu as pltpu


def resblock_kernel(x_ref, xh_ref, w1_ref, b1_ref, w2_ref, b2_ref, o_ref,
                    pbuf1, pbuf2, patch, hstage, hsem,
                    *, H, W, Cp, K, p, Th, res_scale):
    """One (batch, row-tile) per grid step.

    x_ref  : (1, Th, W, Cp)    f32   interior rows of the tile (auto-pipelined)
    xh_ref : (N*H, W, Cp)      f32   whole input in HBM (halo rows only)
    w*_ref : (K, K*Cp, Cp)     bf16  conv weights, per-dy im2col layout
    b*_ref : (1, Cp)           f32   conv biases
    o_ref  : (1, Th, W, Cp)          output tile (lane-dense, Cp % 128 == 0)
    pbuf1  : (Th+4p, W+2p, Cp) bf16  zero-padded x for conv1 (halo recompute)
    pbuf2  : (Th+2p, W+2p, Cp) bf16  zero-padded y1 for conv2
    patch  : ((Th+2p)*W, K*Cp) bf16  per-dy im2col operand
    hstage : (2, 2p, W, Cp)    f32   halo-row DMA landing buffer
    hsem   : (2,)                    DMA semaphores
    """
    n = pl.program_id(0)
    t = pl.program_id(1)
    nT = pl.num_programs(1)
    ThE = Th + 2 * p                 # rows of y1 needed by conv2 (halo recompute)
    ThA = Th + 4 * p                 # rows of padded x needed by conv1
    bf = pbuf1.dtype

    row0 = n * H + t * Th            # first interior row of this tile in xh_ref

    if p > 0:
        # ---- kick off the tiny halo-row DMAs (overlap with staging below) ----
        @pl.when(t > 0)
        def _():
            pltpu.make_async_copy(xh_ref.at[pl.ds(row0 - 2 * p, 2 * p)],
                                  hstage.at[0], hsem.at[0]).start()

        @pl.when(t + 1 < nT)
        def _():
            pltpu.make_async_copy(xh_ref.at[pl.ds(row0 + Th, 2 * p)],
                                  hstage.at[1], hsem.at[1]).start()

        # ---- 'same' padding: left/right column strips are always zero --------
        pbuf1[:, pl.ds(0, p), :] = jnp.zeros((ThA, p, Cp), bf)
        pbuf1[:, pl.ds(p + W, p), :] = jnp.zeros((ThA, p, Cp), bf)
        pbuf2[:, pl.ds(0, p), :] = jnp.zeros((ThE, p, Cp), bf)
        pbuf2[:, pl.ds(p + W, p), :] = jnp.zeros((ThE, p, Cp), bf)

        # ---- input rows outside the image are zero ---------------------------
        @pl.when(t == 0)
        def _():
            pbuf1[pl.ds(0, 2 * p), pl.ds(p, W), :] = jnp.zeros((2 * p, W, Cp), bf)

        @pl.when(t + 1 == nT)
        def _():
            pbuf1[pl.ds(2 * p + Th, 2 * p), pl.ds(p, W), :] = (
                jnp.zeros((2 * p, W, Cp), bf))

    # ---- stage the interior x rows (single pipelined HBM read of the bulk) ----
    pbuf1[pl.ds(2 * p, Th), pl.ds(p, W), :] = x_ref[0].astype(bf)

    if p > 0:
        # ---- land the halo rows ----------------------------------------------
        @pl.when(t > 0)
        def _():
            pltpu.make_async_copy(xh_ref.at[pl.ds(row0 - 2 * p, 2 * p)],
                                  hstage.at[0], hsem.at[0]).wait()
            pbuf1[pl.ds(0, 2 * p), pl.ds(p, W), :] = hstage[0].astype(bf)

        @pl.when(t + 1 < nT)
        def _():
            pltpu.make_async_copy(xh_ref.at[pl.ds(row0 + Th, 2 * p)],
                                  hstage.at[1], hsem.at[1]).wait()
            pbuf1[pl.ds(2 * p + Th, 2 * p), pl.ds(p, W), :] = hstage[1].astype(bf)

    def conv(buf, rows, w_ref, b_ref):
        """'same' KxK conv as K fused (rows*W, K*Cp) x (K*Cp, Cp) MXU matmuls."""
        m = rows * W
        acc = None
        for dy in range(K):
            for dx in range(K):
                # sublane-offset window; lanes (Cp) untouched -> no relayout.
                win = buf[pl.ds(dy, rows), pl.ds(dx, W), :]
                patch[pl.ds(0, m), pl.ds(dx * Cp, Cp)] = win.reshape(m, Cp)
            part = jnp.dot(patch[pl.ds(0, m), :], w_ref[dy],
                           preferred_element_type=jnp.float32)   # bf16 MXU, f32 acc
            acc = part if acc is None else acc + part
        return acc + b_ref[...].astype(jnp.float32)              # (m, Cp) f32

    # ---- conv1 + ReLU over the Th+2p extended rows (halo recompute) -----------
    y1 = jnp.maximum(conv(pbuf1, ThE, w1_ref, b1_ref), 0.0)
    pbuf2[:, pl.ds(p, W), :] = y1.reshape(ThE, W, Cp).astype(bf)

    if p > 0:
        # y1 rows that fall outside the image are conv2 'same'-padding zeros.
        @pl.when(t == 0)
        def _():
            pbuf2[pl.ds(0, p), pl.ds(p, W), :] = jnp.zeros((p, W, Cp), bf)

        @pl.when(t + 1 == nT)
        def _():
            pbuf2[pl.ds(ThE - p, p), pl.ds(p, W), :] = jnp.zeros((p, W, Cp), bf)

    # ---- conv2, f32 epilogue: *res_scale + x, written lane-dense --------------
    y2 = conv(pbuf2, Th, w2_ref, b2_ref)
    if res_scale != 1.0:
        y2 = y2 * jnp.float32(res_scale)
    out = y2.reshape(Th, W, Cp) + x_ref[0].astype(jnp.float32)
    o_ref[0] = out.astype(o_ref.dtype)


def resblock(x, w1, b1, w2, b2, *, res_scale=1.0, tile_h=None):
    """EDSR ResBlock forward.  x: (N, H, W, C) NHWC; w: (K, K, Cin, Cout); b: (C,)."""
    N, H, W, C = x.shape
    K = w1.shape[0]
    p = K // 2

    # Lane-pad channels to a multiple of 128 so patch writes / matmul operands /
    # output stores are lane-dense and 128-aligned (no-op when C % 128 == 0).
    Cp = max(128, ((C + 127) // 128) * 128)
    if Cp != C:
        cp = Cp - C
        x_p = jnp.pad(x, ((0, 0), (0, 0), (0, 0), (0, cp)))
        w1_p = jnp.pad(w1, ((0, 0), (0, 0), (0, cp), (0, cp)))
        w2_p = jnp.pad(w2, ((0, 0), (0, 0), (0, cp), (0, cp)))
        b1_p = jnp.pad(b1, (0, cp))
        b2_p = jnp.pad(b2, (0, cp))
    else:
        x_p, w1_p, w2_p, b1_p, b2_p = x, w1, w2, b1, b2

    # Row tile: H % Th == 0 and Th >= 2*p (halo-recompute scheme).
    if tile_h is None:
        tile_h = H
        for cand in (32, 16, 8):
            if H % cand == 0 and cand >= 2 * p:
                tile_h = cand
                break
    Th = int(tile_h)
    assert H % Th == 0 and Th >= 2 * p, (H, Th, p)
    nT = H // Th
    ThE, ThA, Wp = Th + 2 * p, Th + 4 * p, W + 2 * p

    # Weights in per-dy im2col layout, bf16 for the MXU; biases stay f32.
    w1m = w1_p.reshape(K, K * Cp, Cp).astype(jnp.bfloat16)
    w2m = w2_p.reshape(K, K * Cp, Cp).astype(jnp.bfloat16)
    b1r = b1_p.reshape(1, Cp).astype(jnp.float32)
    b2r = b2_p.reshape(1, Cp).astype(jnp.float32)
    xh = x_p.reshape(N * H, W, Cp)          # same HBM buffer, flat-row view (halo DMA)

    kernel = functools.partial(resblock_kernel, H=H, W=W, Cp=Cp, K=K, p=p, Th=Th,
                               res_scale=float(res_scale))

    # Explicit VMEM budget: scratch + double-buffered x/out blocks + single-buffered
    # weights, with 2x headroom, clamped to [32 MiB, 64 MiB] (v7x physical = 64 MiB).
    hrows = max(2 * p, 1)
    itemsize = x.dtype.itemsize
    scratch_bytes = (ThA * Wp * Cp + ThE * Wp * Cp + ThE * W * K * Cp) * 2 \
        + 2 * hrows * W * Cp * 4
    io_bytes = 2 * 2 * Th * W * Cp * itemsize
    wgt_bytes = 2 * K * K * Cp * Cp * 2 + 2 * Cp * 4
    vmem_limit = int(min(max(2 * (scratch_bytes + io_bytes + wgt_bytes),
                             32 * 1024 * 1024), 64 * 1024 * 1024))

    def const_spec(shape):
        zero = (0,) * len(shape)
        return pl.BlockSpec(shape, lambda n, t: zero,
                            pipeline_mode=pl.Buffered(1))    # no double-buffering

    out_p = pl.pallas_call(
        kernel,
        out_shape=jax.ShapeDtypeStruct((N, H, W, Cp), x.dtype),
        grid=(N, nT),
        in_specs=[
            pl.BlockSpec((1, Th, W, Cp), lambda n, t: (n, t, 0, 0)),  # x tile
            pl.BlockSpec(memory_space=pl.ANY),                         # x in HBM (halos)
            const_spec((K, K * Cp, Cp)),                               # w1
            const_spec((1, Cp)),                                       # b1
            const_spec((K, K * Cp, Cp)),                               # w2
            const_spec((1, Cp)),                                       # b2
        ],
        out_specs=pl.BlockSpec((1, Th, W, Cp), lambda n, t: (n, t, 0, 0)),
        scratch_shapes=[
            pltpu.VMEM((ThA, Wp, Cp), jnp.bfloat16),       # padded x  (conv1 input)
            pltpu.VMEM((ThE, Wp, Cp), jnp.bfloat16),       # padded y1 (conv2 input)
            pltpu.VMEM((ThE * W, K * Cp), jnp.bfloat16),   # per-dy im2col patch
            pltpu.VMEM((2, hrows, W, Cp), jnp.float32),    # halo landing buffer
            pltpu.SemaphoreType.DMA((2,)),
        ],
        compiler_params=pltpu.CompilerParams(
            dimension_semantics=("parallel", "parallel"),  # batch x row-tile over TCs
            vmem_limit_bytes=vmem_limit),
    )(x_p, xh, w1m, b1r, w2m, b2r)

    return out_p[..., :C] if Cp != C else out_p


def resblock_ref(x, w1, b1, w2, b2, *, res_scale=1.0):
    """Pure-JAX f32 reference (NHWC / HWIO)."""
    dn = ("NHWC", "HWIO", "NHWC")
    y = jax.lax.conv_general_dilated(x, w1, (1, 1), "SAME",
                                     dimension_numbers=dn) + b1
    y = jnp.maximum(y, 0.0)
    y = jax.lax.conv_general_dilated(y, w2, (1, 1), "SAME",
                                     dimension_numbers=dn) + b2
    return y * res_scale + x


if __name__ == "__main__":
    # ResBlock(default_conv, n_feats=4, kernel_size=3) on a batch-2, 16x16 input
    # (PyTorch is NCHW [2, 4, 16, 16]; this kernel uses the NHWC layout).
    N, H, W, C, K = 2, 16, 16, 4, 3
    res_scale = 1.0

    key = jax.random.PRNGKey(0)
    kx, kw1, kb1, kw2, kb2 = jax.random.split(key, 5)

    x = jax.random.normal(kx, (N, H, W, C), dtype=jnp.float32)
    scale = 1.0 / (C * K * K) ** 0.5          # ~ PyTorch default conv init scale
    w1 = jax.random.uniform(kw1, (K, K, C, C), jnp.float32, -scale, scale)
    b1 = jax.random.uniform(kb1, (C,), jnp.float32, -scale, scale)
    w2 = jax.random.uniform(kw2, (K, K, C, C), jnp.float32, -scale, scale)
    b2 = jax.random.uniform(kb2, (C,), jnp.float32, -scale, scale)

    # tile_h=8 -> 2 row tiles per image, exercising both halo-DMA branches.
    out = resblock(x, w1, b1, w2, b2, res_scale=res_scale, tile_h=8)
    out = jax.block_until_ready(out)

    ref = resblock_ref(x, w1, b1, w2, b2, res_scale=res_scale)
    assert out.shape == (N, H, W, C) and out.dtype == x.dtype
    # bf16 MXU operands -> looser tolerance than a pure-f32 conv stack.
    assert jnp.allclose(out, ref, atol=5e-2, rtol=5e-2), (
        float(jnp.max(jnp.abs(out - ref))))
    print("KERNEL_OK")
</pallas_src>

<mosaic_0001>
module attributes {stable_mosaic.version = 11 : i64} {
  func.func @resblock_kernel(%arg0: i32, %arg1: i32, %arg2: memref<1x8x16x128xf32, #tpu.memory_space<vmem>>, %arg3: memref<32x16x128xf32, #tpu.memory_space<any>>, %arg4: memref<3x384x128xbf16, #tpu.memory_space<vmem>>, %arg5: memref<1x128xf32, #tpu.memory_space<vmem>>, %arg6: memref<3x384x128xbf16, #tpu.memory_space<vmem>>, %arg7: memref<1x128xf32, #tpu.memory_space<vmem>>, %arg8: memref<1x8x16x128xf32, #tpu.memory_space<vmem>>, %arg9: memref<12x18x128xbf16, #tpu.memory_space<vmem>>, %arg10: memref<10x18x128xbf16, #tpu.memory_space<vmem>>, %arg11: memref<160x384xbf16, #tpu.memory_space<vmem>>, %arg12: memref<2x2x16x128xf32, #tpu.memory_space<vmem>>, %arg13: memref<2x!tpu.dma_semaphore, #tpu.memory_space<semaphore_mem>>) attributes {dimension_semantics = [#tpu.dimension_semantics<parallel>, #tpu.dimension_semantics<parallel>], iteration_bounds = array<i64: 2, 2>, scalar_prefetch = 0 : i64, scratch_operands = 5 : i64, tpu.core_type = #tpu.core_type<tc>, window_params = [{transform_indices = @transform_0, window_bounds = array<i64: 1, 8, 16, 128>}, {}, {pipeline_mode = #tpu.pipeline_mode<synchronous>, transform_indices = @transform_2, window_bounds = array<i64: 3, 384, 128>}, {pipeline_mode = #tpu.pipeline_mode<synchronous>, transform_indices = @transform_3, window_bounds = array<i64: 1, 128>}, {pipeline_mode = #tpu.pipeline_mode<synchronous>, transform_indices = @transform_4, window_bounds = array<i64: 3, 384, 128>}, {pipeline_mode = #tpu.pipeline_mode<synchronous>, transform_indices = @transform_5, window_bounds = array<i64: 1, 128>}, {transform_indices = @transform_6, window_bounds = array<i64: 1, 8, 16, 128>}]} {
    %c16_i32 = arith.constant 16 : i32
    %0 = arith.muli %arg0, %c16_i32 : i32
    %c8_i32 = arith.constant 8 : i32
    %1 = arith.muli %arg1, %c8_i32 : i32
    %2 = arith.addi %0, %1 : i32
    %c0_i32 = arith.constant 0 : i32
    %3 = arith.cmpi sgt, %arg1, %c0_i32 : i32
    %4 = arith.extui %3 : i1 to i32
    %c0_i32_0 = arith.constant 0 : i32
    %5 = arith.cmpi ne, %4, %c0_i32_0 : i32
    scf.if %5 {
      %c2_i32_175 = arith.constant 2 : i32
      %143 = arith.subi %2, %c2_i32_175 : i32
      %c0_i32_176 = arith.constant 0 : i32
      %c0_i32_177 = arith.constant 0 : i32
      %c0_i32_178 = arith.constant 0 : i32
      %c0_i32_179 = arith.constant 0 : i32
      %144 = tpu.memref_slice %arg3[%143, %c0_i32_178, %c0_i32_179] : memref<32x16x128xf32, #tpu.memory_space<any>> -> memref<2x16x128xf32, #tpu.memory_space<any>>
      %c0_i32_180 = arith.constant 0 : i32
      %c0_i32_181 = arith.constant 0 : i32
      %c0_i32_182 = arith.constant 0 : i32
      %145 = tpu.memref_slice %arg12[%c0_i32_176, %c0_i32_180, %c0_i32_181, %c0_i32_182] : memref<2x2x16x128xf32, #tpu.memory_space<vmem>> -> memref<1x2x16x128xf32, #tpu.memory_space<vmem>>
      %146 = tpu.memref_squeeze %145 : memref<1x2x16x128xf32, #tpu.memory_space<vmem>> -> memref<2x16x128xf32, #tpu.memory_space<vmem>>
      %147 = tpu.memref_slice %arg13[%c0_i32_177] : memref<2x!tpu.dma_semaphore, #tpu.memory_space<semaphore_mem>> -> memref<1x!tpu.dma_semaphore, #tpu.memory_space<semaphore_mem>>
      %148 = tpu.memref_squeeze %147 : memref<1x!tpu.dma_semaphore, #tpu.memory_space<semaphore_mem>> -> memref<!tpu.dma_semaphore, #tpu.memory_space<semaphore_mem>>
      tpu.enqueue_dma source(%144 : memref<2x16x128xf32, #tpu.memory_space<any>>) target(%146 : memref<2x16x128xf32, #tpu.memory_space<vmem>>) target_semaphore(%148 : memref<!tpu.dma_semaphore, #tpu.memory_space<semaphore_mem>>)
    } else {
    }
    %c1_i32 = arith.constant 1 : i32
    %6 = arith.addi %arg1, %c1_i32 : i32
    %c2_i32 = arith.constant 2 : i32
    %7 = arith.cmpi slt, %6, %c2_i32 : i32
    %8 = arith.extui %7 : i1 to i32
    %c0_i32_1 = arith.constant 0 : i32
    %9 = arith.cmpi ne, %8, %c0_i32_1 : i32
    scf.if %9 {
      %c8_i32_175 = arith.constant 8 : i32
      %143 = arith.addi %2, %c8_i32_175 : i32
      %c1_i32_176 = arith.constant 1 : i32
      %c1_i32_177 = arith.constant 1 : i32
      %c0_i32_178 = arith.constant 0 : i32
      %c0_i32_179 = arith.constant 0 : i32
      %144 = tpu.memref_slice %arg3[%143, %c0_i32_178, %c0_i32_179] : memref<32x16x128xf32, #tpu.memory_space<any>> -> memref<2x16x128xf32, #tpu.memory_space<any>>
      %c0_i32_180 = arith.constant 0 : i32
      %c0_i32_181 = arith.constant 0 : i32
      %c0_i32_182 = arith.constant 0 : i32
      %145 = tpu.memref_slice %arg12[%c1_i32_176, %c0_i32_180, %c0_i32_181, %c0_i32_182] : memref<2x2x16x128xf32, #tpu.memory_space<vmem>> -> memref<1x2x16x128xf32, #tpu.memory_space<vmem>>
      %146 = tpu.memref_squeeze %145 : memref<1x2x16x128xf32, #tpu.memory_space<vmem>> -> memref<2x16x128xf32, #tpu.memory_space<vmem>>
      %147 = tpu.memref_slice %arg13[%c1_i32_177] : memref<2x!tpu.dma_semaphore, #tpu.memory_space<semaphore_mem>> -> memref<1x!tpu.dma_semaphore, #tpu.memory_space<semaphore_mem>>
      %148 = tpu.memref_squeeze %147 : memref<1x!tpu.dma_semaphore, #tpu.memory_space<semaphore_mem>> -> memref<!tpu.dma_semaphore, #tpu.memory_space<semaphore_mem>>
      tpu.enqueue_dma source(%144 : memref<2x16x128xf32, #tpu.memory_space<any>>) target(%146 : memref<2x16x128xf32, #tpu.memory_space<vmem>>) target_semaphore(%148 : memref<!tpu.dma_semaphore, #tpu.memory_space<semaphore_mem>>)
    } else {
    }
    %cst = arith.constant 0.000000e+00 : bf16
    %10 = vector.broadcast %cst : bf16 to vector<12x1x128xbf16>
    %c0 = arith.constant 0 : index
    %c0_2 = arith.constant 0 : index
    %c0_3 = arith.constant 0 : index
    %11 = vector.load %arg9[%c0, %c0_2, %c0_3] : memref<12x18x128xbf16, #tpu.memory_space<vmem>>, vector<12x1x128xbf16>
    tpu.vector_store %arg9[%c0, %c0_2, %c0_3], %10 {strides = array<i32>} : memref<12x18x128xbf16, #tpu.memory_space<vmem>>, vector<12x1x128xbf16>,
    %cst_4 = arith.constant 0.000000e+00 : bf16
    %12 = vector.broadcast %cst_4 : bf16 to vector<12x1x128xbf16>
    %c0_5 = arith.constant 0 : index
    %c17 = arith.constant 17 : index
    %c0_6 = arith.constant 0 : index
    %13 = vector.load %arg9[%c0_5, %c17, %c0_6] : memref<12x18x128xbf16, #tpu.memory_space<vmem>>, vector<12x1x128xbf16>
    tpu.vector_store %arg9[%c0_5, %c17, %c0_6], %12 {strides = array<i32>} : memref<12x18x128xbf16, #tpu.memory_space<vmem>>, vector<12x1x128xbf16>,
    %cst_7 = arith.constant 0.000000e+00 : bf16
    %14 = vector.broadcast %cst_7 : bf16 to vector<10x1x128xbf16>
    %c0_8 = arith.constant 0 : index
    %c0_9 = arith.constant 0 : index
    %c0_10 = arith.constant 0 : index
    %15 = vector.load %arg10[%c0_8, %c0_9, %c0_10] : memref<10x18x128xbf16, #tpu.memory_space<vmem>>, vector<10x1x128xbf16>
    tpu.vector_store %arg10[%c0_8, %c0_9, %c0_10], %14 {strides = array<i32>} : memref<10x18x128xbf16, #tpu.memory_space<vmem>>, vector<10x1x128xbf16>,
    %cst_11 = arith.constant 0.000000e+00 : bf16
    %16 = vector.broadcast %cst_11 : bf16 to vector<10x1x128xbf16>
    %c0_12 = arith.constant 0 : index
    %c17_13 = arith.constant 17 : index
    %c0_14 = arith.constant 0 : index
    %17 = vector.load %arg10[%c0_12, %c17_13, %c0_14] : memref<10x18x128xbf16, #tpu.memory_space<vmem>>, vector<10x1x128xbf16>
    tpu.vector_store %arg10[%c0_12, %c17_13, %c0_14], %16 {strides = array<i32>} : memref<10x18x128xbf16, #tpu.memory_space<vmem>>, vector<10x1x128xbf16>,
    %c0_i32_15 = arith.constant 0 : i32
    %18 = arith.cmpi eq, %arg1, %c0_i32_15 : i32
    %19 = arith.extui %18 : i1 to i32
    %c0_i32_16 = arith.constant 0 : i32
    %20 = arith.cmpi ne, %19, %c0_i32_16 : i32
    scf.if %20 {
      %cst_175 = arith.constant 0.000000e+00 : bf16
      %143 = vector.broadcast %cst_175 : bf16 to vector<2x16x128xbf16>
      %c0_176 = arith.constant 0 : index
      %c1_177 = arith.constant 1 : index
      %c0_178 = arith.constant 0 : index
      %144 = vector.load %arg9[%c0_176, %c1_177, %c0_178] : memref<12x18x128xbf16, #tpu.memory_space<vmem>>, vector<2x16x128xbf16>
      tpu.vector_store %arg9[%c0_176, %c1_177, %c0_178], %143 {strides = array<i32>} : memref<12x18x128xbf16, #tpu.memory_space<vmem>>, vector<2x16x128xbf16>,
    } else {
    }
    %c1_i32_17 = arith.constant 1 : i32
    %21 = arith.addi %arg1, %c1_i32_17 : i32
    %c2_i32_18 = arith.constant 2 : i32
    %22 = arith.cmpi eq, %21, %c2_i32_18 : i32
    %23 = arith.extui %22 : i1 to i32
    %c0_i32_19 = arith.constant 0 : i32
    %24 = arith.cmpi ne, %23, %c0_i32_19 : i32
    scf.if %24 {
      %cst_175 = arith.constant 0.000000e+00 : bf16
      %143 = vector.broadcast %cst_175 : bf16 to vector<2x16x128xbf16>
      %c10 = arith.constant 10 : index
      %c1_176 = arith.constant 1 : index
      %c0_177 = arith.constant 0 : index
      %144 = vector.load %arg9[%c10, %c1_176, %c0_177] : memref<12x18x128xbf16, #tpu.memory_space<vmem>>, vector<2x16x128xbf16>
      tpu.vector_store %arg9[%c10, %c1_176, %c0_177], %143 {strides = array<i32>} : memref<12x18x128xbf16, #tpu.memory_space<vmem>>, vector<2x16x128xbf16>,
    } else {
    }
    %c0_20 = arith.constant 0 : index
    %c0_21 = arith.constant 0 : index
    %c0_22 = arith.constant 0 : index
    %c0_23 = arith.constant 0 : index
    %25 = vector.load %arg2[%c0_20, %c0_21, %c0_22, %c0_23] : memref<1x8x16x128xf32, #tpu.memory_space<vmem>>, vector<1x8x16x128xf32>
    %26 = vector.shape_cast %25 : vector<1x8x16x128xf32> to vector<8x16x128xf32>
    %27 = arith.truncf %26 : vector<8x16x128xf32> to vector<8x16x128xbf16>
    %c2 = arith.constant 2 : index
    %c1 = arith.constant 1 : index
    %c0_24 = arith.constant 0 : index
    %28 = vector.load %arg9[%c2, %c1, %c0_24] : memref<12x18x128xbf16, #tpu.memory_space<vmem>>, vector<8x16x128xbf16>
    tpu.vector_store %arg9[%c2, %c1, %c0_24], %27 {strides = array<i32>} : memref<12x18x128xbf16, #tpu.memory_space<vmem>>, vector<8x16x128xbf16>,
    %c0_i32_25 = arith.constant 0 : i32
    %29 = arith.cmpi sgt, %arg1, %c0_i32_25 : i32
    %30 = arith.extui %29 : i1 to i32
    %c0_i32_26 = arith.constant 0 : i32
    %31 = arith.cmpi ne, %30, %c0_i32_26 : i32
    scf.if %31 {
      %c2_i32_175 = arith.constant 2 : i32
      %143 = arith.subi %2, %c2_i32_175 : i32
      %c0_i32_176 = arith.constant 0 : i32
      %c0_i32_177 = arith.constant 0 : i32
      %c0_i32_178 = arith.constant 0 : i32
      %c0_i32_179 = arith.constant 0 : i32
      %144 = tpu.memref_slice %arg3[%143, %c0_i32_178, %c0_i32_179] : memref<32x16x128xf32, #tpu.memory_space<any>> -> memref<2x16x128xf32, #tpu.memory_space<any>>
      %c0_i32_180 = arith.constant 0 : i32
      %c0_i32_181 = arith.constant 0 : i32
      %c0_i32_182 = arith.constant 0 : i32
      %145 = tpu.memref_slice %arg12[%c0_i32_176, %c0_i32_180, %c0_i32_181, %c0_i32_182] : memref<2x2x16x128xf32, #tpu.memory_space<vmem>> -> memref<1x2x16x128xf32, #tpu.memory_space<vmem>>
      %146 = tpu.memref_squeeze %145 : memref<1x2x16x128xf32, #tpu.memory_space<vmem>> -> memref<2x16x128xf32, #tpu.memory_space<vmem>>
      %147 = tpu.memref_slice %arg13[%c0_i32_177] : memref<2x!tpu.dma_semaphore, #tpu.memory_space<semaphore_mem>> -> memref<1x!tpu.dma_semaphore, #tpu.memory_space<semaphore_mem>>
      %148 = tpu.memref_squeeze %147 : memref<1x!tpu.dma_semaphore, #tpu.memory_space<semaphore_mem>> -> memref<!tpu.dma_semaphore, #tpu.memory_space<semaphore_mem>>
      tpu.wait_dma2 semaphore(%148 : memref<!tpu.dma_semaphore, #tpu.memory_space<semaphore_mem>>) src(%144 : memref<2x16x128xf32, #tpu.memory_space<any>>) dst(%146 : memref<2x16x128xf32, #tpu.memory_space<vmem>>)
      %c0_183 = arith.constant 0 : index
      %c0_184 = arith.constant 0 : index
      %c0_185 = arith.constant 0 : index
      %c0_186 = arith.constant 0 : index
      %149 = vector.load %arg12[%c0_183, %c0_184, %c0_185, %c0_186] : memref<2x2x16x128xf32, #tpu.memory_space<vmem>>, vector<1x2x16x128xf32>
      %150 = vector.shape_cast %149 : vector<1x2x16x128xf32> to vector<2x16x128xf32>
      %151 = arith.truncf %150 : vector<2x16x128xf32> to vector<2x16x128xbf16>
      %c0_187 = arith.constant 0 : index
      %c1_188 = arith.constant 1 : index
      %c0_189 = arith.constant 0 : index
      %152 = vector.load %arg9[%c0_187, %c1_188, %c0_189] : memref<12x18x128xbf16, #tpu.memory_space<vmem>>, vector<2x16x128xbf16>
      tpu.vector_store %arg9[%c0_187, %c1_188, %c0_189], %151 {strides = array<i32>} : memref<12x18x128xbf16, #tpu.memory_space<vmem>>, vector<2x16x128xbf16>,
    } else {
    }
    %c1_i32_27 = arith.constant 1 : i32
    %32 = arith.addi %arg1, %c1_i32_27 : i32
    %c2_i32_28 = arith.constant 2 : i32
    %33 = arith.cmpi slt, %32, %c2_i32_28 : i32
    %34 = arith.extui %33 : i1 to i32
    %c0_i32_29 = arith.constant 0 : i32
    %35 = arith.cmpi ne, %34, %c0_i32_29 : i32
    scf.if %35 {
      %c8_i32_175 = arith.constant 8 : i32
      %143 = arith.addi %2, %c8_i32_175 : i32
      %c1_i32_176 = arith.constant 1 : i32
      %c1_i32_177 = arith.constant 1 : i32
      %c0_i32_178 = arith.constant 0 : i32
      %c0_i32_179 = arith.constant 0 : i32
      %144 = tpu.memref_slice %arg3[%143, %c0_i32_178, %c0_i32_179] : memref<32x16x128xf32, #tpu.memory_space<any>> -> memref<2x16x128xf32, #tpu.memory_space<any>>
      %c0_i32_180 = arith.constant 0 : i32
      %c0_i32_181 = arith.constant 0 : i32
      %c0_i32_182 = arith.constant 0 : i32
      %145 = tpu.memref_slice %arg12[%c1_i32_176, %c0_i32_180, %c0_i32_181, %c0_i32_182] : memref<2x2x16x128xf32, #tpu.memory_space<vmem>> -> memref<1x2x16x128xf32, #tpu.memory_space<vmem>>
      %146 = tpu.memref_squeeze %145 : memref<1x2x16x128xf32, #tpu.memory_space<vmem>> -> memref<2x16x128xf32, #tpu.memory_space<vmem>>
      %147 = tpu.memref_slice %arg13[%c1_i32_177] : memref<2x!tpu.dma_semaphore, #tpu.memory_space<semaphore_mem>> -> memref<1x!tpu.dma_semaphore, #tpu.memory_space<semaphore_mem>>
      %148 = tpu.memref_squeeze %147 : memref<1x!tpu.dma_semaphore, #tpu.memory_space<semaphore_mem>> -> memref<!tpu.dma_semaphore, #tpu.memory_space<semaphore_mem>>
      tpu.wait_dma2 semaphore(%148 : memref<!tpu.dma_semaphore, #tpu.memory_space<semaphore_mem>>) src(%144 : memref<2x16x128xf32, #tpu.memory_space<any>>) dst(%146 : memref<2x16x128xf32, #tpu.memory_space<vmem>>)
      %c1_183 = arith.constant 1 : index
      %c0_184 = arith.constant 0 : index
      %c0_185 = arith.constant 0 : index
      %c0_186 = arith.constant 0 : index
      %149 = vector.load %arg12[%c1_183, %c0_184, %c0_185, %c0_186] : memref<2x2x16x128xf32, #tpu.memory_space<vmem>>, vector<1x2x16x128xf32>
      %150 = vector.shape_cast %149 : vector<1x2x16x128xf32> to vector<2x16x128xf32>
      %151 = arith.truncf %150 : vector<2x16x128xf32> to vector<2x16x128xbf16>
      %c10 = arith.constant 10 : index
      %c1_187 = arith.constant 1 : index
      %c0_188 = arith.constant 0 : index
      %152 = vector.load %arg9[%c10, %c1_187, %c0_188] : memref<12x18x128xbf16, #tpu.memory_space<vmem>>, vector<2x16x128xbf16>
      tpu.vector_store %arg9[%c10, %c1_187, %c0_188], %151 {strides = array<i32>} : memref<12x18x128xbf16, #tpu.memory_space<vmem>>, vector<2x16x128xbf16>,
    } else {
    }
    %c0_30 = arith.constant 0 : index
    %c0_31 = arith.constant 0 : index
    %c0_32 = arith.constant 0 : index
    %36 = vector.load %arg9[%c0_30, %c0_31, %c0_32] : memref<12x18x128xbf16, #tpu.memory_space<vmem>>, vector<10x16x128xbf16>
    %37 = vector.shape_cast %36 : vector<10x16x128xbf16> to vector<160x128xbf16>
    %c0_33 = arith.constant 0 : index
    %c0_34 = arith.constant 0 : index
    %38 = vector.load %arg11[%c0_33, %c0_34] : memref<160x384xbf16, #tpu.memory_space<vmem>>, vector<160x128xbf16>
    tpu.vector_store %arg11[%c0_33, %c0_34], %37 {strides = array<i32>} : memref<160x384xbf16, #tpu.memory_space<vmem>>, vector<160x128xbf16>,
    %c0_35 = arith.constant 0 : index
    %c1_36 = arith.constant 1 : index
    %c0_37 = arith.constant 0 : index
    %39 = vector.load %arg9[%c0_35, %c1_36, %c0_37] : memref<12x18x128xbf16, #tpu.memory_space<vmem>>, vector<10x16x128xbf16>
    %40 = vector.shape_cast %39 : vector<10x16x128xbf16> to vector<160x128xbf16>
    %c0_38 = arith.constant 0 : index
    %c128 = arith.constant 128 : index
    %41 = vector.load %arg11[%c0_38, %c128] : memref<160x384xbf16, #tpu.memory_space<vmem>>, vector<160x128xbf16>
    tpu.vector_store %arg11[%c0_38, %c128], %40 {strides = array<i32>} : memref<160x384xbf16, #tpu.memory_space<vmem>>, vector<160x128xbf16>,
    %c0_39 = arith.constant 0 : index
    %c2_40 = arith.constant 2 : index
    %c0_41 = arith.constant 0 : index
    %42 = vector.load %arg9[%c0_39, %c2_40, %c0_41] : memref<12x18x128xbf16, #tpu.memory_space<vmem>>, vector<10x16x128xbf16>
    %43 = vector.shape_cast %42 : vector<10x16x128xbf16> to vector<160x128xbf16>
    %c0_42 = arith.constant 0 : index
    %c256 = arith.constant 256 : index
    %44 = vector.load %arg11[%c0_42, %c256] : memref<160x384xbf16, #tpu.memory_space<vmem>>, vector<160x128xbf16>
    tpu.vector_store %arg11[%c0_42, %c256], %43 {strides = array<i32>} : memref<160x384xbf16, #tpu.memory_space<vmem>>, vector<160x128xbf16>,
    %c0_43 = arith.constant 0 : index
    %c0_44 = arith.constant 0 : index
    %45 = vector.load %arg11[%c0_43, %c0_44] : memref<160x384xbf16, #tpu.memory_space<vmem>>, vector<160x384xbf16>
    %c0_45 = arith.constant 0 : index
    %c0_46 = arith.constant 0 : index
    %c0_47 = arith.constant 0 : index
    %46 = vector.load %arg4[%c0_45, %c0_46, %c0_47] : memref<3x384x128xbf16, #tpu.memory_space<vmem>>, vector<1x384x128xbf16>
    %47 = vector.shape_cast %46 : vector<1x384x128xbf16> to vector<384x128xbf16>
    %cst_48 = arith.constant dense<0.000000e+00> : vector<160x128xf32>
    %48 = tpu.matmul %45, %47, %cst_48 {dimension_numbers = #tpu.dot_dimension_numbers<[1], [0], [0], [1], [0, 0, 1, 1], [], []>} : vector<160x384xbf16>, vector<384x128xbf16>, vector<160x128xf32> -> vector<160x128xf32>
    %c1_49 = arith.constant 1 : index
    %c0_50 = arith.constant 0 : index
    %c0_51 = arith.constant 0 : index
    %49 = vector.load %arg9[%c1_49, %c0_50, %c0_51] : memref<12x18x128xbf16, #tpu.memory_space<vmem>>, vector<10x16x128xbf16>
    %50 = vector.shape_cast %49 : vector<10x16x128xbf16> to vector<160x128xbf16>
    %c0_52 = arith.constant 0 : index
    %c0_53 = arith.constant 0 : index
    %51 = vector.load %arg11[%c0_52, %c0_53] : memref<160x384xbf16, #tpu.memory_space<vmem>>, vector<160x128xbf16>
    tpu.vector_store %arg11[%c0_52, %c0_53], %50 {strides = array<i32>} : memref<160x384xbf16, #tpu.memory_space<vmem>>, vector<160x128xbf16>,
    %c1_54 = arith.constant 1 : index
    %c1_55 = arith.constant 1 : index
    %c0_56 = arith.constant 0 : index
    %52 = vector.load %arg9[%c1_54, %c1_55, %c0_56] : memref<12x18x128xbf16, #tpu.memory_space<vmem>>, vector<10x16x128xbf16>
    %53 = vector.shape_cast %52 : vector<10x16x128xbf16> to vector<160x128xbf16>
    %c0_57 = arith.constant 0 : index
    %c128_58 = arith.constant 128 : index
    %54 = vector.load %arg11[%c0_57, %c128_58] : memref<160x384xbf16, #tpu.memory_space<vmem>>, vector<160x128xbf16>
    tpu.vector_store %arg11[%c0_57, %c128_58], %53 {strides = array<i32>} : memref<160x384xbf16, #tpu.memory_space<vmem>>, vector<160x128xbf16>,
    %c1_59 = arith.constant 1 : index
    %c2_60 = arith.constant 2 : index
    %c0_61 = arith.constant 0 : index
    %55 = vector.load %arg9[%c1_59, %c2_60, %c0_61] : memref<12x18x128xbf16, #tpu.memory_space<vmem>>, vector<10x16x128xbf16>
    %56 = vector.shape_cast %55 : vector<10x16x128xbf16> to vector<160x128xbf16>
    %c0_62 = arith.constant 0 : index
    %c256_63 = arith.constant 256 : index
    %57 = vector.load %arg11[%c0_62, %c256_63] : memref<160x384xbf16, #tpu.memory_space<vmem>>, vector<160x128xbf16>
    tpu.vector_store %arg11[%c0_62, %c256_63], %56 {strides = array<i32>} : memref<160x384xbf16, #tpu.memory_space<vmem>>, vector<160x128xbf16>,
    %c0_64 = arith.constant 0 : index
    %c0_65 = arith.constant 0 : index
    %58 = vector.load %arg11[%c0_64, %c0_65] : memref<160x384xbf16, #tpu.memory_space<vmem>>, vector<160x384xbf16>
    %c1_66 = arith.constant 1 : index
    %c0_67 = arith.constant 0 : index
    %c0_68 = arith.constant 0 : index
    %59 = vector.load %arg4[%c1_66, %c0_67, %c0_68] : memref<3x384x128xbf16, #tpu.memory_space<vmem>>, vector<1x384x128xbf16>
    %60 = vector.shape_cast %59 : vector<1x384x128xbf16> to vector<384x128xbf16>
    %cst_69 = arith.constant dense<0.000000e+00> : vector<160x128xf32>
    %61 = tpu.matmul %58, %60, %cst_69 {dimension_numbers = #tpu.dot_dimension_numbers<[1], [0], [0], [1], [0, 0, 1, 1], [], []>} : vector<160x384xbf16>, vector<384x128xbf16>, vector<160x128xf32> -> vector<160x128xf32>
    %62 = arith.addf %48, %61 : vector<160x128xf32>
    %c2_70 = arith.constant 2 : index
    %c0_71 = arith.constant 0 : index
    %c0_72 = arith.constant 0 : index
    %63 = vector.load %arg9[%c2_70, %c0_71, %c0_72] : memref<12x18x128xbf16, #tpu.memory_space<vmem>>, vector<10x16x128xbf16>
    %64 = vector.shape_cast %63 : vector<10x16x128xbf16> to vector<160x128xbf16>
    %c0_73 = arith.constant 0 : index
    %c0_74 = arith.constant 0 : index
    %65 = vector.load %arg11[%c0_73, %c0_74] : memref<160x384xbf16, #tpu.memory_space<vmem>>, vector<160x128xbf16>
    tpu.vector_store %arg11[%c0_73, %c0_74], %64 {strides = array<i32>} : memref<160x384xbf16, #tpu.memory_space<vmem>>, vector<160x128xbf16>,
    %c2_75 = arith.constant 2 : index
    %c1_76 = arith.constant 1 : index
    %c0_77 = arith.constant 0 : index
    %66 = vector.load %arg9[%c2_75, %c1_76, %c0_77] : memref<12x18x128xbf16, #tpu.memory_space<vmem>>, vector<10x16x128xbf16>
    %67 = vector.shape_cast %66 : vector<10x16x128xbf16> to vector<160x128xbf16>
    %c0_78 = arith.constant 0 : index
    %c128_79 = arith.constant 128 : index
    %68 = vector.load %arg11[%c0_78, %c128_79] : memref<160x384xbf16, #tpu.memory_space<vmem>>, vector<160x128xbf16>
    tpu.vector_store %arg11[%c0_78, %c128_79], %67 {strides = array<i32>} : memref<160x384xbf16, #tpu.memory_space<vmem>>, vector<160x128xbf16>,
    %c2_80 = arith.constant 2 : index
    %c2_81 = arith.constant 2 : index
    %c0_82 = arith.constant 0 : index
    %69 = vector.load %arg9[%c2_80, %c2_81, %c0_82] : memref<12x18x128xbf16, #tpu.memory_space<vmem>>, vector<10x16x128xbf16>
    %70 = vector.shape_cast %69 : vector<10x16x128xbf16> to vector<160x128xbf16>
    %c0_83 = arith.constant 0 : index
    %c256_84 = arith.constant 256 : index
    %71 = vector.load %arg11[%c0_83, %c256_84] : memref<160x384xbf16, #tpu.memory_space<vmem>>, vector<160x128xbf16>
    tpu.vector_store %arg11[%c0_83, %c256_84], %70 {strides = array<i32>} : memref<160x384xbf16, #tpu.memory_space<vmem>>, vector<160x128xbf16>,
    %c0_85 = arith.constant 0 : index
    %c0_86 = arith.constant 0 : index
    %72 = vector.load %arg11[%c0_85, %c0_86] : memref<160x384xbf16, #tpu.memory_space<vmem>>, vector<160x384xbf16>
    %c2_87 = arith.constant 2 : index
    %c0_88 = arith.constant 0 : index
    %c0_89 = arith.constant 0 : index
    %73 = vector.load %arg4[%c2_87, %c0_88, %c0_89] : memref<3x384x128xbf16, #tpu.memory_space<vmem>>, vector<1x384x128xbf16>
    %74 = vector.shape_cast %73 : vector<1x384x128xbf16> to vector<384x128xbf16>
    %cst_90 = arith.constant dense<0.000000e+00> : vector<160x128xf32>
    %75 = tpu.matmul %72, %74, %cst_90 {dimension_numbers = #tpu.dot_dimension_numbers<[1], [0], [0], [1], [0, 0, 1, 1], [], []>} : vector<160x384xbf16>, vector<384x128xbf16>, vector<160x128xf32> -> vector<160x128xf32>
    %76 = arith.addf %62, %75 : vector<160x128xf32>
    %c0_91 = arith.constant 0 : index
    %c0_92 = arith.constant 0 : index
    %77 = vector.load %arg5[%c0_91, %c0_92] : memref<1x128xf32, #tpu.memory_space<vmem>>, vector<1x128xf32>
    %78 = vector.broadcast %77 : vector<1x128xf32> to vector<160x128xf32>
    %79 = arith.addf %76, %78 : vector<160x128xf32>
    %cst_93 = arith.constant 0.000000e+00 : f32
    %80 = vector.broadcast %cst_93 : f32 to vector<160x128xf32>
    %81 = arith.maximumf %79, %80 : vector<160x128xf32>
    %82 = vector.shape_cast %81 : vector<160x128xf32> to vector<10x16x128xf32>
    %83 = arith.truncf %82 : vector<10x16x128xf32> to vector<10x16x128xbf16>
    %c0_94 = arith.constant 0 : index
    %c1_95 = arith.constant 1 : index
    %c0_96 = arith.constant 0 : index
    %84 = vector.load %arg10[%c0_94, %c1_95, %c0_96] : memref<10x18x128xbf16, #tpu.memory_space<vmem>>, vector<10x16x128xbf16>
    tpu.vector_store %arg10[%c0_94, %c1_95, %c0_96], %83 {strides = array<i32>} : memref<10x18x128xbf16, #tpu.memory_space<vmem>>, vector<10x16x128xbf16>,
    %c0_i32_97 = arith.constant 0 : i32
    %85 = arith.cmpi eq, %arg1, %c0_i32_97 : i32
    %86 = arith.extui %85 : i1 to i32
    %c0_i32_98 = arith.constant 0 : i32
    %87 = arith.cmpi ne, %86, %c0_i32_98 : i32
    scf.if %87 {
      %cst_175 = arith.constant 0.000000e+00 : bf16
      %143 = vector.broadcast %cst_175 : bf16 to vector<1x16x128xbf16>
      %c0_176 = arith.constant 0 : index
      %c1_177 = arith.constant 1 : index
      %c0_178 = arith.constant 0 : index
      %144 = vector.load %arg10[%c0_176, %c1_177, %c0_178] : memref<10x18x128xbf16, #tpu.memory_space<vmem>>, vector<1x16x128xbf16>
      tpu.vector_store %arg10[%c0_176, %c1_177, %c0_178], %143 {strides = array<i32>} : memref<10x18x128xbf16, #tpu.memory_space<vmem>>, vector<1x16x128xbf16>,
    } else {
    }
    %c1_i32_99 = arith.constant 1 : i32
    %88 = arith.addi %arg1, %c1_i32_99 : i32
    %c2_i32_100 = arith.constant 2 : i32
    %89 = arith.cmpi eq, %88, %c2_i32_100 : i32
    %90 = arith.extui %89 : i1 to i32
    %c0_i32_101 = arith.constant 0 : i32
    %91 = arith.cmpi ne, %90, %c0_i32_101 : i32
    scf.if %91 {
      %cst_175 = arith.constant 0.000000e+00 : bf16
      %143 = vector.broadcast %cst_175 : bf16 to vector<1x16x128xbf16>
      %c9 = arith.constant 9 : index
      %c1_176 = arith.constant 1 : index
      %c0_177 = arith.constant 0 : index
      %144 = vector.load %arg10[%c9, %c1_176, %c0_177] : memref<10x18x128xbf16, #tpu.memory_space<vmem>>, vector<1x16x128xbf16>
      tpu.vector_store %arg10[%c9, %c1_176, %c0_177], %143 {strides = array<i32>} : memref<10x18x128xbf16, #tpu.memory_space<vmem>>, vector<1x16x128xbf16>,
    } else {
    }
    %c0_102 = arith.constant 0 : index
    %c0_103 = arith.constant 0 : index
    %c0_104 = arith.constant 0 : index
    %92 = vector.load %arg10[%c0_102, %c0_103, %c0_104] : memref<10x18x128xbf16, #tpu.memory_space<vmem>>, vector<8x16x128xbf16>
    %93 = vector.shape_cast %92 : vector<8x16x128xbf16> to vector<128x128xbf16>
    %c0_105 = arith.constant 0 : index
    %c0_106 = arith.constant 0 : index
    %94 = vector.load %arg11[%c0_105, %c0_106] : memref<160x384xbf16, #tpu.memory_space<vmem>>, vector<128x128xbf16>
    tpu.vector_store %arg11[%c0_105, %c0_106], %93 {strides = array<i32>} : memref<160x384xbf16, #tpu.memory_space<vmem>>, vector<128x128xbf16>,
    %c0_107 = arith.constant 0 : index
    %c1_108 = arith.constant 1 : index
    %c0_109 = arith.constant 0 : index
    %95 = vector.load %arg10[%c0_107, %c1_108, %c0_109] : memref<10x18x128xbf16, #tpu.memory_space<vmem>>, vector<8x16x128xbf16>
    %96 = vector.shape_cast %95 : vector<8x16x128xbf16> to vector<128x128xbf16>
    %c0_110 = arith.constant 0 : index
    %c128_111 = arith.constant 128 : index
    %97 = vector.load %arg11[%c0_110, %c128_111] : memref<160x384xbf16, #tpu.memory_space<vmem>>, vector<128x128xbf16>
    tpu.vector_store %arg11[%c0_110, %c128_111], %96 {strides = array<i32>} : memref<160x384xbf16, #tpu.memory_space<vmem>>, vector<128x128xbf16>,
    %c0_112 = arith.constant 0 : index
    %c2_113 = arith.constant 2 : index
    %c0_114 = arith.constant 0 : index
    %98 = vector.load %arg10[%c0_112, %c2_113, %c0_114] : memref<10x18x128xbf16, #tpu.memory_space<vmem>>, vector<8x16x128xbf16>
    %99 = vector.shape_cast %98 : vector<8x16x128xbf16> to vector<128x128xbf16>
    %c0_115 = arith.constant 0 : index
    %c256_116 = arith.constant 256 : index
    %100 = vector.load %arg11[%c0_115, %c256_116] : memref<160x384xbf16, #tpu.memory_space<vmem>>, vector<128x128xbf16>
    tpu.vector_store %arg11[%c0_115, %c256_116], %99 {strides = array<i32>} : memref<160x384xbf16, #tpu.memory_space<vmem>>, vector<128x128xbf16>,
    %c0_117 = arith.constant 0 : index
    %c0_118 = arith.constant 0 : index
    %101 = vector.load %arg11[%c0_117, %c0_118] : memref<160x384xbf16, #tpu.memory_space<vmem>>, vector<128x384xbf16>
    %c0_119 = arith.constant 0 : index
    %c0_120 = arith.constant 0 : index
    %c0_121 = arith.constant 0 : index
    %102 = vector.load %arg6[%c0_119, %c0_120, %c0_121] : memref<3x384x128xbf16, #tpu.memory_space<vmem>>, vector<1x384x128xbf16>
    %103 = vector.shape_cast %102 : vector<1x384x128xbf16> to vector<384x128xbf16>
    %cst_122 = arith.constant dense<0.000000e+00> : vector<128x128xf32>
    %104 = tpu.matmul %101, %103, %cst_122 {dimension_numbers = #tpu.dot_dimension_numbers<[1], [0], [0], [1], [0, 0, 1, 1], [], []>} : vector<128x384xbf16>, vector<384x128xbf16>, vector<128x128xf32> -> vector<128x128xf32>
    %c1_123 = arith.constant 1 : index
    %c0_124 = arith.constant 0 : index
    %c0_125 = arith.constant 0 : index
    %105 = vector.load %arg10[%c1_123, %c0_124, %c0_125] : memref<10x18x128xbf16, #tpu.memory_space<vmem>>, vector<8x16x128xbf16>
    %106 = vector.shape_cast %105 : vector<8x16x128xbf16> to vector<128x128xbf16>
    %c0_126 = arith.constant 0 : index
    %c0_127 = arith.constant 0 : index
    %107 = vector.load %arg11[%c0_126, %c0_127] : memref<160x384xbf16, #tpu.memory_space<vmem>>, vector<128x128xbf16>
    tpu.vector_store %arg11[%c0_126, %c0_127], %106 {strides = array<i32>} : memref<160x384xbf16, #tpu.memory_space<vmem>>, vector<128x128xbf16>,
    %c1_128 = arith.constant 1 : index
    %c1_129 = arith.constant 1 : index
    %c0_130 = arith.constant 0 : index
    %108 = vector.load %arg10[%c1_128, %c1_129, %c0_130] : memref<10x18x128xbf16, #tpu.memory_space<vmem>>, vector<8x16x128xbf16>
    %109 = vector.shape_cast %108 : vector<8x16x128xbf16> to vector<128x128xbf16>
    %c0_131 = arith.constant 0 : index
    %c128_132 = arith.constant 128 : index
    %110 = vector.load %arg11[%c0_131, %c128_132] : memref<160x384xbf16, #tpu.memory_space<vmem>>, vector<128x128xbf16>
    tpu.vector_store %arg11[%c0_131, %c128_132], %109 {strides = array<i32>} : memref<160x384xbf16, #tpu.memory_space<vmem>>, vector<128x128xbf16>,
    %c1_133 = arith.constant 1 : index
    %c2_134 = arith.constant 2 : index
    %c0_135 = arith.constant 0 : index
    %111 = vector.load %arg10[%c1_133, %c2_134, %c0_135] : memref<10x18x128xbf16, #tpu.memory_space<vmem>>, vector<8x16x128xbf16>
    %112 = vector.shape_cast %111 : vector<8x16x128xbf16> to vector<128x128xbf16>
    %c0_136 = arith.constant 0 : index
    %c256_137 = arith.constant 256 : index
    %113 = vector.load %arg11[%c0_136, %c256_137] : memref<160x384xbf16, #tpu.memory_space<vmem>>, vector<128x128xbf16>
    tpu.vector_store %arg11[%c0_136, %c256_137], %112 {strides = array<i32>} : memref<160x384xbf16, #tpu.memory_space<vmem>>, vector<128x128xbf16>,
    %c0_138 = arith.constant 0 : index
    %c0_139 = arith.constant 0 : index
    %114 = vector.load %arg11[%c0_138, %c0_139] : memref<160x384xbf16, #tpu.memory_space<vmem>>, vector<128x384xbf16>
    %c1_140 = arith.constant 1 : index
    %c0_141 = arith.constant 0 : index
    %c0_142 = arith.constant 0 : index
    %115 = vector.load %arg6[%c1_140, %c0_141, %c0_142] : memref<3x384x128xbf16, #tpu.memory_space<vmem>>, vector<1x384x128xbf16>
    %116 = vector.shape_cast %115 : vector<1x384x128xbf16> to vector<384x128xbf16>
    %cst_143 = arith.constant dense<0.000000e+00> : vector<128x128xf32>
    %117 = tpu.matmul %114, %116, %cst_143 {dimension_numbers = #tpu.dot_dimension_numbers<[1], [0], [0], [1], [0, 0, 1, 1], [], []>} : vector<128x384xbf16>, vector<384x128xbf16>, vector<128x128xf32> -> vector<128x128xf32>
    %118 = arith.addf %104, %117 : vector<128x128xf32>
    %c2_144 = arith.constant 2 : index
    %c0_145 = arith.constant 0 : index
    %c0_146 = arith.constant 0 : index
    %119 = vector.load %arg10[%c2_144, %c0_145, %c0_146] : memref<10x18x128xbf16, #tpu.memory_space<vmem>>, vector<8x16x128xbf16>
    %120 = vector.shape_cast %119 : vector<8x16x128xbf16> to vector<128x128xbf16>
    %c0_147 = arith.constant 0 : index
    %c0_148 = arith.constant 0 : index
    %121 = vector.load %arg11[%c0_147, %c0_148] : memref<160x384xbf16, #tpu.memory_space<vmem>>, vector<128x128xbf16>
    tpu.vector_store %arg11[%c0_147, %c0_148], %120 {strides = array<i32>} : memref<160x384xbf16, #tpu.memory_space<vmem>>, vector<128x128xbf16>,
    %c2_149 = arith.constant 2 : index
    %c1_150 = arith.constant 1 : index
    %c0_151 = arith.constant 0 : index
    %122 = vector.load %arg10[%c2_149, %c1_150, %c0_151] : memref<10x18x128xbf16, #tpu.memory_space<vmem>>, vector<8x16x128xbf16>
    %123 = vector.shape_cast %122 : vector<8x16x128xbf16> to vector<128x128xbf16>
    %c0_152 = arith.constant 0 : index
    %c128_153 = arith.constant 128 : index
    %124 = vector.load %arg11[%c0_152, %c128_153] : memref<160x384xbf16, #tpu.memory_space<vmem>>, vector<128x128xbf16>
    tpu.vector_store %arg11[%c0_152, %c128_153], %123 {strides = array<i32>} : memref<160x384xbf16, #tpu.memory_space<vmem>>, vector<128x128xbf16>,
    %c2_154 = arith.constant 2 : index
    %c2_155 = arith.constant 2 : index
    %c0_156 = arith.constant 0 : index
    %125 = vector.load %arg10[%c2_154, %c2_155, %c0_156] : memref<10x18x128xbf16, #tpu.memory_space<vmem>>, vector<8x16x128xbf16>
    %126 = vector.shape_cast %125 : vector<8x16x128xbf16> to vector<128x128xbf16>
    %c0_157 = arith.constant 0 : index
    %c256_158 = arith.constant 256 : index
    %127 = vector.load %arg11[%c0_157, %c256_158] : memref<160x384xbf16, #tpu.memory_space<vmem>>, vector<128x128xbf16>
    tpu.vector_store %arg11[%c0_157, %c256_158], %126 {strides = array<i32>} : memref<160x384xbf16, #tpu.memory_space<vmem>>, vector<128x128xbf16>,
    %c0_159 = arith.constant 0 : index
    %c0_160 = arith.constant 0 : index
    %128 = vector.load %arg11[%c0_159, %c0_160] : memref<160x384xbf16, #tpu.memory_space<vmem>>, vector<128x384xbf16>
    %c2_161 = arith.constant 2 : index
    %c0_162 = arith.constant 0 : index
    %c0_163 = arith.constant 0 : index
    %129 = vector.load %arg6[%c2_161, %c0_162, %c0_163] : memref<3x384x128xbf16, #tpu.memory_space<vmem>>, vector<1x384x128xbf16>
    %130 = vector.shape_cast %129 : vector<1x384x128xbf16> to vector<384x128xbf16>
    %cst_164 = arith.constant dense<0.000000e+00> : vector<128x128xf32>
    %131 = tpu.matmul %128, %130, %cst_164 {dimension_numbers = #tpu.dot_dimension_numbers<[1], [0], [0], [1], [0, 0, 1, 1], [], []>} : vector<128x384xbf16>, vector<384x128xbf16>, vector<128x128xf32> -> vector<128x128xf32>
    %132 = arith.addf %118, %131 : vector<128x128xf32>
    %c0_165 = arith.constant 0 : index
    %c0_166 = arith.constant 0 : index
    %133 = vector.load %arg7[%c0_165, %c0_166] : memref<1x128xf32, #tpu.memory_space<vmem>>, vector<1x128xf32>
    %134 = vector.broadcast %133 : vector<1x128xf32> to vector<128x128xf32>
    %135 = arith.addf %132, %134 : vector<128x128xf32>
    %136 = vector.shape_cast %135 : vector<128x128xf32> to vector<8x16x128xf32>
    %c0_167 = arith.constant 0 : index
    %c0_168 = arith.constant 0 : index
    %c0_169 = arith.constant 0 : index
    %c0_170 = arith.constant 0 : index
    %137 = vector.load %arg2[%c0_167, %c0_168, %c0_169, %c0_170] : memref<1x8x16x128xf32, #tpu.memory_space<vmem>>, vector<1x8x16x128xf32>
    %138 = vector.shape_cast %137 : vector<1x8x16x128xf32> to vector<8x16x128xf32>
    %139 = arith.addf %136, %138 : vector<8x16x128xf32>
    %c0_171 = arith.constant 0 : index
    %c0_172 = arith.constant 0 : index
    %c0_173 = arith.constant 0 : index
    %c0_174 = arith.constant 0 : index
    %140 = vector.load %arg8[%c0_171, %c0_172, %c0_173, %c0_174] : memref<1x8x16x128xf32, #tpu.memory_space<vmem>>, vector<1x8x16x128xf32>
    %141 = vector.shape_cast %140 : vector<1x8x16x128xf32> to vector<8x16x128xf32>
    %142 = vector.shape_cast %139 : vector<8x16x128xf32> to vector<1x8x16x128xf32>
    tpu.vector_store %arg8[%c0_171, %c0_172, %c0_173, %c0_174], %142 {strides = array<i32>} : memref<1x8x16x128xf32, #tpu.memory_space<vmem>>, vector<1x8x16x128xf32>,
    return
  }
  func.func @transform_0(%arg0: i32, %arg1: i32) -> (i32, i32, i32, i32) {
    %c0_i32 = arith.constant 0 : i32
    %c0_i32_0 = arith.constant 0 : i32
    %c0_i32_1 = arith.constant 0 : i32
    return %arg0, %arg1, %c0_i32, %c0_i32_0 : i32, i32, i32, i32
  }
  func.func @transform_2(%arg0: i32, %arg1: i32) -> (i32, i32, i32) {
    %c0_i32 = arith.constant 0 : i32
    %c0_i32_0 = arith.constant 0 : i32
    %c0_i32_1 = arith.constant 0 : i32
    %c0_i32_2 = arith.constant 0 : i32
    return %c0_i32, %c0_i32_0, %c0_i32_1 : i32, i32, i32
  }
  func.func @transform_3(%arg0: i32, %arg1: i32) -> (i32, i32) {
    %c0_i32 = arith.constant 0 : i32
    %c0_i32_0 = arith.constant 0 : i32
    %c0_i32_1 = arith.constant 0 : i32
    return %c0_i32, %c0_i32_0 : i32, i32
  }
  func.func @transform_4(%arg0: i32, %arg1: i32) -> (i32, i32, i32) {
    %c0_i32 = arith.constant 0 : i32
    %c0_i32_0 = arith.constant 0 : i32
    %c0_i32_1 = arith.constant 0 : i32
    %c0_i32_2 = arith.constant 0 : i32
    return %c0_i32, %c0_i32_0, %c0_i32_1 : i32, i32, i32
  }
  func.func @transform_5(%arg0: i32, %arg1: i32) -> (i32, i32) {
    %c0_i32 = arith.constant 0 : i32
    %c0_i32_0 = arith.constant 0 : i32
    %c0_i32_1 = arith.constant 0 : i32
    return %c0_i32, %c0_i32_0 : i32, i32
  }
  func.func @transform_6(%arg0: i32, %arg1: i32) -> (i32, i32, i32, i32) {
    %c0_i32 = arith.constant 0 : i32
    %c0_i32_0 = arith.constant 0 : i32
    %c0_i32_1 = arith.constant 0 : i32
    return %arg0, %arg1, %c0_i32, %c0_i32_0 : i32, i32, i32, i32
  }
}

</mosaic_0001>

<bundles_post_ra>
// kernel: tpu_custom_call.1
= control target key start
LH: loop header
LB: loop body
LE: loop exit
PB: predicated region body
PF: predicated region fallthrough
CT: control target
= control target key end

     0   :  { %s12023_s0 = inlined_call_operand.hbm [shape: f32[2,16,16,128], index: 0, kind: input, shape index: {}]   ;;  %s12024_s1 = inlined_call_operand.hbm [shape: f32[32,16,128], index: 1, kind: input, shape index: {}]   ;;  %s12025_s2 = inlined_call_operand.hbm [shape: bf16[3,384,128], index: 2, kind: input, shape index: {}]   ;;  %s12026_s3 = inlined_call_operand.vmem [shape: f32[1,128], index: 3, kind: input, shape index: {}]   ;;  %s12027_s4 = inlined_call_operand.hbm [shape: bf16[3,384,128], index: 4, kind: input, shape index: {}]   ;;  %s12028_s5 = inlined_call_operand.vmem [shape: f32[1,128], index: 5, kind: input, shape index: {}]   ;;  %s12029_s6 = inlined_call_operand.hbm [shape: f32[2,16,16,128], index: 6, kind: output, shape index: {}]  }
   0x1   :  { %12043 = sst [smem:[#allocation31_spill]] %s12025_s2 }
   0x2   :  { %12044 = sst [smem:[#allocation32_spill]] %s12026_s3 }
   0x3   :  { %12045 = sst [smem:[#allocation33_spill]] %s12027_s4 }
   0x4   :  { %12046 = sst [smem:[#allocation34_spill]] %s12028_s5 }
   0x5   :  { %12047 = sst [smem:[#allocation35_spill]] %s12029_s6 }
   0x6   :  { %11 = vsyncpa [#allocation8], 0 }
   0x7   :  { %13 = vsyncpa [#allocation8 + $0x1], 0 }
   0x8   :  { %14 = vsyncpa [#allocation11], 0 }
   0x9   :  { %15 = vsyncpa [#allocation9], 0 }
   0xa   :  { %17 = vsyncpa [#allocation9 + $0x1], 0  ;;  %s9822_s21 = smov 0   ;;  %s9824_s22 = smov 0  }
   0xb   :  { %s9826_s23 = smov 0   ;;  %s9828_s24 = smov 0  }
   0xc   :  { %s9830_s25 = smov 0   ;;  %s9832_s26 = smov 0  }
   0xd   :  { %s9834_s27 = smov 0   ;;  %s9836_s28 = smov 0  }
   0xe LB: > { %12048 = sst [smem:[#allocation25_spill]] %s9741_s21  ;;  %s7924_s29 = sadd.s32 4294967295, %s9769_s28   ;;  %s9769_s28 = sphi %s9836_s28, %s23_s28   ;;  %s9765_s27 = sphi %s9834_s27, %s12129_s27   ;;  %s9761_s26 = sphi %s9832_s26, %s12128_s26   ;;  %s9757_s25 = sphi %s9830_s25, %s12127_s25   ;;  %s9753_s24 = sphi %s9828_s24, %s12126_s24   ;;  %s9749_s23 = sphi %s9826_s23, %s12125_s23   ;;  %s9745_s22 = sphi %s9824_s22, %s12124_s22   ;;  %s9741_s21 = sphi %s9822_s21, %s12123_s21  }
   0xf   : > { %s7925_s30 = sadd.s32 4294967294, %s9769_s28   ;;  %p57_p0 = scmp.ne.s32.totalorder %s9745_s22, %s9741_s21 }
  0x10   : > { %p9866_p1 = scmp.eq.s32.totalorder %s7924_s29, 0  ;;  %p9870_p2 = scmp.eq.s32.totalorder %s7924_s29, 3 }
  0x11   : > { %p173_p3 = scmp.eq.s32.totalorder %s7925_s30, 3  ;;  %p7926_p5 = scmp.ge.s32.totalorder %s9769_s28, 1 }
  0x12   : > { %s12049_s7 = scalar_select %p9866_p1, 1, 0 }
  0x13   : > { %p9876_p4 = por %p9866_p1, %p57_p0  ;;  %p9881_p6 = por %p173_p3, %p57_p0 }
  0x14   : > { %p180_p7 = scmp.lt.s32.totalorder %s9769_s28, 5  ;;  %s9771_s12 = smov [#allocation10]  }
  0x15   : > { %s12051_s9 = scalar_select %p9876_p4, 1, 0 }
  0x16   : > { %s12052_s10 = scalar_select %p9881_p6, 1, 0 }
  0x17   : > { %p9886_p8 = pnand %p7926_p5, %p180_p7  ;;  %s192_s13 = sshll.u32 %s9771_s12, 4  ;;  %s193_s13 = int_to_ptr.vmem [resolvable:$true] %s192_s13 }
  0x18   : > { %12053 = sst [smem:[#allocation26_spill]] %s12052_s10  ;;  %s9772_s15 = smov [#allocation12]  }
  0x19   : > { %p9160_p9 = pneg %p9886_p8  ;;  %s208_s16 = sshll.u32 %s9772_s15, 4  ;;  %s209_s16 = int_to_ptr.vmem [resolvable:$true] %s208_s16 }
  0x1a   : > { %s9543_s17 = scalar_lea.vmem %s193_s13, 9216  ;;  %p9551_p3 = scmp.lt.s32.totalorder %s193_s13, %s193_s13 }
  0x1b   : > { %p9894_p10 = pnand %p9160_p9, %p9866_p1  ;;  %p9544_p12 = scmp.ne.s32.totalorder %s193_s13, %s9543_s17 }
  0x1c   : > { %p9552_p5 = scmp.lt.s32.totalorder %s9543_s17, %s9543_s17 }
  0x1d   : > { %p9534_p11 = pneg %p9894_p10 }
  0x1e   : > { %p9553_p7 = por %p9552_p5, %p9551_p3 }
  0x1f   : > { %p9546_p13 = pnand %p9544_p12, %p9534_p11 }
  0x21   : > { %p9547_p0 = pneg %p9546_p13 }
  0x23   : > { %p9554_p9 = pnand %p9553_p7, %p9547_p0 }
  0x25   : > { %9557 = shalt.err (!%p9554_p9)
}
  0x26   : > { %s9773_s18 = smov 64   ;;  %s9774_s19 = smov 4  }
  0x27   : > { %s12056_s2 = sld [smem:[#allocation31_spill]]  ;;  %s9569_s30 = scalar_lea.vmem %s209_s16, 9216 }
  0x28   : > { %p9570_p6 = scmp.ne.s32.totalorder %s209_s16, %s9569_s30  ;;  %p9577_p1 = scmp.lt.s32.totalorder %s209_s16, %s209_s16 }
  0x29   : > { %p9578_p4 = scmp.lt.s32.totalorder %s9569_s30, %s9569_s30 }
  0x2a   : > { %p9572_p12 = pnand %p9570_p6, %p9534_p11 }
  0x2b   : > { %p9579_p3 = por %p9578_p4, %p9577_p1 }
  0x2c   : > { %p9573_p13 = pneg %p9572_p12 }
  0x2d   : > { %9163 = dma.hbm_to_vmem [thread:$0]  (!%p9894_p10), %s12056_s2, 9216, %s193_s13, [#allocation11], %s9773_s18, %s9773_s18, %s9774_s19  }
  0x2e   : > { %p9580_p0 = pnand %p9579_p3, %p9573_p13 }
  0x30   : > { %9583 = shalt.err (!%p9580_p0)
}
  0x31   : > { %s12057_s4 = sld [smem:[#allocation33_spill]]  ;;  %s32_s13 = sadd.s32 1, %s9761_s26 }
  0x32   : > { %s35_s17 = sadd.s32 1, %s9765_s27  ;;  %p33_p1 = scmp.ge.s32.totalorder %s32_s13, 2 }
  0x33   : > { %s44_s14 = sadd.s32 1, %s9749_s23  ;;  %p51_p4 = scmp.ne.s32.totalorder %s9749_s23, %s9745_s22 }
  0x34   : > { %p52_p6 = scmp.eq.s32.totalorder %s9769_s28, 0  ;;  %s12131_s13 = smov (%p33_p1, %s32_s13), 0 }
  0x35   : > { %12058 = sst [smem:[#allocation27_spill]] %s12131_s13  ;;  %s12133_s17 = smov (!%p33_p1, %s35_s17), %s9765_s27 }
  0x36   : > { %s40_s20 = ssub.s32 %s9761_s26, %s12131_s13  ;;  %p9927_p11 = por %p52_p6, %p51_p4 }
  0x37   : > { %9166 = dma.hbm_to_vmem [thread:$0]  (!%p9894_p10), %s12057_s4, 9216, %s209_s16, [#allocation11], %s9773_s18, %s9773_s18, %s9774_s19  }
  0x38   : > { %p37_p10 = scmp.ge.s32.totalorder %s12133_s17, 2  ;;  %p9933_p5 = por %p9870_p2, %p51_p4 }
  0x39   : > { %p9177_p7 = scmp.lt.s32.totalorder %s9769_s28, 4  ;;  %s225_s18 = sand.u32 1, %s9749_s23  }
  0x3a   : > { %s12060_s16 = scalar_select %p9933_p5, 1, 0 }
  0x3b   : > { %s12135_s17 = smov (%p37_p10, %s12133_s17), 0  ;;  %s7930_s19 = sshll.u32 %s225_s18, 7 }
  0x3c   : > { %12061 = sst [smem:[#allocation28_spill]] %s12060_s16  ;;  %s39_s30 = ssub.s32 %s9765_s27, %s12135_s17 }
  0x3d   : > { %s41_s12 = sor.u32 %s40_s20, %s39_s30  ;;  %s8371_s15 = sshll.u32 %s9761_s26, 4 }
  0x3e   : > { %p42_p9 = scmp.eq.s32.totalorder %s41_s12, 0  ;;  %s7933_s2 = sshll.u32 %s9765_s27, 5 }
  0x3f   : > { %s236_s4 = sadd.s32 %s8371_s15, %s7933_s2  ;;  %s229_s13 = scalar_lea.vmem [#allocation7], %s7930_s19 }
  0x40   : > { %s239_s8 = sshll.u32 %s229_s13, 4  ;;  %s7934_s21 = sshll.u32 %s236_s4, 7  ;;  %s240_s8 = int_to_ptr.vmem [resolvable:$true] %s239_s8 }
  0x41   : > { %s9946_s10 = scalar_select %p42_p9, %s9749_s23, %s44_s14  }
  0x42   : > { %s238_s5 = scalar_lea.hbm %s12023_s0, %s7934_s21  ;;  %p9955_p2 = pnand %p9177_p7, %p9927_p11 }
  0x43   : > { %s226_s20 = scalar_lea.sflag [#allocation8], %s225_s18  ;;  %s9597_s2 = scalar_lea.vmem %s240_s8, 2048 }
  0x44   : > { %p9586_p12 = pneg %p9955_p2  ;;  %p9598_p13 = scmp.ne.s32.totalorder %s240_s8, %s9597_s2 }
  0x45   : > { %s9775_s4 = smov [#allocation7]  }
  0x46   : > { %p9600_p3 = pnand %p9598_p13, %p9586_p12  ;;  %s9602_s13 = sshll.u32 %s9775_s4, 4  ;;  %s9603_s13 = int_to_ptr.vmem [resolvable:$false] %s9602_s13 }
  0x47   : > { %s9604_s14 = scalar_lea.vmem %s9603_s13, 4096  ;;  %p9605_p1 = scmp.lt.s32.totalorder %s240_s8, %s9603_s13 }
  0x48   : > { %p9601_p0 = pneg %p9600_p3  ;;  %p9606_p4 = scmp.lt.s32.totalorder %s9604_s14, %s9597_s2 }
  0x4a   : > { %p9607_p6 = por %p9606_p4, %p9605_p1 }
  0x4c   : > { %p9608_p10 = pnand %p9607_p6, %p9601_p0 }
  0x4e   : > { %9611 = shalt.err (!%p9608_p10)
}
  0x4f   : > { %s9776_s6 = smov 128   ;;  %s9777_s21 = smov 8  }
  0x50   : > { %9170 = dma.hbm_to_vmem [thread:$0]  (!%p9955_p2), %s238_s5, 2048, %s240_s8, %s226_s20, %s9776_s6, %s9776_s6, %s9777_s21  }
  0x51   : > { %251 = sbr.rel (%p9886_p8) target bundleno = 1421 (0x58d), region = 40 }
  0x56   : > { %s9966_s29 = sand.u32 1, %s9745_s22   ;;  %p12063_p11 = scmp.ne.s32.totalorder %s12051_s9, 0 }
  0x57   : > { %s7936_s16 = sshll.u32 %s9966_s29, 7  ;;  %s254_s18 = scalar_lea.sflag [#allocation8], %s9966_s29 }
  0x58   : > { %s9972_s19 = scalar_lea.vmem [#allocation7], %s7936_s16 }
  0x59   : > { %9724 = dma.done.wait (%p12063_p11), %s254_s18, 2048  }
  0x5a   : > { %9726 = vsyncadd (%p12063_p11), %s254_s18, 4294965248  ;;  %p12064_p7 = scmp.ne.s32.totalorder %s12049_s7, 0 }
  0x5c   : > { %9728 = dma.done.wait (%p12064_p7), [#allocation11], 18432  }
  0x5d   : > { %9730 = vsyncadd (%p12064_p7), [#allocation11], 4294948864  ;;  %s7940_s3 = sshll.u32 %s9757_s25, 4  ;;  %s7941_s5 = sshll.u32 %s9753_s24, 3  ;;  %vm339_vm0 = vcmask 1040384   ;;  %v12065_v0 = vmov 0 }
  0x5e   : > { %s9985_s11 = sadd.s32 %s7941_s5, %s7940_s3  ;;  %p9180_p9 = scmp.gt.s32.totalorder %s9753_s24, 0  ;;  %vm340_vm1 = vsmask.f32 256 }
  0x5f   : > { %s7943_s9 = sadd.s32 4294967294, %s9985_s11  ;;  %s9778_s12 = smov [#allocation5]   ;;  %vm9996_vm2 = vmand %vm339_vm0, %vm340_vm1 }
  0x60   : > { %s8372_s30 = sshll.u32 %s7943_s9, 8  ;;  %s313_s15 = sshll.u32 %s9778_s12, 4  ;;  %v12066_v0 = vsel %vm9996_vm2, 4294967295, %v12065_v0  ;;  %s9992_s15 = int_to_ptr.vmem [resolvable:$true] %s313_s15 }
  0x61   : > { %s305_s20 = scalar_lea.hbm %s12024_s1, %s8372_s30  ;;  %12067 = vst [vmem:[#allocation29_spill] sm:$0xff] %v12066_v0  ;;  %s9616_s14 = scalar_lea.hbm %s12024_s1, 8192 }
  0x62   : > { %s9612_s2 = scalar_lea.hbm %s305_s20, 512  ;;  %p9617_p3 = scmp.lt.s32.totalorder %s305_s20, %s12024_s1 }
  0x63   : > { %p9613_p2 = scmp.ne.s32.totalorder %s305_s20, %s9612_s2  ;;  %p9618_p0 = scmp.lt.s32.totalorder %s9616_s14, %s9612_s2 }
  0x65   : > { %p9614_p12 = pnand %p9613_p2, %p9180_p9  ;;  %p9619_p1 = por %p9618_p0, %p9617_p3 }
  0x67   : > { %p9615_p13 = pneg %p9614_p12 }
  0x69   : > { %p9620_p4 = pnand %p9619_p1, %p9615_p13 }
  0x6b   : > { %9623 = shalt.err (!%p9620_p4)  }
  0x6c   : > { %s9624_s5 = scalar_lea.vmem %s9992_s15, 512  ;;  %s9630_s9 = scalar_lea.vmem %s9992_s15, 1024 }
  0x6d   : > { %p9625_p6 = scmp.ne.s32.totalorder %s9992_s15, %s9624_s5  ;;  %p9631_p7 = scmp.lt.s32.totalorder %s9992_s15, %s9992_s15 }
  0x6e   : > { %p9632_p2 = scmp.lt.s32.totalorder %s9630_s9, %s9624_s5 }
  0x6f   : > { %p9626_p10 = pnand %p9625_p6, %p9180_p9 }
  0x70   : > { %p9633_p12 = por %p9632_p2, %p9631_p7 }
  0x71   : > { %p9627_p11 = pneg %p9626_p10 }
  0x73   : > { %p9634_p3 = pnand %p9633_p12, %p9627_p11 }
  0x75   : > { %9637 = shalt.err (!%p9634_p3)  }
  0x76   : > { %9155 = dma.hbm_to_vmem [thread:$0]  (%p9180_p9), %s305_s20, 512, %s9992_s15, [#allocation6]  ;;  %vm378_vm3 = vsmask.f32 7938  ;;  %v342_v1 = vld [vmem:[#allocation2] sm:$0x1] }
  0x77   : > { %s7949_s30 = sshll.u32 %s9985_s11, 8  ;;  %s10026_s12 = sadd.s32 1, %s9753_s24  ;;  %v345_v2 = vld [vmem:[#allocation2 + $0xc] sm:$0x1]  ;;  %v343_v3 = vsel %vm9996_vm2, 0, %v342_v1 }
  0x78   : > { %p9181_p0 = scmp.lt.s32.totalorder %s10026_s12, 2  ;;  %v346_v4 = vsel %vm9996_vm2, 0, %v345_v2  ;;  %v348_v5 = vld [vmem:[#allocation2 + $0x18] sm:$0x1]  ;;  %s7858_s20 = scalar_lea.hbm %s12024_s1, %s7949_s30  ;;  %344 = vst [vmem:[#allocation2] sm:$0x1] %v343_v3 }
  0x79   : > { %347 = vst [vmem:[#allocation2 + $0xc] sm:$0x1] %v346_v4  ;;  %v349_v6 = vsel %vm9996_vm2, 0, %v348_v5  ;;  %v351_v7 = vld [vmem:[#allocation2 + $0x24] sm:$0x1]  ;;  %s10039_s11 = scalar_lea.hbm %s7858_s20, 2048 }
  0x7a   : > { %v354_v8 = vld [vmem:[#allocation2 + $0x30] sm:$0x1]  ;;  %s9779_s2 = smov [#allocation5 + $0x20]   ;;  %350 = vst [vmem:[#allocation2 + $0x18] sm:$0x1] %v349_v6  ;;  %v352_v9 = vsel %vm9996_vm2, 0, %v351_v7  ;;  %p9643_p6 = scmp.lt.s32.totalorder %s10039_s11, %s12024_s1 }
  0x7b   : > { %s335_s4 = sshll.u32 %s9779_s2, 4  ;;  %v355_v10 = vsel %vm9996_vm2, 0, %v354_v8  ;;  %v357_v11 = vld [vmem:[#allocation2 + $0x3c] sm:$0x1]  ;;  %353 = vst [vmem:[#allocation2 + $0x24] sm:$0x1] %v352_v9  ;;  %s336_s4 = int_to_ptr.vmem [resolvable:$true] %s335_s4 }
  0x7c   : > { %356 = vst [vmem:[#allocation2 + $0x30] sm:$0x1] %v355_v10  ;;  %v358_v12 = vsel %vm9996_vm2, 0, %v357_v11  ;;  %v360_v13 = vld [vmem:[#allocation2 + $0x48] sm:$0x1]  ;;  %s9664_s13 = scalar_lea.hbm %s7858_s20, 2560 }
  0x7d   : > { %v363_v14 = vld [vmem:[#allocation2 + $0x54] sm:$0x1]  ;;  %p9639_p9 = scmp.ne.s32.totalorder %s10039_s11, %s9664_s13  ;;  %p9644_p10 = scmp.lt.s32.totalorder %s9616_s14, %s9664_s13 }
  0x7f   : > { %p9640_p1 = pnand %p9639_p9, %p9181_p0  ;;  %p9645_p11 = por %p9644_p10, %p9643_p6 }
  0x81   : > { %p9641_p4 = pneg %p9640_p1 }
  0x83   : > { %p9646_p7 = pnand %p9645_p11, %p9641_p4 }
  0x85   : > { %9649 = shalt.err (!%p9646_p7)  }
  0x86   : > { %s9650_s5 = scalar_lea.vmem %s336_s4, 512  ;;  %p9657_p9 = scmp.lt.s32.totalorder %s336_s4, %s9992_s15 }
  0x87   : > { %p9651_p2 = scmp.ne.s32.totalorder %s336_s4, %s9650_s5  ;;  %p9658_p1 = scmp.lt.s32.totalorder %s9630_s9, %s9650_s5 }
  0x89   : > { %p9652_p12 = pnand %p9651_p2, %p9181_p0  ;;  %p9659_p13 = por %p9658_p1, %p9657_p9 }
  0x8b   : > { %p9653_p3 = pneg %p9652_p12 }
  0x8d   : > { %p9660_p8 = pnand %p9659_p13, %p9653_p3 }
  0x8f   : > { %9663 = shalt.err (!%p9660_p8)  }
  0x90   : > { %9157 = dma.hbm_to_vmem [thread:$0]  (%p9181_p0), %s10039_s11, 512, %s336_s4, [#allocation6 + $0x1]  ;;  %359 = vst [vmem:[#allocation2 + $0x3c] sm:$0x1] %v358_v12  ;;  %v361_v15 = vsel %vm9996_vm2, 0, %v360_v13  ;;  %v364_v16 = vsel %vm9996_vm2, 0, %v363_v14  ;;  %vm10072_vm4 = vmand %vm339_vm0, %vm378_vm3 }
  0x91   : > { %v366_v17 = vld [vmem:[#allocation2 + $0x60] sm:$0x1]  ;;  %362 = vst [vmem:[#allocation2 + $0x48] sm:$0x1] %v361_v15  ;;  %365 = vst [vmem:[#allocation2 + $0x54] sm:$0x1] %v364_v16 }
  0x92   : > { %v367_v19 = vsel %vm9996_vm2, 0, %v366_v17  ;;  %v369_v20 = vld [vmem:[#allocation2 + $0x6c] sm:$0x1]  ;;  %v372_v21 = vld [vmem:[#allocation2 + $0x78] sm:$0x1]  ;;  %s10150_s15 = scalar_lea.vmem [#allocation13], %s7936_s16 }
  0x93   : > { %368 = vst [vmem:[#allocation2 + $0x60] sm:$0x1] %v367_v19  ;;  %v370_v22 = vsel %vm9996_vm2, 0, %v369_v20  ;;  %v373_v23 = vsel %vm9996_vm2, 0, %v372_v21  ;;  %v375_v24 = vld [vmem:[#allocation2 + $0x84] sm:$0x1] }
  0x94   : > { %v380_v25 = vld [vmem:[#allocation2 + $0x8] sm:$0x1]  ;;  %371 = vst [vmem:[#allocation2 + $0x6c] sm:$0x1] %v370_v22  ;;  %374 = vst [vmem:[#allocation2 + $0x78] sm:$0x1] %v373_v23 }
  0x95   : > { %v376_v26 = vsel %vm9996_vm2, 0, %v375_v24  ;;  %v381_v27 = vsel %vm10072_vm4, 0, %v380_v25  ;;  %v383_v28 = vld [vmem:[#allocation2 + $0x14] sm:$0x1]  ;;  %v386_v29 = vld [vmem:[#allocation2 + $0x20] sm:$0x1] }
  0x96   : > { %377 = vst [vmem:[#allocation2 + $0x84] sm:$0x1] %v376_v26  ;;  %382 = vst [vmem:[#allocation2 + $0x8] sm:$0x1] %v381_v27  ;;  %v384_v30 = vsel %vm10072_vm4, 0, %v383_v28  ;;  %v387_v31 = vsel %vm10072_vm4, 0, %v386_v29 }
  0x97   : > { %v389_v32 = vld [vmem:[#allocation2 + $0x2c] sm:$0x1]  ;;  %v392_v33 = vld [vmem:[#allocation2 + $0x38] sm:$0x1]  ;;  %385 = vst [vmem:[#allocation2 + $0x14] sm:$0x1] %v384_v30 }
  0x98   : > { %388 = vst [vmem:[#allocation2 + $0x20] sm:$0x1] %v387_v31  ;;  %v390_v34 = vsel %vm10072_vm4, 0, %v389_v32  ;;  %v393_v35 = vsel %vm10072_vm4, 0, %v392_v33  ;;  %v395_v36 = vld [vmem:[#allocation2 + $0x44] sm:$0x1] }
  0x99   : > { %v398_v37 = vld [vmem:[#allocation2 + $0x50] sm:$0x1]  ;;  %391 = vst [vmem:[#allocation2 + $0x2c] sm:$0x1] %v390_v34  ;;  %394 = vst [vmem:[#allocation2 + $0x38] sm:$0x1] %v393_v35 }
  0x9a   : > { %v396_v38 = vsel %vm10072_vm4, 0, %v395_v36  ;;  %v399_v39 = vsel %vm10072_vm4, 0, %v398_v37  ;;  %v401_v40 = vld [vmem:[#allocation2 + $0x5c] sm:$0x1]  ;;  %v404_v41 = vld [vmem:[#allocation2 + $0x68] sm:$0x1] }
  0x9b   : > { %397 = vst [vmem:[#allocation2 + $0x44] sm:$0x1] %v396_v38  ;;  %400 = vst [vmem:[#allocation2 + $0x50] sm:$0x1] %v399_v39  ;;  %v402_v42 = vsel %vm10072_vm4, 0, %v401_v40  ;;  %v405_v43 = vsel %vm10072_vm4, 0, %v404_v41 }
  0x9c   : > { %v407_v44 = vld [vmem:[#allocation2 + $0x74] sm:$0x1]  ;;  %v410_v45 = vld [vmem:[#allocation2 + $0x80] sm:$0x1]  ;;  %403 = vst [vmem:[#allocation2 + $0x5c] sm:$0x1] %v402_v42 }
  0x9d   : > { %406 = vst [vmem:[#allocation2 + $0x68] sm:$0x1] %v405_v43  ;;  %v408_v46 = vsel %vm10072_vm4, 0, %v407_v44  ;;  %v411_v47 = vsel %vm10072_vm4, 0, %v410_v45  ;;  %v413_v48 = vld [vmem:[#allocation2 + $0x8c] sm:$0x1] }
  0x9e   : > { %v416_v49 = vld [vmem:[#allocation3] sm:$0x1]  ;;  %409 = vst [vmem:[#allocation2 + $0x74] sm:$0x1] %v408_v46  ;;  %412 = vst [vmem:[#allocation2 + $0x80] sm:$0x1] %v411_v47 }
  0x9f   : > { %v414_v50 = vsel %vm10072_vm4, 0, %v413_v48  ;;  %v417_v51 = vsel %vm9996_vm2, 0, %v416_v49  ;;  %v419_v52 = vld [vmem:[#allocation3 + $0xc] sm:$0x1]  ;;  %v422_v53 = vld [vmem:[#allocation3 + $0x18] sm:$0x1] }
  0xa0   : > { %415 = vst [vmem:[#allocation2 + $0x8c] sm:$0x1] %v414_v50  ;;  %418 = vst [vmem:[#allocation3] sm:$0x1] %v417_v51  ;;  %v420_v54 = vsel %vm9996_vm2, 0, %v419_v52  ;;  %v423_v55 = vsel %vm9996_vm2, 0, %v422_v53 }
  0xa1   : > { %v425_v56 = vld [vmem:[#allocation3 + $0x24] sm:$0x1]  ;;  %v428_v57 = vld [vmem:[#allocation3 + $0x30] sm:$0x1]  ;;  %421 = vst [vmem:[#allocation3 + $0xc] sm:$0x1] %v420_v54 }
  0xa2   : > { %424 = vst [vmem:[#allocation3 + $0x18] sm:$0x1] %v423_v55  ;;  %v426_v58 = vsel %vm9996_vm2, 0, %v425_v56  ;;  %v429_v59 = vsel %vm9996_vm2, 0, %v428_v57  ;;  %v431_v60 = vld [vmem:[#allocation3 + $0x3c] sm:$0x1] }
  0xa3   : > { %v434_v61 = vld [vmem:[#allocation3 + $0x48] sm:$0x1]  ;;  %427 = vst [vmem:[#allocation3 + $0x24] sm:$0x1] %v426_v58  ;;  %430 = vst [vmem:[#allocation3 + $0x30] sm:$0x1] %v429_v59 }
  0xa4   : > { %v432_v62 = vsel %vm9996_vm2, 0, %v431_v60  ;;  %v435_v63 = vsel %vm9996_vm2, 0, %v434_v61  ;;  %v437_v1 = vld [vmem:[#allocation3 + $0x54] sm:$0x1]  ;;  %v440_v2 = vld [vmem:[#allocation3 + $0x60] sm:$0x1] }
  0xa5   : > { %433 = vst [vmem:[#allocation3 + $0x3c] sm:$0x1] %v432_v62  ;;  %436 = vst [vmem:[#allocation3 + $0x48] sm:$0x1] %v435_v63  ;;  %v438_v3 = vsel %vm9996_vm2, 0, %v437_v1  ;;  %v441_v4 = vsel %vm9996_vm2, 0, %v440_v2 }
  0xa6   : > { %v443_v5 = vld [vmem:[#allocation3 + $0x6c] sm:$0x1]  ;;  %v446_v6 = vld [vmem:[#allocation3 + $0x8] sm:$0x1]  ;;  %439 = vst [vmem:[#allocation3 + $0x54] sm:$0x1] %v438_v3 }
  0xa7   : > { %442 = vst [vmem:[#allocation3 + $0x60] sm:$0x1] %v441_v4  ;;  %v444_v7 = vsel %vm9996_vm2, 0, %v443_v5  ;;  %v447_v8 = vsel %vm10072_vm4, 0, %v446_v6  ;;  %v449_v9 = vld [vmem:[#allocation3 + $0x14] sm:$0x1] }
  0xa8   : > { %v452_v10 = vld [vmem:[#allocation3 + $0x20] sm:$0x1]  ;;  %445 = vst [vmem:[#allocation3 + $0x6c] sm:$0x1] %v444_v7  ;;  %448 = vst [vmem:[#allocation3 + $0x8] sm:$0x1] %v447_v8 }
  0xa9   : > { %v450_v11 = vsel %vm10072_vm4, 0, %v449_v9  ;;  %v453_v12 = vsel %vm10072_vm4, 0, %v452_v10  ;;  %v455_v13 = vld [vmem:[#allocation3 + $0x2c] sm:$0x1]  ;;  %v458_v14 = vld [vmem:[#allocation3 + $0x38] sm:$0x1] }
  0xaa   : > { %451 = vst [vmem:[#allocation3 + $0x14] sm:$0x1] %v450_v11  ;;  %454 = vst [vmem:[#allocation3 + $0x20] sm:$0x1] %v453_v12  ;;  %v456_v15 = vsel %vm10072_vm4, 0, %v455_v13  ;;  %v459_v16 = vsel %vm10072_vm4, 0, %v458_v14 }
  0xab   : > { %v461_v17 = vld [vmem:[#allocation3 + $0x44] sm:$0x1]  ;;  %v464_v19 = vld [vmem:[#allocation3 + $0x50] sm:$0x1]  ;;  %457 = vst [vmem:[#allocation3 + $0x2c] sm:$0x1] %v456_v15 }
  0xac   : > { %460 = vst [vmem:[#allocation3 + $0x38] sm:$0x1] %v459_v16  ;;  %v462_v20 = vsel %vm10072_vm4, 0, %v461_v17  ;;  %v465_v21 = vsel %vm10072_vm4, 0, %v464_v19  ;;  %v467_v22 = vld [vmem:[#allocation3 + $0x5c] sm:$0x1] }
  0xad   : > { %v470_v23 = vld [vmem:[#allocation3 + $0x68] sm:$0x1]  ;;  %463 = vst [vmem:[#allocation3 + $0x44] sm:$0x1] %v462_v20  ;;  %466 = vst [vmem:[#allocation3 + $0x50] sm:$0x1] %v465_v21 }
  0xae   : > { %v468_v24 = vsel %vm10072_vm4, 0, %v467_v22  ;;  %v471_v25 = vsel %vm10072_vm4, 0, %v470_v23  ;;  %v473_v26 = vld [vmem:[#allocation3 + $0x74] sm:$0x1]  ;;  %p7950_p8 = scmp.ne.s32.totalorder %s9753_s24, 0 }
  0xaf   : > { %469 = vst [vmem:[#allocation3 + $0x5c] sm:$0x1] %v468_v24  ;;  %472 = vst [vmem:[#allocation3 + $0x68] sm:$0x1] %v471_v25  ;;  %v474_v27 = vsel %vm10072_vm4, 0, %v473_v26 }
  0xb0   : > { %475 = vst [vmem:[#allocation3 + $0x74] sm:$0x1] %v474_v27  ;;  %479 = sbr.rel (%p7950_p8) target bundleno = 186 (0xba), region = 72 }
  0xb5   : > { %vm480_vm5 = vcmask 1043456   ;;  %v482_v28 = vld [vmem:[#allocation2] sm:$0xf]  ;;  %v486_v29 = vld [vmem:[#allocation2 + $0x8] sm:$0x1]  ;;  %v9780_v30 = vmov 0  }
  0xb6   : > { %vm481_vm6 = vmand %vm480_vm5, %vm378_vm3  ;;  %485 = vst [vmem:[#allocation2 + $0x4] sm:$0xf] %v9780_v30  ;;  %v487_v18 = vsel %vm9996_vm2, 0, %v486_v29  ;;  %v489_v31 = vld [vmem:[#allocation2 + $0xc] sm:$0xf] }
  0xb7   : > { %492 = vst [vmem:[#allocation2 + $0x10] sm:$0xf] %v9780_v30  ;;  %v493_v32 = vld [vmem:[#allocation2 + $0x14] sm:$0x1]  ;;  %v483_v33 = vsel %vm481_vm6, 0, %v482_v28  ;;  %v490_v34 = vsel %vm481_vm6, 0, %v489_v31 }
  0xb8   : > { %488 = vst [vmem:[#allocation2 + $0x8] sm:$0x1] %v487_v18  ;;  %v494_v35 = vsel %vm9996_vm2, 0, %v493_v32  ;;  %484 = vst [vmem:[#allocation2] sm:$0xf] %v483_v33 }
  0xb9   : > { %491 = vst [vmem:[#allocation2 + $0xc] sm:$0xf] %v490_v34  ;;  %495 = vst [vmem:[#allocation2 + $0x14] sm:$0x1] %v494_v35 }
  0xba PF: > { %p7951_p13 = scmp.ne.s32.totalorder %s10026_s12, 2 }
  0xbc   : > { %499 = sbr.rel (%p7951_p13) target bundleno = 198 (0xc6), region = 76 }
  0xc1   : > { %vm501_vm7 = vcmask 1043456   ;;  %v503_v36 = vld [vmem:[#allocation2 + $0x78] sm:$0xf]  ;;  %v507_v37 = vld [vmem:[#allocation2 + $0x80] sm:$0x1]  ;;  %v9781_v38 = vmov 0  }
  0xc2   : > { %vm502_vm8 = vmand %vm501_vm7, %vm378_vm3  ;;  %506 = vst [vmem:[#allocation2 + $0x7c] sm:$0xf] %v9781_v38  ;;  %v508_v39 = vsel %vm9996_vm2, 0, %v507_v37  ;;  %v510_v40 = vld [vmem:[#allocation2 + $0x84] sm:$0xf] }
  0xc3   : > { %513 = vst [vmem:[#allocation2 + $0x88] sm:$0xf] %v9781_v38  ;;  %v514_v41 = vld [vmem:[#allocation2 + $0x8c] sm:$0x1]  ;;  %v504_v42 = vsel %vm502_vm8, 0, %v503_v36  ;;  %v511_v43 = vsel %vm502_vm8, 0, %v510_v40 }
  0xc4   : > { %509 = vst [vmem:[#allocation2 + $0x80] sm:$0x1] %v508_v39  ;;  %v515_v44 = vsel %vm9996_vm2, 0, %v514_v41  ;;  %505 = vst [vmem:[#allocation2 + $0x78] sm:$0xf] %v504_v42 }
  0xc5   : > { %512 = vst [vmem:[#allocation2 + $0x84] sm:$0xf] %v511_v43  ;;  %516 = vst [vmem:[#allocation2 + $0x8c] sm:$0x1] %v515_v44 }
  0xc6 PF: > { %v517_v45 = vld [vmem:[%s9972_s19] sm:$0xff]  ;;  %v518_v46 = vld [vmem:[%s9972_s19 + $0x8] sm:$0xff]  ;;  %v519_v49 = vld [vmem:[%s9972_s19 + $0x10] sm:$0xff]  ;;  %vm744_vm9 = vcmask 1043456   ;;  %vm581_vm10 = vsmask.f32 4368 }
  0xc7   : > { %v8373_v47 = vpack.c.bf16 %v517_v45, %v517_v45  ;;  %v8374_v48 = vpack.c.bf16 %v518_v46, %v518_v46  ;;  %v8375_v50 = vpack.c.bf16 %v519_v49, %v519_v49  ;;  %v520_v51 = vld [vmem:[%s9972_s19 + $0x18] sm:$0xff]  ;;  %v521_v59 = vld [vmem:[%s9972_s19 + $0x20] sm:$0xff]  ;;  %v522_v60 = vld [vmem:[%s9972_s19 + $0x28] sm:$0xff]  ;;  %p12074_p0 = scmp.le.s32.totalorder %s9753_s24, 0 }
  0xc8   : > { %v8376_v58 = vpack.c.bf16 %v520_v51, %v520_v51  ;;  %vm10175_vm11 = vmand %vm744_vm9, %vm378_vm3  ;;  %v746_v63 = vld [vmem:[#allocation2 + $0x18] sm:$0xf]  ;;  %v8377_v2 = vpack.c.bf16 %v521_v59, %v521_v59  ;;  %v8378_v3 = vpack.c.bf16 %v522_v60, %v522_v60  ;;  %v523_v4 = vld [vmem:[%s9972_s19 + $0x30] sm:$0xff] }
  0xc9   : > { %v584_v52 = vshrl.u32 %v8373_v47, 16  ;;  %v587_v53 = vshll.u32 %v8373_v47, 16  ;;  %v592_v54 = vshrl.u32 %v8374_v48, 16  ;;  %v595_v55 = vshll.u32 %v8374_v48, 16  ;;  %vm10182_vm12 = vmor %vm340_vm1, %vm581_vm10  ;;  %v750_v6 = vld [vmem:[#allocation2 + $0x20] sm:$0x1] }
  0xca   : > { %v601_v56 = vshrl.u32 %v8375_v50, 16  ;;  %v604_v57 = vshll.u32 %v8375_v50, 16  ;;  %v609_v8 = vshrl.u32 %v8376_v58, 16  ;;  %v612_v9 = vshll.u32 %v8376_v58, 16  ;;  %v753_v15 = vld [vmem:[#allocation2 + $0x24] sm:$0xf] }
  0xcb   : > { %v586_v61 = vrot.slane %v584_v52, 7  ;;  %v594_v1 = vrot.slane %v592_v54, 7  ;;  %v8379_v10 = vpack.c.bf16 %v523_v4, %v523_v4  ;;  %v618_v20 = vshrl.u32 %v8377_v2, 16  ;;  %v757_v24 = vld [vmem:[#allocation2 + $0x2c] sm:$0x1]  ;;  %v524_v18 = vld [vmem:[%s9972_s19 + $0x38] sm:$0xff] }
  0xcc   : > { %v603_v7 = vrot.slane %v601_v56, 7  ;;  %v611_v19 = vrot.slane %v609_v8, 7  ;;  %v621_v25 = vshll.u32 %v8377_v2, 16  ;;  %v760_v26 = vld [vmem:[#allocation2 + $0x30] sm:$0xf]  ;;  %v525_v31 = vld [vmem:[%s9972_s19 + $0x40] sm:$0xff]  ;;  %v8380_v45 = vpack.c.bf16 %v524_v18, %v524_v18 }
  0xcd   : > { %v589_v11 = vor.u32 %v587_v53, %v586_v61  ;;  %v590_v12 = vrot.slane %v586_v61, 4  ;;  %v597_v13 = vor.u32 %v595_v55, %v594_v1  ;;  %v599_v14 = vrot.slane %v594_v1, 4  ;;  %v526_v32 = vld [vmem:[%s9972_s19 + $0x48] sm:$0xff]  ;;  %v527_v37 = vld [vmem:[%s9972_s19 + $0x50] sm:$0xff]  ;;  %v528_v38 = vld [vmem:[%s9972_s19 + $0x58] sm:$0xff] }
  0xce   : > { %v606_v16 = vor.u32 %v604_v57, %v603_v7  ;;  %v607_v17 = vrot.slane %v603_v7, 4  ;;  %v614_v28 = vor.u32 %v612_v9, %v611_v19  ;;  %v616_v29 = vrot.slane %v611_v19, 4  ;;  %v764_v48 = vld [vmem:[#allocation2 + $0x38] sm:$0x1]  ;;  %v767_v49 = vld [vmem:[#allocation2 + $0x3c] sm:$0xf] }
  0xcf   : > { %v747_v21 = vsel %vm10175_vm11, %v589_v11, %v746_v63  ;;  %v598_v22 = vsel %vm10182_vm12, %v590_v12, %v597_v13  ;;  %v751_v23 = vsel %vm9996_vm2, %v599_v14, %v750_v6  ;;  %v620_v30 = vrot.slane %v618_v20, 7  ;;  %v771_v2 = vld [vmem:[#allocation2 + $0x44] sm:$0x1]  ;;  %v774_v7 = vld [vmem:[#allocation2 + $0x48] sm:$0xf]  ;;  %v529_v14 = vld [vmem:[%s9972_s19 + $0x60] sm:$0xff] }
  0xd0   : > { %748 = vst [vmem:[#allocation2 + $0x18] sm:$0xf] %v747_v21  ;;  %749 = vst [vmem:[#allocation2 + $0x1c] sm:$0xf] %v598_v22  ;;  %v754_v27 = vsel %vm10175_vm11, %v606_v16, %v753_v15  ;;  %v626_v33 = vshrl.u32 %v8378_v3, 16  ;;  %v629_v34 = vshll.u32 %v8378_v3, 16  ;;  %v615_v39 = vsel %vm10182_vm12, %v607_v17, %v614_v28 }
  0xd1   : > { %752 = vst [vmem:[#allocation2 + $0x20] sm:$0x1] %v751_v23  ;;  %755 = vst [vmem:[#allocation2 + $0x24] sm:$0xf] %v754_v27  ;;  %v635_v35 = vshrl.u32 %v8379_v10, 16  ;;  %v638_v36 = vshll.u32 %v8379_v10, 16  ;;  %v758_v40 = vsel %vm9996_vm2, %v616_v29, %v757_v24  ;;  %v623_v41 = vor.u32 %v621_v25, %v620_v30 }
  0xd2   : > { %v624_v42 = vrot.slane %v620_v30, 4  ;;  %756 = vst [vmem:[#allocation2 + $0x28] sm:$0xf] %v615_v39  ;;  %759 = vst [vmem:[#allocation2 + $0x2c] sm:$0x1] %v758_v40  ;;  %v628_v43 = vrot.slane %v626_v33, 7  ;;  %v8381_v46 = vpack.c.bf16 %v525_v31, %v525_v31  ;;  %v8382_v50 = vpack.c.bf16 %v526_v32, %v526_v32 }
  0xd3   : > { %v637_v44 = vrot.slane %v635_v35, 7  ;;  %v761_v47 = vsel %vm10175_vm11, %v623_v41, %v760_v26  ;;  %v8383_v51 = vpack.c.bf16 %v527_v37, %v527_v37  ;;  %v8384_v52 = vpack.c.bf16 %v528_v38, %v528_v38  ;;  %v778_v20 = vld [vmem:[#allocation2 + $0x50] sm:$0x1]  ;;  %v781_v24 = vld [vmem:[#allocation2 + $0x54] sm:$0xf]  ;;  %v530_v30 = vld [vmem:[%s9972_s19 + $0x68] sm:$0xff] }
  0xd4   : > { %762 = vst [vmem:[#allocation2 + $0x30] sm:$0xf] %v761_v47  ;;  %v631_v53 = vor.u32 %v629_v34, %v628_v43  ;;  %v633_v54 = vrot.slane %v628_v43, 4  ;;  %v643_v57 = vshrl.u32 %v8380_v45, 16  ;;  %v646_v58 = vshll.u32 %v8380_v45, 16  ;;  %v531_v18 = vld [vmem:[%s9972_s19 + $0x70] sm:$0xff] }
  0xd5   : > { %v640_v55 = vor.u32 %v638_v36, %v637_v44  ;;  %v641_v56 = vrot.slane %v637_v44, 4  ;;  %v652_v59 = vshrl.u32 %v8381_v46, 16  ;;  %v655_v60 = vshll.u32 %v8381_v46, 16  ;;  %v532_v31 = vld [vmem:[%s9972_s19 + $0x78] sm:$0xff]  ;;  %v785_v36 = vld [vmem:[#allocation2 + $0x5c] sm:$0x1] }
  0xd6   : > { %v632_v61 = vsel %vm10182_vm12, %v624_v42, %v631_v53  ;;  %v765_v63 = vsel %vm9996_vm2, %v633_v54, %v764_v48  ;;  %v660_v3 = vshrl.u32 %v8382_v50, 16  ;;  %v645_v4 = vrot.slane %v643_v57, 7  ;;  %v788_v48 = vld [vmem:[#allocation2 + $0x60] sm:$0xf] }
  0xd7   : > { %v768_v1 = vsel %vm10175_vm11, %v640_v55, %v767_v49  ;;  %763 = vst [vmem:[#allocation2 + $0x34] sm:$0xf] %v632_v61  ;;  %766 = vst [vmem:[#allocation2 + $0x38] sm:$0x1] %v765_v63  ;;  %v654_v6 = vrot.slane %v652_v59, 7  ;;  %v663_v8 = vshll.u32 %v8382_v50, 16  ;;  %v8385_v29 = vpack.c.bf16 %v529_v14, %v529_v14 }
  0xd8   : > { %769 = vst [vmem:[#allocation2 + $0x3c] sm:$0xf] %v768_v1  ;;  %v669_v9 = vshrl.u32 %v8383_v51, 16  ;;  %v662_v10 = vrot.slane %v660_v3, 7  ;;  %v672_v11 = vshll.u32 %v8383_v51, 16  ;;  %v677_v12 = vshrl.u32 %v8384_v52, 16 }
  0xd9   : > { %v680_v13 = vshll.u32 %v8384_v52, 16  ;;  %v648_v15 = vor.u32 %v646_v58, %v645_v4  ;;  %v650_v16 = vrot.slane %v645_v4, 4  ;;  %v657_v17 = vor.u32 %v655_v60, %v654_v6  ;;  %v792_v60 = vld [vmem:[#allocation2 + $0x68] sm:$0x1]  ;;  %v795_v61 = vld [vmem:[#allocation2 + $0x6c] sm:$0xf] }
  0xda   : > { %v658_v19 = vrot.slane %v654_v6, 4  ;;  %v665_v21 = vor.u32 %v663_v8, %v662_v10  ;;  %v667_v22 = vrot.slane %v662_v10, 4  ;;  %v671_v23 = vrot.slane %v669_v9, 7  ;;  %v799_v6 = vld [vmem:[#allocation2 + $0x74] sm:$0x1] }
  0xdb   : > { %v679_v25 = vrot.slane %v677_v12, 7  ;;  %v649_v26 = vsel %vm10182_vm12, %v641_v56, %v648_v15  ;;  %v772_v27 = vsel %vm9996_vm2, %v650_v16, %v771_v2  ;;  %v775_v28 = vsel %vm10175_vm11, %v657_v17, %v774_v7 }
  0xdc   : > { %770 = vst [vmem:[#allocation2 + $0x40] sm:$0xf] %v649_v26  ;;  %773 = vst [vmem:[#allocation2 + $0x44] sm:$0x1] %v772_v27  ;;  %v666_v32 = vsel %vm10182_vm12, %v658_v19, %v665_v21  ;;  %v779_v33 = vsel %vm9996_vm2, %v667_v22, %v778_v20  ;;  %v674_v34 = vor.u32 %v672_v11, %v671_v23  ;;  %v675_v35 = vrot.slane %v671_v23, 4 }
  0xdd   : > { %776 = vst [vmem:[#allocation2 + $0x48] sm:$0xf] %v775_v28  ;;  %777 = vst [vmem:[#allocation2 + $0x4c] sm:$0xf] %v666_v32  ;;  %v682_v37 = vor.u32 %v680_v13, %v679_v25  ;;  %v684_v38 = vrot.slane %v679_v25, 4  ;;  %v686_v39 = vshrl.u32 %v8385_v29, 16  ;;  %v8386_v42 = vpack.c.bf16 %v530_v30, %v530_v30 }
  0xde   : > { %780 = vst [vmem:[#allocation2 + $0x50] sm:$0x1] %v779_v33  ;;  %v689_v40 = vshll.u32 %v8385_v29, 16  ;;  %v782_v41 = vsel %vm10175_vm11, %v674_v34, %v781_v24  ;;  %v8387_v43 = vpack.c.bf16 %v531_v18, %v531_v18  ;;  %v8388_v44 = vpack.c.bf16 %v532_v31, %v532_v31 }
  0xdf   : > { %783 = vst [vmem:[#allocation2 + $0x54] sm:$0xf] %v782_v41  ;;  %v683_v45 = vsel %vm10182_vm12, %v675_v35, %v682_v37  ;;  %v786_v46 = vsel %vm9996_vm2, %v684_v38, %v785_v36  ;;  %v688_v47 = vrot.slane %v686_v39, 7  ;;  %v694_v49 = vshrl.u32 %v8386_v42, 16 }
  0xe0   : > { %784 = vst [vmem:[#allocation2 + $0x58] sm:$0xf] %v683_v45  ;;  %787 = vst [vmem:[#allocation2 + $0x5c] sm:$0x1] %v786_v46  ;;  %v697_v50 = vshll.u32 %v8386_v42, 16  ;;  %v703_v51 = vshrl.u32 %v8387_v43, 16 }
  0xe1   : > { %v706_v52 = vshll.u32 %v8387_v43, 16  ;;  %v691_v53 = vor.u32 %v689_v40, %v688_v47  ;;  %v711_v54 = vshrl.u32 %v8388_v44, 16  ;;  %v714_v55 = vshll.u32 %v8388_v44, 16 }
  0xe2   : > { %v692_v56 = vrot.slane %v688_v47, 4  ;;  %v696_v57 = vrot.slane %v694_v49, 7  ;;  %v705_v58 = vrot.slane %v703_v51, 7 }
  0xe3   : > { %v789_v59 = vsel %vm10175_vm11, %v691_v53, %v788_v48  ;;  %v713_v63 = vrot.slane %v711_v54, 7 }
  0xe4   : > { %790 = vst [vmem:[#allocation2 + $0x60] sm:$0xf] %v789_v59  ;;  %v699_v1 = vor.u32 %v697_v50, %v696_v57  ;;  %v701_v2 = vrot.slane %v696_v57, 4  ;;  %v708_v3 = vor.u32 %v706_v52, %v705_v58  ;;  %v709_v4 = vrot.slane %v705_v58, 4 }
  0xe5   : > { %v716_v7 = vor.u32 %v714_v55, %v713_v63  ;;  %v718_v8 = vrot.slane %v713_v63, 4  ;;  %804 = sbr.rel (%p12074_p0) target bundleno = 248 (0xf8), region = 80 }
  0xe6   : > { %v700_v9 = vsel %vm10182_vm12, %v692_v56, %v699_v1  ;;  %v793_v10 = vsel %vm9996_vm2, %v701_v2, %v792_v60  ;;  %v796_v11 = vsel %vm10175_vm11, %v708_v3, %v795_v61 }
  0xe7   : > { %791 = vst [vmem:[#allocation2 + $0x64] sm:$0xf] %v700_v9  ;;  %794 = vst [vmem:[#allocation2 + $0x68] sm:$0x1] %v793_v10  ;;  %v717_v12 = vsel %vm10182_vm12, %v709_v4, %v716_v7  ;;  %v800_v13 = vsel %vm9996_vm2, %v718_v8, %v799_v6 }
  0xe8   : > { %797 = vst [vmem:[#allocation2 + $0x6c] sm:$0xf] %v796_v11  ;;  %798 = vst [vmem:[#allocation2 + $0x70] sm:$0xf] %v717_v12 }
  0xe9   : > { %801 = vst [vmem:[#allocation2 + $0x74] sm:$0x1] %v800_v13 }
  0xea   : > { %9731 = dma.done.wait [#allocation6], 512 }
  0xeb   : > { %9732 = vsyncadd [#allocation6], 4294966784  ;;  %v809_v14 = vld [vmem:[#allocation5] sm:$0xff]  ;;  %v810_v15 = vld [vmem:[#allocation5 + $0x8] sm:$0xff] }
  0xec   : > { %v8389_v16 = vpack.c.bf16 %v809_v14, %v809_v14  ;;  %v8390_v17 = vpack.c.bf16 %v810_v15, %v810_v15  ;;  %v811_v19 = vld [vmem:[#allocation5 + $0x10] sm:$0xff]  ;;  %v812_v21 = vld [vmem:[#allocation5 + $0x18] sm:$0xff]  ;;  %v865_v30 = vld [vmem:[#allocation2] sm:$0xf] }
  0xed   : > { %v8391_v20 = vpack.c.bf16 %v811_v19, %v811_v19  ;;  %v8392_v28 = vpack.c.bf16 %v812_v21, %v812_v21  ;;  %v869_v31 = vld [vmem:[#allocation2 + $0x8] sm:$0x1]  ;;  %v872_v39 = vld [vmem:[#allocation2 + $0xc] sm:$0xf]  ;;  %v876_v46 = vld [vmem:[#allocation2 + $0x14] sm:$0x1] }
  0xee   : > { %v826_v22 = vshrl.u32 %v8389_v16, 16  ;;  %v829_v23 = vshll.u32 %v8389_v16, 16  ;;  %v834_v24 = vshrl.u32 %v8390_v17, 16  ;;  %v837_v25 = vshll.u32 %v8390_v17, 16 }
  0xef   : > { %v843_v26 = vshrl.u32 %v8391_v20, 16  ;;  %v846_v27 = vshll.u32 %v8391_v20, 16  ;;  %v851_v33 = vshrl.u32 %v8392_v28, 16  ;;  %v854_v34 = vshll.u32 %v8392_v28, 16 }
  0xf0   : > { %v828_v29 = vrot.slane %v826_v22, 7  ;;  %v836_v18 = vrot.slane %v834_v24, 7 }
  0xf1   : > { %v845_v32 = vrot.slane %v843_v26, 7  ;;  %v853_v42 = vrot.slane %v851_v33, 7 }
  0xf2   : > { %v831_v35 = vor.u32 %v829_v23, %v828_v29  ;;  %v832_v36 = vrot.slane %v828_v29, 4  ;;  %v839_v37 = vor.u32 %v837_v25, %v836_v18  ;;  %v841_v38 = vrot.slane %v836_v18, 4 }
  0xf3   : > { %v848_v40 = vor.u32 %v846_v27, %v845_v32  ;;  %v849_v41 = vrot.slane %v845_v32, 4  ;;  %v856_v48 = vor.u32 %v854_v34, %v853_v42  ;;  %v858_v49 = vrot.slane %v853_v42, 4 }
  0xf4   : > { %v866_v43 = vsel %vm10175_vm11, %v831_v35, %v865_v30  ;;  %v840_v44 = vsel %vm10182_vm12, %v832_v36, %v839_v37  ;;  %v870_v45 = vsel %vm9996_vm2, %v841_v38, %v869_v31 }
  0xf5   : > { %867 = vst [vmem:[#allocation2] sm:$0xf] %v866_v43  ;;  %868 = vst [vmem:[#allocation2 + $0x4] sm:$0xf] %v840_v44  ;;  %v873_v47 = vsel %vm10175_vm11, %v848_v40, %v872_v39  ;;  %v857_v50 = vsel %vm10182_vm12, %v849_v41, %v856_v48  ;;  %v877_v51 = vsel %vm9996_vm2, %v858_v49, %v876_v46 }
  0xf6   : > { %871 = vst [vmem:[#allocation2 + $0x8] sm:$0x1] %v870_v45  ;;  %874 = vst [vmem:[#allocation2 + $0xc] sm:$0xf] %v873_v47 }
  0xf7   : > { %875 = vst [vmem:[#allocation2 + $0x10] sm:$0xf] %v857_v50  ;;  %878 = vst [vmem:[#allocation2 + $0x14] sm:$0x1] %v877_v51 }
  0xf8 PF: > { %p12075_p4 = scmp.ge.s32.totalorder %s10026_s12, 2 }
  0xfa   : > { %881 = sbr.rel (%p12075_p4) target bundleno = 269 (0x10d), region = 84 }
  0xff   : > { %9733 = dma.done.wait [#allocation6 + $0x1], 512 }
 0x100   : > { %9734 = vsyncadd [#allocation6 + $0x1], 4294966784  ;;  %v888_v52 = vld [vmem:[#allocation5 + $0x20] sm:$0xff]  ;;  %v889_v53 = vld [vmem:[#allocation5 + $0x28] sm:$0xff] }
 0x101   : > { %v8393_v54 = vpack.c.bf16 %v888_v52, %v888_v52  ;;  %v8394_v55 = vpack.c.bf16 %v889_v53, %v889_v53  ;;  %v890_v56 = vld [vmem:[#allocation5 + $0x30] sm:$0xff]  ;;  %v891_v58 = vld [vmem:[#allocation5 + $0x38] sm:$0xff]  ;;  %v945_v6 = vld [vmem:[#allocation2 + $0x78] sm:$0xf] }
 0x102   : > { %v8395_v57 = vpack.c.bf16 %v890_v56, %v890_v56  ;;  %v8396_v3 = vpack.c.bf16 %v891_v58, %v891_v58  ;;  %v949_v8 = vld [vmem:[#allocation2 + $0x80] sm:$0x1]  ;;  %v952_v16 = vld [vmem:[#allocation2 + $0x84] sm:$0xf]  ;;  %v956_v24 = vld [vmem:[#allocation2 + $0x8c] sm:$0x1] }
 0x103   : > { %v905_v59 = vshrl.u32 %v8393_v54, 16  ;;  %v908_v60 = vshll.u32 %v8393_v54, 16  ;;  %v913_v61 = vshrl.u32 %v8394_v55, 16  ;;  %v916_v63 = vshll.u32 %v8394_v55, 16 }
 0x104   : > { %v922_v1 = vshrl.u32 %v8395_v57, 16  ;;  %v925_v2 = vshll.u32 %v8395_v57, 16  ;;  %v930_v10 = vshrl.u32 %v8396_v3, 16  ;;  %v933_v11 = vshll.u32 %v8396_v3, 16 }
 0x105   : > { %v907_v4 = vrot.slane %v905_v59, 7  ;;  %v915_v7 = vrot.slane %v913_v61, 7 }
 0x106   : > { %v924_v9 = vrot.slane %v922_v1, 7  ;;  %v932_v20 = vrot.slane %v930_v10, 7 }
 0x107   : > { %v910_v12 = vor.u32 %v908_v60, %v907_v4  ;;  %v911_v13 = vrot.slane %v907_v4, 4  ;;  %v918_v14 = vor.u32 %v916_v63, %v915_v7  ;;  %v920_v15 = vrot.slane %v915_v7, 4 }
 0x108   : > { %v927_v17 = vor.u32 %v925_v2, %v924_v9  ;;  %v928_v19 = vrot.slane %v924_v9, 4  ;;  %v935_v26 = vor.u32 %v933_v11, %v932_v20  ;;  %v937_v27 = vrot.slane %v932_v20, 4 }
 0x109   : > { %v946_v21 = vsel %vm10175_vm11, %v910_v12, %v945_v6  ;;  %v919_v22 = vsel %vm10182_vm12, %v911_v13, %v918_v14  ;;  %v950_v23 = vsel %vm9996_vm2, %v920_v15, %v949_v8 }
 0x10a   : > { %947 = vst [vmem:[#allocation2 + $0x78] sm:$0xf] %v946_v21  ;;  %948 = vst [vmem:[#allocation2 + $0x7c] sm:$0xf] %v919_v22  ;;  %v953_v25 = vsel %vm10175_vm11, %v927_v17, %v952_v16  ;;  %v936_v28 = vsel %vm10182_vm12, %v928_v19, %v935_v26  ;;  %v957_v29 = vsel %vm9996_vm2, %v937_v27, %v956_v24 }
 0x10b   : > { %951 = vst [vmem:[#allocation2 + $0x80] sm:$0x1] %v950_v23  ;;  %954 = vst [vmem:[#allocation2 + $0x84] sm:$0xf] %v953_v25 }
 0x10c   : > { %955 = vst [vmem:[#allocation2 + $0x88] sm:$0xf] %v936_v28  ;;  %958 = vst [vmem:[#allocation2 + $0x8c] sm:$0x1] %v957_v29 }
 0x10d PF: > { %vm1372_vm13 = vcmask 1042432   ;;  %vm1373_vm14 = vcmask 1046532   ;;  %vm1029_vm15 = vsmask.f32 3328  ;;  %vm1030_vm0 = vsmask.f32 7440 }
 0x10e   : > { %v9261_v30 = vld [vmem:[#allocation10 + $0x138] sm:$0xff]   ;;  %v9264_v32 = vld [vmem:[#allocation10 + $0x130] sm:$0xff]   ;;  %v9267_v35 = vld [vmem:[#allocation10 + $0x128] sm:$0xff]   ;;  %s12096_s9 = sld [smem:[#allocation32_spill]] }
 0x10f   : > { %v9262_v18 = vld [vmem:[#allocation10 + $0x178] sm:$0xff]   ;;  %8418 = vmatprep.subr.bf16.mxu0 %v9261_v30  ;;  %v9265_v33 = vld [vmem:[#allocation10 + $0x170] sm:$0xff]   ;;  %v9268_v36 = vld [vmem:[#allocation10 + $0x168] sm:$0xff]  }
 0x110   : > { %v9263_v31 = vld [vmem:[#allocation10 + $0xf8] sm:$0xff]   ;;  %8940 = vmatprep.subr.bf16.mxu1 %v9262_v18  ;;  %v9266_v34 = vld [vmem:[#allocation10 + $0xf0] sm:$0xff]   ;;  %v9269_v37 = vld [vmem:[#allocation10 + $0xe8] sm:$0xff]  }
 0x111   : > { %8419 = vmatpush3.bf16.msra.mxu0 %v9263_v31  ;;  %8941 = vmatpush3.bf16.msra.mxu1 %v9262_v18  ;;  %v9270_v38 = vld [vmem:[#allocation10 + $0x120] sm:$0xff]   ;;  %v9273_v41 = vld [vmem:[#allocation10 + $0x118] sm:$0xff]   ;;  %v9276_v44 = vld [vmem:[#allocation10 + $0x110] sm:$0xff]  }
 0x112   : > { %8420 = vmatprep.subr.bf16.mxu0 %v9264_v32  ;;  %8942 = vmatprep.subr.bf16.mxu1 %v9265_v33  ;;  %v9271_v39 = vld [vmem:[#allocation10 + $0x160] sm:$0xff]   ;;  %v9274_v42 = vld [vmem:[#allocation10 + $0x158] sm:$0xff]   ;;  %v9277_v45 = vld [vmem:[#allocation10 + $0x150] sm:$0xff]  }
 0x113   : > { %v9272_v40 = vld [vmem:[#allocation10 + $0xe0] sm:$0xff]   ;;  %v9275_v43 = vld [vmem:[#allocation10 + $0xd8] sm:$0xff]   ;;  %v9278_v46 = vld [vmem:[#allocation10 + $0xd0] sm:$0xff]  }
 0x114   : > { %v9279_v47 = vld [vmem:[#allocation10 + $0x108] sm:$0xff]   ;;  %v9282_v50 = vld [vmem:[#allocation10 + $0x100] sm:$0xff]   ;;  %v1001_v56 = vld [vmem:[#allocation2 + $0x8] sm:$0x1] }
 0x115   : > { %8421 = vmatpush3.bf16.msra.mxu0 %v9266_v34  ;;  %8943 = vmatpush3.bf16.msra.mxu1 %v9265_v33  ;;  %v9280_v48 = vld [vmem:[#allocation10 + $0x148] sm:$0xff]   ;;  %v9283_v54 = vld [vmem:[#allocation10 + $0x140] sm:$0xff]   ;;  %v1052_v63 = vshll.u32 %v1001_v56, 16  ;;  %v1614_v4 = vld [vmem:[#allocation2 + $0xc] sm:$0xf] }
 0x116   : > { %8422 = vmatprep.subr.bf16.mxu0 %v9267_v35  ;;  %8944 = vmatprep.subr.bf16.mxu1 %v9268_v36  ;;  %v9281_v49 = vld [vmem:[#allocation10 + $0xc8] sm:$0xff]   ;;  %v9284_v57 = vld [vmem:[#allocation10 + $0xc0] sm:$0xff]   ;;  %v10271_v6 = vld [vmem:[#allocation10 + $0xb8] sm:$0xff]   ;;  %v1645_v12 = vshrl.u32 %v1614_v4, 16  ;;  %v1648_v13 = vshll.u32 %v1614_v4, 16 }
 0x117   : > { %v959_v51 = vld [vmem:[#allocation2] sm:$0xf]  ;;  %v960_v52 = vld [vmem:[#allocation2 + $0x4] sm:$0xf]  ;;  %v1615_v8 = vld [vmem:[#allocation2 + $0x10] sm:$0xf] }
 0x118   : > { %v999_v53 = vld [vmem:[#allocation2] sm:$0xf]  ;;  %979 = vst [vmem:[#allocation4] sm:$0xf] %v959_v51  ;;  %980 = vst [vmem:[#allocation4 + $0xc] sm:$0xf] %v960_v52 }
 0x119   : > { %8423 = vmatpush3.bf16.msra.mxu0 %v9269_v37  ;;  %8945 = vmatpush3.bf16.msra.mxu1 %v9268_v36  ;;  %v1000_v55 = vld [vmem:[#allocation2 + $0x4] sm:$0xf]  ;;  %v1033_v58 = vshrl.u32 %v999_v53, 16  ;;  %v1036_v59 = vshll.u32 %v999_v53, 16  ;;  %v1616_v9 = vld [vmem:[#allocation2 + $0x14] sm:$0x1]  ;;  %vm10275_vm1 = vmor %vm1029_vm15, %vm1030_vm0 }
 0x11a   : > { %8424 = vmatprep.subr.bf16.mxu0 %v9270_v38  ;;  %8946 = vmatprep.subr.bf16.mxu1 %v9271_v39  ;;  %v1042_v60 = vshll.u32 %v1000_v55, 16  ;;  %v1046_v61 = vshrl.u32 %v1000_v55, 16  ;;  %v9294_v10 = vld [vmem:[#allocation10 + $0x78] sm:$0xff]   ;;  %v1654_v14 = vshll.u32 %v1615_v8, 16  ;;  %v1054_v17 = vrot.slane %v1052_v63, 5  ;;  %vm10290_vm3 = vmor %vm1372_vm13, %vm1373_vm14 }
 0x11b   : > { %v1035_v1 = vrot.slane %v1033_v58, 4  ;;  %v1038_v2 = vrot.slane %v1036_v59, 5  ;;  %v1658_v19 = vshrl.u32 %v1615_v8, 16  ;;  %v1664_v20 = vshll.u32 %v1616_v9, 16  ;;  %v3283_v21 = vld [vmem:[#allocation2 + $0x18] sm:$0xf] }
 0x11c   : > { %v1044_v3 = vrot.slane %v1042_v60, 5  ;;  %v1048_v7 = vrot.slane %v1046_v61, 4  ;;  %v1647_v23 = vrot.slane %v1645_v12, 4  ;;  %v1650_v24 = vrot.slane %v1648_v13, 5  ;;  %v3284_v26 = vld [vmem:[#allocation2 + $0x1c] sm:$0xf] }
 0x11d   : > { %8425 = vmatpush3.bf16.msra.mxu0 %v9272_v40  ;;  %8947 = vmatpush3.bf16.msra.mxu1 %v9271_v39  ;;  %v1039_v11 = vor.u32 %v1038_v2, %v1035_v1  ;;  %v1656_v25 = vrot.slane %v1654_v14, 5  ;;  %v1660_v28 = vrot.slane %v1658_v19, 4  ;;  %v10279_v29 = vrot.slane %v1664_v20, 5  ;;  %v3285_v30 = vld [vmem:[#allocation2 + $0x20] sm:$0x1] }
 0x11e   : > { %8426 = vmatprep.subr.bf16.mxu0 %v9273_v41  ;;  %8948 = vmatprep.subr.bf16.mxu1 %v9274_v42  ;;  %v1049_v16 = vor.u32 %v1048_v7, %v1044_v3  ;;  %v3314_v18 = vshrl.u32 %v3283_v21, 16  ;;  %v1651_v32 = vor.u32 %v1650_v24, %v1647_v23  ;;  %v3317_v33 = vshll.u32 %v3283_v21, 16  ;;  %v1312_v35 = vld [vmem:[#allocation2] sm:$0xe]  ;;  %v1313_v36 = vld [vmem:[#allocation2 + $0x4] sm:$0xf] }
 0x11f   : > { %v1040_v22 = vrot.slane %v1039_v11, 4  ;;  %v3323_v34 = vshll.u32 %v3284_v26, 16  ;;  %v1661_v38 = vor.u32 %v1660_v28, %v1656_v25  ;;  %v3327_v40 = vshrl.u32 %v3284_v26, 16  ;;  %v1314_v41 = vld [vmem:[#allocation2 + $0x8] sm:$0x1] }
 0x120   : > { %v1050_v27 = vrot.slane %v1049_v16, 4  ;;  %v3316_v39 = vrot.slane %v3314_v18, 4  ;;  %v1925_v51 = vld [vmem:[#allocation2 + $0x10] sm:$0xf]  ;;  %v1574_v52 = vld [vmem:[#allocation2 + $0xc] sm:$0xf] }
 0x121   : > { %8427 = vmatpush3.bf16.msra.mxu0 %v9275_v43  ;;  %8949 = vmatpush3.bf16.msra.mxu1 %v9274_v42  ;;  %v1045_v31 = vsel %vm10275_vm1, %v1040_v22, %v1044_v3  ;;  %v1652_v42 = vrot.slane %v1651_v32, 4  ;;  %v3319_v43 = vrot.slane %v3317_v33, 5  ;;  %v1924_v55 = vld [vmem:[#allocation2 + $0xc] sm:$0xe]  ;;  %v1926_v56 = vld [vmem:[#allocation2 + $0x14] sm:$0x1] }
 0x122   : > { %8428 = vmatprep.subr.bf16.mxu0 %v9276_v44  ;;  %8950 = vmatprep.subr.bf16.mxu1 %v9277_v45  ;;  %v1055_v37 = vsel %vm10275_vm1, %v1050_v27, %v1054_v17  ;;  %1292 = vst [vmem:[#allocation4 + $0x4] sm:$0xf] %v1045_v31  ;;  %v10286_v44 = vrot.slane %v3323_v34, 5  ;;  %v10296_v60 = vld [vmem:[#allocation2 + $0x18] sm:$0xe]  ;;  %v1986_v2 = vrot.slane %v1925_v51, 5 }
 0x123   : > { %1293 = vst [vmem:[#allocation4 + $0x10] sm:$0xf] %v1055_v37  ;;  %v3320_v53 = vor.u32 %v3319_v43, %v3316_v39  ;;  %v10298_v61 = vld [vmem:[#allocation2 + $0x1c] sm:$0xf]  ;;  %v1657_v63 = vsel %vm10275_vm1, %v1652_v42, %v1656_v25  ;;  %v10303_v3 = vld [vmem:[#allocation2 + $0x20] sm:$0x1] }
 0x124   : > { %v1315_v4 = vld [vmem:[#allocation2 + $0xc] sm:$0xe]  ;;  %v1316_v11 = vld [vmem:[#allocation2 + $0x10] sm:$0xf]  ;;  %v1317_v12 = vld [vmem:[#allocation2 + $0x14] sm:$0x1] }
 0x125   : > { %8429 = vmatpush3.bf16.msra.mxu0 %v9278_v46  ;;  %8951 = vmatpush3.bf16.msra.mxu1 %v9277_v45  ;;  %v3333_v45 = vshll.u32 %v3285_v30, 16  ;;  %v12078_v46 = vmov 0  ;;  %v3321_v14 = vrot.slane %v3320_v53, 4  ;;  %v1988_v16 = vrot.slane %v1986_v2, 4  ;;  %v1927_v22 = vld [vmem:[#allocation2 + $0x18] sm:$0xe] }
 0x126   : > { %8430 = vmatprep.subr.bf16.mxu0 %v9279_v47  ;;  %8952 = vmatprep.subr.bf16.mxu1 %v9280_v48  ;;  %v12079_v46 = vsel %vm10290_vm3, 4294967295, %v12078_v46  ;;  %v1662_v47 = vrot.slane %v1661_v38, 4  ;;  %v1989_v17 = vrot.slane %v1926_v56, 5  ;;  %v3655_v19 = vrot.slane %v10298_v61, 5  ;;  %v1928_v23 = vld [vmem:[#allocation2 + $0x1c] sm:$0xf] }
 0x127   : > { %12080 = vst [vmem:[#allocation30_spill] sm:$0xff] %v12079_v46  ;;  %v10308_v8 = vrot.slane %v3333_v45, 5  ;;  %v7979_v21 = vrot.slane %v1315_v4, 9  ;;  %v8106_v25 = vrot.slane %v10296_v60, 9  ;;  %v1384_v26 = vrot.slane %v1316_v11, 5 }
 0x128   : > { %v1667_v7 = vsel %vm10275_vm1, %v1662_v47, %v10279_v29  ;;  %v1387_v27 = vrot.slane %v1317_v12, 5  ;;  %v10318_v28 = vld [vmem:[#allocation2 + $0x20] sm:$0x1]  ;;  %v3658_v30 = vrot.slane %v10303_v3, 5  ;;  %v1993_v18 = vrot.slane %v1928_v23, 5 }
 0x129   : > { %8431 = vmatpush3.bf16.msra.mxu0 %v9281_v49  ;;  %8953 = vmatpush3.bf16.msra.mxu1 %v9280_v48  ;;  %v3329_v48 = vrot.slane %v3327_v40, 4  ;;  %v7978_v49 = vrot.slane %v1312_v35, 9  ;;  %v10312_v13 = vld [vmem:[#allocation4] sm:$0xff]  ;;  %v10323_v31 = vld [vmem:[#allocation2 + $0x24] sm:$0xe]  ;;  %v3657_v33 = vrot.slane %v3655_v19, 4  ;;  %v1385_v34 = vsel %vm10290_vm3, %v7979_v21, %v1384_v26 }
 0x12a   : > { %8432 = vmatprep.subr.bf16.mxu0 %v9282_v50  ;;  %8954 = vmatprep.subr.bf16.mxu1 %v9283_v54  ;;  %v1377_v50 = vrot.slane %v1313_v36, 5  ;;  %v10315_v20 = vld [vmem:[#allocation4 + $0xc] sm:$0xff]  ;;  %1594 = vst [vmem:[#allocation4] sm:$0xf] %v1574_v52  ;;  %1904 = vst [vmem:[#allocation4 + $0x4] sm:$0xf] %v1657_v63  ;;  %v1990_v40 = vsel %vm10290_vm3, %v1988_v16, %v1989_v17  ;;  %v3656_v56 = vsel %vm10290_vm3, %v8106_v25, %v3655_v19 }
 0x12b   : > { %v3330_v1 = vor.u32 %v3329_v48, %v10286_v44  ;;  %1905 = vst [vmem:[#allocation4 + $0x10] sm:$0xf] %v1667_v7  ;;  %v10325_v32 = vld [vmem:[#allocation2 + $0x28] sm:$0xf]  ;;  %v1386_v35 = vrot.slane %v1384_v26, 4  ;;  %v7989_v36 = vrot.slane %v1927_v22, 9  ;;  %v3659_v17 = vsel %vm10290_vm3, %v3657_v33, %v3658_v30 }
 0x12c   : > { %v1378_v58 = vsel %vm10290_vm3, %v7978_v49, %v1377_v50  ;;  %v1379_v59 = vrot.slane %v1377_v50, 4  ;;  %v3243_v37 = vld [vmem:[#allocation2 + $0x18] sm:$0xf]  ;;  %v3244_v38 = vld [vmem:[#allocation2 + $0x1c] sm:$0xf]  ;;  %v8107_v43 = vrot.slane %v10323_v31, 9  ;;  %v3326_v50 = vsel %vm10275_vm1, %v3321_v14, %v10286_v44 }
 0x12d   : > { %8433 = vmatpush3.bf16.msra.mxu0 %v9284_v57  ;;  %8955 = vmatpush3.bf16.msra.mxu1 %v9283_v54  ;;  %v1380_v54 = vrot.slane %v1314_v41, 5  ;;  %v1575_v57 = vld [vmem:[#allocation2 + $0x10] sm:$0xf]  ;;  %1465 = vst [vmem:[#allocation4 + $0x8] sm:$0xf] %v1378_v58  ;;  %v3331_v24 = vrot.slane %v3330_v1, 4  ;;  %v1388_v45 = vsel %vm10290_vm3, %v1386_v35, %v1387_v27  ;;  %v1994_v61 = vsel %vm10290_vm3, %v7989_v36, %v1993_v18 }
 0x12e   : > { %8976 = vmatprep.subr.bf16.mxu0 %v10271_v6  ;;  %8512 = vmatprep.subr.bf16.mxu1 %v9294_v10  ;;  %v7988_v10 = vrot.slane %v1924_v55, 9  ;;  %1595 = vst [vmem:[#allocation4 + $0xc] sm:$0xf] %v1575_v57  ;;  %1467 = vst [vmem:[#allocation4 + $0x20] sm:$0xf] %v1385_v34  ;;  %v1996_v41 = vrot.slane %v10318_v28, 5 }
 0x12f   : > { %v1381_v9 = vsel %vm10290_vm3, %v1379_v59, %v1380_v54  ;;  %v10334_v42 = vld [vmem:[#allocation2 + $0x2c] sm:$0x1]  ;;  %v1995_v47 = vrot.slane %v1993_v18, 4  ;;  %v3662_v48 = vrot.slane %v10325_v32, 5  ;;  %v3336_v51 = vsel %vm10275_vm1, %v3331_v24, %v10308_v8  ;;  %1468 = vst [vmem:[#allocation4 + $0x2c] sm:$0xf] %v1388_v45 }
 0x130   : > { %1466 = vst [vmem:[#allocation4 + $0x14] sm:$0xf] %v1381_v9  ;;  %v1987_v29 = vsel %vm10290_vm3, %v7988_v10, %v1986_v2  ;;  %v961_v49 = vld [vmem:[#allocation2 + $0xc] sm:$0xf]  ;;  %v962_v53 = vld [vmem:[#allocation2 + $0x10] sm:$0xf] }
 0x131   : > { %981 = vst [vmem:[#allocation4 + $0x18] sm:$0xf] %v961_v49  ;;  %v1002_v54 = vld [vmem:[#allocation2 + $0xc] sm:$0xf]  ;;  %982 = vst [vmem:[#allocation4 + $0x24] sm:$0xf] %v962_v53  ;;  %v1997_v21 = vsel %vm10290_vm3, %v1995_v47, %v1996_v41 }
 0x132   : > { %v2094_v55 = vld [vmem:[#allocation4] sm:$0xff]  ;;  %v1003_v57 = vld [vmem:[#allocation2 + $0x10] sm:$0xf]  ;;  %v1004_v58 = vld [vmem:[#allocation2 + $0x14] sm:$0x1]  ;;  %v1057_v59 = vshrl.u32 %v1002_v54, 16 }
 0x133   : > { %v9285_v60 = vld [vmem:[#allocation4 + $0x4] ss:$12 sps:$4 sm:$0xff]   ;;  %v1060_v63 = vshll.u32 %v1002_v54, 16  ;;  %v1066_v1 = vshll.u32 %v1003_v57, 16  ;;  %v1070_v2 = vshrl.u32 %v1003_v57, 16  ;;  %v3665_v4 = vrot.slane %v10334_v42, 5 }
 0x134   : > { %v10329_v39 = vld [vmem:[#allocation4 + $0x8] sm:$0xf]  ;;  %3263 = vst [vmem:[#allocation4] sm:$0xf] %v3243_v37  ;;  %3573 = vst [vmem:[#allocation4 + $0x4] sm:$0xf] %v3326_v50  ;;  %2519 = vmatprep.mubr.bf16.mxu0 %v9285_v60 }
 0x135   : > { %2074 = vst [vmem:[#allocation4 + $0x8] sm:$0xf] %v1987_v29  ;;  %v2096_v44 = vld [vmem:[#allocation4 + $0xc] sm:$0xff]  ;;  %v1059_v7 = vrot.slane %v1057_v59, 4  ;;  %v1076_v8 = vshll.u32 %v1004_v58, 16  ;;  %v9296_v9 = vld [vmem:[#allocation10 + $0xb0] sm:$0xff]  }
 0x136   : > { %3264 = vst [vmem:[#allocation4 + $0xc] sm:$0xf] %v3244_v38  ;;  %3574 = vst [vmem:[#allocation4 + $0x10] sm:$0xf] %v3336_v51  ;;  %v7998_v3 = vcombine.low %v2094_v55, %v2096_v44  ;;  %v3664_v10 = vrot.slane %v3662_v48, 4  ;;  %v1062_v11 = vrot.slane %v1060_v63, 5 }
 0x137   : > { %v10346_v52 = vld [vmem:[#allocation4 + $0x14] sm:$0xf]  ;;  %v1068_v12 = vrot.slane %v1066_v1, 5  ;;  %v1072_v14 = vrot.slane %v1070_v2, 4  ;;  %v1617_v16 = vld [vmem:[#allocation2 + $0x18] sm:$0xf] }
 0x138   : > { %2075 = vst [vmem:[#allocation4 + $0x14] sm:$0xf] %v1990_v40  ;;  %2520 = vmatmul.mubr.bf16.vlgmr.msra.gmra.mxu0 %v7998_v3  ;;  %v10357_v19 = vld [vmem:[#allocation4 + $0x20] sm:$0xf]  ;;  %v1078_v22 = vrot.slane %v1076_v8, 5  ;;  %v1669_v24 = vshrl.u32 %v1617_v16, 16  ;;  %v1063_v25 = vor.u32 %v1062_v11, %v1059_v7  ;;  %v3666_v45 = vsel %vm10290_vm3, %v3664_v10, %v3665_v4 }
 0x139   : > { %v1618_v23 = vld [vmem:[#allocation2 + $0x1c] sm:$0xf]  ;;  %2076 = vst [vmem:[#allocation4 + $0x20] sm:$0xf] %v1994_v61  ;;  %8977 = vmatpush3.bf16.msra.mxu0 %v10271_v6  ;;  %v1073_v26 = vor.u32 %v1072_v14, %v1068_v12  ;;  %v1619_v27 = vld [vmem:[#allocation2 + $0x20] sm:$0x1]  ;;  %v3663_v6 = vsel %vm10290_vm3, %v8107_v43, %v3662_v48 }
 0x13a   : > { %v1672_v28 = vshll.u32 %v1617_v16, 16  ;;  %v1678_v29 = vshll.u32 %v1618_v23, 16  ;;  %v10362_v18 = vld [vmem:[#allocation4 + $0x2c] sm:$0xf]  ;;  %v1671_v30 = vrot.slane %v1669_v24, 4  ;;  %v1682_v33 = vshrl.u32 %v1618_v23, 16  ;;  %8978 = vmatprep.subr.bf16.mxu0 %v9296_v9 }
 0x13b   : > { %v1688_v34 = vshll.u32 %v1619_v27, 16  ;;  %v9306_v35 = vld [vmem:[#allocation10 + $0xa8] sm:$0xff]   ;;  %2077 = vst [vmem:[#allocation4 + $0x2c] sm:$0xf] %v1997_v21  ;;  %v1064_v37 = vrot.slane %v1063_v25, 4  ;;  %v1074_v38 = vrot.slane %v1073_v26, 4 }
 0x13c   : > { %v1674_v40 = vrot.slane %v1672_v28, 5  ;;  %v10370_v41 = vrot.slane %v1678_v29, 5  ;;  %v1684_v42 = vrot.slane %v1682_v33, 4  ;;  %v3286_v50 = vld [vmem:[#allocation2 + $0x24] sm:$0xf]  ;;  %v9295_v10 = vld [vmem:[#allocation10 + $0x38] sm:$0xff]  }
 0x13d   : > { %v1069_v47 = vsel %vm10275_vm1, %v1064_v37, %v1068_v12  ;;  %v1079_v49 = vsel %vm10275_vm1, %v1074_v38, %v1078_v22  ;;  %v1690_v32 = vrot.slane %v1688_v34, 5  ;;  %v3287_v31 = vld [vmem:[#allocation2 + $0x28] sm:$0xf]  ;;  %8979 = vmatpush3.bf16.msra.mxu0 %v9296_v9  ;;  %v3288_v51 = vld [vmem:[#allocation2 + $0x2c] sm:$0x1]  ;;  %v3338_v53 = vshrl.u32 %v3286_v50, 16 }
 0x13e   : > { %1294 = vst [vmem:[#allocation4 + $0x1c] sm:$0xf] %v1069_v47  ;;  %1295 = vst [vmem:[#allocation4 + $0x28] sm:$0xf] %v1079_v49  ;;  %v1675_v43 = vor.u32 %v1674_v40, %v1671_v30  ;;  %v1685_v48 = vor.u32 %v1684_v42, %v10370_v41  ;;  %v3341_v54 = vshll.u32 %v3286_v50, 16  ;;  %8980 = vmatprep.subr.bf16.mxu0 %v9306_v35  ;;  %v3351_v57 = vshrl.u32 %v3287_v31, 16 }
 0x13f   : > { %v9287_v36 = vld [vmem:[#allocation4 + $0x8] ss:$12 sps:$4 sm:$0xff]   ;;  %v1318_v55 = vld [vmem:[#allocation2 + $0x18] sm:$0xe]  ;;  %v3357_v58 = vshll.u32 %v3288_v51, 16  ;;  %v3340_v63 = vrot.slane %v3338_v53, 4 }
 0x140   : > { %3743 = vst [vmem:[#allocation4 + $0x8] sm:$0xf] %v3656_v56  ;;  %3744 = vst [vmem:[#allocation4 + $0x14] sm:$0xf] %v3659_v17  ;;  %8956 = vmatprep.mubr.bf16.mxu1 %v9287_v36  ;;  %v3347_v56 = vshll.u32 %v3287_v31, 16  ;;  %v7980_v44 = vrot.slane %v1318_v55, 9 }
 0x141   : > { %v1319_v59 = vld [vmem:[#allocation2 + $0x1c] sm:$0xf]  ;;  %v1676_v60 = vrot.slane %v1675_v43, 4  ;;  %v1686_v61 = vrot.slane %v1685_v48, 4  ;;  %v3343_v1 = vrot.slane %v3341_v54, 5  ;;  %v3353_v7 = vrot.slane %v3351_v57, 4  ;;  %8981 = vmatpush3.bf16.msra.mxu0 %v9306_v35 }
 0x142   : > { %v1576_v2 = vld [vmem:[#allocation2 + $0x18] sm:$0xf]  ;;  %v1577_v3 = vld [vmem:[#allocation2 + $0x1c] sm:$0xf]  ;;  %v10379_v4 = vrot.slane %v3347_v56, 5  ;;  %v1391_v9 = vrot.slane %v1319_v59, 5 }
 0x143   : > { %v1320_v8 = vld [vmem:[#allocation2 + $0x20] sm:$0x1]  ;;  %v9288_v11 = vld [vmem:[#allocation4 + $0x20] ss:$12 sps:$4 sm:$0xff]   ;;  %v1681_v12 = vsel %vm10275_vm1, %v1676_v60, %v10370_v41  ;;  %v3344_v14 = vor.u32 %v3343_v1, %v3340_v63  ;;  %v1691_v21 = vsel %vm10275_vm1, %v1686_v61, %v1690_v32  ;;  %v1930_v25 = vld [vmem:[#allocation2 + $0x24] sm:$0xe] }
 0x144   : > { %v1394_v16 = vrot.slane %v1320_v8, 5  ;;  %v9297_v17 = vld [vmem:[#allocation10 + $0x70] sm:$0xff]   ;;  %3745 = vst [vmem:[#allocation4 + $0x20] sm:$0xf] %v3663_v6  ;;  %3746 = vst [vmem:[#allocation4 + $0x2c] sm:$0xf] %v3666_v45  ;;  %v3354_v22 = vor.u32 %v3353_v7, %v10379_v4  ;;  %v1392_v23 = vsel %vm10290_vm3, %v7980_v44, %v1391_v9  ;;  %8957 = vmatmul.mubr.bf16.vlgmr.msra.gmra.mxu1 %v9288_v11 }
 0x145   : > { %v1393_v24 = vrot.slane %v1391_v9, 4  ;;  %v1931_v26 = vld [vmem:[#allocation2 + $0x28] sm:$0xf]  ;;  %v10389_v27 = vrot.slane %v3344_v14, 4  ;;  %v10391_v28 = vrot.slane %v3357_v58, 5  ;;  %v10393_v34 = vld [vmem:[#allocation4 + $0x18] sm:$0xff]  ;;  %8513 = vmatpush3.bf16.msra.mxu1 %v9295_v10 }
 0x146   : > { %1469 = vst [vmem:[#allocation4 + $0x38] sm:$0xf] %v1392_v23  ;;  %v1932_v29 = vld [vmem:[#allocation2 + $0x2c] sm:$0x1]  ;;  %v2000_v30 = vrot.slane %v1931_v26, 5  ;;  %v10397_v36 = vrot.slane %v3354_v22, 4  ;;  %8514 = vmatprep.subr.bf16.mxu1 %v9297_v17 }
 0x147   : > { %v9298_v33 = vld [vmem:[#allocation10 + $0x30] sm:$0xff]   ;;  %v1395_v37 = vsel %vm10290_vm3, %v1393_v24, %v1394_v16  ;;  %v7990_v38 = vrot.slane %v1930_v25, 9  ;;  %v2003_v6 = vrot.slane %v1932_v29, 5  ;;  %v9303_v40 = vld [vmem:[#allocation10 + $0x68] sm:$0xff]   ;;  %1596 = vst [vmem:[#allocation4 + $0x18] sm:$0xf] %v1576_v2  ;;  %v3350_v8 = vsel %vm10275_vm1, %v10389_v27, %v10379_v4 }
 0x148   : > { %v10395_v35 = vld [vmem:[#allocation4 + $0x24] sm:$0xff]  ;;  %1906 = vst [vmem:[#allocation4 + $0x1c] sm:$0xf] %v1681_v12  ;;  %1470 = vst [vmem:[#allocation4 + $0x44] sm:$0xf] %v1395_v37  ;;  %v2002_v47 = vrot.slane %v2000_v30, 4  ;;  %v3360_v9 = vsel %vm10275_vm1, %v10397_v36, %v10391_v28 }
 0x149   : > { %1597 = vst [vmem:[#allocation4 + $0x24] sm:$0xf] %v1577_v3  ;;  %1907 = vst [vmem:[#allocation4 + $0x28] sm:$0xf] %v1691_v21  ;;  %v10401_v41 = vld [vmem:[#allocation2 + $0x30] sm:$0xe]  ;;  %v2001_v57 = vsel %vm10290_vm3, %v7990_v38, %v2000_v30  ;;  %8515 = vmatpush3.bf16.msra.mxu1 %v9298_v33 }
 0x14a   : > { %v10403_v42 = vld [vmem:[#allocation2 + $0x34] sm:$0xf]  ;;  %v10405_v45 = vld [vmem:[#allocation2 + $0x38] sm:$0x1]  ;;  %v1321_v32 = vld [vmem:[#allocation2 + $0x24] sm:$0xe]  ;;  %8516 = vmatprep.subr.bf16.mxu1 %v9303_v40  ;;  %v2004_v16 = vsel %vm10290_vm3, %v2002_v47, %v2003_v6 }
 0x14b   : > { %v3669_v49 = vrot.slane %v10403_v42, 5  ;;  %v1322_v50 = vld [vmem:[#allocation2 + $0x28] sm:$0xf]  ;;  %v1323_v43 = vld [vmem:[#allocation2 + $0x2c] sm:$0x1]  ;;  %v7981_v48 = vrot.slane %v1321_v32, 9 }
 0x14c   : > { %v1398_v51 = vrot.slane %v1322_v50, 5  ;;  %v1933_v53 = vld [vmem:[#allocation2 + $0x30] sm:$0xe]  ;;  %v3245_v55 = vld [vmem:[#allocation2 + $0x24] sm:$0xf]  ;;  %v1401_v58 = vrot.slane %v1323_v43, 5 }
 0x14d   : > { %v3246_v56 = vld [vmem:[#allocation2 + $0x28] sm:$0xf]  ;;  %v1934_v59 = vld [vmem:[#allocation2 + $0x34] sm:$0xf]  ;;  %v1935_v44 = vld [vmem:[#allocation2 + $0x38] sm:$0x1] }
 0x14e   : > { %v9304_v60 = vld [vmem:[#allocation10 + $0x28] sm:$0xff]   ;;  %v1399_v61 = vsel %vm10290_vm3, %v7981_v48, %v1398_v51  ;;  %v1400_v63 = vrot.slane %v1398_v51, 4  ;;  %v2007_v1 = vrot.slane %v1934_v59, 5  ;;  %v10416_v2 = vld [vmem:[#allocation2 + $0x3c] sm:$0xe]  ;;  %v8108_v11 = vrot.slane %v10401_v41, 9 }
 0x14f   : > { %v9305_v3 = vld [vmem:[#allocation10 + $0x60] sm:$0xff]   ;;  %v10426_v10 = vld [vmem:[#allocation4 + $0x38] sm:$0xf]  ;;  %v3672_v12 = vrot.slane %v10405_v45, 5  ;;  %1471 = vst [vmem:[#allocation4 + $0x50] sm:$0xf] %v1399_v61  ;;  %8517 = vmatpush3.bf16.msra.mxu1 %v9304_v60 }
 0x150   : > { %v9316_v7 = vld [vmem:[#allocation10 + $0xa0] sm:$0xff]   ;;  %v10430_v14 = vld [vmem:[#allocation2 + $0x40] sm:$0xf]  ;;  %2078 = vst [vmem:[#allocation4 + $0x38] sm:$0xf] %v2001_v57  ;;  %v3671_v4 = vrot.slane %v3669_v49, 4  ;;  %v1402_v17 = vsel %vm10290_vm3, %v1400_v63, %v1401_v58  ;;  %8518 = vmatprep.subr.bf16.mxu1 %v9305_v3  ;;  %v3670_v43 = vsel %vm10290_vm3, %v8108_v11, %v3669_v49 }
 0x151   : > { %v7991_v21 = vrot.slane %v1933_v53, 9  ;;  %v9307_v22 = vld [vmem:[#allocation10 + $0x20] sm:$0xff]   ;;  %v9312_v23 = vld [vmem:[#allocation10 + $0x58] sm:$0xff]   ;;  %8982 = vmatprep.subr.bf16.mxu0 %v9316_v7  ;;  %v2098_v24 = vld [vmem:[#allocation4 + $0x18] sm:$0xff]  ;;  %1472 = vst [vmem:[#allocation4 + $0x5c] sm:$0xf] %v1402_v17 }
 0x152   : > { %v2100_v25 = vld [vmem:[#allocation4 + $0x24] sm:$0xff]  ;;  %v2010_v27 = vrot.slane %v1935_v44, 5  ;;  %v8109_v28 = vrot.slane %v10416_v2, 9  ;;  %8983 = vmatpush3.bf16.msra.mxu0 %v9316_v7  ;;  %3265 = vst [vmem:[#allocation4 + $0x18] sm:$0xf] %v3245_v55  ;;  %v2009_v33 = vrot.slane %v2007_v1, 4  ;;  %v3673_v48 = vsel %vm10290_vm3, %v3671_v4, %v3672_v12 }
 0x153   : > { %v9290_v26 = vld [vmem:[#allocation4 + $0x1c] ss:$12 sps:$4 sm:$0xff]   ;;  %3266 = vst [vmem:[#allocation4 + $0x24] sm:$0xf] %v3246_v56  ;;  %v10439_v29 = vld [vmem:[#allocation4 + $0x44] sm:$0xf]  ;;  %v8001_v30 = vcombine.low %v2098_v24, %v2100_v25  ;;  %v2008_v38 = vsel %vm10290_vm3, %v7991_v21, %v2007_v1  ;;  %8519 = vmatpush3.bf16.msra.mxu1 %v9307_v22 }
 0x154   : > { %3575 = vst [vmem:[#allocation4 + $0x1c] sm:$0xf] %v3350_v8  ;;  %3576 = vst [vmem:[#allocation4 + $0x28] sm:$0xf] %v3360_v9  ;;  %v3676_v36 = vrot.slane %v10430_v14, 5  ;;  %2527 = vmatprep.mubr.bf16.mxu0 %v9290_v26  ;;  %v9313_v37 = vld [vmem:[#allocation10 + $0x18] sm:$0xff]   ;;  %v2011_v47 = vsel %vm10290_vm3, %v2009_v33, %v2010_v27  ;;  %8520 = vmatprep.subr.bf16.mxu1 %v9312_v23 }
 0x155   : > { %2079 = vst [vmem:[#allocation4 + $0x44] sm:$0xf] %v2004_v16  ;;  %2528 = vmatmul.mubr.bf16.gmra.mxu0 %v8001_v30  ;;  %v3604_v6 = vld [vmem:[#allocation2 + $0x44] sm:$0x1]  ;;  %v9314_v40 = vld [vmem:[#allocation10 + $0x50] sm:$0xff]   ;;  %v9323_v30 = vld [vmem:[#allocation10 + $0x40] sm:$0xff]  }
 0x156   : > { %v963_v41 = vld [vmem:[#allocation2 + $0x18] sm:$0xf]  ;;  %v964_v32 = vld [vmem:[#allocation2 + $0x1c] sm:$0xf]  ;;  %v1007_v53 = vld [vmem:[#allocation2 + $0x20] sm:$0x1]  ;;  %v3677_v14 = vsel %vm10290_vm3, %v8109_v28, %v3676_v36 }
 0x157   : > { %v10444_v45 = vld [vmem:[#allocation4 + $0x50] sm:$0xf]  ;;  %983 = vst [vmem:[#allocation4 + $0x30] sm:$0xf] %v963_v41  ;;  %984 = vst [vmem:[#allocation4 + $0x3c] sm:$0xf] %v964_v32  ;;  %8521 = vmatpush3.bf16.msra.mxu1 %v9313_v37 }
 0x158   : > { %v1005_v50 = vld [vmem:[#allocation2 + $0x18] sm:$0xf]  ;;  %2080 = vst [vmem:[#allocation4 + $0x50] sm:$0xf] %v2008_v38  ;;  %v1006_v51 = vld [vmem:[#allocation2 + $0x1c] sm:$0xf]  ;;  %8522 = vmatprep.subr.bf16.mxu1 %v9314_v40 }
 0x159   : > { %v10454_v55 = vld [vmem:[#allocation4 + $0x5c] sm:$0xf]  ;;  %v1081_v56 = vshrl.u32 %v1005_v50, 16  ;;  %v1084_v57 = vshll.u32 %v1005_v50, 16  ;;  %v1090_v58 = vshll.u32 %v1006_v51, 16  ;;  %v1094_v59 = vshrl.u32 %v1006_v51, 16 }
 0x15a   : > { %2081 = vst [vmem:[#allocation4 + $0x5c] sm:$0xf] %v2011_v47  ;;  %v3678_v44 = vrot.slane %v3676_v36, 4  ;;  %v3679_v60 = vrot.slane %v3604_v6, 5  ;;  %v1100_v42 = vshll.u32 %v1007_v53, 16  ;;  %v9315_v61 = vld [vmem:[#allocation10 + $0x10] sm:$0xff]  }
 0x15b   : > { %v9321_v49 = vld [vmem:[#allocation10 + $0x48] sm:$0xff]   ;;  %v1083_v1 = vrot.slane %v1081_v56, 4  ;;  %v1086_v2 = vrot.slane %v1084_v57, 5  ;;  %v1092_v7 = vrot.slane %v1090_v58, 5  ;;  %v1096_v8 = vrot.slane %v1094_v59, 4  ;;  %8523 = vmatpush3.bf16.msra.mxu1 %v9315_v61  ;;  %v9327_v28 = vld [vmem:[#allocation10 + $0x98] sm:$0xff]  }
 0x15c   : > { %v9292_v63 = vld [vmem:[#allocation4 + $0x38] ss:$12 sps:$4 sm:$0xff]   ;;  %v1102_v9 = vrot.slane %v1100_v42, 5  ;;  %v1620_v11 = vld [vmem:[#allocation2 + $0x24] sm:$0xf]  ;;  %v3680_v33 = vsel %vm10290_vm3, %v3678_v44, %v3679_v60  ;;  %8524 = vmatprep.subr.bf16.mxu1 %v9321_v49  ;;  %v9324_v32 = vld [vmem:[#allocation10] sm:$0xff]   ;;  %8984 = vmatprep.subr.bf16.mxu0 %v9327_v28 }
 0x15d   : > { %3747 = vst [vmem:[#allocation4 + $0x38] sm:$0xf] %v3670_v43  ;;  %3748 = vst [vmem:[#allocation4 + $0x44] sm:$0xf] %v3673_v48  ;;  %8960 = vmatprep.mubr.bf16.mxu1 %v9292_v63  ;;  %v1087_v16 = vor.u32 %v1086_v2, %v1083_v1  ;;  %v1621_v4 = vld [vmem:[#allocation2 + $0x28] sm:$0xf]  ;;  %v1097_v23 = vor.u32 %v1096_v8, %v1092_v7  ;;  %8985 = vmatpush3.bf16.msra.mxu0 %v9327_v28 }
 0x15e   : > { %v1622_v17 = vld [vmem:[#allocation2 + $0x2c] sm:$0x1]  ;;  %v1693_v21 = vshrl.u32 %v1620_v11, 16  ;;  %v1696_v22 = vshll.u32 %v1620_v11, 16  ;;  %v1702_v24 = vshll.u32 %v1621_v4, 16  ;;  %v1706_v25 = vshrl.u32 %v1621_v4, 16 }
 0x15f   : > { %v1712_v26 = vshll.u32 %v1622_v17, 16  ;;  %v9322_v27 = vld [vmem:[#allocation10 + $0x8] sm:$0xff]   ;;  %v1088_v37 = vrot.slane %v1087_v16, 4  ;;  %v1098_v36 = vrot.slane %v1097_v23, 4  ;;  %v3289_v51 = vld [vmem:[#allocation2 + $0x30] sm:$0xf] }
 0x160   : > { %v1695_v38 = vrot.slane %v1693_v21, 4  ;;  %v1698_v6 = vrot.slane %v1696_v22, 5  ;;  %v10464_v40 = vrot.slane %v1702_v24, 5  ;;  %v1708_v41 = vrot.slane %v1706_v25, 4  ;;  %v3290_v57 = vld [vmem:[#allocation2 + $0x34] sm:$0xf]  ;;  %8525 = vmatpush3.bf16.msra.mxu1 %v9322_v27 }
 0x161   : > { %v10466_v47 = vrot.slane %v1712_v26, 5  ;;  %v9293_v50 = vld [vmem:[#allocation4 + $0x50] ss:$12 sps:$4 sm:$0xff]   ;;  %v1093_v43 = vsel %vm10275_vm1, %v1088_v37, %v1092_v7  ;;  %v1103_v53 = vsel %vm10275_vm1, %v1098_v36, %v1102_v9  ;;  %v3362_v59 = vshrl.u32 %v3289_v51, 16  ;;  %v1324_v63 = vld [vmem:[#allocation2 + $0x30] sm:$0xe]  ;;  %8526 = vmatprep.subr.bf16.mxu1 %v9323_v30 }
 0x162   : > { %v1699_v48 = vor.u32 %v1698_v6, %v1695_v38  ;;  %3749 = vst [vmem:[#allocation4 + $0x50] sm:$0xf] %v3677_v14  ;;  %3750 = vst [vmem:[#allocation4 + $0x5c] sm:$0xf] %v3680_v33  ;;  %v1709_v56 = vor.u32 %v1708_v41, %v10464_v40  ;;  %v3291_v58 = vld [vmem:[#allocation2 + $0x38] sm:$0x1]  ;;  %8961 = vmatmul.mubr.bf16.gmra.mxu1 %v9293_v50 }
 0x163   : > { %1296 = vst [vmem:[#allocation4 + $0x34] sm:$0xf] %v1093_v43  ;;  %v3365_v44 = vshll.u32 %v3289_v51, 16  ;;  %1297 = vst [vmem:[#allocation4 + $0x40] sm:$0xf] %v1103_v53  ;;  %v3371_v42 = vshll.u32 %v3290_v57, 16 }
 0x164   : > { %v1700_v60 = vrot.slane %v1699_v48, 4  ;;  %v3375_v61 = vshrl.u32 %v3290_v57, 16  ;;  %v3381_v49 = vshll.u32 %v3291_v58, 16  ;;  %v1710_v1 = vrot.slane %v1709_v56, 4  ;;  %v1325_v8 = vld [vmem:[#allocation2 + $0x34] sm:$0xf]  ;;  %8527 = vmatpush3.bf16.msra.mxu1 %v9324_v32 }
 0x165   : > { %v3364_v2 = vrot.slane %v3362_v59, 4  ;;  %v3367_v7 = vrot.slane %v3365_v44, 5  ;;  %v7982_v9 = vrot.slane %v1324_v63, 9  ;;  %v1578_v11 = vld [vmem:[#allocation2 + $0x24] sm:$0xf]  ;;  %v10473_v14 = vrot.slane %v3371_v42, 5 }
 0x166   : > { %v3377_v16 = vrot.slane %v3375_v61, 4  ;;  %v1326_v4 = vld [vmem:[#allocation2 + $0x38] sm:$0x1]  ;;  %v9330_v17 = vld [vmem:[#allocation10 + $0x90] sm:$0xff]   ;;  %v1705_v22 = vsel %vm10275_vm1, %v1700_v60, %v10464_v40  ;;  %v1405_v24 = vrot.slane %v1325_v8, 5  ;;  %v10479_v33 = vrot.slane %v3381_v49, 5 }
 0x167   : > { %v1579_v21 = vld [vmem:[#allocation2 + $0x28] sm:$0xf]  ;;  %v3368_v23 = vor.u32 %v3367_v7, %v3364_v2  ;;  %v1408_v25 = vrot.slane %v1326_v4, 5  ;;  %v1936_v26 = vld [vmem:[#allocation2 + $0x3c] sm:$0xe]  ;;  %8986 = vmatprep.subr.bf16.mxu0 %v9330_v17  ;;  %v1715_v28 = vsel %vm10275_vm1, %v1710_v1, %v10466_v47  ;;  %v9333_v7 = vld [vmem:[#allocation10 + $0x88] sm:$0xff]  }
 0x168   : > { %v1937_v27 = vld [vmem:[#allocation2 + $0x40] sm:$0xf]  ;;  %v3378_v30 = vor.u32 %v3377_v16, %v10473_v14  ;;  %v1938_v37 = vld [vmem:[#allocation2 + $0x44] sm:$0x1]  ;;  %v7992_v38 = vrot.slane %v1936_v26, 9  ;;  %v1406_v36 = vsel %vm10290_vm3, %v7982_v9, %v1405_v24  ;;  %v1407_v40 = vrot.slane %v1405_v24, 4  ;;  %8987 = vmatpush3.bf16.msra.mxu0 %v9330_v17 }
 0x169   : > { %v2014_v6 = vrot.slane %v1937_v27, 5  ;;  %v10486_v41 = vld [vmem:[#allocation2 + $0x48] sm:$0xe]  ;;  %v10488_v50 = vld [vmem:[#allocation2 + $0x4c] sm:$0xf]  ;;  %v3369_v43 = vrot.slane %v3368_v23, 4  ;;  %8988 = vmatprep.subr.bf16.mxu0 %v9333_v7 }
 0x16a   : > { %v10490_v32 = vld [vmem:[#allocation4 + $0x30] sm:$0xff]  ;;  %v3379_v48 = vrot.slane %v3378_v30, 4  ;;  %1473 = vst [vmem:[#allocation4 + $0x68] sm:$0xf] %v1406_v36  ;;  %v2017_v51 = vrot.slane %v1938_v37, 5  ;;  %v10494_v56 = vld [vmem:[#allocation4 + $0x3c] sm:$0xff]  ;;  %v1409_v47 = vsel %vm10290_vm3, %v1407_v40, %v1408_v25 }
 0x16b   : > { %v10492_v53 = vld [vmem:[#allocation2 + $0x50] sm:$0x1]  ;;  %1598 = vst [vmem:[#allocation4 + $0x30] sm:$0xf] %v1578_v11  ;;  %1908 = vst [vmem:[#allocation4 + $0x34] sm:$0xf] %v1705_v22  ;;  %v2015_v8 = vsel %vm10290_vm3, %v7992_v38, %v2014_v6  ;;  %v3374_v22 = vsel %vm10275_vm1, %v3369_v43, %v10473_v14 }
 0x16c   : > { %v2016_v57 = vrot.slane %v2014_v6, 4  ;;  %v3683_v58 = vrot.slane %v10488_v50, 5  ;;  %v1327_v59 = vld [vmem:[#allocation2 + $0x3c] sm:$0xe]  ;;  %1599 = vst [vmem:[#allocation4 + $0x3c] sm:$0xf] %v1579_v21  ;;  %v3384_v30 = vsel %vm10275_vm1, %v3379_v48, %v10479_v33  ;;  %8989 = vmatpush3.bf16.msra.mxu0 %v9333_v7 }
 0x16d   : > { %1909 = vst [vmem:[#allocation4 + $0x40] sm:$0xf] %v1715_v28  ;;  %1474 = vst [vmem:[#allocation4 + $0x74] sm:$0xf] %v1409_v47  ;;  %v1328_v44 = vld [vmem:[#allocation2 + $0x40] sm:$0xf] }
 0x16e   : > { %v1329_v60 = vld [vmem:[#allocation2 + $0x44] sm:$0x1]  ;;  %v7983_v42 = vrot.slane %v1327_v59, 9  ;;  %v8110_v49 = vrot.slane %v10486_v41, 9  ;;  %v1412_v63 = vrot.slane %v1328_v44, 5  ;;  %v3686_v9 = vrot.slane %v10492_v53, 5 }
 0x16f   : > { %v1415_v1 = vrot.slane %v1329_v60, 5  ;;  %v1939_v2 = vld [vmem:[#allocation2 + $0x48] sm:$0xe]  ;;  %v1940_v11 = vld [vmem:[#allocation2 + $0x4c] sm:$0xf]  ;;  %v3685_v37 = vrot.slane %v3683_v58, 4  ;;  %v2018_v36 = vsel %vm10290_vm3, %v2016_v57, %v2017_v51 }
 0x170   : > { %v1941_v16 = vld [vmem:[#allocation2 + $0x50] sm:$0x1]  ;;  %v3248_v21 = vld [vmem:[#allocation2 + $0x34] sm:$0xf]  ;;  %v1413_v23 = vsel %vm10290_vm3, %v7983_v42, %v1412_v63  ;;  %v1414_v24 = vrot.slane %v1412_v63, 4  ;;  %v2021_v25 = vrot.slane %v1940_v11, 5 }
 0x171   : > { %v3247_v17 = vld [vmem:[#allocation2 + $0x30] sm:$0xf]  ;;  %v3608_v26 = vld [vmem:[#allocation2 + $0x54] sm:$0xe]  ;;  %v3609_v27 = vld [vmem:[#allocation2 + $0x58] sm:$0xf] }
 0x172   : > { %1475 = vst [vmem:[#allocation4 + $0x80] sm:$0xf] %v1413_v23  ;;  %v7993_v38 = vrot.slane %v1939_v2, 9  ;;  %v2024_v6 = vrot.slane %v1941_v16, 5  ;;  %v10517_v28 = vld [vmem:[#allocation2 + $0x5c] sm:$0x1]  ;;  %v1416_v40 = vsel %vm10290_vm3, %v1414_v24, %v1415_v1  ;;  %v3684_v23 = vsel %vm10290_vm3, %v8110_v49, %v3683_v58 }
 0x173   : > { %v10519_v14 = vld [vmem:[#allocation4 + $0x68] sm:$0xf]  ;;  %v8111_v43 = vrot.slane %v3608_v26, 9  ;;  %v3690_v53 = vrot.slane %v3609_v27, 5  ;;  %v2102_v33 = vld [vmem:[#allocation4 + $0x30] sm:$0xff]  ;;  %v2023_v48 = vrot.slane %v2021_v25, 4  ;;  %v3687_v24 = vsel %vm10290_vm3, %v3685_v37, %v3686_v9 }
 0x174   : > { %2082 = vst [vmem:[#allocation4 + $0x68] sm:$0xf] %v2015_v8  ;;  %1476 = vst [vmem:[#allocation4 + $0x8c] sm:$0xf] %v1416_v40  ;;  %v2104_v47 = vld [vmem:[#allocation4 + $0x3c] sm:$0xff]  ;;  %v3693_v60 = vrot.slane %v10517_v28, 5  ;;  %v2022_v57 = vsel %vm10290_vm3, %v7993_v38, %v2021_v25 }
 0x175   : > { %v9299_v59 = vld [vmem:[#allocation4 + $0x34] ss:$12 sps:$4 sm:$0xff]   ;;  %3267 = vst [vmem:[#allocation4 + $0x30] sm:$0xf] %v3247_v17  ;;  %3268 = vst [vmem:[#allocation4 + $0x3c] sm:$0xf] %v3248_v21  ;;  %v8004_v51 = vcombine.low %v2102_v33, %v2104_v47  ;;  %v2025_v2 = vsel %vm10290_vm3, %v2023_v48, %v2024_v6  ;;  %v3691_v41 = vsel %vm10290_vm3, %v8111_v43, %v3690_v53 }
 0x176   : > { %v10525_v44 = vld [vmem:[#allocation4 + $0x74] sm:$0xf]  ;;  %3577 = vst [vmem:[#allocation4 + $0x34] sm:$0xf] %v3374_v22  ;;  %3578 = vst [vmem:[#allocation4 + $0x40] sm:$0xf] %v3384_v30  ;;  %2535 = vmatprep.mubr.bf16.mxu0 %v9299_v59 }
 0x177   : > { %2083 = vst [vmem:[#allocation4 + $0x74] sm:$0xf] %v2018_v36  ;;  %2536 = vmatmul.mubr.bf16.gmra.mxu0 %v8004_v51  ;;  %v965_v42 = vld [vmem:[#allocation2 + $0x24] sm:$0xf]  ;;  %v966_v63 = vld [vmem:[#allocation2 + $0x28] sm:$0xf] }
 0x178   : > { %985 = vst [vmem:[#allocation4 + $0x48] sm:$0xf] %v965_v42  ;;  %986 = vst [vmem:[#allocation4 + $0x54] sm:$0xf] %v966_v63  ;;  %v1008_v7 = vld [vmem:[#allocation2 + $0x24] sm:$0xf] }
 0x179   : > { %v10530_v1 = vld [vmem:[#allocation4 + $0x80] sm:$0xf]  ;;  %v1010_v11 = vld [vmem:[#allocation2 + $0x2c] sm:$0x1]  ;;  %v1105_v16 = vshrl.u32 %v1008_v7, 16  ;;  %v1108_v17 = vshll.u32 %v1008_v7, 16 }
 0x17a   : > { %v1009_v8 = vld [vmem:[#allocation2 + $0x28] sm:$0xf]  ;;  %2084 = vst [vmem:[#allocation4 + $0x80] sm:$0xf] %v2022_v57  ;;  %v3692_v26 = vrot.slane %v3690_v53, 4  ;;  %v1124_v27 = vshll.u32 %v1010_v11, 16 }
 0x17b   : > { %v1114_v21 = vshll.u32 %v1009_v8, 16  ;;  %v1118_v22 = vshrl.u32 %v1009_v8, 16  ;;  %v10542_v25 = vld [vmem:[#allocation4 + $0x8c] sm:$0xf]  ;;  %v1107_v30 = vrot.slane %v1105_v16, 4  ;;  %v1110_v38 = vrot.slane %v1108_v17, 5 }
 0x17c   : > { %2085 = vst [vmem:[#allocation4 + $0x8c] sm:$0xf] %v2025_v2  ;;  %v9336_v40 = vld [vmem:[#allocation10 + $0x80] sm:$0xff]   ;;  %v1126_v49 = vrot.slane %v1124_v27, 5  ;;  %v1623_v9 = vld [vmem:[#allocation2 + $0x30] sm:$0xf]  ;;  %v3694_v57 = vsel %vm10290_vm3, %v3692_v26, %v3693_v60 }
 0x17d   : > { %v1116_v6 = vrot.slane %v1114_v21, 5  ;;  %v1120_v28 = vrot.slane %v1118_v22, 4  ;;  %v1111_v50 = vor.u32 %v1110_v38, %v1107_v30  ;;  %v1624_v37 = vld [vmem:[#allocation2 + $0x34] sm:$0xf]  ;;  %v1625_v33 = vld [vmem:[#allocation2 + $0x38] sm:$0x1]  ;;  %8990 = vmatprep.subr.bf16.mxu0 %v9336_v40 }
 0x17e   : > { %v9301_v36 = vld [vmem:[#allocation4 + $0x68] ss:$12 sps:$4 sm:$0xff]   ;;  %v1717_v48 = vshrl.u32 %v1623_v9, 16  ;;  %v1720_v47 = vshll.u32 %v1623_v9, 16  ;;  %v1726_v59 = vshll.u32 %v1624_v37, 16  ;;  %v1730_v51 = vshrl.u32 %v1624_v37, 16  ;;  %8991 = vmatpush3.bf16.msra.mxu0 %v9336_v40 }
 0x17f   : > { %3751 = vst [vmem:[#allocation4 + $0x68] sm:$0xf] %v3684_v23  ;;  %3752 = vst [vmem:[#allocation4 + $0x74] sm:$0xf] %v3687_v24  ;;  %v1121_v58 = vor.u32 %v1120_v28, %v1116_v6  ;;  %8964 = vmatprep.mubr.bf16.mxu1 %v9301_v36  ;;  %v1112_v42 = vrot.slane %v1111_v50, 4  ;;  %v1736_v2 = vshll.u32 %v1625_v33, 16 }
 0x180   : > { %v1719_v43 = vrot.slane %v1717_v48, 4  ;;  %v1722_v53 = vrot.slane %v1720_v47, 5  ;;  %v1728_v7 = vrot.slane %v1726_v59, 5  ;;  %v1732_v8 = vrot.slane %v1730_v51, 4  ;;  %v3292_v21 = vld [vmem:[#allocation2 + $0x3c] sm:$0xf] }
 0x181   : > { %v1122_v63 = vrot.slane %v1121_v58, 4  ;;  %v1117_v11 = vsel %vm10275_vm1, %v1112_v42, %v1116_v6  ;;  %v1738_v17 = vrot.slane %v1736_v2, 5  ;;  %v3293_v24 = vld [vmem:[#allocation2 + $0x40] sm:$0xf]  ;;  %v3294_v26 = vld [vmem:[#allocation2 + $0x44] sm:$0x1] }
 0x182   : > { %1298 = vst [vmem:[#allocation4 + $0x4c] sm:$0xf] %v1117_v11  ;;  %v1723_v60 = vor.u32 %v1722_v53, %v1719_v43  ;;  %v1733_v23 = vor.u32 %v1732_v8, %v1728_v7  ;;  %v3386_v27 = vshrl.u32 %v3292_v21, 16  ;;  %v3389_v30 = vshll.u32 %v3292_v21, 16  ;;  %v1330_v50 = vld [vmem:[#allocation2 + $0x48] sm:$0xe] }
 0x183   : > { %v1127_v16 = vsel %vm10275_vm1, %v1122_v63, %v1126_v49  ;;  %v9302_v22 = vld [vmem:[#allocation4 + $0x80] ss:$12 sps:$4 sm:$0xff]   ;;  %v3395_v38 = vshll.u32 %v3293_v24, 16  ;;  %v3399_v28 = vshrl.u32 %v3293_v24, 16  ;;  %v3405_v40 = vshll.u32 %v3294_v26, 16 }
 0x184   : > { %1299 = vst [vmem:[#allocation4 + $0x58] sm:$0xf] %v1127_v16  ;;  %3753 = vst [vmem:[#allocation4 + $0x80] sm:$0xf] %v3691_v41  ;;  %8965 = vmatmul.mubr.bf16.gmra.mxu1 %v9302_v22  ;;  %v1724_v6 = vrot.slane %v1723_v60, 4  ;;  %v1734_v36 = vrot.slane %v1733_v23, 4 }
 0x185   : > { %3754 = vst [vmem:[#allocation4 + $0x8c] sm:$0xf] %v3694_v57  ;;  %v1580_v58 = vld [vmem:[#allocation2 + $0x30] sm:$0xf]  ;;  %v1581_v49 = vld [vmem:[#allocation2 + $0x34] sm:$0xf] }
 0x186   : > { %v3388_v9 = vrot.slane %v3386_v27, 4  ;;  %v3391_v37 = vrot.slane %v3389_v30, 5  ;;  %v10552_v33 = vrot.slane %v3395_v38, 5  ;;  %v3401_v48 = vrot.slane %v3399_v28, 4  ;;  %v1331_v47 = vld [vmem:[#allocation2 + $0x4c] sm:$0xf] }
 0x187   : > { %v1729_v41 = vsel %vm10275_vm1, %v1724_v6, %v1728_v7  ;;  %v1739_v59 = vsel %vm10275_vm1, %v1734_v36, %v1738_v17  ;;  %v1332_v51 = vld [vmem:[#allocation2 + $0x50] sm:$0x1]  ;;  %v7984_v57 = vrot.slane %v1330_v50, 9  ;;  %v1942_v42 = vld [vmem:[#allocation2 + $0x54] sm:$0xe]  ;;  %v1419_v43 = vrot.slane %v1331_v47, 5 }
 0x188   : > { %v3392_v63 = vor.u32 %v3391_v37, %v3388_v9  ;;  %v3402_v2 = vor.u32 %v3401_v48, %v10552_v33  ;;  %v1422_v53 = vrot.slane %v1332_v51, 5  ;;  %v1943_v8 = vld [vmem:[#allocation2 + $0x58] sm:$0xf]  ;;  %v1944_v11 = vld [vmem:[#allocation2 + $0x5c] sm:$0x1]  ;;  %v3407_v16 = vrot.slane %v3405_v40, 5 }
 0x189   : > { %v10559_v21 = vld [vmem:[#allocation4 + $0x48] sm:$0xff]  ;;  %v1420_v7 = vsel %vm10290_vm3, %v7984_v57, %v1419_v43  ;;  %v1421_v60 = vrot.slane %v1419_v43, 4  ;;  %v7994_v17 = vrot.slane %v1942_v42, 9  ;;  %v2028_v23 = vrot.slane %v1943_v8, 5  ;;  %v10565_v27 = vld [vmem:[#allocation2 + $0x60] sm:$0xe] }
 0x18a   : > { %1600 = vst [vmem:[#allocation4 + $0x48] sm:$0xf] %v1580_v58  ;;  %1910 = vst [vmem:[#allocation4 + $0x4c] sm:$0xf] %v1729_v41  ;;  %v3393_v24 = vrot.slane %v3392_v63, 4  ;;  %v2031_v26 = vrot.slane %v1944_v11, 5 }
 0x18b   : > { %v10561_v22 = vld [vmem:[#allocation4 + $0x54] sm:$0xff]  ;;  %1477 = vst [vmem:[#allocation4 + $0x98] sm:$0xf] %v1420_v7  ;;  %v10567_v30 = vld [vmem:[#allocation2 + $0x64] sm:$0xf]  ;;  %v3403_v28 = vrot.slane %v3402_v2, 4  ;;  %v1423_v6 = vsel %vm10290_vm3, %v1421_v60, %v1422_v53 }
 0x18c   : > { %1601 = vst [vmem:[#allocation4 + $0x54] sm:$0xf] %v1581_v49  ;;  %1911 = vst [vmem:[#allocation4 + $0x58] sm:$0xf] %v1739_v59  ;;  %v3697_v36 = vrot.slane %v10567_v30, 5  ;;  %v2030_v47 = vrot.slane %v2028_v23, 4  ;;  %v3398_v11 = vsel %vm10275_vm1, %v3393_v24, %v10552_v33 }
 0x18d   : > { %v1333_v40 = vld [vmem:[#allocation2 + $0x54] sm:$0xe]  ;;  %v1334_v50 = vld [vmem:[#allocation2 + $0x58] sm:$0xf]  ;;  %1478 = vst [vmem:[#allocation4 + $0xa4] sm:$0xf] %v1423_v6  ;;  %v3408_v7 = vsel %vm10275_vm1, %v3403_v28, %v3407_v16 }
 0x18e   : > { %v10574_v58 = vld [vmem:[#allocation2 + $0x68] sm:$0x1]  ;;  %v1335_v49 = vld [vmem:[#allocation2 + $0x5c] sm:$0x1]  ;;  %v7985_v9 = vrot.slane %v1333_v40, 9  ;;  %v1426_v37 = vrot.slane %v1334_v50, 5  ;;  %v2032_v16 = vsel %vm10290_vm3, %v2030_v47, %v2031_v26 }
 0x18f   : > { %v3249_v48 = vld [vmem:[#allocation2 + $0x3c] sm:$0xf]  ;;  %v1429_v41 = vrot.slane %v1335_v49, 5  ;;  %v1945_v59 = vld [vmem:[#allocation2 + $0x60] sm:$0xe]  ;;  %v8112_v42 = vrot.slane %v10565_v27, 9  ;;  %v2029_v27 = vsel %vm10290_vm3, %v7994_v17, %v2028_v23 }
 0x190   : > { %v1946_v51 = vld [vmem:[#allocation2 + $0x64] sm:$0xf]  ;;  %v1427_v63 = vsel %vm10290_vm3, %v7985_v9, %v1426_v37  ;;  %v1428_v2 = vrot.slane %v1426_v37, 4  ;;  %v1947_v43 = vld [vmem:[#allocation2 + $0x68] sm:$0x1]  ;;  %v3699_v60 = vrot.slane %v3697_v36, 4 }
 0x191   : > { %v2035_v53 = vrot.slane %v1946_v51, 5  ;;  %v3250_v8 = vld [vmem:[#allocation2 + $0x40] sm:$0xf]  ;;  %v3700_v30 = vrot.slane %v10574_v58, 5  ;;  %1479 = vst [vmem:[#allocation4 + $0xb0] sm:$0xf] %v1427_v63 }
 0x192   : > { %v10587_v6 = vld [vmem:[#allocation2 + $0x6c] sm:$0xe]  ;;  %v1430_v40 = vsel %vm10290_vm3, %v1428_v2, %v1429_v41  ;;  %v7995_v50 = vrot.slane %v1945_v59, 9  ;;  %v2038_v49 = vrot.slane %v1947_v43, 5  ;;  %v3615_v9 = vld [vmem:[#allocation2 + $0x70] sm:$0xf] }
 0x193   : > { %v2106_v37 = vld [vmem:[#allocation4 + $0x48] sm:$0xff]  ;;  %v2108_v33 = vld [vmem:[#allocation4 + $0x54] sm:$0xff]  ;;  %1480 = vst [vmem:[#allocation4 + $0xbc] sm:$0xf] %v1430_v40  ;;  %v2037_v28 = vrot.slane %v2035_v53, 4  ;;  %v8113_v58 = vrot.slane %v10587_v6, 9 }
 0x194   : > { %v9308_v24 = vld [vmem:[#allocation4 + $0x4c] ss:$12 sps:$4 sm:$0xff]   ;;  %3269 = vst [vmem:[#allocation4 + $0x48] sm:$0xf] %v3249_v48  ;;  %3270 = vst [vmem:[#allocation4 + $0x54] sm:$0xf] %v3250_v8  ;;  %v8007_v23 = vcombine.low %v2106_v37, %v2108_v33  ;;  %v2036_v26 = vsel %vm10290_vm3, %v7995_v50, %v2035_v53  ;;  %v3701_v37 = vsel %vm10290_vm3, %v3699_v60, %v3700_v30 }
 0x195   : > { %3579 = vst [vmem:[#allocation4 + $0x4c] sm:$0xf] %v3398_v11  ;;  %3580 = vst [vmem:[#allocation4 + $0x58] sm:$0xf] %v3408_v7  ;;  %v10596_v17 = vld [vmem:[#allocation4 + $0x98] sm:$0xf]  ;;  %2543 = vmatprep.mubr.bf16.mxu0 %v9308_v24  ;;  %v2039_v63 = vsel %vm10290_vm3, %v2037_v28, %v2038_v49  ;;  %v3698_v11 = vsel %vm10290_vm3, %v8112_v42, %v3697_v36 }
 0x196   : > { %v10598_v41 = vld [vmem:[#allocation4 + $0xa4] sm:$0xf]  ;;  %2086 = vst [vmem:[#allocation4 + $0x98] sm:$0xf] %v2029_v27  ;;  %v3704_v59 = vrot.slane %v3615_v9, 5  ;;  %v9339_v51 = vld [vmem:[#allocation10 + $0x1f8] sm:$0xff]   ;;  %2544 = vmatmul.mubr.bf16.gmra.mxu0 %v8007_v23 }
 0x197   : > { %2087 = vst [vmem:[#allocation4 + $0xa4] sm:$0xf] %v2032_v16  ;;  %v3616_v47 = vld [vmem:[#allocation2 + $0x74] sm:$0x1]  ;;  %8606 = vmatprep.subr.bf16.mxu0 %v9339_v51  ;;  %v967_v2 = vld [vmem:[#allocation2 + $0x30] sm:$0xf] }
 0x198   : > { %v10602_v48 = vld [vmem:[#allocation4 + $0xb0] sm:$0xf]  ;;  %v968_v43 = vld [vmem:[#allocation2 + $0x34] sm:$0xf]  ;;  %987 = vst [vmem:[#allocation4 + $0x60] sm:$0xf] %v967_v2  ;;  %v3705_v60 = vsel %vm10290_vm3, %v8113_v58, %v3704_v59 }
 0x199   : > { %2088 = vst [vmem:[#allocation4 + $0xb0] sm:$0xf] %v2036_v26  ;;  %988 = vst [vmem:[#allocation4 + $0x6c] sm:$0xf] %v968_v43  ;;  %v1011_v7 = vld [vmem:[#allocation2 + $0x30] sm:$0xf] }
 0x19a   : > { %v1012_v53 = vld [vmem:[#allocation2 + $0x34] sm:$0xf]  ;;  %v1013_v6 = vld [vmem:[#allocation2 + $0x38] sm:$0x1]  ;;  %v10610_v27 = vld [vmem:[#allocation4 + $0xbc] sm:$0xf] }
 0x19b   : > { %v1129_v40 = vshrl.u32 %v1011_v7, 16  ;;  %v1132_v50 = vshll.u32 %v1011_v7, 16  ;;  %v1138_v9 = vshll.u32 %v1012_v53, 16  ;;  %v1142_v49 = vshrl.u32 %v1012_v53, 16  ;;  %2089 = vst [vmem:[#allocation4 + $0xbc] sm:$0xf] %v2039_v63 }
 0x19c   : > { %v3706_v33 = vrot.slane %v3704_v59, 4  ;;  %v3707_v24 = vrot.slane %v3616_v47, 5  ;;  %v1148_v16 = vshll.u32 %v1013_v6, 16  ;;  %v10614_v2 = vld [vmem:[#allocation10 + $0x238] sm:$0xff]   ;;  %v1626_v63 = vld [vmem:[#allocation2 + $0x3c] sm:$0xf] }
 0x19d   : > { %v1131_v36 = vrot.slane %v1129_v40, 4  ;;  %v1134_v42 = vrot.slane %v1132_v50, 5  ;;  %v1140_v28 = vrot.slane %v1138_v9, 5  ;;  %v1144_v23 = vrot.slane %v1142_v49, 4  ;;  %v1627_v53 = vld [vmem:[#allocation2 + $0x40] sm:$0xf]  ;;  %9012 = vmatprep.subr.bf16.mxu1 %v10614_v2 }
 0x19e   : > { %v9310_v51 = vld [vmem:[#allocation4 + $0x98] ss:$12 sps:$4 sm:$0xff]   ;;  %v1150_v26 = vrot.slane %v1148_v16, 5  ;;  %v1628_v6 = vld [vmem:[#allocation2 + $0x44] sm:$0x1]  ;;  %v1741_v40 = vshrl.u32 %v1626_v63, 16  ;;  %v3708_v16 = vsel %vm10290_vm3, %v3706_v33, %v3707_v24 }
 0x19f   : > { %3755 = vst [vmem:[#allocation4 + $0x98] sm:$0xf] %v3698_v11  ;;  %3756 = vst [vmem:[#allocation4 + $0xa4] sm:$0xf] %v3701_v37  ;;  %v1135_v30 = vor.u32 %v1134_v42, %v1131_v36  ;;  %v1145_v47 = vor.u32 %v1144_v23, %v1140_v28  ;;  %8968 = vmatprep.mubr.bf16.mxu1 %v9310_v51  ;;  %v1744_v50 = vshll.u32 %v1626_v63, 16  ;;  %v1750_v9 = vshll.u32 %v1627_v53, 16 }
 0x1a0   : > { %v1754_v49 = vshrl.u32 %v1627_v53, 16  ;;  %v1760_v7 = vshll.u32 %v1628_v6, 16  ;;  %v1743_v43 = vrot.slane %v1741_v40, 4  ;;  %v3297_v53 = vld [vmem:[#allocation2 + $0x50] sm:$0x1] }
 0x1a1   : > { %v1136_v11 = vrot.slane %v1135_v30, 4  ;;  %v1146_v37 = vrot.slane %v1145_v47, 4  ;;  %v1746_v58 = vrot.slane %v1744_v50, 5  ;;  %v1752_v59 = vrot.slane %v1750_v9, 5  ;;  %v3295_v30 = vld [vmem:[#allocation2 + $0x48] sm:$0xf] }
 0x1a2   : > { %v1756_v36 = vrot.slane %v1754_v49, 4  ;;  %v9311_v42 = vld [vmem:[#allocation4 + $0xb0] ss:$12 sps:$4 sm:$0xff]   ;;  %v1762_v63 = vrot.slane %v1760_v7, 5  ;;  %v3296_v47 = vld [vmem:[#allocation2 + $0x4c] sm:$0xf] }
 0x1a3   : > { %v1141_v23 = vsel %vm10275_vm1, %v1136_v11, %v1140_v28  ;;  %v1151_v51 = vsel %vm10275_vm1, %v1146_v37, %v1150_v26  ;;  %3757 = vst [vmem:[#allocation4 + $0xb0] sm:$0xf] %v3705_v60  ;;  %3758 = vst [vmem:[#allocation4 + $0xbc] sm:$0xf] %v3708_v16  ;;  %v1747_v33 = vor.u32 %v1746_v58, %v1743_v43  ;;  %8969 = vmatmul.mubr.bf16.gmra.mxu1 %v9311_v42  ;;  %v1336_v49 = vld [vmem:[#allocation2 + $0x60] sm:$0xe] }
 0x1a4   : > { %1300 = vst [vmem:[#allocation4 + $0x64] sm:$0xf] %v1141_v23  ;;  %1301 = vst [vmem:[#allocation4 + $0x70] sm:$0xf] %v1151_v51  ;;  %v1757_v24 = vor.u32 %v1756_v36, %v1752_v59  ;;  %v3410_v6 = vshrl.u32 %v3295_v30, 16  ;;  %v3413_v40 = vshll.u32 %v3295_v30, 16 }
 0x1a5   : > { %v3419_v50 = vshll.u32 %v3296_v47, 16  ;;  %v3423_v9 = vshrl.u32 %v3296_v47, 16  ;;  %v1748_v28 = vrot.slane %v1747_v33, 4  ;;  %v3429_v8 = vshll.u32 %v3297_v53, 16  ;;  %v1337_v26 = vld [vmem:[#allocation2 + $0x64] sm:$0xf] }
 0x1a6   : > { %v1758_v11 = vrot.slane %v1757_v24, 4  ;;  %v7986_v7 = vrot.slane %v1336_v49, 9  ;;  %v1582_v60 = vld [vmem:[#allocation2 + $0x3c] sm:$0xf]  ;;  %v3412_v16 = vrot.slane %v3410_v6, 4  ;;  %v3415_v37 = vrot.slane %v3413_v40, 5 }
 0x1a7   : > { %v10629_v23 = vrot.slane %v3419_v50, 5  ;;  %v3425_v43 = vrot.slane %v3423_v9, 4  ;;  %v1338_v58 = vld [vmem:[#allocation2 + $0x68] sm:$0x1]  ;;  %v1753_v36 = vsel %vm10275_vm1, %v1748_v28, %v1752_v59  ;;  %v1433_v42 = vrot.slane %v1337_v26, 5 }
 0x1a8   : > { %v1948_v51 = vld [vmem:[#allocation2 + $0x6c] sm:$0xe]  ;;  %v1949_v30 = vld [vmem:[#allocation2 + $0x70] sm:$0xf]  ;;  %v1583_v47 = vld [vmem:[#allocation2 + $0x40] sm:$0xf]  ;;  %v1763_v33 = vsel %vm10275_vm1, %v1758_v11, %v1762_v63  ;;  %v3416_v24 = vor.u32 %v3415_v37, %v3412_v16 }
 0x1a9   : > { %v3426_v53 = vor.u32 %v3425_v43, %v10629_v23  ;;  %v1436_v49 = vrot.slane %v1338_v58, 5  ;;  %v1950_v6 = vld [vmem:[#allocation2 + $0x74] sm:$0x1]  ;;  %v1434_v40 = vsel %vm10290_vm3, %v7986_v7, %v1433_v42  ;;  %v1435_v50 = vrot.slane %v1433_v42, 4  ;;  %v10638_v57 = vld [vmem:[#allocation2 + $0x7c] sm:$0xf] }
 0x1aa   : > { %v2042_v9 = vrot.slane %v1949_v30, 5  ;;  %v3431_v26 = vrot.slane %v3429_v8, 5  ;;  %1481 = vst [vmem:[#allocation4 + $0xc8] sm:$0xf] %v1434_v40  ;;  %v7996_v38 = vrot.slane %v1948_v51, 9  ;;  %v3417_v7 = vrot.slane %v3416_v24, 4 }
 0x1ab   : > { %v10640_v59 = vld [vmem:[#allocation4 + $0x60] sm:$0xff]  ;;  %v10642_v28 = vld [vmem:[#allocation4 + $0x6c] sm:$0xff]  ;;  %v1437_v37 = vsel %vm10290_vm3, %v1435_v50, %v1436_v49  ;;  %v2045_v43 = vrot.slane %v1950_v6, 5  ;;  %v1340_v58 = vld [vmem:[#allocation2 + $0x70] sm:$0xf]  ;;  %v3427_v42 = vrot.slane %v3426_v53, 4 }
 0x1ac   : > { %v10644_v63 = vld [vmem:[#allocation2 + $0x78] sm:$0xe]  ;;  %1602 = vst [vmem:[#allocation4 + $0x60] sm:$0xf] %v1582_v60  ;;  %1603 = vst [vmem:[#allocation4 + $0x6c] sm:$0xf] %v1583_v47  ;;  %v2043_v49 = vsel %vm10290_vm3, %v7996_v38, %v2042_v9  ;;  %v3422_v38 = vsel %vm10275_vm1, %v3417_v7, %v10629_v23 }
 0x1ad   : > { %1912 = vst [vmem:[#allocation4 + $0x64] sm:$0xf] %v1753_v36  ;;  %1913 = vst [vmem:[#allocation4 + $0x70] sm:$0xf] %v1763_v33  ;;  %v1339_v8 = vld [vmem:[#allocation2 + $0x6c] sm:$0xe] }
 0x1ae   : > { %1482 = vst [vmem:[#allocation4 + $0xd4] sm:$0xf] %v1437_v37  ;;  %v10652_v51 = vld [vmem:[#allocation2 + $0x80] sm:$0x1]  ;;  %v3711_v30 = vrot.slane %v10638_v57, 5  ;;  %v2044_v11 = vrot.slane %v2042_v9, 4  ;;  %v3432_v9 = vsel %vm10275_vm1, %v3427_v42, %v3431_v26 }
 0x1af   : > { %v1341_v40 = vld [vmem:[#allocation2 + $0x74] sm:$0x1]  ;;  %v7987_v16 = vrot.slane %v1339_v8, 9  ;;  %v1440_v60 = vrot.slane %v1340_v58, 5  ;;  %v1952_v36 = vld [vmem:[#allocation2 + $0x7c] sm:$0xf] }
 0x1b0   : > { %v1443_v47 = vrot.slane %v1341_v40, 5  ;;  %v3251_v33 = vld [vmem:[#allocation2 + $0x48] sm:$0xf]  ;;  %v3252_v24 = vld [vmem:[#allocation2 + $0x4c] sm:$0xf]  ;;  %v8114_v6 = vrot.slane %v10644_v63, 9 }
 0x1b1   : > { %v1951_v50 = vld [vmem:[#allocation2 + $0x78] sm:$0xe]  ;;  %v1953_v53 = vld [vmem:[#allocation2 + $0x80] sm:$0x1]  ;;  %v2049_v37 = vrot.slane %v1952_v36, 5  ;;  %v3713_v4 = vrot.slane %v3711_v30, 4  ;;  %v1441_v8 = vsel %vm10290_vm3, %v7987_v16, %v1440_v60 }
 0x1b2   : > { %v3714_v61 = vrot.slane %v10652_v51, 5  ;;  %v1442_v58 = vrot.slane %v1440_v60, 4  ;;  %v10663_v40 = vld [vmem:[#allocation2 + $0x84] sm:$0xe]  ;;  %1483 = vst [vmem:[#allocation4 + $0xe0] sm:$0xf] %v1441_v8  ;;  %v2046_v51 = vsel %vm10290_vm3, %v2044_v11, %v2045_v43 }
 0x1b3   : > { %v3621_v63 = vld [vmem:[#allocation2 + $0x88] sm:$0xf]  ;;  %v10670_v36 = vld [vmem:[#allocation2 + $0x8c] sm:$0x1]  ;;  %v10672_v12 = vld [vmem:[#allocation4 + $0xc8] sm:$0xf] }
 0x1b4   : > { %v1444_v16 = vsel %vm10290_vm3, %v1442_v58, %v1443_v47  ;;  %v7997_v60 = vrot.slane %v1951_v50, 9  ;;  %v2052_v3 = vrot.slane %v1953_v53, 5  ;;  %v2110_v54 = vld [vmem:[#allocation4 + $0x60] sm:$0xff]  ;;  %v2112_v31 = vld [vmem:[#allocation4 + $0x6c] sm:$0xff]  ;;  %2090 = vst [vmem:[#allocation4 + $0xc8] sm:$0xf] %v2043_v49 }
 0x1b5   : > { %v9317_v23 = vld [vmem:[#allocation4 + $0x64] ss:$12 sps:$4 sm:$0xff]   ;;  %1484 = vst [vmem:[#allocation4 + $0xec] sm:$0xf] %v1444_v16  ;;  %v2051_v26 = vrot.slane %v2049_v37, 4  ;;  %v8115_v7 = vrot.slane %v10663_v40, 9  ;;  %v8010_v11 = vcombine.low %v2110_v54, %v2112_v31  ;;  %v3715_v16 = vsel %vm10290_vm3, %v3713_v4, %v3714_v61 }
 0x1b6   : > { %3271 = vst [vmem:[#allocation4 + $0x60] sm:$0xf] %v3251_v33  ;;  %3272 = vst [vmem:[#allocation4 + $0x6c] sm:$0xf] %v3252_v24  ;;  %v10679_v42 = vld [vmem:[#allocation4 + $0xd4] sm:$0xf]  ;;  %2551 = vmatprep.mubr.bf16.mxu0 %v9317_v23  ;;  %v2050_v49 = vsel %vm10290_vm3, %v7997_v60, %v2049_v37  ;;  %v3712_v37 = vsel %vm10290_vm3, %v8114_v6, %v3711_v30 }
 0x1b7   : > { %3581 = vst [vmem:[#allocation4 + $0x64] sm:$0xf] %v3422_v38  ;;  %3582 = vst [vmem:[#allocation4 + $0x70] sm:$0xf] %v3432_v9  ;;  %v3718_v43 = vrot.slane %v3621_v63, 5  ;;  %v3721_v47 = vrot.slane %v10670_v36, 5  ;;  %2552 = vmatmul.mubr.bf16.gmra.mxu0 %v8010_v11  ;;  %v2053_v31 = vsel %vm10290_vm3, %v2051_v26, %v2052_v3 }
 0x1b8   : > { %2091 = vst [vmem:[#allocation4 + $0xd4] sm:$0xf] %v2046_v51  ;;  %v969_v53 = vld [vmem:[#allocation2 + $0x3c] sm:$0xf]  ;;  %v970_v33 = vld [vmem:[#allocation2 + $0x40] sm:$0xf] }
 0x1b9   : > { %989 = vst [vmem:[#allocation4 + $0x78] sm:$0xf] %v969_v53  ;;  %v1014_v24 = vld [vmem:[#allocation2 + $0x3c] sm:$0xf]  ;;  %v1015_v8 = vld [vmem:[#allocation2 + $0x40] sm:$0xf]  ;;  %v3719_v30 = vsel %vm10290_vm3, %v8115_v7, %v3718_v43 }
 0x1ba   : > { %v10686_v58 = vld [vmem:[#allocation4 + $0xe0] sm:$0xf]  ;;  %990 = vst [vmem:[#allocation4 + $0x84] sm:$0xf] %v970_v33  ;;  %v1016_v54 = vld [vmem:[#allocation2 + $0x44] sm:$0x1] }
 0x1bb   : > { %v1153_v40 = vshrl.u32 %v1014_v24, 16  ;;  %v1156_v38 = vshll.u32 %v1014_v24, 16  ;;  %2092 = vst [vmem:[#allocation4 + $0xe0] sm:$0xf] %v2050_v49  ;;  %v3720_v9 = vrot.slane %v3718_v43, 4  ;;  %v1162_v63 = vshll.u32 %v1015_v8, 16 }
 0x1bc   : > { %v1166_v36 = vshrl.u32 %v1015_v8, 16  ;;  %v1172_v51 = vshll.u32 %v1016_v54, 16  ;;  %v10696_v60 = vld [vmem:[#allocation4 + $0xec] sm:$0xf]  ;;  %v1629_v57 = vld [vmem:[#allocation2 + $0x48] sm:$0xf] }
 0x1bd   : > { %v1155_v3 = vrot.slane %v1153_v40, 4  ;;  %v1158_v23 = vrot.slane %v1156_v38, 5  ;;  %2093 = vst [vmem:[#allocation4 + $0xec] sm:$0xf] %v2053_v31  ;;  %v1164_v26 = vrot.slane %v1162_v63, 5  ;;  %v1765_v8 = vshrl.u32 %v1629_v57, 16 }
 0x1be   : > { %v1168_v11 = vrot.slane %v1166_v36, 4  ;;  %v1174_v49 = vrot.slane %v1172_v51, 5  ;;  %v1630_v4 = vld [vmem:[#allocation2 + $0x4c] sm:$0xf]  ;;  %v1631_v6 = vld [vmem:[#allocation2 + $0x50] sm:$0x1]  ;;  %v3722_v36 = vsel %vm10290_vm3, %v3720_v9, %v3721_v47 }
 0x1bf   : > { %v9319_v33 = vld [vmem:[#allocation4 + $0xc8] ss:$12 sps:$4 sm:$0xff]   ;;  %v1159_v24 = vor.u32 %v1158_v23, %v1155_v3  ;;  %v1768_v54 = vshll.u32 %v1629_v57, 16  ;;  %v1774_v40 = vshll.u32 %v1630_v4, 16  ;;  %v1778_v38 = vshrl.u32 %v1630_v4, 16  ;;  %v9346_v53 = vld [vmem:[#allocation10 + $0x230] sm:$0xff]  }
 0x1c0   : > { %3759 = vst [vmem:[#allocation4 + $0xc8] sm:$0xf] %v3712_v37  ;;  %3760 = vst [vmem:[#allocation4 + $0xd4] sm:$0xf] %v3715_v16  ;;  %v1169_v61 = vor.u32 %v1168_v11, %v1164_v26  ;;  %8972 = vmatprep.mubr.bf16.mxu1 %v9319_v33  ;;  %v1784_v63 = vshll.u32 %v1631_v6, 16  ;;  %v1767_v3 = vrot.slane %v1765_v8, 4 }
 0x1c1   : > { %v1160_v31 = vrot.slane %v1159_v24, 4  ;;  %v1770_v37 = vrot.slane %v1768_v54, 5  ;;  %v1776_v7 = vrot.slane %v1774_v40, 5  ;;  %v1780_v43 = vrot.slane %v1778_v38, 4  ;;  %v3298_v24 = vld [vmem:[#allocation2 + $0x54] sm:$0xf] }
 0x1c2   : > { %v1170_v51 = vrot.slane %v1169_v61, 4  ;;  %v1786_v23 = vrot.slane %v1784_v63, 5  ;;  %v3299_v57 = vld [vmem:[#allocation2 + $0x58] sm:$0xf]  ;;  %v3300_v4 = vld [vmem:[#allocation2 + $0x5c] sm:$0x1] }
 0x1c3   : > { %v1165_v16 = vsel %vm10275_vm1, %v1160_v31, %v1164_v26  ;;  %v1771_v33 = vor.u32 %v1770_v37, %v1767_v3  ;;  %v1781_v47 = vor.u32 %v1780_v43, %v1776_v7  ;;  %v3434_v9 = vshrl.u32 %v3298_v24, 16  ;;  %v1584_v31 = vld [vmem:[#allocation2 + $0x48] sm:$0xf] }
 0x1c4   : > { %v1175_v11 = vsel %vm10275_vm1, %v1170_v51, %v1174_v49  ;;  %1302 = vst [vmem:[#allocation4 + $0x7c] sm:$0xf] %v1165_v16  ;;  %v9320_v6 = vld [vmem:[#allocation4 + $0xe0] ss:$12 sps:$4 sm:$0xff]   ;;  %v3437_v61 = vshll.u32 %v3298_v24, 16  ;;  %v3443_v26 = vshll.u32 %v3299_v57, 16  ;;  %v12081_v16 = vcombine.high %v10312_v13, %v10315_v20 }
 0x1c5   : > { %1303 = vst [vmem:[#allocation4 + $0x88] sm:$0xf] %v1175_v11  ;;  %3761 = vst [vmem:[#allocation4 + $0xe0] sm:$0xf] %v3719_v30  ;;  %v1772_v8 = vrot.slane %v1771_v33, 4  ;;  %v3447_v54 = vshrl.u32 %v3299_v57, 16  ;;  %8973 = vmatmul.mubr.bf16.gmra.mxu1 %v9320_v6 }
 0x1c6   : > { %3762 = vst [vmem:[#allocation4 + $0xec] sm:$0xf] %v3722_v36  ;;  %v1782_v40 = vrot.slane %v1781_v47, 4  ;;  %v3436_v38 = vrot.slane %v3434_v9, 4  ;;  %v3439_v49 = vrot.slane %v3437_v61, 5  ;;  %v3453_v63 = vshll.u32 %v3300_v4, 16  ;;  %3049 = vmatprep.mubr.bf16.mxu1 %v12081_v16 }
 0x1c7   : > { %v1585_v51 = vld [vmem:[#allocation2 + $0x4c] sm:$0xf]  ;;  %v10708_v3 = vrot.slane %v3443_v26, 5  ;;  %v3449_v37 = vrot.slane %v3447_v54, 4  ;;  %v971_v43 = vld [vmem:[#allocation2 + $0x48] sm:$0xf]  ;;  %v1777_v30 = vsel %vm10275_vm1, %v1772_v8, %v1776_v7 }
 0x1c8   : > { %v1787_v36 = vsel %vm10275_vm1, %v1782_v40, %v1786_v23  ;;  %v3440_v11 = vor.u32 %v3439_v49, %v3436_v38  ;;  %v972_v33 = vld [vmem:[#allocation2 + $0x4c] sm:$0xf]  ;;  %991 = vst [vmem:[#allocation4 + $0x90] sm:$0xf] %v971_v43  ;;  %v1017_v24 = vld [vmem:[#allocation2 + $0x48] sm:$0xf] }
 0x1c9   : > { %v1018_v57 = vld [vmem:[#allocation2 + $0x4c] sm:$0xf]  ;;  %v3450_v4 = vor.u32 %v3449_v37, %v10708_v3  ;;  %992 = vst [vmem:[#allocation4 + $0x9c] sm:$0xf] %v972_v33  ;;  %v1019_v6 = vld [vmem:[#allocation2 + $0x50] sm:$0x1] }
 0x1ca   : > { %v1177_v47 = vshrl.u32 %v1017_v24, 16  ;;  %v1180_v9 = vshll.u32 %v1017_v24, 16  ;;  %v1186_v61 = vshll.u32 %v1018_v57, 16  ;;  %v10720_v54 = vrot.slane %v3440_v11, 4  ;;  %v1632_v24 = vld [vmem:[#allocation2 + $0x54] sm:$0xf] }
 0x1cb   : > { %v10718_v26 = vld [vmem:[#allocation4 + $0x78] sm:$0xff]  ;;  %v10722_v7 = vrot.slane %v3453_v63, 5  ;;  %v1190_v8 = vshrl.u32 %v1018_v57, 16  ;;  %v1196_v23 = vshll.u32 %v1019_v6, 16  ;;  %v3451_v38 = vrot.slane %v3450_v4, 4 }
 0x1cc   : > { %v10724_v40 = vld [vmem:[#allocation4 + $0x84] sm:$0xff]  ;;  %1604 = vst [vmem:[#allocation4 + $0x78] sm:$0xf] %v1584_v31  ;;  %1914 = vst [vmem:[#allocation4 + $0x7c] sm:$0xf] %v1777_v30  ;;  %v1179_v49 = vrot.slane %v1177_v47, 4  ;;  %v3446_v63 = vsel %vm10275_vm1, %v10720_v54, %v10708_v3  ;;  %v12082_v4 = vcombine.low %v10312_v13, %v10315_v20 }
 0x1cd   : > { %v1182_v37 = vrot.slane %v1180_v9, 5  ;;  %v1188_v16 = vrot.slane %v1186_v61, 5  ;;  %1605 = vst [vmem:[#allocation4 + $0x84] sm:$0xf] %v1585_v51  ;;  %1915 = vst [vmem:[#allocation4 + $0x88] sm:$0xf] %v1787_v36 }
 0x1ce   : > { %v1192_v43 = vrot.slane %v1190_v8, 4  ;;  %v1198_v33 = vrot.slane %v1196_v23, 5  ;;  %v1633_v57 = vld [vmem:[#allocation2 + $0x58] sm:$0xf]  ;;  %v1634_v6 = vld [vmem:[#allocation2 + $0x5c] sm:$0x1]  ;;  %3050 = vmatmul.mubr.bf16.vlgmr.msra.gmra.mxu1 %v12082_v4  ;;  %v3456_v23 = vsel %vm10275_vm1, %v3451_v38, %v10722_v7 }
 0x1cf   : > { %v1183_v11 = vor.u32 %v1182_v37, %v1179_v49  ;;  %v1789_v31 = vshrl.u32 %v1632_v24, 16  ;;  %v1792_v30 = vshll.u32 %v1632_v24, 16  ;;  %v1798_v36 = vshll.u32 %v1633_v57, 16  ;;  %v3253_v61 = vld [vmem:[#allocation2 + $0x54] sm:$0xf]  ;;  %9013 = vmatpush3.bf16.msra.mxu1 %v10614_v2  ;;  %v9349_v13 = vld [vmem:[#allocation10 + $0x228] sm:$0xff]  }
 0x1d0   : > { %v1193_v51 = vor.u32 %v1192_v43, %v1188_v16  ;;  %v1802_v47 = vshrl.u32 %v1633_v57, 16  ;;  %v1808_v9 = vshll.u32 %v1634_v6, 16  ;;  %v3254_v8 = vld [vmem:[#allocation2 + $0x58] sm:$0xf]  ;;  %v12083_v37 = vcombine.high %v10393_v34, %v10395_v35  ;;  %v3301_v6 = vld [vmem:[#allocation2 + $0x60] sm:$0xf]  ;;  %9014 = vmatprep.subr.bf16.mxu1 %v9346_v53 }
 0x1d1   : > { %v1184_v3 = vrot.slane %v1183_v11, 4  ;;  %v1791_v54 = vrot.slane %v1789_v31, 4  ;;  %v1794_v49 = vrot.slane %v1792_v30, 5  ;;  %v10740_v43 = vrot.slane %v1798_v36, 5  ;;  %v3302_v11 = vld [vmem:[#allocation2 + $0x64] sm:$0xf] }
 0x1d2   : > { %3057 = vmatprep.mubr.bf16.mxu1 %v12083_v37  ;;  %v1194_v20 = vrot.slane %v1193_v51, 4  ;;  %v1804_v24 = vrot.slane %v1802_v47, 4  ;;  %v10742_v57 = vrot.slane %v1808_v9, 5  ;;  %v3303_v31 = vld [vmem:[#allocation2 + $0x68] sm:$0x1]  ;;  %v3458_v30 = vshrl.u32 %v3301_v6, 16 }
 0x1d3   : > { %v1189_v7 = vsel %vm10275_vm1, %v1184_v3, %v1188_v16  ;;  %v1795_v38 = vor.u32 %v1794_v49, %v1791_v54  ;;  %v3461_v4 = vshll.u32 %v3301_v6, 16  ;;  %v2114_v37 = vld [vmem:[#allocation4 + $0x78] sm:$0xff]  ;;  %v3467_v36 = vshll.u32 %v3302_v11, 16  ;;  %9015 = vmatpush3.bf16.msra.mxu1 %v9346_v53 }
 0x1d4   : > { %v1199_v2 = vsel %vm10275_vm1, %v1194_v20, %v1198_v33  ;;  %1304 = vst [vmem:[#allocation4 + $0x94] sm:$0xf] %v1189_v7  ;;  %v1805_v51 = vor.u32 %v1804_v24, %v10740_v43  ;;  %v3471_v47 = vshrl.u32 %v3302_v11, 16  ;;  %v2116_v9 = vld [vmem:[#allocation4 + $0x84] sm:$0xff]  ;;  %v3460_v0 = vrot.slane %v3458_v30, 4  ;;  %9016 = vmatprep.subr.bf16.mxu1 %v9349_v13  ;;  %v9352_v20 = vld [vmem:[#allocation10 + $0x220] sm:$0xff]  }
 0x1d5   : > { %v9325_v50 = vld [vmem:[#allocation4 + $0x7c] ss:$12 sps:$4 sm:$0xff]   ;;  %1305 = vst [vmem:[#allocation4 + $0xa0] sm:$0xf] %v1199_v2  ;;  %v1796_v46 = vrot.slane %v1795_v38, 4  ;;  %v3463_v16 = vrot.slane %v3461_v4, 5  ;;  %v8013_v3 = vcombine.low %v2114_v37, %v2116_v9 }
 0x1d6   : > { %3273 = vst [vmem:[#allocation4 + $0x78] sm:$0xf] %v3253_v61  ;;  %3274 = vst [vmem:[#allocation4 + $0x84] sm:$0xf] %v3254_v8  ;;  %v1806_v54 = vrot.slane %v1805_v51, 4  ;;  %v10749_v49 = vrot.slane %v3467_v36, 5  ;;  %2559 = vmatprep.mubr.bf16.mxu0 %v9325_v50  ;;  %v12084_v8 = vcombine.low %v10393_v34, %v10395_v35 }
 0x1d7   : > { %3583 = vst [vmem:[#allocation4 + $0x7c] sm:$0xf] %v3446_v63  ;;  %3584 = vst [vmem:[#allocation4 + $0x88] sm:$0xf] %v3456_v23  ;;  %v3473_v33 = vrot.slane %v3471_v47, 4  ;;  %v3464_v6 = vor.u32 %v3463_v16, %v3460_v0  ;;  %v3477_v7 = vshll.u32 %v3303_v31, 16  ;;  %2560 = vmatmul.mubr.bf16.gmra.mxu0 %v8013_v3  ;;  %v1801_v53 = vsel %vm10275_vm1, %v1796_v46, %v10740_v43 }
 0x1d8   : > { %v1586_v24 = vld [vmem:[#allocation2 + $0x54] sm:$0xf]  ;;  %v974_v38 = vld [vmem:[#allocation2 + $0x58] sm:$0xf]  ;;  %v1811_v63 = vsel %vm10275_vm1, %v1806_v54, %v10742_v57  ;;  %3058 = vmatmul.mubr.bf16.gmra.mxu1 %v12084_v8  ;;  %v1022_v23 = vld [vmem:[#allocation2 + $0x5c] sm:$0x1]  ;;  %v12085_v57 = vcombine.high %v10490_v32, %v10494_v56 }
 0x1d9   : > { %v973_v11 = vld [vmem:[#allocation2 + $0x54] sm:$0xf]  ;;  %v3474_v61 = vor.u32 %v3473_v33, %v10749_v49  ;;  %994 = vst [vmem:[#allocation4 + $0xb4] sm:$0xf] %v974_v38  ;;  %v1021_v50 = vld [vmem:[#allocation2 + $0x58] sm:$0xf]  ;;  %9017 = vmatpush3.bf16.msra.mxu1 %v9349_v13 }
 0x1da   : > { %993 = vst [vmem:[#allocation4 + $0xa8] sm:$0xf] %v973_v11  ;;  %v1020_v0 = vld [vmem:[#allocation2 + $0x54] sm:$0xf]  ;;  %v10761_v31 = vrot.slane %v3464_v6, 4  ;;  %v10763_v30 = vrot.slane %v3477_v7, 5  ;;  %3065 = vmatprep.mubr.bf16.mxu1 %v12085_v57  ;;  %9018 = vmatprep.subr.bf16.mxu1 %v9352_v20 }
 0x1db   : > { %v1201_v46 = vshrl.u32 %v1020_v0, 16  ;;  %v1204_v43 = vshll.u32 %v1020_v0, 16  ;;  %v9355_v4 = vld [vmem:[#allocation10 + $0x218] sm:$0xff]   ;;  %v1587_v37 = vld [vmem:[#allocation2 + $0x58] sm:$0xf]  ;;  %v10768_v34 = vrot.slane %v3474_v61, 4 }
 0x1dc   : > { %v1210_v35 = vshll.u32 %v1021_v50, 16  ;;  %v1214_v2 = vshrl.u32 %v1021_v50, 16  ;;  %v1220_v51 = vshll.u32 %v1022_v23, 16  ;;  %v10770_v36 = vld [vmem:[#allocation4 + $0x90] sm:$0xff]  ;;  %v1635_v16 = vld [vmem:[#allocation2 + $0x60] sm:$0xf]  ;;  %v3470_v13 = vsel %vm10275_vm1, %v10761_v31, %v10749_v49 }
 0x1dd   : > { %v1203_v47 = vrot.slane %v1201_v46, 4  ;;  %v1206_v9 = vrot.slane %v1204_v43, 5  ;;  %v10772_v3 = vld [vmem:[#allocation4 + $0x9c] sm:$0xff]  ;;  %1606 = vst [vmem:[#allocation4 + $0x90] sm:$0xf] %v1586_v24  ;;  %v3480_v54 = vsel %vm10275_vm1, %v10768_v34, %v10763_v30  ;;  %v1813_v61 = vshrl.u32 %v1635_v16, 16  ;;  %9019 = vmatpush3.bf16.msra.mxu1 %v9352_v20 }
 0x1de   : > { %1916 = vst [vmem:[#allocation4 + $0x94] sm:$0xf] %v1801_v53  ;;  %v1212_v33 = vrot.slane %v1210_v35, 5  ;;  %v1216_v6 = vrot.slane %v1214_v2, 4  ;;  %v1636_v7 = vld [vmem:[#allocation2 + $0x64] sm:$0xf]  ;;  %9020 = vmatprep.subr.bf16.mxu1 %v9355_v4 }
 0x1df   : > { %1607 = vst [vmem:[#allocation4 + $0x9c] sm:$0xf] %v1587_v37  ;;  %1917 = vst [vmem:[#allocation4 + $0xa0] sm:$0xf] %v1811_v63  ;;  %v1207_v11 = vor.u32 %v1206_v9, %v1203_v47  ;;  %v1637_v38 = vld [vmem:[#allocation2 + $0x68] sm:$0x1] }
 0x1e0   : > { %v1816_v24 = vshll.u32 %v1635_v16, 16  ;;  %v1822_v53 = vshll.u32 %v1636_v7, 16  ;;  %v1217_v8 = vor.u32 %v1216_v6, %v1212_v33  ;;  %v1222_v0 = vrot.slane %v1220_v51, 5  ;;  %v9357_v23 = vld [vmem:[#allocation10 + $0x210] sm:$0xff]   ;;  %v3255_v37 = vld [vmem:[#allocation2 + $0x60] sm:$0xf] }
 0x1e1   : > { %v1826_v50 = vshrl.u32 %v1636_v7, 16  ;;  %v1832_v49 = vshll.u32 %v1637_v38, 16  ;;  %v1208_v31 = vrot.slane %v1207_v11, 4  ;;  %v1815_v46 = vrot.slane %v1813_v61, 4  ;;  %v3304_v57 = vld [vmem:[#allocation2 + $0x6c] sm:$0xf]  ;;  %9021 = vmatpush3.bf16.msra.mxu1 %v9355_v4 }
 0x1e2   : > { %v1818_v30 = vrot.slane %v1816_v24, 5  ;;  %v10782_v43 = vrot.slane %v1822_v53, 5  ;;  %v3256_v63 = vld [vmem:[#allocation2 + $0x64] sm:$0xf]  ;;  %v1218_v34 = vrot.slane %v1217_v8, 4  ;;  %v3482_v20 = vshrl.u32 %v3304_v57, 16  ;;  %9022 = vmatprep.subr.bf16.mxu1 %v9357_v23 }
 0x1e3   : > { %v1828_v35 = vrot.slane %v1826_v50, 4  ;;  %v10784_v2 = vrot.slane %v1832_v49, 5  ;;  %v3305_v47 = vld [vmem:[#allocation2 + $0x70] sm:$0xf]  ;;  %v12086_v51 = vcombine.low %v10490_v32, %v10494_v56  ;;  %v10789_v9 = vld [vmem:[#allocation10 + $0x208] sm:$0xff]   ;;  %v1213_v16 = vsel %vm10275_vm1, %v1208_v31, %v1212_v33 }
 0x1e4   : > { %v1819_v6 = vor.u32 %v1818_v30, %v1815_v46  ;;  %v3306_v7 = vld [vmem:[#allocation2 + $0x74] sm:$0x1]  ;;  %v3485_v11 = vshll.u32 %v3304_v57, 16  ;;  %v3491_v38 = vshll.u32 %v3305_v47, 16  ;;  %v12087_v61 = vcombine.high %v10559_v21, %v10561_v22  ;;  %1306 = vst [vmem:[#allocation4 + $0xac] sm:$0xf] %v1213_v16 }
 0x1e5   : > { %3066 = vmatmul.mubr.bf16.gmra.mxu1 %v12086_v51  ;;  %v1223_v24 = vsel %vm10275_vm1, %v1218_v34, %v1222_v0  ;;  %v1829_v32 = vor.u32 %v1828_v35, %v10782_v43  ;;  %v3484_v56 = vrot.slane %v3482_v20, 4  ;;  %v3495_v53 = vshrl.u32 %v3305_v47, 16  ;;  %v975_v8 = vld [vmem:[#allocation2 + $0x60] sm:$0xf]  ;;  %v2118_v33 = vld [vmem:[#allocation4 + $0x90] sm:$0xff] }
 0x1e6   : > { %3073 = vmatprep.mubr.bf16.mxu1 %v12087_v61  ;;  %1307 = vst [vmem:[#allocation4 + $0xb8] sm:$0xf] %v1223_v24  ;;  %v1820_v50 = vrot.slane %v1819_v6, 4  ;;  %v3487_v49 = vrot.slane %v3485_v11, 5  ;;  %v10799_v31 = vrot.slane %v3491_v38, 5  ;;  %v3501_v46 = vshll.u32 %v3306_v7, 16  ;;  %9023 = vmatpush3.bf16.msra.mxu1 %v9357_v23 }
 0x1e7   : > { %995 = vst [vmem:[#allocation4 + $0xc0] sm:$0xf] %v975_v8  ;;  %v2120_v30 = vld [vmem:[#allocation4 + $0x9c] sm:$0xff]  ;;  %v1830_v57 = vrot.slane %v1829_v32, 4  ;;  %v3497_v51 = vrot.slane %v3495_v53, 4  ;;  %v10801_v0 = vld [vmem:[#allocation10 + $0x200] sm:$0xff]   ;;  %v8065_v7 = vcombine.high %v10640_v59, %v10642_v28  ;;  %9024 = vmatprep.subr.bf16.mxu1 %v10789_v9 }
 0x1e8   : > { %v9328_v4 = vld [vmem:[#allocation4 + $0x94] ss:$12 sps:$4 sm:$0xff]   ;;  %3275 = vst [vmem:[#allocation4 + $0x90] sm:$0xf] %v3255_v37  ;;  %3276 = vst [vmem:[#allocation4 + $0x9c] sm:$0xf] %v3256_v63  ;;  %v8016_v34 = vcombine.low %v2118_v33, %v2120_v30  ;;  %v3488_v47 = vor.u32 %v3487_v49, %v3484_v56  ;;  %v1825_v11 = vsel %vm10275_vm1, %v1820_v50, %v10782_v43 }
 0x1e9   : > { %3585 = vst [vmem:[#allocation4 + $0x94] sm:$0xf] %v3470_v13  ;;  %3586 = vst [vmem:[#allocation4 + $0xa0] sm:$0xf] %v3480_v54  ;;  %v1588_v35 = vld [vmem:[#allocation2 + $0x60] sm:$0xf]  ;;  %2567 = vmatprep.mubr.bf16.mxu0 %v9328_v4  ;;  %v3498_v37 = vor.u32 %v3497_v51, %v10799_v31  ;;  %v1835_v23 = vsel %vm10275_vm1, %v1830_v57, %v10784_v2  ;;  %v12088_v50 = vcombine.low %v10559_v21, %v10561_v22 }
 0x1ea   : > { %v10803_v20 = vrot.slane %v3501_v46, 5  ;;  %v976_v16 = vld [vmem:[#allocation2 + $0x64] sm:$0xf]  ;;  %v1023_v6 = vld [vmem:[#allocation2 + $0x60] sm:$0xf]  ;;  %2568 = vmatmul.mubr.bf16.gmra.mxu0 %v8016_v34  ;;  %v10815_v53 = vrot.slane %v3488_v47, 4  ;;  %9025 = vmatpush3.bf16.msra.mxu1 %v10789_v9  ;;  %v8064_v21 = vcombine.low %v10640_v59, %v10642_v28  ;;  %v8068_v22 = vcombine.high %v10718_v26, %v10724_v40 }
 0x1eb   : > { %996 = vst [vmem:[#allocation4 + $0xcc] sm:$0xf] %v976_v16  ;;  %v1024_v13 = vld [vmem:[#allocation2 + $0x64] sm:$0xf]  ;;  %v1025_v54 = vld [vmem:[#allocation2 + $0x68] sm:$0x1]  ;;  %9026 = vmatprep.subr.bf16.mxu1 %v10801_v0 }
 0x1ec   : > { %v1225_v63 = vshrl.u32 %v1023_v6, 16  ;;  %v1228_v38 = vshll.u32 %v1023_v6, 16  ;;  %v1589_v61 = vld [vmem:[#allocation2 + $0x64] sm:$0xf]  ;;  %v1234_v24 = vshll.u32 %v1024_v13, 16  ;;  %v1238_v32 = vshrl.u32 %v1024_v13, 16 }
 0x1ed   : > { %v1244_v56 = vshll.u32 %v1025_v54, 16  ;;  %v10817_v43 = vrot.slane %v3498_v37, 4  ;;  %3074 = vmatmul.mubr.bf16.gmra.mxu1 %v12088_v50  ;;  %v10822_v49 = vld [vmem:[#allocation4 + $0xa8] sm:$0xff]  ;;  %v1638_v51 = vld [vmem:[#allocation2 + $0x6c] sm:$0xf]  ;;  %v10825_v2 = vld [vmem:[#allocation4 + $0xb4] sm:$0xff] }
 0x1ee   : > { %v1227_v8 = vrot.slane %v1225_v63, 4  ;;  %v1230_v33 = vrot.slane %v1228_v38, 5  ;;  %v1236_v46 = vrot.slane %v1234_v24, 5  ;;  %v1240_v30 = vrot.slane %v1238_v32, 4  ;;  %3081 = vmatprep.mubr.bf16.mxu1 %v8065_v7  ;;  %1608 = vst [vmem:[#allocation4 + $0xa8] sm:$0xf] %v1588_v35  ;;  %9027 = vmatpush3.bf16.msra.mxu1 %v10801_v0 }
 0x1ef   : > { %v1246_v4 = vrot.slane %v1244_v56, 5  ;;  %1918 = vst [vmem:[#allocation4 + $0xac] sm:$0xf] %v1825_v11  ;;  %v1639_v34 = vld [vmem:[#allocation2 + $0x70] sm:$0xf]  ;;  %v1837_v16 = vshrl.u32 %v1638_v51, 16  ;;  %v3494_v35 = vsel %vm10275_vm1, %v10815_v53, %v10799_v31  ;;  %v3504_v32 = vsel %vm10275_vm1, %v10817_v43, %v10803_v20 }
 0x1f0   : > { %v1231_v57 = vor.u32 %v1230_v33, %v1227_v8  ;;  %v1640_v47 = vld [vmem:[#allocation2 + $0x74] sm:$0x1]  ;;  %1609 = vst [vmem:[#allocation4 + $0xb4] sm:$0xf] %v1589_v61  ;;  %1919 = vst [vmem:[#allocation4 + $0xb8] sm:$0xf] %v1835_v23  ;;  %v1241_v6 = vor.u32 %v1240_v30, %v1236_v46 }
 0x1f1   : > { %v1840_v9 = vshll.u32 %v1638_v51, 16  ;;  %v1846_v7 = vshll.u32 %v1639_v34, 16  ;;  %v1850_v37 = vshrl.u32 %v1639_v34, 16  ;;  %v1839_v13 = vrot.slane %v1837_v16, 4  ;;  %v3307_v24 = vld [vmem:[#allocation2 + $0x78] sm:$0xf] }
 0x1f2   : > { %v1232_v11 = vrot.slane %v1231_v57, 4  ;;  %v1856_v54 = vshll.u32 %v1640_v47, 16  ;;  %v1242_v59 = vrot.slane %v1241_v6, 4  ;;  %v3257_v61 = vld [vmem:[#allocation2 + $0x6c] sm:$0xf]  ;;  %v3506_v33 = vshrl.u32 %v3307_v24, 16 }
 0x1f3   : > { %v1842_v28 = vrot.slane %v1840_v9, 5  ;;  %v10836_v63 = vrot.slane %v1846_v7, 5  ;;  %v1852_v38 = vrot.slane %v1850_v37, 4  ;;  %v3258_v23 = vld [vmem:[#allocation2 + $0x70] sm:$0xf]  ;;  %v3509_v51 = vshll.u32 %v3307_v24, 16 }
 0x1f4   : > { %v1237_v31 = vsel %vm10275_vm1, %v1232_v11, %v1236_v46  ;;  %v10845_v56 = vrot.slane %v1856_v54, 5  ;;  %v3308_v53 = vld [vmem:[#allocation2 + $0x7c] sm:$0xf]  ;;  %v3309_v8 = vld [vmem:[#allocation2 + $0x80] sm:$0x1]  ;;  %v1247_v50 = vsel %vm10275_vm1, %v1242_v59, %v1246_v4  ;;  %v3508_v57 = vrot.slane %v3506_v33, 4 }
 0x1f5   : > { %1308 = vst [vmem:[#allocation4 + $0xc4] sm:$0xf] %v1237_v31  ;;  %v1843_v0 = vor.u32 %v1842_v28, %v1839_v13  ;;  %v1853_v30 = vor.u32 %v1852_v38, %v10836_v63  ;;  %1309 = vst [vmem:[#allocation4 + $0xd0] sm:$0xf] %v1247_v50  ;;  %v3515_v34 = vshll.u32 %v3308_v53, 16  ;;  %v3519_v20 = vshrl.u32 %v3308_v53, 16  ;;  %3082 = vmatmul.mubr.bf16.gmra.mxu1 %v8064_v21 }
 0x1f6   : > { %v3525_v43 = vshll.u32 %v3309_v8, 16  ;;  %v977_v47 = vld [vmem:[#allocation2 + $0x6c] sm:$0xf]  ;;  %v2122_v46 = vld [vmem:[#allocation4 + $0xa8] sm:$0xff]  ;;  %v3511_v9 = vrot.slane %v3509_v51, 5  ;;  %3089 = vmatprep.mubr.bf16.mxu1 %v8068_v22  ;;  %v8067_v59 = vcombine.low %v10718_v26, %v10724_v40  ;;  %v8071_v53 = vcombine.high %v10770_v36, %v10772_v3 }
 0x1f7   : > { %v1844_v16 = vrot.slane %v1843_v0, 4  ;;  %v1854_v6 = vrot.slane %v1853_v30, 4  ;;  %v978_v7 = vld [vmem:[#allocation2 + $0x70] sm:$0xf]  ;;  %997 = vst [vmem:[#allocation4 + $0xd8] sm:$0xf] %v977_v47 }
 0x1f8   : > { %v2124_v4 = vld [vmem:[#allocation4 + $0xb4] sm:$0xff]  ;;  %v10850_v11 = vrot.slane %v3515_v34, 5  ;;  %v3521_v13 = vrot.slane %v3519_v20, 4  ;;  %v10852_v54 = vrot.slane %v3525_v43, 5  ;;  %998 = vst [vmem:[#allocation4 + $0xe4] sm:$0xf] %v978_v7  ;;  %v3512_v28 = vor.u32 %v3511_v9, %v3508_v57 }
 0x1f9   : > { %v9331_v37 = vld [vmem:[#allocation4 + $0xac] ss:$12 sps:$4 sm:$0xff]   ;;  %3277 = vst [vmem:[#allocation4 + $0xa8] sm:$0xf] %v3257_v61  ;;  %3278 = vst [vmem:[#allocation4 + $0xb4] sm:$0xf] %v3258_v23  ;;  %v8019_v21 = vcombine.low %v2122_v46, %v2124_v4  ;;  %v1849_v22 = vsel %vm10275_vm1, %v1844_v16, %v10836_v63  ;;  %v1859_v63 = vsel %vm10275_vm1, %v1854_v6, %v10845_v56 }
 0x1fa   : > { %3587 = vst [vmem:[#allocation4 + $0xac] sm:$0xf] %v3494_v35  ;;  %3588 = vst [vmem:[#allocation4 + $0xb8] sm:$0xf] %v3504_v32  ;;  %v1026_v38 = vld [vmem:[#allocation2 + $0x6c] sm:$0xf]  ;;  %2575 = vmatprep.mubr.bf16.mxu0 %v9331_v37  ;;  %v3522_v26 = vor.u32 %v3521_v13, %v10850_v11  ;;  %v8070_v56 = vcombine.low %v10770_v36, %v10772_v3  ;;  %v8074_v16 = vcombine.high %v10822_v49, %v10825_v2 }
 0x1fb   : > { %v1027_v24 = vld [vmem:[#allocation2 + $0x70] sm:$0xf]  ;;  %v1028_v31 = vld [vmem:[#allocation2 + $0x74] sm:$0x1]  ;;  %v1590_v8 = vld [vmem:[#allocation2 + $0x6c] sm:$0xf]  ;;  %2576 = vmatmul.mubr.bf16.gmra.mxu0 %v8019_v21 }
 0x1fc   : > { %v1249_v40 = vshrl.u32 %v1026_v38, 16  ;;  %v1252_v61 = vshll.u32 %v1026_v38, 16  ;;  %v1258_v35 = vshll.u32 %v1027_v24, 16  ;;  %v1591_v23 = vld [vmem:[#allocation2 + $0x70] sm:$0xf]  ;;  %v10865_v32 = vrot.slane %v3512_v28, 4 }
 0x1fd   : > { %v1262_v33 = vshrl.u32 %v1027_v24, 16  ;;  %v1268_v50 = vshll.u32 %v1028_v31, 16  ;;  %v10867_v0 = vld [vmem:[#allocation4 + $0xc0] sm:$0xff]  ;;  %v3523_v30 = vrot.slane %v3522_v26, 4  ;;  %v10869_v20 = vld [vmem:[#allocation4 + $0xcc] sm:$0xff]  ;;  %3090 = vmatmul.mubr.bf16.gmra.mxu1 %v8067_v59 }
 0x1fe   : > { %v1251_v51 = vrot.slane %v1249_v40, 4  ;;  %v1254_v57 = vrot.slane %v1252_v61, 5  ;;  %v1260_v34 = vrot.slane %v1258_v35, 5  ;;  %1610 = vst [vmem:[#allocation4 + $0xc0] sm:$0xf] %v1590_v8  ;;  %v3518_v6 = vsel %vm10275_vm1, %v10865_v32, %v10850_v11  ;;  %3097 = vmatprep.mubr.bf16.mxu1 %v8071_v53 }
 0x1ff   : > { %1920 = vst [vmem:[#allocation4 + $0xc4] sm:$0xf] %v1849_v22  ;;  %v1264_v43 = vrot.slane %v1262_v33, 4  ;;  %v1270_v47 = vrot.slane %v1268_v50, 5  ;;  %v1641_v46 = vld [vmem:[#allocation2 + $0x78] sm:$0xf]  ;;  %v3528_v3 = vsel %vm10275_vm1, %v3523_v30, %v10852_v54 }
 0x200   : > { %1611 = vst [vmem:[#allocation4 + $0xcc] sm:$0xf] %v1591_v23  ;;  %1921 = vst [vmem:[#allocation4 + $0xd0] sm:$0xf] %v1859_v63  ;;  %v1255_v9 = vor.u32 %v1254_v57, %v1251_v51  ;;  %v1642_v7 = vld [vmem:[#allocation2 + $0x7c] sm:$0xf] }
 0x201   : > { %v1643_v4 = vld [vmem:[#allocation2 + $0x80] sm:$0x1]  ;;  %v1861_v37 = vshrl.u32 %v1641_v46, 16  ;;  %v1864_v13 = vshll.u32 %v1641_v46, 16  ;;  %v1265_v21 = vor.u32 %v1264_v43, %v1260_v34  ;;  %v1870_v22 = vshll.u32 %v1642_v7, 16 }
 0x202   : > { %v1874_v28 = vshrl.u32 %v1642_v7, 16  ;;  %v1880_v36 = vshll.u32 %v1643_v4, 16  ;;  %v1256_v38 = vrot.slane %v1255_v9, 4  ;;  %v3259_v8 = vld [vmem:[#allocation2 + $0x78] sm:$0xf] }
 0x203   : > { %v1863_v24 = vrot.slane %v1861_v37, 4  ;;  %v1866_v31 = vrot.slane %v1864_v13, 5  ;;  %v3260_v11 = vld [vmem:[#allocation2 + $0x7c] sm:$0xf]  ;;  %v1266_v26 = vrot.slane %v1265_v21, 4  ;;  %v1872_v40 = vrot.slane %v1870_v22, 5 }
 0x204   : > { %v1876_v61 = vrot.slane %v1874_v28, 4  ;;  %v1882_v35 = vrot.slane %v1880_v36, 5  ;;  %v3310_v23 = vld [vmem:[#allocation2 + $0x84] sm:$0xf]  ;;  %v1261_v59 = vsel %vm10275_vm1, %v1256_v38, %v1260_v34  ;;  %v3311_v32 = vld [vmem:[#allocation2 + $0x88] sm:$0xf] }
 0x205   : > { %v1867_v63 = vor.u32 %v1866_v31, %v1863_v24  ;;  %v3312_v53 = vld [vmem:[#allocation2 + $0x8c] sm:$0x1]  ;;  %v3530_v33 = vshrl.u32 %v3310_v23, 16  ;;  %v3533_v50 = vshll.u32 %v3310_v23, 16  ;;  %v1271_v54 = vsel %vm10275_vm1, %v1266_v26, %v1270_v47  ;;  %1310 = vst [vmem:[#allocation4 + $0xdc] sm:$0xf] %v1261_v59  ;;  %3098 = vmatmul.mubr.bf16.gmra.mxu1 %v8070_v56  ;;  %v8434_v23 = vpop.f32.mrf.mxu0 }
 0x206   : > { %v1877_v30 = vor.u32 %v1876_v61, %v1872_v40  ;;  %v3539_v51 = vshll.u32 %v3311_v32, 16  ;;  %v3543_v57 = vshrl.u32 %v3311_v32, 16  ;;  %v2126_v43 = vld [vmem:[#allocation4 + $0xc0] sm:$0xff]  ;;  %1311 = vst [vmem:[#allocation4 + $0xe8] sm:$0xf] %v1271_v54  ;;  %v3549_v4 = vshll.u32 %v3312_v53, 16  ;;  %3105 = vmatprep.mubr.bf16.mxu1 %v8074_v16 }
 0x207   : > { %v1868_v46 = vrot.slane %v1867_v63, 4  ;;  %v3532_v9 = vrot.slane %v3530_v33, 4  ;;  %v3535_v7 = vrot.slane %v3533_v50, 5  ;;  %v2128_v37 = vld [vmem:[#allocation4 + $0xcc] sm:$0xff]  ;;  %3279 = vst [vmem:[#allocation4 + $0xc0] sm:$0xf] %v3259_v8  ;;  %v8077_v16 = vcombine.high %v10867_v0, %v10869_v20 }
 0x208   : > { %v9334_v34 = vld [vmem:[#allocation4 + $0xc4] ss:$12 sps:$4 sm:$0xff]   ;;  %v1878_v13 = vrot.slane %v1877_v30, 4  ;;  %v3541_v21 = vrot.slane %v3539_v51, 5  ;;  %v3545_v22 = vrot.slane %v3543_v57, 4  ;;  %v8022_v47 = vcombine.low %v2126_v43, %v2128_v37 }
 0x209   : > { %3280 = vst [vmem:[#allocation4 + $0xcc] sm:$0xf] %v3260_v11  ;;  %3589 = vst [vmem:[#allocation4 + $0xc4] sm:$0xf] %v3518_v6  ;;  %v1592_v28 = vld [vmem:[#allocation2 + $0x78] sm:$0xf]  ;;  %v3536_v36 = vor.u32 %v3535_v7, %v3532_v9  ;;  %2583 = vmatprep.mubr.bf16.mxu0 %v9334_v34  ;;  %v1873_v31 = vsel %vm10275_vm1, %v1868_v46, %v1872_v40  ;;  %v8073_v6 = vcombine.low %v10822_v49, %v10825_v2  ;;  %v8435_v40 = vpop.f32.mrf.mxu0  ;;  %v8958_v9 = vpop.f32.mrf.mxu1 }
 0x20a   : > { %3590 = vst [vmem:[#allocation4 + $0xd0] sm:$0xf] %v3528_v3  ;;  %v3546_v38 = vor.u32 %v3545_v22, %v3541_v21  ;;  %2584 = vmatmul.mubr.bf16.gmra.mxu0 %v8022_v47  ;;  %v1593_v24 = vld [vmem:[#allocation2 + $0x7c] sm:$0xf]  ;;  %v1883_v26 = vsel %vm10275_vm1, %v1878_v13, %v1882_v35  ;;  %v3551_v61 = vrot.slane %v3549_v4, 5  ;;  %v8436_v63 = vadd.f32 %v8435_v40, %v8434_v23  ;;  %v9340_v4 = vld [vmem:[#allocation10 + $0x1b8] sm:$0xff]  }
 0x20b   : > { %v3537_v11 = vrot.slane %v3536_v36, 4  ;;  %v3261_v59 = vld [vmem:[#allocation2 + $0x84] sm:$0xf]  ;;  %v3262_v35 = vld [vmem:[#allocation2 + $0x88] sm:$0xf]  ;;  %v8437_v32 = vpop.f32.mrf.mxu0  ;;  %v8076_v33 = vcombine.low %v10867_v0, %v10869_v20  ;;  %v8054_v51 = vcombine.low %v10329_v39, %v10346_v52  ;;  %v8057_v0 = vcombine.low %v10357_v19, %v10362_v18  ;;  %v2634_v7 = vpop.f32.mrf.mxu1 }
 0x20c   : > { %v1521_v8 = vld [vmem:[#allocation4 + $0xd8] sm:$0xff]  ;;  %v3547_v56 = vrot.slane %v3546_v38, 4  ;;  %v9342_v39 = vld [vmem:[#allocation10 + $0x1f0] sm:$0xff]   ;;  %v8060_v52 = vcombine.low %v10426_v10, %v10439_v29  ;;  %v10906_v37 = vadd.f32 %v8436_v63, %v2634_v7  ;;  %v9366_v34 = vld [vmem:[#allocation4 + $0x8] ss:$12 sps:$4 sm:$0xff]   ;;  %v12089_v38 = vcombine.low %v10444_v45, %v10454_v55 }
 0x20d   : > { %v1523_v3 = vld [vmem:[#allocation4 + $0xe4] sm:$0xff]  ;;  %1612 = vst [vmem:[#allocation4 + $0xd8] sm:$0xf] %v1592_v28  ;;  %1922 = vst [vmem:[#allocation4 + $0xdc] sm:$0xf] %v1873_v31  ;;  %3106 = vmatmul.mubr.bf16.gmra.mxu1 %v8073_v6  ;;  %v3542_v49 = vsel %vm10275_vm1, %v3537_v11, %v3541_v21  ;;  %v8438_v50 = vpop.f32.mrf.mxu0  ;;  %v8959_v13 = vpop.f32.mrf.mxu1  ;;  %v9344_v19 = vld [vmem:[#allocation10 + $0x1e8] sm:$0xff]   ;;  %v12090_v31 = vcombine.low %v10519_v14, %v10525_v44  ;;  %v12091_v14 = vcombine.low %v10530_v1, %v10542_v25 }
 0x20e   : > { %1613 = vst [vmem:[#allocation4 + $0xe4] sm:$0xf] %v1593_v24  ;;  %1923 = vst [vmem:[#allocation4 + $0xe8] sm:$0xf] %v1883_v26  ;;  %3113 = vmatprep.mubr.bf16.mxu1 %v8077_v16  ;;  %v3552_v2 = vsel %vm10275_vm1, %v3547_v56, %v3551_v61  ;;  %v8080_v57 = vcombine.high %v1521_v8, %v1523_v3  ;;  %v8439_v43 = vadd.f32 %v8438_v50, %v8437_v32  ;;  %v9343_v22 = vld [vmem:[#allocation10 + $0x1b0] sm:$0xff]   ;;  %v9345_v28 = vld [vmem:[#allocation10 + $0x1a8] sm:$0xff]  }
 0x20f   : > { %v8079_v20 = vcombine.low %v1521_v8, %v1523_v3  ;;  %v2637_v21 = vpop.f32.mrf.mxu1  ;;  %v9367_v18 = vld [vmem:[#allocation4 + $0x20] ss:$12 sps:$4 sm:$0xff]   ;;  %v9347_v10 = vld [vmem:[#allocation10 + $0x1e0] sm:$0xff]   ;;  %v9374_v29 = vld [vmem:[#allocation4 + $0x38] ss:$12 sps:$4 sm:$0xff]   ;;  %v12092_v44 = vcombine.low %v10596_v17, %v10598_v41  ;;  %v12093_v1 = vcombine.low %v10602_v48, %v10610_v27  ;;  %v12094_v25 = vcombine.low %v10672_v12, %v10679_v42 }
 0x210   : > { %v10908_v47 = vadd.f32 %v8439_v43, %v2637_v21  ;;  %v9348_v26 = vld [vmem:[#allocation10 + $0x1a0] sm:$0xff]   ;;  %v9350_v8 = vld [vmem:[#allocation10 + $0x1d8] sm:$0xff]   ;;  %v9353_v16 = vld [vmem:[#allocation10 + $0x1d0] sm:$0xff]   ;;  %v12095_v50 = vcombine.low %v10686_v58, %v10696_v60 }
 0x211   : > { %v9375_v3 = vld [vmem:[#allocation4 + $0x50] ss:$12 sps:$4 sm:$0xff]   ;;  %v9351_v45 = vld [vmem:[#allocation10 + $0x198] sm:$0xff]   ;;  %v9370_v58 = vld [vmem:[#allocation4 + $0x18] ss:$12 sps:$4 sm:$0xff]  }
 0x212   : > { %v9382_v23 = vld [vmem:[#allocation4 + $0x68] ss:$12 sps:$4 sm:$0xff]   ;;  %v9383_v63 = vld [vmem:[#allocation4 + $0x80] ss:$12 sps:$4 sm:$0xff]   ;;  %v9358_v32 = vld [vmem:[#allocation10 + $0x188] sm:$0xff]  }
 0x213   : > { %v9361_v17 = vld [vmem:[#allocation10 + $0x180] sm:$0xff]   ;;  %v9363_v27 = vld [vmem:[#allocation4] ss:$12 sps:$4 sm:$0xff]   ;;  %v9368_v12 = vld [vmem:[#allocation4 + $0x1c] ss:$12 sps:$4 sm:$0xff]  }
 0x214   : > { %v2130_v53 = vld [vmem:[#allocation4 + $0xd8] sm:$0xff] }
 0x215   : > { %v2132_v54 = vld [vmem:[#allocation4 + $0xe4] sm:$0xff]  ;;  %3281 = vst [vmem:[#allocation4 + $0xd8] sm:$0xf] %v3261_v59  ;;  %3114 = vmatmul.mubr.bf16.gmra.mxu1 %v8076_v33  ;;  %v8440_v36 = vpop.f32.mrf.mxu0  ;;  %v9391_v41 = vld [vmem:[#allocation4 + $0xb0] ss:$12 sps:$4 sm:$0xff]  }
 0x216   : > { %v9337_v30 = vld [vmem:[#allocation4 + $0xdc] ss:$12 sps:$4 sm:$0xff]   ;;  %3282 = vst [vmem:[#allocation4 + $0xe4] sm:$0xf] %v3262_v35  ;;  %v8025_v46 = vcombine.low %v2130_v53, %v2132_v54  ;;  %3121 = vmatprep.mubr.bf16.mxu1 %v8080_v57  ;;  %v9354_v59 = vld [vmem:[#allocation10 + $0x190] sm:$0xff]  }
 0x217   : > { %3591 = vst [vmem:[#allocation4 + $0xdc] sm:$0xf] %v3542_v49  ;;  %3592 = vst [vmem:[#allocation4 + $0xe8] sm:$0xf] %v3552_v2  ;;  %2591 = vmatprep.mubr.bf16.mxu0 %v9337_v30  ;;  %v8441_v24 = vpop.f32.mrf.mxu0  ;;  %v9356_v35 = vld [vmem:[#allocation10 + $0x1c8] sm:$0xff]   ;;  %v9360_v49 = vld [vmem:[#allocation10 + $0x1c0] sm:$0xff]  }
 0x218   : > { %2592 = vmatmul.mubr.bf16.gmra.mxu0 %v8025_v46  ;;  %v8442_v61 = vadd.f32 %v8441_v24, %v8440_v36  ;;  %v9390_v2 = vld [vmem:[#allocation4 + $0x98] ss:$12 sps:$4 sm:$0xff]   ;;  %v9398_v33 = vld [vmem:[#allocation4 + $0xc8] ss:$12 sps:$4 sm:$0xff]   ;;  %v9399_v54 = vld [vmem:[#allocation4 + $0xe0] ss:$12 sps:$4 sm:$0xff]  }
 0x219   : > { %8992 = vmatprep.mubr.bf16.mxu0 %v8054_v51  ;;  %v8443_v11 = vpop.f32.mrf.mxu0  ;;  %v9365_v53 = vld [vmem:[#allocation4 + $0x4] ss:$12 sps:$4 sm:$0xff]  }
 0x21a   : > { %v10916_v6 = vadd.f32 %v8958_v9, %v8442_v61  ;;  %v9386_v24 = vld [vmem:[#allocation4 + $0x78] ss:$12 sps:$4 sm:$0xff]  }
 0x21b   : > { %v8444_v56 = vpop.f32.mrf.mxu0 }
 0x21c   : > { %v8445_v55 = vadd.f32 %v8444_v56, %v8443_v11 }
 0x21d   : > { %3122 = vmatmul.mubr.bf16.gmra.mxu1 %v8079_v20 }
 0x21e   : > { %9028 = vmatprep.mubr.bf16.mxu1 %v9366_v34  ;;  %v10918_v40 = vadd.f32 %v8959_v13, %v8445_v55  ;;  %v9378_v34 = vld [vmem:[#allocation4 + $0x48] ss:$12 sps:$4 sm:$0xff]   ;;  %v9379_v13 = vld [vmem:[#allocation4 + $0x64] ss:$12 sps:$4 sm:$0xff]  }
 0x220   : > { %8993 = vmatmul.mubr.bf16.vlgmr.msra.gmra.mxu0 %v8057_v0  ;;  %v9371_v0 = vld [vmem:[#allocation4 + $0x34] ss:$12 sps:$4 sm:$0xff]  }
 0x221   : > { %8607 = vmatpush3.bf16.msra.mxu0 %v9340_v4  ;;  %8996 = vmatprep.mubr.bf16.mxu0 %v8060_v52  ;;  %v9376_v52 = vld [vmem:[#allocation4 + $0x4c] ss:$12 sps:$4 sm:$0xff]  }
 0x222   : > { %8608 = vmatprep.subr.bf16.mxu0 %v9342_v39  ;;  %v8962_v48 = vpop.f32.mrf.mxu1  ;;  %v9373_v39 = vld [vmem:[#allocation4 + $0x30] ss:$12 sps:$4 sm:$0xff]  }
 0x224   : > { %v2650_v42 = vpop.f32.mrf.mxu1 }
 0x225   : > { %8609 = vmatpush3.bf16.msra.mxu0 %v9343_v22  ;;  %9029 = vmatmul.mubr.bf16.vlgmr.msra.gmra.mxu1 %v9367_v18  ;;  %v9381_v22 = vld [vmem:[#allocation4 + $0x60] ss:$12 sps:$4 sm:$0xff]  }
 0x226   : > { %8610 = vmatprep.subr.bf16.mxu0 %v9344_v19  ;;  %9032 = vmatprep.mubr.bf16.mxu1 %v9374_v29  ;;  %v8963_v43 = vpop.f32.mrf.mxu1  ;;  %v9384_v19 = vld [vmem:[#allocation4 + $0x7c] ss:$12 sps:$4 sm:$0xff]  }
 0x228   : > { %8997 = vmatmul.mubr.bf16.gmra.mxu0 %v12089_v38  ;;  %v2653_v7 = vpop.f32.mrf.mxu1 }
 0x229   : > { %8611 = vmatpush3.bf16.msra.mxu0 %v9345_v28  ;;  %9000 = vmatprep.mubr.bf16.mxu0 %v12090_v31 }
 0x22a   : > { %8612 = vmatprep.subr.bf16.mxu0 %v9347_v10 }
 0x22d   : > { %8613 = vmatpush3.bf16.msra.mxu0 %v9348_v26  ;;  %9033 = vmatmul.mubr.bf16.gmra.mxu1 %v9375_v3  ;;  %v9387_v26 = vld [vmem:[#allocation4 + $0x94] ss:$12 sps:$4 sm:$0xff]   ;;  %v9392_v3 = vld [vmem:[#allocation4 + $0xac] ss:$12 sps:$4 sm:$0xff]  }
 0x22e   : > { %8614 = vmatprep.subr.bf16.mxu0 %v9350_v8  ;;  %9036 = vmatprep.mubr.bf16.mxu1 %v9382_v23  ;;  %v9389_v8 = vld [vmem:[#allocation4 + $0x90] ss:$12 sps:$4 sm:$0xff]  }
 0x230   : > { %9001 = vmatmul.mubr.bf16.gmra.mxu0 %v12091_v14 }
 0x231   : > { %8615 = vmatpush3.bf16.msra.mxu0 %v9351_v45  ;;  %9004 = vmatprep.mubr.bf16.mxu0 %v12092_v44  ;;  %v9394_v45 = vld [vmem:[#allocation4 + $0xa8] ss:$12 sps:$4 sm:$0xff]   ;;  %v9397_v44 = vld [vmem:[#allocation4 + $0xc0] ss:$12 sps:$4 sm:$0xff]  }
 0x232   : > { %8616 = vmatprep.subr.bf16.mxu0 %v9353_v16  ;;  %v9395_v16 = vld [vmem:[#allocation4 + $0xc4] ss:$12 sps:$4 sm:$0xff]  }
 0x235   : > { %8617 = vmatpush3.bf16.msra.mxu0 %v9354_v59  ;;  %9037 = vmatmul.mubr.bf16.gmra.mxu1 %v9383_v63  ;;  %v9400_v63 = vld [vmem:[#allocation4 + $0xdc] ss:$12 sps:$4 sm:$0xff]  }
 0x236   : > { %8618 = vmatprep.subr.bf16.mxu0 %v9356_v35  ;;  %9040 = vmatprep.mubr.bf16.mxu1 %v9390_v2 }
 0x237   : > { %v8446_v30 = vpop.f32.mrf.mxu0 }
 0x238   : > { %9005 = vmatmul.mubr.bf16.gmra.mxu0 %v12093_v1 }
 0x239   : > { %9008 = vmatprep.mubr.bf16.mxu0 %v12094_v25  ;;  %8619 = vmatpush3.bf16.msra.mxu0 %v9358_v32  ;;  %v8447_v51 = vpop.f32.mrf.mxu0 }
 0x23a   : > { %8620 = vmatprep.subr.bf16.mxu0 %v9360_v49  ;;  %v8448_v57 = vadd.f32 %v8447_v51, %v8446_v30 }
 0x23b   : > { %v8449_v46 = vpop.f32.mrf.mxu0 }
 0x23c   : > { %v10935_v9 = vadd.f32 %v8448_v57, %v2650_v42 }
 0x23d   : > { %8621 = vmatpush3.bf16.msra.mxu0 %v9361_v17  ;;  %9041 = vmatmul.mubr.bf16.gmra.mxu1 %v9391_v41  ;;  %v8450_v60 = vpop.f32.mrf.mxu0 }
 0x23e   : > { %9044 = vmatprep.mubr.bf16.mxu1 %v9398_v33  ;;  %v8451_v20 = vadd.f32 %v8450_v60, %v8449_v46 }
 0x240   : > { %9009 = vmatmul.mubr.bf16.gmra.mxu0 %v12095_v50  ;;  %v10937_v4 = vadd.f32 %v8451_v20, %v2653_v7 }
 0x241   : > { %4188 = vmatprep.mubr.bf16.mxu0 %v9365_v53  ;;  %v9402_v53 = vld [vmem:[#allocation4 + $0xd8] ss:$12 sps:$4 sm:$0xff]  }
 0x244   : > { %v10943_v61 = vpop.f32.mrf.mxu1 }
 0x245   : > { %9045 = vmatmul.mubr.bf16.gmra.mxu1 %v9399_v54 }
 0x246   : > { %v2666_v11 = vpop.f32.mrf.mxu1 }
 0x248   : > { %4189 = vmatmul.mubr.bf16.vlgmr.msra.gmra.mxu0 %v9363_v27  ;;  %v10945_v56 = vpop.f32.mrf.mxu1 }
 0x249   : > { %4196 = vmatprep.mubr.bf16.mxu0 %v9368_v12 }
 0x24a   : > { %v2669_v55 = vpop.f32.mrf.mxu1 }
 0x250   : > { %4197 = vmatmul.mubr.bf16.gmra.mxu0 %v9370_v58 }
 0x251   : > { %4204 = vmatprep.mubr.bf16.mxu0 %v9371_v0 }
 0x256   : > { %v8452_v21 = vpop.f32.mrf.mxu0 }
 0x258   : > { %4205 = vmatmul.mubr.bf16.gmra.mxu0 %v9373_v39  ;;  %v8453_v18 = vpop.f32.mrf.mxu0 }
 0x259   : > { %4212 = vmatprep.mubr.bf16.mxu0 %v9376_v52  ;;  %v8454_v28 = vadd.f32 %v8453_v18, %v8452_v21 }
 0x25a   : > { %v8455_v10 = vpop.f32.mrf.mxu0 }
 0x25b   : > { %v10939_v29 = vadd.f32 %v8962_v48, %v8454_v28 }
 0x25c   : > { %v8456_v36 = vpop.f32.mrf.mxu0 }
 0x25d   : > { %v8457_v38 = vadd.f32 %v8456_v36, %v8455_v10 }
 0x25f   : > { %v10941_v31 = vadd.f32 %v8963_v43, %v8457_v38 }
 0x260   : > { %4213 = vmatmul.mubr.bf16.gmra.mxu0 %v9378_v34 }
 0x261   : > { %4220 = vmatprep.mubr.bf16.mxu0 %v9379_v13 }
 0x263   : > { %v10947_v23 = vpop.f32.mrf.mxu1 }
 0x265   : > { %v2682_v59 = vpop.f32.mrf.mxu1 }
 0x267   : > { %v10951_v1 = vpop.f32.mrf.mxu1 }
 0x268   : > { %4221 = vmatmul.mubr.bf16.gmra.mxu0 %v9381_v22 }
 0x269   : > { %4228 = vmatprep.mubr.bf16.mxu0 %v9384_v19  ;;  %v2685_v33 = vpop.f32.mrf.mxu1 }
 0x270   : > { %4229 = vmatmul.mubr.bf16.gmra.mxu0 %v9386_v24 }
 0x271   : > { %4236 = vmatprep.mubr.bf16.mxu0 %v9387_v26 }
 0x277   : > { %v8458_v14 = vpop.f32.mrf.mxu0 }
 0x278   : > { %4237 = vmatmul.mubr.bf16.gmra.mxu0 %v9389_v8 }
 0x279   : > { %4244 = vmatprep.mubr.bf16.mxu0 %v9392_v3  ;;  %v8459_v35 = vpop.f32.mrf.mxu0 }
 0x27a   : > { %v8460_v32 = vadd.f32 %v8459_v35, %v8458_v14 }
 0x27b   : > { %v8461_v49 = vpop.f32.mrf.mxu0 }
 0x27c   : > { %v10949_v2 = vadd.f32 %v8460_v32, %v2666_v11 }
 0x27d   : > { %v8462_v25 = vpop.f32.mrf.mxu0 }
 0x27e   : > { %v8463_v17 = vadd.f32 %v8462_v25, %v8461_v49 }
 0x280   : > { %4245 = vmatmul.mubr.bf16.gmra.mxu0 %v9394_v45  ;;  %v10953_v41 = vadd.f32 %v8463_v17, %v2669_v55 }
 0x281   : > { %4252 = vmatprep.mubr.bf16.mxu0 %v9395_v16 }
 0x285   : > { %v10955_v50 = vpop.f32.mrf.mxu1 }
 0x287   : > { %v10957_v48 = vpop.f32.mrf.mxu1 }
 0x288   : > { %4253 = vmatmul.mubr.bf16.gmra.mxu0 %v9397_v44 }
 0x289   : > { %4260 = vmatprep.mubr.bf16.mxu0 %v9400_v63  ;;  %v10959_v27 = vpop.f32.mrf.mxu1 }
 0x28b   : > { %v10961_v54 = vpop.f32.mrf.mxu1 }
 0x28e   : > { %v8528_v12 = vpop.f32.mrf.mxu1 }
 0x290   : > { %4261 = vmatmul.mubr.bf16.gmra.mxu0 %v9402_v53  ;;  %v8529_v42 = vpop.f32.mrf.mxu1 }
 0x291   : > { %v8530_v30 = vadd.f32 %v8529_v42, %v8528_v12 }
 0x292   : > { %v8531_v51 = vpop.f32.mrf.mxu1 }
 0x293   : > { %v10964_v57 = vadd.f32 %v8530_v30, %v10906_v37 }
 0x294   : > { %v8532_v43 = vpop.f32.mrf.mxu1 }
 0x295   : > { %v8533_v46 = vadd.f32 %v8532_v43, %v8531_v51 }
 0x297   : > { %v8464_v58 = vpop.f32.mrf.mxu0  ;;  %v10967_v0 = vadd.f32 %v8533_v46, %v10908_v47 }
 0x298   : > { %v8534_v60 = vpop.f32.mrf.mxu1 }
 0x299   : > { %v8465_v20 = vpop.f32.mrf.mxu0 }
 0x29a   : > { %v8535_v7 = vpop.f32.mrf.mxu1  ;;  %v8466_v39 = vadd.f32 %v8465_v20, %v8464_v58 }
 0x29b   : > { %v8536_v52 = vadd.f32 %v8535_v7, %v8534_v60  ;;  %v8467_v34 = vpop.f32.mrf.mxu0 }
 0x29c   : > { %v8537_v13 = vpop.f32.mrf.mxu1 }
 0x29d   : > { %v10970_v21 = vadd.f32 %v8536_v52, %v10916_v6  ;;  %v8468_v22 = vpop.f32.mrf.mxu0 }
 0x29e   : > { %v8538_v19 = vpop.f32.mrf.mxu1  ;;  %v8469_v37 = vadd.f32 %v8468_v22, %v8467_v34 }
 0x29f   : > { %v8539_v18 = vadd.f32 %v8538_v19, %v8537_v13 }
 0x2a1   : > { %v10973_v10 = vadd.f32 %v8539_v18, %v10918_v40  ;;  %v2678_v18 = vadd.f32 %v10945_v56, %v8469_v37 }
 0x2a5   : > { %v8540_v28 = vpop.f32.mrf.mxu1 }
 0x2a7   : > { %v8541_v36 = vpop.f32.mrf.mxu1 }
 0x2a8   : > { %v8542_v47 = vadd.f32 %v8541_v36, %v8540_v28 }
 0x2a9   : > { %v8543_v38 = vpop.f32.mrf.mxu1 }
 0x2aa   : > { %v10976_v24 = vadd.f32 %v8542_v47, %v10935_v9  ;;  %v8470_v8 = vpop.f32.mrf.mxu0 }
 0x2ab   : > { %v8544_v26 = vpop.f32.mrf.mxu1 }
 0x2ac   : > { %v8545_v11 = vadd.f32 %v8544_v26, %v8543_v38  ;;  %v8471_v6 = vpop.f32.mrf.mxu0 }
 0x2ad   : > { %v8546_v3 = vpop.f32.mrf.mxu1  ;;  %v8472_v55 = vadd.f32 %v8471_v6, %v8470_v8 }
 0x2ae   : > { %v10979_v45 = vadd.f32 %v8545_v11, %v10937_v4  ;;  %v8473_v14 = vpop.f32.mrf.mxu0 }
 0x2af   : > { %v8547_v16 = vpop.f32.mrf.mxu1  ;;  %v2683_v40 = vadd.f32 %v8472_v55, %v2682_v59 }
 0x2b0   : > { %v8548_v44 = vadd.f32 %v8547_v16, %v8546_v3  ;;  %v8474_v63 = vpop.f32.mrf.mxu0 }
 0x2b1   : > { %v8549_v35 = vpop.f32.mrf.mxu1  ;;  %v8475_v9 = vadd.f32 %v8474_v63, %v8473_v14 }
 0x2b2   : > { %v10982_v32 = vadd.f32 %v8548_v44, %v10939_v29 }
 0x2b3   : > { %v8550_v49 = vpop.f32.mrf.mxu1  ;;  %v2686_v17 = vadd.f32 %v8475_v9, %v2685_v33 }
 0x2b4   : > { %v8551_v25 = vadd.f32 %v8550_v49, %v8549_v35 }
 0x2b5   : > { %v8552_v53 = vpop.f32.mrf.mxu1 }
 0x2b6   : > { %v10985_v12 = vadd.f32 %v8551_v25, %v10941_v31  ;;  %v2675_v31 = vadd.f32 %v10943_v61, %v8466_v39 }
 0x2b7   : > { %v8553_v4 = vpop.f32.mrf.mxu1 }
 0x2b8   : > { %v8554_v42 = vadd.f32 %v8553_v4, %v8552_v53 }
 0x2b9   : > { %v8555_v30 = vpop.f32.mrf.mxu1 }
 0x2ba   : > { %v10988_v43 = vadd.f32 %v8554_v42, %v10949_v2 }
 0x2bb   : > { %v8476_v51 = vpop.f32.mrf.mxu0  ;;  %v8556_v59 = vpop.f32.mrf.mxu1 }
 0x2bc   : > { %v8557_v58 = vadd.f32 %v8556_v59, %v8555_v30 }
 0x2bd   : > { %v8477_v46 = vpop.f32.mrf.mxu0  ;;  %v8558_v60 = vpop.f32.mrf.mxu1 }
 0x2be   : > { %v8478_v29 = vadd.f32 %v8477_v46, %v8476_v51  ;;  %v10991_v7 = vadd.f32 %v8557_v58, %v10953_v41 }
 0x2bf   : > { %v8479_v20 = vpop.f32.mrf.mxu0  ;;  %v8559_v33 = vpop.f32.mrf.mxu1 }
 0x2c0   : > { %v8560_v34 = vadd.f32 %v8559_v33, %v8558_v60  ;;  %v2691_v37 = vadd.f32 %v10947_v23, %v8478_v29 }
 0x2c1   : > { %v8480_v52 = vpop.f32.mrf.mxu0  ;;  %v8561_v22 = vpop.f32.mrf.mxu1 }
 0x2c2   : > { %v8481_v13 = vadd.f32 %v8480_v52, %v8479_v20  ;;  %v10994_v19 = vadd.f32 %v8560_v34, %v2675_v31 }
 0x2c3   : > { %v8562_v2 = vpop.f32.mrf.mxu1 }
 0x2c4   : > { %v8563_v28 = vadd.f32 %v8562_v2, %v8561_v22 }
 0x2c5   : > { %v8564_v36 = vpop.f32.mrf.mxu1 }
 0x2c6   : > { %v3095_v47 = vadd.f32 %v8563_v28, %v2678_v18 }
 0x2c7   : > { %v8565_v26 = vpop.f32.mrf.mxu1 }
 0x2c8   : > { %v8566_v8 = vadd.f32 %v8565_v26, %v8564_v36 }
 0x2c9   : > { %v8567_v11 = vpop.f32.mrf.mxu1 }
 0x2ca   : > { %v8482_v38 = vpop.f32.mrf.mxu0  ;;  %v3100_v6 = vadd.f32 %v8566_v8, %v2683_v40  ;;  %v2694_v40 = vadd.f32 %v10951_v1, %v8481_v13 }
 0x2cb   : > { %v8568_v39 = vpop.f32.mrf.mxu1 }
 0x2cc   : > { %v8483_v41 = vpop.f32.mrf.mxu0  ;;  %v8569_v16 = vadd.f32 %v8568_v39, %v8567_v11 }
 0x2cd   : > { %v8484_v3 = vadd.f32 %v8483_v41, %v8482_v38  ;;  %v8570_v44 = vpop.f32.mrf.mxu1 }
 0x2ce   : > { %v8485_v61 = vpop.f32.mrf.mxu0  ;;  %v3103_v63 = vadd.f32 %v8569_v16, %v2686_v17 }
 0x2cf   : > { %v2699_v55 = vadd.f32 %v8484_v3, %v10957_v48  ;;  %v8571_v56 = vpop.f32.mrf.mxu1 }
 0x2d0   : > { %v8486_v14 = vpop.f32.mrf.mxu0  ;;  %v8572_v49 = vadd.f32 %v8571_v56, %v8570_v44 }
 0x2d1   : > { %v8487_v35 = vadd.f32 %v8486_v14, %v8485_v61  ;;  %v8573_v25 = vpop.f32.mrf.mxu1 }
 0x2d2   : > { %v3108_v53 = vadd.f32 %v8572_v49, %v2691_v37 }
 0x2d3   : > { %v2702_v9 = vadd.f32 %v8487_v35, %v10961_v54  ;;  %v8574_v4 = vpop.f32.mrf.mxu1 }
 0x2d4   : > { %v8575_v42 = vadd.f32 %v8574_v4, %v8573_v25 }
 0x2d5   : > { %v8576_v51 = vpop.f32.mrf.mxu1 }
 0x2d6   : > { %v3111_v48 = vadd.f32 %v8575_v42, %v2694_v40 }
 0x2d7   : > { %v8577_v46 = vpop.f32.mrf.mxu1 }
 0x2d8   : > { %v8488_v30 = vpop.f32.mrf.mxu0  ;;  %v8578_v60 = vadd.f32 %v8577_v46, %v8576_v51 }
 0x2d9   : > { %v8579_v20 = vpop.f32.mrf.mxu1 }
 0x2da   : > { %v8489_v59 = vpop.f32.mrf.mxu0  ;;  %v3116_v33 = vadd.f32 %v8578_v60, %v2699_v55 }
 0x2db   : > { %v8490_v58 = vadd.f32 %v8489_v59, %v8488_v30  ;;  %v8580_v29 = vpop.f32.mrf.mxu1 }
 0x2dc   : > { %v8491_v17 = vpop.f32.mrf.mxu0  ;;  %v8581_v31 = vadd.f32 %v8580_v29, %v8579_v20 }
 0x2dd   : > { %v8582_v34 = vpop.f32.mrf.mxu1  ;;  %v2707_v2 = vadd.f32 %v10955_v50, %v8490_v58 }
 0x2de   : > { %v8492_v23 = vpop.f32.mrf.mxu0  ;;  %v3119_v22 = vadd.f32 %v8581_v31, %v2702_v9 }
 0x2df   : > { %v8493_v54 = vadd.f32 %v8492_v23, %v8491_v17  ;;  %v8583_v13 = vpop.f32.mrf.mxu1 }
 0x2e0   : > { %v11001_v52 = vpop.f32.mrf.mxu0  ;;  %v8584_v18 = vadd.f32 %v8583_v13, %v8582_v34 }
 0x2e1   : > { %v8585_v36 = vpop.f32.mrf.mxu1  ;;  %v2710_v41 = vadd.f32 %v10959_v27, %v8493_v54 }
 0x2e2   : > { %v3164_v1 = vpop.f32.mrf.mxu0  ;;  %v3124_v38 = vadd.f32 %v8584_v18, %v2707_v2 }
 0x2e3   : > { %v8586_v8 = vpop.f32.mrf.mxu1  ;;  %v3165_v54 = vadd.f32 %v3164_v1, %v10964_v57 }
 0x2e4   : > { %v11004_v28 = vpop.f32.mrf.mxu0  ;;  %v8587_v11 = vadd.f32 %v8586_v8, %v8585_v36 }
 0x2e6   : > { %v3167_v26 = vpop.f32.mrf.mxu0  ;;  %v3127_v61 = vadd.f32 %v8587_v11, %v2710_v41 }
 0x2e8   : > { %v11007_v3 = vpop.f32.mrf.mxu0 }
 0x2ea   : > { %v11009_v39 = vpop.f32.mrf.mxu0 }
 0x2ec   : > { %v11011_v55 = vpop.f32.mrf.mxu0 }
 0x2ee   : > { %v11013_v16 = vpop.f32.mrf.mxu0 }
 0x2f0   : > { %v9002_v50 = vpop.f32.mrf.mxu0 }
 0x2f1   : > { %v11016_v14 = vadd.f32 %v9002_v50, %v10994_v19 }
 0x2f2   : > { %v11018_v44 = vpop.f32.mrf.mxu0 }
 0x2f4   : > { %v9003_v35 = vpop.f32.mrf.mxu0 }
 0x2f5   : > { %v11020_v56 = vadd.f32 %v9003_v35, %v3095_v47  ;;  %v9030_v47 = vpop.f32.mrf.mxu1  ;;  %v3173_v35 = vadd.f32 %v11001_v52, %v10970_v21  ;;  %v4709_v21 = vld [vmem:[#allocation3] sm:$0xf] }
 0x2f6   : > { %v11022_v27 = vpop.f32.mrf.mxu0 }
 0x2f7   : > { %v4303_v17 = vpop.f32.mrf.mxu1 }
 0x2f8   : > { %v9006_v37 = vpop.f32.mrf.mxu0 }
 0x2f9   : > { %v11024_v9 = vadd.f32 %v9006_v37, %v3108_v53  ;;  %v9031_v23 = vpop.f32.mrf.mxu1 }
 0x2fa   : > { %v3212_v49 = vpop.f32.mrf.mxu0 }
 0x2fb   : > { %v11026_v25 = vadd.f32 %v3212_v49, %v3100_v6  ;;  %v4306_v13 = vpop.f32.mrf.mxu1 }
 0x2fc   : > { %v9007_v4 = vpop.f32.mrf.mxu0 }
 0x2fd   : > { %v11028_v40 = vadd.f32 %v9007_v4, %v3111_v48  ;;  %v11048_v11 = vpop.f32.mrf.mxu1 }
 0x2fe   : > { %v3215_v42 = vpop.f32.mrf.mxu0 }
 0x2ff   : > { %v11030_v30 = vadd.f32 %v3215_v42, %v3103_v63 }
 0x300   : > { %v9010_v19 = vpop.f32.mrf.mxu0 }
 0x301   : > { %v11032_v51 = vadd.f32 %v9010_v19, %v3124_v38  ;;  %v4319_v19 = vpop.f32.mrf.mxu1 }
 0x302   : > { %v3228_v59 = vpop.f32.mrf.mxu0 }
 0x303   : > { %v11034_v46 = vadd.f32 %v3228_v59, %v3116_v33  ;;  %v11044_v33 = vld [vmem:[%s12096_s9] ss:$0 sm:$0xff] }
 0x304   : > { %v9011_v58 = vpop.f32.mrf.mxu0 }
 0x305   : > { %v11036_v60 = vadd.f32 %v9011_v58, %v3127_v61 }
 0x306   : > { %v3231_v53 = vpop.f32.mrf.mxu0 }
 0x307   : > { %v11038_v6 = vadd.f32 %v3231_v53, %v3119_v22  ;;  %v3168_v22 = vadd.f32 %v3167_v26, %v10967_v0 }
 0x308   : > { %v8622_v20 = vpop.f32.mrf.mxu0 }
 0x30a   : > { %v8623_v48 = vpop.f32.mrf.mxu0 }
 0x30b   : > { %v8624_v29 = vadd.f32 %v8623_v48, %v8622_v20 }
 0x30c   : > { %v8625_v63 = vpop.f32.mrf.mxu0 }
 0x30d   : > { %v4304_v31 = vadd.f32 %v8624_v29, %v4303_v17 }
 0x30e   : > { %v8626_v34 = vpop.f32.mrf.mxu0 }
 0x30f   : > { %v4382_v2 = vadd.f32 %v4304_v31, %v3165_v54  ;;  %v8627_v18 = vadd.f32 %v8626_v34, %v8625_v63  ;;  %v3176_v63 = vadd.f32 %v11004_v28, %v10973_v10  ;;  %v11056_v31 = vpop.f32.mrf.mxu1  ;;  %v4713_v10 = vld [vmem:[#allocation3 + $0x8] sm:$0x1] }
 0x310   : > { %v8628_v36 = vpop.f32.mrf.mxu0 }
 0x311   : > { %v4409_v38 = vadd.f32 %v11044_v33, %v4382_v2  ;;  %v4307_v8 = vadd.f32 %v8627_v18, %v4306_v13 }
 0x312   : > { %v8629_v41 = vpop.f32.mrf.mxu0 }
 0x313   : > { %v4429_v57 = vmax.f32 %v4409_v38, 0.0  ;;  %v4383_v1 = vadd.f32 %v4307_v8, %v3168_v22  ;;  %v8630_v61 = vadd.f32 %v8629_v41, %v8628_v36  ;;  %v3181_v41 = vadd.f32 %v11009_v39, %v10976_v24 }
 0x314   : > { %v8631_v50 = vpop.f32.mrf.mxu0 }
 0x315   : > { %v8397_v37 = vpack.c.bf16 %v4429_v57, %v4429_v57  ;;  %v4410_v49 = vadd.f32 %v11044_v33, %v4383_v1  ;;  %v4312_v4 = vadd.f32 %v9030_v47, %v8630_v61  ;;  %v4322_v61 = vpop.f32.mrf.mxu1 }
 0x316   : > { %v8632_v42 = vpop.f32.mrf.mxu0 }
 0x317   : > { %v4510_v0 = vshrl.u32 %v8397_v37, 16  ;;  %v4430_v26 = vmax.f32 %v4410_v49, 0.0  ;;  %v4384_v59 = vadd.f32 %v4312_v4, %v3173_v35  ;;  %v8633_v58 = vadd.f32 %v8632_v42, %v8631_v50 }
 0x318   : > { %v8634_v53 = vpop.f32.mrf.mxu0  ;;  %v4513_v20 = vshll.u32 %v8397_v37, 16 }
 0x319   : > { %v4512_v17 = vrot.slane %v4510_v0, 7  ;;  %v8398_v48 = vpack.c.bf16 %v4430_v26, %v4430_v26  ;;  %v4411_v29 = vadd.f32 %v11044_v33, %v4384_v59  ;;  %v4315_v52 = vadd.f32 %v9031_v23, %v8633_v58 }
 0x31a   : > { %v8635_v54 = vpop.f32.mrf.mxu0  ;;  %v3184_v59 = vadd.f32 %v11013_v16, %v10979_v45 }
 0x31b   : > { %v4515_v47 = vor.u32 %v4513_v20, %v4512_v17  ;;  %v4518_v34 = vshrl.u32 %v8398_v48, 16  ;;  %v4431_v13 = vmax.f32 %v4411_v29, 0.0  ;;  %v4385_v2 = vadd.f32 %v4315_v52, %v3176_v63  ;;  %v4716_v63 = vld [vmem:[#allocation3 + $0xc] sm:$0xf] }
 0x31c   : > { %v8636_v18 = vadd.f32 %v8635_v54, %v8634_v53  ;;  %v8637_v36 = vpop.f32.mrf.mxu0  ;;  %v4521_v8 = vshll.u32 %v8398_v48, 16  ;;  %v4516_v50 = vrot.slane %v4512_v17, 4  ;;  %v11070_v54 = vpop.f32.mrf.mxu1 }
 0x31d   : > { %v4710_v22 = vsel %vm10175_vm11, %v4515_v47, %v4709_v21  ;;  %v4520_v38 = vrot.slane %v4518_v34, 7  ;;  %v8399_v28 = vpack.c.bf16 %v4431_v13, %v4431_v13  ;;  %v4412_v23 = vadd.f32 %v11044_v33, %v4385_v2 }
 0x31e   : > { %4711 = vst [vmem:[#allocation3] sm:$0xf] %v4710_v22  ;;  %v4320_v57 = vadd.f32 %v8636_v18, %v4319_v19  ;;  %v8638_v1 = vpop.f32.mrf.mxu0  ;;  %v3189_v34 = vadd.f32 %v11007_v3, %v10982_v32 }
 0x31f   : > { %v4523_v35 = vor.u32 %v4521_v8, %v4520_v38  ;;  %v4525_v37 = vrot.slane %v4520_v38, 4  ;;  %v8639_v49 = vadd.f32 %v8638_v1, %v8637_v36  ;;  %v4527_v4 = vshrl.u32 %v8399_v28, 16  ;;  %v4335_v1 = vpop.f32.mrf.mxu1 }
 0x320   : > { %v4432_v42 = vmax.f32 %v4412_v23, 0.0  ;;  %v4386_v0 = vadd.f32 %v4320_v57, %v3181_v41  ;;  %v8640_v26 = vpop.f32.mrf.mxu0  ;;  %v4530_v17 = vshll.u32 %v8399_v28, 16  ;;  %v4720_v41 = vld [vmem:[#allocation3 + $0x14] sm:$0x1] }
 0x321   : > { %v4524_v24 = vsel %vm10182_vm12, %v4516_v50, %v4523_v35  ;;  %v4714_v58 = vsel %vm9996_vm2, %v4525_v37, %v4713_v10  ;;  %v4323_v19 = vadd.f32 %v8639_v49, %v4322_v61  ;;  %v4529_v53 = vrot.slane %v4527_v4, 7 }
 0x322   : > { %4712 = vst [vmem:[#allocation3 + $0x4] sm:$0xf] %v4524_v24  ;;  %4715 = vst [vmem:[#allocation3 + $0x8] sm:$0x1] %v4714_v58  ;;  %v8400_v20 = vpack.c.bf16 %v4432_v42, %v4432_v42  ;;  %v4413_v48 = vadd.f32 %v11044_v33, %v4386_v0  ;;  %v8641_v29 = vpop.f32.mrf.mxu0  ;;  %v3192_v49 = vadd.f32 %v11011_v55, %v10985_v12 }
 0x323   : > { %v4387_v21 = vadd.f32 %v4323_v19, %v3184_v59  ;;  %v8642_v52 = vadd.f32 %v8641_v29, %v8640_v26  ;;  %v4532_v45 = vor.u32 %v4530_v17, %v4529_v53  ;;  %v4533_v61 = vrot.slane %v4529_v53, 4  ;;  %v11086_v53 = vpop.f32.mrf.mxu1  ;;  %v4723_v17 = vld [vmem:[#allocation3 + $0x18] sm:$0xf] }
 0x324   : > { %v4535_v16 = vshrl.u32 %v8400_v20, 16  ;;  %v8643_v47 = vpop.f32.mrf.mxu0  ;;  %v4433_v13 = vmax.f32 %v4413_v48, 0.0  ;;  %v4538_v38 = vshll.u32 %v8400_v20, 16 }
 0x325   : > { %v4414_v2 = vadd.f32 %v11044_v33, %v4387_v21  ;;  %v4328_v18 = vadd.f32 %v11048_v11, %v8642_v52  ;;  %v4717_v36 = vsel %vm10175_vm11, %v4532_v45, %v4716_v63  ;;  %v4727_v45 = vld [vmem:[#allocation3 + $0x20] sm:$0x1] }
 0x326   : > { %v4537_v22 = vrot.slane %v4535_v16, 7  ;;  %v8644_v8 = vpop.f32.mrf.mxu0  ;;  %4718 = vst [vmem:[#allocation3 + $0xc] sm:$0xf] %v4717_v36  ;;  %v8401_v10 = vpack.c.bf16 %v4433_v13, %v4433_v13 }
 0x327   : > { %v4434_v28 = vmax.f32 %v4414_v2, 0.0  ;;  %v4388_v23 = vadd.f32 %v4328_v18, %v3189_v34  ;;  %v8645_v57 = vadd.f32 %v8644_v8, %v8643_v47 }
 0x328   : > { %v4540_v32 = vor.u32 %v4538_v38, %v4537_v22  ;;  %v4542_v3 = vrot.slane %v4537_v22, 4  ;;  %v8646_v50 = vpop.f32.mrf.mxu0  ;;  %v4544_v35 = vshrl.u32 %v8401_v10, 16  ;;  %v4547_v24 = vshll.u32 %v8401_v10, 16  ;;  %v4338_v22 = vpop.f32.mrf.mxu1 }
 0x329   : > { %v8402_v37 = vpack.c.bf16 %v4434_v28, %v4434_v28  ;;  %v4415_v11 = vadd.f32 %v11044_v33, %v4388_v23  ;;  %v4331_v0 = vadd.f32 %v11056_v31, %v8645_v57  ;;  %v3197_v31 = vadd.f32 %v11018_v44, %v10988_v43 }
 0x32a   : > { %v4541_v4 = vsel %vm10182_vm12, %v4533_v61, %v4540_v32  ;;  %v4721_v42 = vsel %vm9996_vm2, %v4542_v3, %v4720_v41  ;;  %v8647_v26 = vpop.f32.mrf.mxu0  ;;  %v4546_v59 = vrot.slane %v4544_v35, 7  ;;  %v3200_v57 = vadd.f32 %v11022_v27, %v10991_v7 }
 0x32b   : > { %4719 = vst [vmem:[#allocation3 + $0x10] sm:$0xf] %v4541_v4  ;;  %4722 = vst [vmem:[#allocation3 + $0x14] sm:$0x1] %v4721_v42  ;;  %v4552_v58 = vshrl.u32 %v8402_v37, 16  ;;  %v4435_v19 = vmax.f32 %v4415_v11, 0.0  ;;  %v4389_v20 = vadd.f32 %v4331_v0, %v3192_v49  ;;  %v8648_v12 = vadd.f32 %v8647_v26, %v8646_v50  ;;  %v11100_v11 = vpop.f32.mrf.mxu1 }
 0x32c   : > { %v8649_v55 = vpop.f32.mrf.mxu0  ;;  %v4549_v48 = vor.u32 %v4547_v24, %v4546_v59  ;;  %v4555_v63 = vshll.u32 %v8402_v37, 16  ;;  %v4550_v52 = vrot.slane %v4546_v59, 4 }
 0x32d   : > { %v4554_v29 = vrot.slane %v4552_v58, 7  ;;  %v8403_v21 = vpack.c.bf16 %v4435_v19, %v4435_v19  ;;  %v4416_v16 = vadd.f32 %v11044_v33, %v4389_v20  ;;  %v4336_v47 = vadd.f32 %v8648_v12, %v4335_v1  ;;  %v4730_v1 = vld [vmem:[#allocation3 + $0x24] sm:$0xf] }
 0x32e   : > { %v8650_v34 = vpop.f32.mrf.mxu0  ;;  %v4724_v13 = vsel %vm10175_vm11, %v4549_v48, %v4723_v17  ;;  %v4734_v17 = vld [vmem:[#allocation3 + $0x2c] sm:$0x1] }
 0x32f   : > { %v4557_v2 = vor.u32 %v4555_v63, %v4554_v29  ;;  %v4559_v18 = vrot.slane %v4554_v29, 4  ;;  %v4561_v36 = vshrl.u32 %v8403_v21, 16  ;;  %4725 = vst [vmem:[#allocation3 + $0x18] sm:$0xf] %v4724_v13  ;;  %v4436_v38 = vmax.f32 %v4416_v16, 0.0 }
 0x330   : > { %v4390_v8 = vadd.f32 %v4336_v47, %v3197_v31  ;;  %v8651_v41 = vadd.f32 %v8650_v34, %v8649_v55  ;;  %v8652_v10 = vpop.f32.mrf.mxu0  ;;  %v4564_v23 = vshll.u32 %v8403_v21, 16  ;;  %v4351_v55 = vpop.f32.mrf.mxu1 }
 0x331   : > { %v4558_v43 = vsel %vm10182_vm12, %v4550_v52, %v4557_v2  ;;  %v4728_v44 = vsel %vm9996_vm2, %v4559_v18, %v4727_v45  ;;  %v4563_v28 = vrot.slane %v4561_v36, 7  ;;  %v8404_v61 = vpack.c.bf16 %v4436_v38, %v4436_v38  ;;  %v4737_v2 = vld [vmem:[#allocation3 + $0x30] sm:$0xf] }
 0x332   : > { %4726 = vst [vmem:[#allocation3 + $0x1c] sm:$0xf] %v4558_v43  ;;  %4729 = vst [vmem:[#allocation3 + $0x20] sm:$0x1] %v4728_v44  ;;  %v4417_v32 = vadd.f32 %v11044_v33, %v4390_v8  ;;  %v4339_v3 = vadd.f32 %v8651_v41, %v4338_v22  ;;  %v8653_v50 = vpop.f32.mrf.mxu0  ;;  %v9043_v8 = vpop.f32.mrf.mxu1 }
 0x333   : > { %v4566_v35 = vor.u32 %v4564_v23, %v4563_v28  ;;  %v8654_v37 = vadd.f32 %v8653_v50, %v8652_v10  ;;  %v4569_v49 = vshrl.u32 %v8404_v61, 16  ;;  %v4572_v59 = vshll.u32 %v8404_v61, 16 }
 0x334   : > { %v4437_v4 = vmax.f32 %v4417_v32, 0.0  ;;  %v4391_v42 = vadd.f32 %v4339_v3, %v3200_v57  ;;  %v8655_v0 = vpop.f32.mrf.mxu0  ;;  %v4567_v48 = vrot.slane %v4563_v28, 4  ;;  %v4354_v50 = vpop.f32.mrf.mxu1 }
 0x335   : > { %v4731_v26 = vsel %vm10175_vm11, %v4566_v35, %v4730_v1  ;;  %v4344_v7 = vadd.f32 %v11070_v54, %v8654_v37  ;;  %v4571_v27 = vrot.slane %v4569_v49, 7  ;;  %v4741_v35 = vld [vmem:[#allocation3 + $0x38] sm:$0x1] }
 0x336   : > { %4732 = vst [vmem:[#allocation3 + $0x24] sm:$0xf] %v4731_v26  ;;  %v8405_v24 = vpack.c.bf16 %v4437_v4, %v4437_v4  ;;  %v4418_v58 = vadd.f32 %v11044_v33, %v4391_v42  ;;  %v8656_v19 = vpop.f32.mrf.mxu0 }
 0x337   : > { %v4392_v20 = vadd.f32 %v4344_v7, %v11016_v14  ;;  %v8657_v12 = vadd.f32 %v8656_v19, %v8655_v0  ;;  %v4574_v29 = vor.u32 %v4572_v59, %v4571_v27  ;;  %v4576_v63 = vrot.slane %v4571_v27, 4  ;;  %v4744_v59 = vld [vmem:[#allocation3 + $0x3c] sm:$0xf] }
 0x338   : > { %v4578_v21 = vshrl.u32 %v8405_v24, 16  ;;  %v8658_v31 = vpop.f32.mrf.mxu0  ;;  %v4438_v52 = vmax.f32 %v4418_v58, 0.0  ;;  %v4581_v14 = vshll.u32 %v8405_v24, 16 }
 0x339   : > { %v4419_v54 = vadd.f32 %v11044_v33, %v4392_v20  ;;  %v4347_v45 = vadd.f32 %v11086_v53, %v8657_v12  ;;  %v4575_v16 = vsel %vm10182_vm12, %v4567_v48, %v4574_v29  ;;  %v4735_v47 = vsel %vm9996_vm2, %v4576_v63, %v4734_v17 }
 0x33a   : > { %v4580_v34 = vrot.slane %v4578_v21, 7  ;;  %v8659_v13 = vpop.f32.mrf.mxu0  ;;  %4733 = vst [vmem:[#allocation3 + $0x28] sm:$0xf] %v4575_v16  ;;  %4736 = vst [vmem:[#allocation3 + $0x2c] sm:$0x1] %v4735_v47  ;;  %v8406_v18 = vpack.c.bf16 %v4438_v52, %v4438_v52 }
 0x33b   : > { %v4439_v36 = vmax.f32 %v4419_v54, 0.0  ;;  %v4393_v22 = vadd.f32 %v4347_v45, %v11020_v56  ;;  %v8660_v38 = vadd.f32 %v8659_v13, %v8658_v31 }
 0x33c   : > { %v4583_v41 = vor.u32 %v4581_v14, %v4580_v34  ;;  %v8661_v53 = vpop.f32.mrf.mxu0  ;;  %v4586_v10 = vshrl.u32 %v8406_v18, 16  ;;  %v4589_v61 = vshll.u32 %v8406_v18, 16  ;;  %v4584_v56 = vrot.slane %v4580_v34, 4  ;;  %v4748_v34 = vld [vmem:[#allocation3 + $0x44] sm:$0x1] }
 0x33d   : > { %v8407_v43 = vpack.c.bf16 %v4439_v36, %v4439_v36  ;;  %v4420_v44 = vadd.f32 %v11044_v33, %v4393_v22  ;;  %v4352_v23 = vadd.f32 %v8660_v38, %v4351_v55  ;;  %v11123_v55 = vpop.f32.mrf.mxu1 }
 0x33e   : > { %v4738_v28 = vsel %vm10175_vm11, %v4583_v41, %v4737_v2  ;;  %v8662_v57 = vpop.f32.mrf.mxu0  ;;  %v4588_v1 = vrot.slane %v4586_v10, 7 }
 0x33f   : > { %4739 = vst [vmem:[#allocation3 + $0x30] sm:$0xf] %v4738_v28  ;;  %v4595_v32 = vshrl.u32 %v8407_v43, 16  ;;  %v4440_v3 = vmax.f32 %v4420_v44, 0.0  ;;  %v4598_v37 = vshll.u32 %v8407_v43, 16  ;;  %v4394_v49 = vadd.f32 %v4352_v23, %v11026_v25  ;;  %v4367_v2 = vpop.f32.mrf.mxu1 }
 0x340   : > { %v8663_v4 = vadd.f32 %v8662_v57, %v8661_v53  ;;  %v8664_v42 = vpop.f32.mrf.mxu0  ;;  %v4591_v0 = vor.u32 %v4589_v61, %v4588_v1  ;;  %v4593_v26 = vrot.slane %v4588_v1, 4  ;;  %v4751_v57 = vld [vmem:[#allocation3 + $0x48] sm:$0xf] }
 0x341   : > { %v4597_v7 = vrot.slane %v4595_v32, 7  ;;  %v8408_v27 = vpack.c.bf16 %v4440_v3, %v4440_v3  ;;  %v4421_v24 = vadd.f32 %v11044_v33, %v4394_v49 }
 0x342   : > { %v4355_v58 = vadd.f32 %v8663_v4, %v4354_v50  ;;  %v8665_v19 = vpop.f32.mrf.mxu0  ;;  %v4592_v17 = vsel %vm10182_vm12, %v4584_v56, %v4591_v0  ;;  %v4742_v20 = vsel %vm9996_vm2, %v4593_v26, %v4741_v35 }
 0x343   : > { %v4600_v12 = vor.u32 %v4598_v37, %v4597_v7  ;;  %4740 = vst [vmem:[#allocation3 + $0x34] sm:$0xf] %v4592_v17  ;;  %4743 = vst [vmem:[#allocation3 + $0x38] sm:$0x1] %v4742_v20  ;;  %v4603_v25 = vshrl.u32 %v8408_v27, 16  ;;  %v4441_v48 = vmax.f32 %v4421_v24, 0.0  ;;  %v8666_v31 = vadd.f32 %v8665_v19, %v8664_v42 }
 0x344   : > { %v4395_v29 = vadd.f32 %v4355_v58, %v11030_v30  ;;  %v8667_v63 = vpop.f32.mrf.mxu0  ;;  %v4606_v54 = vshll.u32 %v8408_v27, 16  ;;  %v4601_v18 = vrot.slane %v4597_v7, 4  ;;  %v4755_v24 = vld [vmem:[#allocation3 + $0x50] sm:$0x1] }
 0x345   : > { %v4745_v21 = vsel %vm10175_vm11, %v4600_v12, %v4744_v59  ;;  %v4605_v52 = vrot.slane %v4603_v25, 7  ;;  %v8409_v45 = vpack.c.bf16 %v4441_v48, %v4441_v48  ;;  %v4360_v14 = vadd.f32 %v11100_v11, %v8666_v31 }
 0x346   : > { %4746 = vst [vmem:[#allocation3 + $0x3c] sm:$0xf] %v4745_v21  ;;  %v4422_v16 = vadd.f32 %v11044_v33, %v4395_v29  ;;  %v8668_v47 = vpop.f32.mrf.mxu0 }
 0x347   : > { %v8669_v13 = vadd.f32 %v8668_v47, %v8667_v63  ;;  %v4608_v36 = vor.u32 %v4606_v54, %v4605_v52  ;;  %v4610_v30 = vrot.slane %v4605_v52, 4  ;;  %v4612_v22 = vshrl.u32 %v8409_v45, 16 }
 0x348   : > { %v8670_v38 = vpop.f32.mrf.mxu0  ;;  %v4442_v41 = vmax.f32 %v4422_v16, 0.0  ;;  %v4396_v53 = vadd.f32 %v4360_v14, %v11024_v9  ;;  %v4615_v23 = vshll.u32 %v8409_v45, 16  ;;  %v9047_v9 = vpop.f32.mrf.mxu1 }
 0x349   : > { %v4363_v10 = vadd.f32 %v9043_v8, %v8669_v13  ;;  %v4609_v43 = vsel %vm10182_vm12, %v4601_v18, %v4608_v36  ;;  %v4749_v44 = vsel %vm9996_vm2, %v4610_v30, %v4748_v34  ;;  %v4614_v28 = vrot.slane %v4612_v22, 7 }
 0x34a   : > { %v8671_v11 = vpop.f32.mrf.mxu0  ;;  %4747 = vst [vmem:[#allocation3 + $0x40] sm:$0xf] %v4609_v43  ;;  %4750 = vst [vmem:[#allocation3 + $0x44] sm:$0x1] %v4749_v44  ;;  %v8410_v1 = vpack.c.bf16 %v4442_v41, %v4442_v41  ;;  %v4423_v61 = vadd.f32 %v11044_v33, %v4396_v53 }
 0x34b   : > { %v4397_v32 = vadd.f32 %v4363_v10, %v11028_v40  ;;  %v8672_v3 = vadd.f32 %v8671_v11, %v8670_v38  ;;  %v4617_v8 = vor.u32 %v4615_v23, %v4614_v28  ;;  %v4370_v40 = vpop.f32.mrf.mxu1  ;;  %v4618_v17 = vrot.slane %v4614_v28, 4  ;;  %v4762_v10 = vld [vmem:[#allocation3 + $0x5c] sm:$0x1] }
 0x34c   : > { %v8673_v50 = vpop.f32.mrf.mxu0  ;;  %v4620_v56 = vshrl.u32 %v8410_v1, 16  ;;  %v4443_v35 = vmax.f32 %v4423_v61, 0.0  ;;  %v4623_v4 = vshll.u32 %v8410_v1, 16 }
 0x34d   : > { %v4424_v37 = vadd.f32 %v11044_v33, %v4397_v32  ;;  %v4752_v49 = vsel %vm10175_vm11, %v4617_v8, %v4751_v57  ;;  %v4368_v42 = vadd.f32 %v8672_v3, %v4367_v2 }
 0x34e   : > { %v8674_v0 = vpop.f32.mrf.mxu0  ;;  %4753 = vst [vmem:[#allocation3 + $0x48] sm:$0xf] %v4752_v49  ;;  %v4622_v26 = vrot.slane %v4620_v56, 7  ;;  %v8411_v7 = vpack.c.bf16 %v4443_v35, %v4443_v35 }
 0x34f   : > { %v4444_v27 = vmax.f32 %v4424_v37, 0.0  ;;  %v8675_v59 = vadd.f32 %v8674_v0, %v8673_v50  ;;  %v4398_v58 = vadd.f32 %v4368_v42, %v11034_v46  ;;  %v4758_v46 = vld [vmem:[#allocation3 + $0x54] sm:$0xf] }
 0x350   : > { %v8676_v19 = vpop.f32.mrf.mxu0  ;;  %v4625_v20 = vor.u32 %v4623_v4, %v4622_v26  ;;  %v4627_v12 = vrot.slane %v4622_v26, 4  ;;  %v4629_v25 = vshrl.u32 %v8411_v7, 16  ;;  %v4632_v48 = vshll.u32 %v8411_v7, 16 }
 0x351   : > { %v8412_v29 = vpack.c.bf16 %v4444_v27, %v4444_v27  ;;  %v4425_v63 = vadd.f32 %v11044_v33, %v4398_v58  ;;  %v4371_v21 = vadd.f32 %v8675_v59, %v4370_v40  ;;  %v4769_v40 = vld [vmem:[#allocation3 + $0x68] sm:$0x1] }
 0x352   : > { %v8677_v31 = vpop.f32.mrf.mxu0  ;;  %v4626_v52 = vsel %vm10182_vm12, %v4618_v17, %v4625_v20  ;;  %v4756_v54 = vsel %vm9996_vm2, %v4627_v12, %v4755_v24  ;;  %v4631_v45 = vrot.slane %v4629_v25, 7  ;;  %v4772_v20 = vld [vmem:[#allocation3 + $0x6c] sm:$0xf] }
 0x353   : > { %v8678_v16 = vadd.f32 %v8677_v31, %v8676_v19  ;;  %4754 = vst [vmem:[#allocation3 + $0x4c] sm:$0xf] %v4626_v52  ;;  %4757 = vst [vmem:[#allocation3 + $0x50] sm:$0x1] %v4756_v54  ;;  %v4637_v47 = vshrl.u32 %v8412_v29, 16  ;;  %v4445_v34 = vmax.f32 %v4425_v63, 0.0  ;;  %v4399_v14 = vadd.f32 %v4371_v21, %v11038_v6 }
 0x354   : > { %v8679_v13 = vpop.f32.mrf.mxu0  ;;  %v4634_v2 = vor.u32 %v4632_v48, %v4631_v45  ;;  %v4640_v30 = vshll.u32 %v8412_v29, 16  ;;  %v4635_v28 = vrot.slane %v4631_v45, 4  ;;  %v4776_v31 = vld [vmem:[#allocation3 + $0x74] sm:$0x1] }
 0x355   : > { %v4376_v18 = vadd.f32 %v11123_v55, %v8678_v16  ;;  %v4639_v36 = vrot.slane %v4637_v47, 7  ;;  %v8413_v22 = vpack.c.bf16 %v4445_v34, %v4445_v34  ;;  %v4426_v38 = vadd.f32 %v11044_v33, %v4399_v14 }
 0x356   : > { %v8680_v41 = vpop.f32.mrf.mxu0  ;;  %v4759_v53 = vsel %vm10175_vm11, %v4634_v2, %v4758_v46 }
 0x357   : > { %v4400_v43 = vadd.f32 %v4376_v18, %v11032_v51  ;;  %v8681_v44 = vadd.f32 %v8680_v41, %v8679_v13  ;;  %4760 = vst [vmem:[#allocation3 + $0x54] sm:$0xf] %v4759_v53  ;;  %v4642_v6 = vor.u32 %v4640_v30, %v4639_v36  ;;  %v4644_v23 = vrot.slane %v4639_v36, 4  ;;  %v4765_v51 = vld [vmem:[#allocation3 + $0x60] sm:$0xf] }
 0x358   : > { %v4646_v11 = vshrl.u32 %v8413_v22, 16  ;;  %v4446_v57 = vmax.f32 %v4426_v38, 0.0  ;;  %v4649_v8 = vshll.u32 %v8413_v22, 16 }
 0x359   : > { %v4427_v55 = vadd.f32 %v11044_v33, %v4400_v43  ;;  %v4379_v1 = vadd.f32 %v9047_v9, %v8681_v44  ;;  %v4643_v61 = vsel %vm10182_vm12, %v4635_v28, %v4642_v6  ;;  %v4763_v32 = vsel %vm9996_vm2, %v4644_v23, %v4762_v10 }
 0x35a   : > { %v4648_v3 = vrot.slane %v4646_v11, 7  ;;  %4761 = vst [vmem:[#allocation3 + $0x58] sm:$0xf] %v4643_v61  ;;  %4764 = vst [vmem:[#allocation3 + $0x5c] sm:$0x1] %v4763_v32  ;;  %v8414_v50 = vpack.c.bf16 %v4446_v57, %v4446_v57 }
 0x35b   : > { %v4447_v56 = vmax.f32 %v4427_v55, 0.0  ;;  %v4401_v35 = vadd.f32 %v4379_v1, %v11036_v60 }
 0x35c   : > { %v4651_v37 = vor.u32 %v4649_v8, %v4648_v3  ;;  %v4654_v49 = vshrl.u32 %v8414_v50, 16  ;;  %v4657_v26 = vshll.u32 %v8414_v50, 16  ;;  %v4652_v59 = vrot.slane %v4648_v3, 4 }
 0x35d   : > { %v8415_v4 = vpack.c.bf16 %v4447_v56, %v4447_v56  ;;  %v4428_v9 = vadd.f32 %v11044_v33, %v4401_v35 }
 0x35e   : > { %v4766_v42 = vsel %vm10175_vm11, %v4651_v37, %v4765_v51  ;;  %v4656_v0 = vrot.slane %v4654_v49, 7 }
 0x35f   : > { %4767 = vst [vmem:[#allocation3 + $0x60] sm:$0xf] %v4766_v42  ;;  %v4663_v7 = vshrl.u32 %v8415_v4, 16  ;;  %v4448_v27 = vmax.f32 %v4428_v9, 0.0  ;;  %v4666_v24 = vshll.u32 %v8415_v4, 16 }
 0x360   : > { %v4659_v58 = vor.u32 %v4657_v26, %v4656_v0  ;;  %v4661_v19 = vrot.slane %v4656_v0, 4 }
 0x361   : > { %v4665_v17 = vrot.slane %v4663_v7, 7  ;;  %v8416_v60 = vpack.c.bf16 %v4448_v27, %v4448_v27 }
 0x362   : > { %v4660_v12 = vsel %vm10182_vm12, %v4652_v59, %v4659_v58  ;;  %v4770_v33 = vsel %vm9996_vm2, %v4661_v19, %v4769_v40 }
 0x363   : > { %v4668_v25 = vor.u32 %v4666_v24, %v4665_v17  ;;  %4768 = vst [vmem:[#allocation3 + $0x64] sm:$0xf] %v4660_v12  ;;  %4771 = vst [vmem:[#allocation3 + $0x68] sm:$0x1] %v4770_v33  ;;  %v4671_v48 = vshrl.u32 %v8416_v60, 16  ;;  %v4674_v21 = vshll.u32 %v8416_v60, 16 }
 0x364   : > { %v4669_v52 = vrot.slane %v4665_v17, 4 }
 0x365   : > { %v4773_v29 = vsel %vm10175_vm11, %v4668_v25, %v4772_v20  ;;  %v4673_v63 = vrot.slane %v4671_v48, 7 }
 0x366   : > { %4774 = vst [vmem:[#allocation3 + $0x6c] sm:$0xf] %v4773_v29  ;;  %4781 = sbr.rel (%p7950_p8) target bundleno = 878 (0x36e), region = 88 }
 0x367   : > { %v4676_v54 = vor.u32 %v4674_v21, %v4673_v63  ;;  %v4678_v45 = vrot.slane %v4673_v63, 4 }
 0x369   : > { %v4677_v16 = vsel %vm10182_vm12, %v4669_v52, %v4676_v54  ;;  %v4777_v46 = vsel %vm9996_vm2, %v4678_v45, %v4776_v31 }
 0x36a   : > { %4775 = vst [vmem:[#allocation3 + $0x70] sm:$0xf] %v4677_v16  ;;  %4778 = vst [vmem:[#allocation3 + $0x74] sm:$0x1] %v4777_v46 }
 0x36b   : > { %v4782_v47 = vld [vmem:[#allocation3] sm:$0xf]  ;;  %v4786_v34 = vld [vmem:[#allocation3 + $0x8] sm:$0x1]  ;;  %v9782_v13 = vmov 0  }
 0x36c   : > { %v4783_v14 = vsel %vm10175_vm11, 0, %v4782_v47  ;;  %4785 = vst [vmem:[#allocation3 + $0x4] sm:$0xf] %v9782_v13  ;;  %v4787_v18 = vsel %vm9996_vm2, 0, %v4786_v34 }
 0x36d   : > { %4784 = vst [vmem:[#allocation3] sm:$0xf] %v4783_v14  ;;  %4788 = vst [vmem:[#allocation3 + $0x8] sm:$0x1] %v4787_v18 }
 0x36e PF: > { %4791 = sbr.rel (%p7951_p13) target bundleno = 887 (0x377), region = 92 }
 0x373   : > { %v4793_v5 = vld [vmem:[#allocation3 + $0x6c] sm:$0xf]  ;;  %v9783_v30 = vmov 0  }
 0x374   : > { %v4797_v39 = vld [vmem:[#allocation3 + $0x74] sm:$0x1]  ;;  %v4794_v36 = vsel %vm10175_vm11, 0, %v4793_v5  ;;  %4796 = vst [vmem:[#allocation3 + $0x70] sm:$0xf] %v9783_v30 }
 0x375   : > { %v4798_v38 = vsel %vm9996_vm2, 0, %v4797_v39  ;;  %4795 = vst [vmem:[#allocation3 + $0x6c] sm:$0xf] %v4794_v36 }
 0x376   : > { %4799 = vst [vmem:[#allocation3 + $0x74] sm:$0x1] %v4798_v38 }
 0x377 PF: > { %v9403_v41 = vld [vmem:[#allocation12 + $0x138] sm:$0xff]   ;;  %v9406_v43 = vld [vmem:[#allocation12 + $0x130] sm:$0xff]   ;;  %v9409_v28 = vld [vmem:[#allocation12 + $0x128] sm:$0xff]   ;;  %s12116_s7 = sld [smem:[#allocation34_spill]]  ;;  %s8417_s8 = sshll.u32 %s9753_s24, 4 }
 0x378   : > { %v9404_v53 = vld [vmem:[#allocation12 + $0xf8] sm:$0xff]   ;;  %8700 = vmatprep.subr.bf16.mxu1 %v9403_v41  ;;  %v9407_v44 = vld [vmem:[#allocation12 + $0xf0] sm:$0xff]   ;;  %v9410_v6 = vld [vmem:[#allocation12 + $0xe8] sm:$0xff]   ;;  %s8365_s20 = sshll.u32 %s9757_s25, 5  ;;  %s7794_s2 = sshll.u32 %s10150_s15, 4  ;;  %s11968_s2 = int_to_ptr.vmem [resolvable:$true] %s7794_s2 }
 0x379   : > { %v9405_v10 = vld [vmem:[#allocation12 + $0x178] sm:$0xff]   ;;  %8701 = vmatpush3.bf16.msra.mxu1 %v9404_v53  ;;  %v9408_v62 = vld [vmem:[#allocation12 + $0x170] sm:$0xff]   ;;  %v9411_v23 = vld [vmem:[#allocation12 + $0x168] sm:$0xff]   ;;  %s7791_s24 = sadd.s32 %s8417_s8, %s8365_s20  ;;  %s12118_s6 = sld [smem:[#allocation35_spill]] }
 0x37a   : > { %9048 = vmatprep.subr.bf16.mxu0 %v9405_v10  ;;  %8702 = vmatprep.subr.bf16.mxu1 %v9406_v43  ;;  %v9412_v11 = vld [vmem:[#allocation12 + $0x120] sm:$0xff]   ;;  %v9415_v1 = vld [vmem:[#allocation12 + $0x118] sm:$0xff]   ;;  %v9418_v3 = vld [vmem:[#allocation12 + $0x110] sm:$0xff]   ;;  %s8366_s11 = sshll.u32 %s7791_s24, 7  ;;  %s7778_s18 = scalar_lea.sflag [#allocation9], %s9966_s29 }
 0x37b   : > { %9049 = vmatpush3.bf16.msra.mxu0 %v9405_v10  ;;  %v9413_v57 = vld [vmem:[#allocation12 + $0xe0] sm:$0xff]   ;;  %v9417_v61 = vld [vmem:[#allocation12 + $0x158] sm:$0xff]   ;;  %v9420_v8 = vld [vmem:[#allocation12 + $0x150] sm:$0xff]   ;;  %s9665_s3 = scalar_lea.vmem %s11968_s2, 2048 }
 0x37c   : > { %9050 = vmatprep.subr.bf16.mxu0 %v9408_v62  ;;  %v9414_v55 = vld [vmem:[#allocation12 + $0x160] sm:$0xff]   ;;  %v9416_v32 = vld [vmem:[#allocation12 + $0xd8] sm:$0xff]   ;;  %v9419_v51 = vld [vmem:[#allocation12 + $0xd0] sm:$0xff]   ;;  %p9666_p6 = scmp.ne.s32.totalorder %s11968_s2, %s9665_s3 }
 0x37d   : > { %8703 = vmatpush3.bf16.msra.mxu1 %v9407_v44  ;;  %v9421_v50 = vld [vmem:[#allocation12 + $0x108] sm:$0xff]   ;;  %v9424_v37 = vld [vmem:[#allocation12 + $0x100] sm:$0xff]   ;;  %v4800_v49 = vld [vmem:[#allocation3] sm:$0xf] }
 0x37e   : > { %8704 = vmatprep.subr.bf16.mxu1 %v9409_v28  ;;  %v9422_v56 = vld [vmem:[#allocation12 + $0xc8] sm:$0xff]   ;;  %v4801_v4 = vld [vmem:[#allocation3 + $0x4] sm:$0xf]  ;;  %v4832_v9 = vld [vmem:[#allocation3] sm:$0xf]  ;;  %p9667_p10 = pnand %p9666_p6, %p9933_p5 }
 0x37f   : > { %9051 = vmatpush3.bf16.msra.mxu0 %v9408_v62  ;;  %v9423_v35 = vld [vmem:[#allocation12 + $0x148] sm:$0xff]   ;;  %4816 = vst [vmem:[#allocation4] sm:$0xf] %v4800_v49  ;;  %4817 = vst [vmem:[#allocation4 + $0xc] sm:$0xf] %v4801_v4  ;;  %v4857_v26 = vshrl.u32 %v4832_v9, 16  ;;  %s11966_s21 = scalar_lea.hbm %s12118_s6, %s8366_s11 }
 0x380   : > { %9052 = vmatprep.subr.bf16.mxu0 %v9411_v23  ;;  %v4833_v42 = vld [vmem:[#allocation3 + $0x4] sm:$0xf]  ;;  %v4834_v0 = vld [vmem:[#allocation3 + $0x8] sm:$0x1]  ;;  %v4860_v7 = vshll.u32 %v4832_v9, 16  ;;  %p9668_p11 = pneg %p9667_p10 }
 0x381   : > { %8705 = vmatpush3.bf16.msra.mxu1 %v9410_v6  ;;  %v9426_v27 = vld [vmem:[#allocation12 + $0x140] sm:$0xff]   ;;  %v4866_v59 = vshll.u32 %v4833_v42, 16  ;;  %v4870_v40 = vshrl.u32 %v4833_v42, 16  ;;  %v4876_v24 = vshll.u32 %v4834_v0, 16  ;;  %v4859_v19 = vrot.slane %v4857_v26, 4  ;;  %v9429_v48 = vld [vmem:[#allocation12 + $0x78] sm:$0xff]  }
 0x382   : > { %8706 = vmatprep.subr.bf16.mxu1 %v9412_v11  ;;  %v9425_v58 = vld [vmem:[#allocation12 + $0xc0] sm:$0xff]   ;;  %v4862_v17 = vrot.slane %v4860_v7, 5  ;;  %v5330_v33 = vld [vmem:[#allocation3 + $0x10] sm:$0xf]  ;;  %v5331_v63 = vld [vmem:[#allocation3 + $0x14] sm:$0x1] }
 0x383   : > { %9053 = vmatpush3.bf16.msra.mxu0 %v9411_v23  ;;  %v5329_v60 = vld [vmem:[#allocation3 + $0xc] sm:$0xf]  ;;  %v4868_v20 = vrot.slane %v4866_v59, 5  ;;  %v4872_v12 = vrot.slane %v4870_v40, 4  ;;  %v5363_v31 = vshll.u32 %v5330_v33, 16  ;;  %v5367_v52 = vshrl.u32 %v5330_v33, 16 }
 0x384   : > { %9054 = vmatprep.subr.bf16.mxu0 %v9414_v55  ;;  %v5354_v25 = vshrl.u32 %v5329_v60, 16  ;;  %v4863_v29 = vor.u32 %v4862_v17, %v4859_v19  ;;  %v5357_v21 = vshll.u32 %v5329_v60, 16  ;;  %v4878_v45 = vrot.slane %v4876_v24, 5  ;;  %v6759_v2 = vld [vmem:[#allocation3 + $0x18] sm:$0xf]  ;;  %v9483_v15 = vld [vmem:[#allocation12 + $0x1a0] sm:$0xff]  }
 0x385   : > { %8707 = vmatpush3.bf16.msra.mxu1 %v9413_v57  ;;  %v4873_v54 = vor.u32 %v4872_v12, %v4868_v20  ;;  %v5373_v46 = vshll.u32 %v5331_v63, 16  ;;  %v5365_v14 = vrot.slane %v5363_v31, 5  ;;  %v5369_v13 = vrot.slane %v5367_v52, 4  ;;  %v6760_v39 = vld [vmem:[#allocation3 + $0x1c] sm:$0xf] }
 0x386   : > { %8708 = vmatprep.subr.bf16.mxu1 %v9415_v1  ;;  %v5356_v16 = vrot.slane %v5354_v25, 4  ;;  %v4864_v47 = vrot.slane %v4863_v29, 4  ;;  %v5359_v34 = vrot.slane %v5357_v21, 5  ;;  %v6761_v36 = vld [vmem:[#allocation3 + $0x20] sm:$0x1]  ;;  %v6784_v41 = vshrl.u32 %v6759_v2, 16 }
 0x387   : > { %9055 = vmatpush3.bf16.msra.mxu0 %v9414_v55  ;;  %v4874_v18 = vrot.slane %v4873_v54, 4  ;;  %v5375_v5 = vrot.slane %v5373_v46, 5  ;;  %v5370_v38 = vor.u32 %v5369_v13, %v5365_v14  ;;  %v6787_v10 = vshll.u32 %v6759_v2, 16  ;;  %v5080_v62 = vld [vmem:[#allocation3] sm:$0xe] }
 0x388   : > { %9056 = vmatprep.subr.bf16.mxu0 %v9417_v61  ;;  %v4869_v30 = vsel %vm10275_vm1, %v4864_v47, %v4868_v20  ;;  %v5360_v22 = vor.u32 %v5359_v34, %v5356_v16  ;;  %v6793_v43 = vshll.u32 %v6760_v39, 16  ;;  %v6797_v44 = vshrl.u32 %v6760_v39, 16  ;;  %v5081_v57 = vld [vmem:[#allocation3 + $0x4] sm:$0xf]  ;;  %v5579_v9 = vld [vmem:[#allocation3 + $0x14] sm:$0x1] }
 0x389   : > { %8709 = vmatpush3.bf16.msra.mxu1 %v9416_v32  ;;  %v4879_v53 = vsel %vm10275_vm1, %v4874_v18, %v4878_v45  ;;  %5064 = vst [vmem:[#allocation4 + $0x4] sm:$0xf] %v4869_v30  ;;  %v5371_v6 = vrot.slane %v5370_v38, 4  ;;  %v6786_v23 = vrot.slane %v6784_v41, 4  ;;  %v6803_v11 = vshll.u32 %v6761_v36, 16 }
 0x38a   : > { %8710 = vmatprep.subr.bf16.mxu1 %v9418_v3  ;;  %5065 = vst [vmem:[#allocation4 + $0x10] sm:$0xf] %v4879_v53  ;;  %v5361_v28 = vrot.slane %v5360_v22, 4  ;;  %v6789_v55 = vrot.slane %v6787_v10, 5  ;;  %v11187_v1 = vrot.slane %v6793_v43, 5  ;;  %v8193_v3 = vrot.slane %v5080_v62, 9 }
 0x38b   : > { %9057 = vmatpush3.bf16.msra.mxu0 %v9417_v61  ;;  %v6799_v61 = vrot.slane %v6797_v44, 4  ;;  %v5082_v32 = vld [vmem:[#allocation3 + $0x8] sm:$0x1]  ;;  %v5298_v42 = vld [vmem:[#allocation3 + $0x10] sm:$0xf]  ;;  %v5376_v0 = vsel %vm10275_vm1, %v5371_v6, %v5375_v5  ;;  %v5630_v17 = vrot.slane %v5579_v9, 5 }
 0x38c   : > { %9058 = vmatprep.subr.bf16.mxu0 %v9420_v8  ;;  %v5133_v4 = vrot.slane %v5082_v32, 5  ;;  %v11196_v40 = vld [vmem:[#allocation3 + $0x1c] sm:$0xf]  ;;  %v11202_v60 = vld [vmem:[#allocation3 + $0x18] sm:$0xe]  ;;  %v11246_v32 = vld [vmem:[#allocation12 + $0xb8] sm:$0xff]  }
 0x38d   : > { %8711 = vmatpush3.bf16.msra.mxu1 %v9419_v51  ;;  %v5577_v51 = vld [vmem:[#allocation3 + $0xc] sm:$0xe]  ;;  %v6800_v49 = vor.u32 %v6799_v61, %v11187_v1  ;;  %v11210_v25 = vld [vmem:[#allocation3 + $0x20] sm:$0x1]  ;;  %v7057_v29 = vrot.slane %v11196_v40, 5 }
 0x38e   : > { %8712 = vmatprep.subr.bf16.mxu1 %v9421_v50  ;;  %v5578_v50 = vld [vmem:[#allocation3 + $0x10] sm:$0xf]  ;;  %v8201_v19 = vrot.slane %v5577_v51, 9  ;;  %v5083_v63 = vld [vmem:[#allocation3 + $0xc] sm:$0xe]  ;;  %v7060_v13 = vrot.slane %v11210_v25, 5 }
 0x38f   : > { %9059 = vmatpush3.bf16.msra.mxu0 %v9420_v8  ;;  %v5130_v8 = vrot.slane %v5081_v57, 5  ;;  %v5627_v59 = vrot.slane %v5578_v50, 5  ;;  %v11206_v12 = vrot.slane %v6800_v49, 4  ;;  %v5084_v31 = vld [vmem:[#allocation3 + $0x10] sm:$0xf]  ;;  %v8194_v54 = vrot.slane %v5083_v63, 9 }
 0x390   : > { %9060 = vmatprep.subr.bf16.mxu0 %v9423_v35  ;;  %v11204_v20 = vld [vmem:[#allocation4] sm:$0xff]  ;;  %v5085_v52 = vld [vmem:[#allocation3 + $0x14] sm:$0x1]  ;;  %v5137_v45 = vrot.slane %v5084_v31, 5  ;;  %v11219_v2 = vld [vmem:[#allocation3 + $0x20] sm:$0x1] }
 0x391   : > { %8713 = vmatpush3.bf16.msra.mxu1 %v9422_v56  ;;  %v5297_v56 = vld [vmem:[#allocation3 + $0xc] sm:$0xf]  ;;  %v5131_v7 = vsel %vm10290_vm3, %v8193_v3, %v5130_v8  ;;  %v5629_v21 = vrot.slane %v5627_v59, 4  ;;  %v5140_v16 = vrot.slane %v5085_v52, 5  ;;  %v5580_v46 = vld [vmem:[#allocation3 + $0x18] sm:$0xe]  ;;  %v5628_v34 = vsel %vm10290_vm3, %v8201_v19, %v5627_v59 }
 0x392   : > { %8714 = vmatprep.subr.bf16.mxu1 %v9424_v37  ;;  %v6790_v37 = vor.u32 %v6789_v55, %v6786_v23  ;;  %5200 = vst [vmem:[#allocation4 + $0x8] sm:$0xf] %v5131_v7  ;;  %5313 = vst [vmem:[#allocation4] sm:$0xf] %v5297_v56  ;;  %v5581_v47 = vld [vmem:[#allocation3 + $0x1c] sm:$0xf]  ;;  %v5138_v36 = vsel %vm10290_vm3, %v8194_v54, %v5137_v45 }
 0x393   : > { %9061 = vmatpush3.bf16.msra.mxu0 %v9423_v35  ;;  %v5366_v35 = vsel %vm10275_vm1, %v5361_v28, %v5365_v14  ;;  %v8305_v14 = vrot.slane %v11202_v60, 9  ;;  %v5634_v18 = vrot.slane %v5581_v47, 5  ;;  %v6727_v5 = vld [vmem:[#allocation3 + $0x18] sm:$0xf]  ;;  %v6728_v39 = vld [vmem:[#allocation3 + $0x1c] sm:$0xf]  ;;  %v5631_v10 = vsel %vm10290_vm3, %v5629_v21, %v5630_v17 }
 0x394   : > { %9062 = vmatprep.subr.bf16.mxu0 %v9426_v27  ;;  %v11198_v24 = vrot.slane %v6790_v37, 4  ;;  %5561 = vst [vmem:[#allocation4 + $0x4] sm:$0xf] %v5366_v35  ;;  %v5139_v30 = vrot.slane %v5137_v45, 4  ;;  %v8202_v22 = vrot.slane %v5580_v46, 9  ;;  %v7059_v43 = vrot.slane %v7057_v29, 4 }
 0x395   : > { %8715 = vmatpush3.bf16.msra.mxu1 %v9425_v58  ;;  %v11200_v58 = vrot.slane %v6803_v11, 5  ;;  %v11223_v38 = vld [vmem:[#allocation3 + $0x24] sm:$0xe]  ;;  %v11225_v41 = vld [vmem:[#allocation3 + $0x28] sm:$0xf]  ;;  %v5637_v44 = vrot.slane %v11219_v2, 5  ;;  %v7058_v60 = vsel %vm10290_vm3, %v8305_v14, %v7057_v29 }
 0x396   : > { %8780 = vmatprep.subr.bf16.mxu1 %v9429_v48  ;;  %v11212_v48 = vld [vmem:[#allocation4 + $0xc] sm:$0xff]  ;;  %5202 = vst [vmem:[#allocation4 + $0x20] sm:$0xf] %v5138_v36  ;;  %v11234_v62 = vld [vmem:[#allocation3 + $0x2c] sm:$0x1]  ;;  %v6796_v28 = vsel %vm10275_vm1, %v11198_v24, %v11187_v1  ;;  %v5141_v11 = vsel %vm10290_vm3, %v5139_v30, %v5140_v16  ;;  %v5636_v57 = vrot.slane %v5634_v18, 4  ;;  %v5635_v35 = vsel %vm10290_vm3, %v8202_v22, %v5634_v18 }
 0x397   : > { %9063 = vmatpush3.bf16.msra.mxu0 %v9426_v27  ;;  %v5132_v27 = vrot.slane %v5130_v8, 4  ;;  %5314 = vst [vmem:[#allocation4 + $0xc] sm:$0xf] %v5298_v42  ;;  %5562 = vst [vmem:[#allocation4 + $0x10] sm:$0xf] %v5376_v0  ;;  %v6806_v6 = vsel %vm10275_vm1, %v11206_v12, %v11200_v58  ;;  %v9431_v23 = vld [vmem:[#allocation12 + $0x38] sm:$0xff]   ;;  %v7061_v21 = vsel %vm10290_vm3, %v7059_v43, %v7060_v13 }
 0x398   : > { %v4802_v55 = vld [vmem:[#allocation3 + $0xc] sm:$0xf]  ;;  %v4803_v61 = vld [vmem:[#allocation3 + $0x10] sm:$0xf]  ;;  %5203 = vst [vmem:[#allocation4 + $0x2c] sm:$0xf] %v5141_v11  ;;  %9080 = vmatprep.subr.bf16.mxu0 %v11246_v32  ;;  %v5638_v52 = vsel %vm10290_vm3, %v5636_v57, %v5637_v44 }
 0x399   : > { %v5134_v33 = vsel %vm10290_vm3, %v5132_v27, %v5133_v4  ;;  %v11227_v53 = vld [vmem:[#allocation4 + $0x8] sm:$0xf]  ;;  %v7064_v1 = vrot.slane %v11225_v41, 5  ;;  %4818 = vst [vmem:[#allocation4 + $0x18] sm:$0xf] %v4802_v55  ;;  %v8306_v9 = vrot.slane %v11223_v38, 9 }
 0x39a   : > { %5201 = vst [vmem:[#allocation4 + $0x14] sm:$0xf] %v5134_v33  ;;  %5697 = vst [vmem:[#allocation4 + $0x8] sm:$0xf] %v5628_v34  ;;  %v4835_v51 = vld [vmem:[#allocation3 + $0xc] sm:$0xf] }
 0x39b   : > { %v5713_v3 = vld [vmem:[#allocation4] sm:$0xff]  ;;  %4819 = vst [vmem:[#allocation4 + $0x24] sm:$0xf] %v4803_v61  ;;  %v4836_v37 = vld [vmem:[#allocation3 + $0x10] sm:$0xf]  ;;  %v4881_v49 = vshrl.u32 %v4835_v51, 16 }
 0x39c   : > { %6743 = vst [vmem:[#allocation4] sm:$0xf] %v6727_v5  ;;  %v4837_v42 = vld [vmem:[#allocation3 + $0x14] sm:$0x1]  ;;  %v4884_v0 = vshll.u32 %v4835_v51, 16  ;;  %v4890_v7 = vshll.u32 %v4836_v37, 16 }
 0x39d   : > { %v9435_v27 = vld [vmem:[#allocation12 + $0x70] sm:$0xff]   ;;  %v7067_v59 = vrot.slane %v11234_v62, 5  ;;  %v4883_v24 = vrot.slane %v4881_v49, 4  ;;  %v4894_v58 = vshrl.u32 %v4836_v37, 16  ;;  %v4900_v19 = vshll.u32 %v4837_v42, 16  ;;  %v9439_v34 = vld [vmem:[#allocation12 + $0x68] sm:$0xff]  }
 0x39e   : > { %v5715_v50 = vld [vmem:[#allocation4 + $0xc] sm:$0xff]  ;;  %v9436_v17 = vld [vmem:[#allocation12 + $0x30] sm:$0xff]   ;;  %v4886_v12 = vrot.slane %v4884_v0, 5  ;;  %v4892_v33 = vrot.slane %v4890_v7, 5  ;;  %v7066_v54 = vrot.slane %v7064_v1, 4  ;;  %v9441_v44 = vld [vmem:[#allocation12 + $0x28] sm:$0xff]   ;;  %v7065_v62 = vsel %vm10290_vm3, %v8306_v9, %v7064_v1 }
 0x39f   : > { %v9427_v56 = vld [vmem:[#allocation4 + $0x4] ss:$12 sps:$4 sm:$0xff]   ;;  %6744 = vst [vmem:[#allocation4 + $0xc] sm:$0xf] %v6728_v39  ;;  %v8209_v4 = vcombine.low %v5713_v3, %v5715_v50  ;;  %v5332_v25 = vld [vmem:[#allocation3 + $0x18] sm:$0xf] }
 0x3a0   : > { %6991 = vst [vmem:[#allocation4 + $0x4] sm:$0xf] %v6796_v28  ;;  %6992 = vst [vmem:[#allocation4 + $0x10] sm:$0xf] %v6806_v6  ;;  %6098 = vmatprep.mubr.bf16.mxu1 %v9427_v56  ;;  %v5333_v63 = vld [vmem:[#allocation3 + $0x1c] sm:$0xf]  ;;  %v4887_v29 = vor.u32 %v4886_v12, %v4883_v24  ;;  %v7068_v1 = vsel %vm10290_vm3, %v7066_v54, %v7067_v59 }
 0x3a1   : > { %v11248_v8 = vld [vmem:[#allocation4 + $0x14] sm:$0xf]  ;;  %6099 = vmatmul.mubr.bf16.vlgmr.msra.gmra.mxu1 %v8209_v4  ;;  %v11262_v31 = vld [vmem:[#allocation4 + $0x20] sm:$0xf]  ;;  %v4896_v40 = vrot.slane %v4894_v58, 4  ;;  %v5378_v16 = vshrl.u32 %v5332_v25, 16 }
 0x3a2   : > { %5698 = vst [vmem:[#allocation4 + $0x14] sm:$0xf] %v5631_v10  ;;  %8781 = vmatpush3.bf16.msra.mxu1 %v9431_v23  ;;  %v5334_v45 = vld [vmem:[#allocation3 + $0x20] sm:$0x1]  ;;  %5699 = vst [vmem:[#allocation4 + $0x20] sm:$0xf] %v5635_v35 }
 0x3a3   : > { %v5381_v46 = vshll.u32 %v5332_v25, 16  ;;  %v5387_v47 = vshll.u32 %v5333_v63, 16  ;;  %8782 = vmatprep.subr.bf16.mxu1 %v9435_v27  ;;  %v11268_v14 = vld [vmem:[#allocation4 + $0x2c] sm:$0xf]  ;;  %v4897_v13 = vor.u32 %v4896_v40, %v4892_v33  ;;  %v4902_v2 = vrot.slane %v4900_v19, 5  ;;  %v9445_v11 = vld [vmem:[#allocation12 + $0x60] sm:$0xff]  }
 0x3a4   : > { %v5391_v18 = vshrl.u32 %v5333_v63, 16  ;;  %v5397_v5 = vshll.u32 %v5334_v45, 16  ;;  %5700 = vst [vmem:[#allocation4 + $0x2c] sm:$0xf] %v5638_v52  ;;  %v4888_v36 = vrot.slane %v4887_v29, 4  ;;  %v5380_v30 = vrot.slane %v5378_v16, 4 }
 0x3a5   : > { %v4898_v22 = vrot.slane %v4897_v13, 4  ;;  %v5383_v38 = vrot.slane %v5381_v46, 5  ;;  %v11270_v10 = vrot.slane %v5387_v47, 5  ;;  %v6762_v6 = vld [vmem:[#allocation3 + $0x24] sm:$0xf]  ;;  %v9446_v41 = vld [vmem:[#allocation12 + $0x20] sm:$0xff]  }
 0x3a6   : > { %v5393_v43 = vrot.slane %v5391_v18, 4  ;;  %8783 = vmatpush3.bf16.msra.mxu1 %v9436_v17  ;;  %v4893_v28 = vsel %vm10275_vm1, %v4888_v36, %v4892_v33  ;;  %v6763_v23 = vld [vmem:[#allocation3 + $0x28] sm:$0xf]  ;;  %v6764_v3 = vld [vmem:[#allocation3 + $0x2c] sm:$0x1]  ;;  %v6808_v51 = vshrl.u32 %v6762_v6, 16 }
 0x3a7   : > { %8784 = vmatprep.subr.bf16.mxu1 %v9439_v34  ;;  %v4903_v57 = vsel %vm10275_vm1, %v4898_v22, %v4902_v2  ;;  %5066 = vst [vmem:[#allocation4 + $0x1c] sm:$0xf] %v4893_v28  ;;  %v5384_v55 = vor.u32 %v5383_v38, %v5380_v30  ;;  %v6811_v50 = vshll.u32 %v6762_v6, 16  ;;  %v6817_v56 = vshll.u32 %v6763_v23, 16  ;;  %v9451_v37 = vld [vmem:[#allocation12 + $0x58] sm:$0xff]   ;;  %v9448_v0 = vld [vmem:[#allocation12 + $0xb0] sm:$0xff]  }
 0x3a8   : > { %v5394_v61 = vor.u32 %v5393_v43, %v11270_v10  ;;  %5067 = vst [vmem:[#allocation4 + $0x28] sm:$0xf] %v4903_v57  ;;  %v6821_v35 = vshrl.u32 %v6763_v23, 16  ;;  %v5399_v9 = vrot.slane %v5397_v5, 5  ;;  %v6810_v42 = vrot.slane %v6808_v51, 4  ;;  %v9459_v13 = vld [vmem:[#allocation12 + $0x50] sm:$0xff]  }
 0x3a9   : > { %v9430_v39 = vld [vmem:[#allocation4 + $0x8] ss:$12 sps:$4 sm:$0xff]   ;;  %v5385_v49 = vrot.slane %v5384_v55, 4  ;;  %v5299_v7 = vld [vmem:[#allocation3 + $0x18] sm:$0xf]  ;;  %v6813_v27 = vrot.slane %v6811_v50, 5 }
 0x3aa   : > { %7127 = vst [vmem:[#allocation4 + $0x8] sm:$0xf] %v7058_v60  ;;  %7128 = vst [vmem:[#allocation4 + $0x14] sm:$0xf] %v7061_v21  ;;  %9064 = vmatprep.mubr.bf16.mxu0 %v9430_v39  ;;  %v5395_v4 = vrot.slane %v5394_v61, 4  ;;  %8785 = vmatpush3.bf16.msra.mxu1 %v9441_v44  ;;  %v11283_v24 = vrot.slane %v6817_v56, 5 }
 0x3ab   : > { %v6823_v58 = vrot.slane %v6821_v35, 4  ;;  %v6827_v19 = vshll.u32 %v6764_v3, 16  ;;  %8786 = vmatprep.subr.bf16.mxu1 %v9445_v11  ;;  %v9432_v17 = vld [vmem:[#allocation4 + $0x20] ss:$12 sps:$4 sm:$0xff]   ;;  %v5300_v59 = vld [vmem:[#allocation3 + $0x1c] sm:$0xf]  ;;  %v5390_v12 = vsel %vm10275_vm1, %v5385_v49, %v11270_v10  ;;  %v6814_v33 = vor.u32 %v6813_v27, %v6810_v42 }
 0x3ac   : > { %v9453_v60 = vld [vmem:[#allocation12 + $0x18] sm:$0xff]   ;;  %7129 = vst [vmem:[#allocation4 + $0x20] sm:$0xf] %v7065_v62  ;;  %7130 = vst [vmem:[#allocation4 + $0x2c] sm:$0xf] %v7068_v1  ;;  %9065 = vmatmul.mubr.bf16.vlgmr.msra.gmra.mxu0 %v9432_v17  ;;  %v5400_v54 = vsel %vm10275_vm1, %v5395_v4, %v5399_v9  ;;  %v9454_v30 = vld [vmem:[#allocation12 + $0xa8] sm:$0xff]  }
 0x3ad   : > { %v6824_v25 = vor.u32 %v6823_v58, %v11283_v24  ;;  %v4804_v63 = vld [vmem:[#allocation3 + $0x18] sm:$0xf]  ;;  %v4805_v21 = vld [vmem:[#allocation3 + $0x1c] sm:$0xf]  ;;  %v4840_v45 = vld [vmem:[#allocation3 + $0x20] sm:$0x1]  ;;  %9081 = vmatpush3.bf16.msra.mxu0 %v11246_v32 }
 0x3ae   : > { %v4838_v52 = vld [vmem:[#allocation3 + $0x18] sm:$0xf]  ;;  %4820 = vst [vmem:[#allocation4 + $0x30] sm:$0xf] %v4804_v63  ;;  %4821 = vst [vmem:[#allocation4 + $0x3c] sm:$0xf] %v4805_v21  ;;  %8787 = vmatpush3.bf16.msra.mxu1 %v9446_v41  ;;  %9082 = vmatprep.subr.bf16.mxu0 %v9448_v0 }
 0x3af   : > { %v4839_v40 = vld [vmem:[#allocation3 + $0x1c] sm:$0xf]  ;;  %v4905_v29 = vshrl.u32 %v4838_v52, 16  ;;  %v4908_v16 = vshll.u32 %v4838_v52, 16  ;;  %v11291_v46 = vld [vmem:[#allocation4 + $0x18] sm:$0xff]  ;;  %8788 = vmatprep.subr.bf16.mxu1 %v9451_v37  ;;  %v11296_v18 = vrot.slane %v6814_v33, 4 }
 0x3b0   : > { %v4914_v47 = vshll.u32 %v4839_v40, 16  ;;  %v4918_v34 = vshrl.u32 %v4839_v40, 16  ;;  %v11294_v2 = vld [vmem:[#allocation4 + $0x24] sm:$0xff]  ;;  %5315 = vst [vmem:[#allocation4 + $0x18] sm:$0xf] %v5299_v7  ;;  %v4924_v36 = vshll.u32 %v4840_v45, 16 }
 0x3b1   : > { %5563 = vst [vmem:[#allocation4 + $0x1c] sm:$0xf] %v5390_v12  ;;  %v4907_v5 = vrot.slane %v4905_v29, 4  ;;  %v4910_v39 = vrot.slane %v4908_v16, 5  ;;  %5316 = vst [vmem:[#allocation4 + $0x24] sm:$0xf] %v5300_v59  ;;  %9083 = vmatpush3.bf16.msra.mxu0 %v9448_v0  ;;  %v6820_v1 = vsel %vm10275_vm1, %v11296_v18, %v11283_v24 }
 0x3b2   : > { %5564 = vst [vmem:[#allocation4 + $0x28] sm:$0xf] %v5400_v54  ;;  %v6825_v22 = vrot.slane %v6824_v25, 4  ;;  %v6829_v38 = vrot.slane %v6827_v19, 5  ;;  %v4916_v10 = vrot.slane %v4914_v47, 5  ;;  %v4920_v43 = vrot.slane %v4918_v34, 4  ;;  %8789 = vmatpush3.bf16.msra.mxu1 %v9453_v60  ;;  %9084 = vmatprep.subr.bf16.mxu0 %v9454_v30 }
 0x3b3   : > { %v5335_v32 = vld [vmem:[#allocation3 + $0x24] sm:$0xf]  ;;  %v4911_v44 = vor.u32 %v4910_v39, %v4907_v5  ;;  %v4926_v62 = vrot.slane %v4924_v36, 5  ;;  %v5336_v28 = vld [vmem:[#allocation3 + $0x28] sm:$0xf]  ;;  %8790 = vmatprep.subr.bf16.mxu1 %v9459_v13  ;;  %v9460_v3 = vld [vmem:[#allocation12 + $0x10] sm:$0xff]  }
 0x3b4   : > { %v5337_v6 = vld [vmem:[#allocation3 + $0x2c] sm:$0x1]  ;;  %v5402_v23 = vshrl.u32 %v5335_v32, 16  ;;  %v4921_v11 = vor.u32 %v4920_v43, %v4916_v10  ;;  %v5405_v57 = vshll.u32 %v5335_v32, 16  ;;  %v5411_v55 = vshll.u32 %v5336_v28, 16  ;;  %v9461_v59 = vld [vmem:[#allocation12 + $0x98] sm:$0xff]  }
 0x3b5   : > { %v5415_v61 = vshrl.u32 %v5336_v28, 16  ;;  %v6729_v51 = vld [vmem:[#allocation3 + $0x24] sm:$0xf]  ;;  %v6730_v41 = vld [vmem:[#allocation3 + $0x28] sm:$0xf]  ;;  %v4912_v50 = vrot.slane %v4911_v44, 4  ;;  %v6830_v7 = vsel %vm10275_vm1, %v6825_v22, %v6829_v38  ;;  %9085 = vmatpush3.bf16.msra.mxu0 %v9454_v30 }
 0x3b6   : > { %v5404_v56 = vrot.slane %v5402_v23, 4  ;;  %v5421_v35 = vshll.u32 %v5337_v6, 16  ;;  %v9456_v37 = vld [vmem:[#allocation12 + $0xa0] sm:$0xff]   ;;  %v4922_v49 = vrot.slane %v4921_v11, 4  ;;  %v5407_v4 = vrot.slane %v5405_v57, 5  ;;  %8791 = vmatpush3.bf16.msra.mxu1 %v9460_v3  ;;  %v9466_v32 = vld [vmem:[#allocation12 + $0x48] sm:$0xff]  }
 0x3b7   : > { %v11302_v9 = vrot.slane %v5411_v55, 5  ;;  %v5417_v42 = vrot.slane %v5415_v61, 4  ;;  %v6765_v0 = vld [vmem:[#allocation3 + $0x30] sm:$0xf]  ;;  %v4917_v27 = vsel %vm10275_vm1, %v4912_v50, %v4916_v10  ;;  %v6766_v24 = vld [vmem:[#allocation3 + $0x34] sm:$0xf]  ;;  %9086 = vmatprep.subr.bf16.mxu0 %v9456_v37  ;;  %8792 = vmatprep.subr.bf16.mxu1 %v9466_v32 }
 0x3b8   : > { %v11308_v58 = vrot.slane %v5421_v35, 5  ;;  %v6767_v19 = vld [vmem:[#allocation3 + $0x38] sm:$0x1]  ;;  %v6832_v17 = vshrl.u32 %v6765_v0, 16  ;;  %v5717_v60 = vld [vmem:[#allocation4 + $0x18] sm:$0xff]  ;;  %v4927_v12 = vsel %vm10275_vm1, %v4922_v49, %v4926_v62  ;;  %v5408_v33 = vor.u32 %v5407_v4, %v5404_v56 }
 0x3b9   : > { %5068 = vst [vmem:[#allocation4 + $0x34] sm:$0xf] %v4917_v27  ;;  %v5418_v25 = vor.u32 %v5417_v42, %v11302_v9  ;;  %v6835_v63 = vshll.u32 %v6765_v0, 16  ;;  %v5719_v21 = vld [vmem:[#allocation4 + $0x24] sm:$0xff]  ;;  %5069 = vst [vmem:[#allocation4 + $0x40] sm:$0xf] %v4927_v12  ;;  %9087 = vmatpush3.bf16.msra.mxu0 %v9456_v37  ;;  %v8259_v56 = vcombine.low %v11227_v53, %v11248_v8 }
 0x3ba   : > { %v9433_v52 = vld [vmem:[#allocation4 + $0x1c] ss:$12 sps:$4 sm:$0xff]   ;;  %v6834_v54 = vrot.slane %v6832_v17, 4  ;;  %v6841_v40 = vshll.u32 %v6766_v24, 16  ;;  %v6845_v45 = vshrl.u32 %v6766_v24, 16  ;;  %v8212_v29 = vcombine.low %v5717_v60, %v5719_v21  ;;  %9088 = vmatprep.subr.bf16.mxu0 %v9461_v59  ;;  %v9462_v11 = vld [vmem:[#allocation12 + $0x90] sm:$0xff]  }
 0x3bb   : > { %6745 = vst [vmem:[#allocation4 + $0x18] sm:$0xf] %v6729_v51  ;;  %6746 = vst [vmem:[#allocation4 + $0x24] sm:$0xf] %v6730_v41  ;;  %v5409_v16 = vrot.slane %v5408_v33, 4  ;;  %v5419_v47 = vrot.slane %v5418_v25, 4  ;;  %6106 = vmatprep.mubr.bf16.mxu1 %v9433_v52  ;;  %v8262_v12 = vcombine.low %v11262_v31, %v11268_v14 }
 0x3bc   : > { %6993 = vst [vmem:[#allocation4 + $0x1c] sm:$0xf] %v6820_v1  ;;  %6994 = vst [vmem:[#allocation4 + $0x28] sm:$0xf] %v6830_v7  ;;  %v6837_v34 = vrot.slane %v6835_v63, 5  ;;  %v11313_v5 = vrot.slane %v6841_v40, 5  ;;  %6107 = vmatmul.mubr.bf16.gmra.mxu1 %v8212_v29 }
 0x3bd   : > { %v5086_v13 = vld [vmem:[#allocation3 + $0x18] sm:$0xe]  ;;  %v5301_v18 = vld [vmem:[#allocation3 + $0x24] sm:$0xf]  ;;  %v6847_v39 = vrot.slane %v6845_v45, 4  ;;  %v6851_v38 = vshll.u32 %v6767_v19, 16  ;;  %v5414_v44 = vsel %vm10275_vm1, %v5409_v16, %v11302_v9  ;;  %v5424_v55 = vsel %vm10275_vm1, %v5419_v47, %v11308_v58  ;;  %9089 = vmatpush3.bf16.msra.mxu0 %v9461_v59 }
 0x3be   : > { %v5087_v36 = vld [vmem:[#allocation3 + $0x1c] sm:$0xf]  ;;  %v8195_v30 = vrot.slane %v5086_v13, 9  ;;  %v6838_v22 = vor.u32 %v6837_v34, %v6834_v54  ;;  %v5088_v10 = vld [vmem:[#allocation3 + $0x20] sm:$0x1]  ;;  %v9468_v51 = vld [vmem:[#allocation12 + $0x8] sm:$0xff]   ;;  %9090 = vmatprep.subr.bf16.mxu0 %v9462_v11  ;;  %v8258_v59 = vcombine.high %v11204_v20, %v11212_v48 }
 0x3bf   : > { %v5144_v43 = vrot.slane %v5087_v36, 5  ;;  %v6848_v62 = vor.u32 %v6847_v39, %v11313_v5  ;;  %v5147_v28 = vrot.slane %v5088_v10, 5  ;;  %v5583_v6 = vld [vmem:[#allocation3 + $0x24] sm:$0xe]  ;;  %v5584_v23 = vld [vmem:[#allocation3 + $0x28] sm:$0xf]  ;;  %8793 = vmatpush3.bf16.msra.mxu1 %v9468_v51 }
 0x3c0   : > { %v5302_v57 = vld [vmem:[#allocation3 + $0x28] sm:$0xf]  ;;  %v5585_v1 = vld [vmem:[#allocation3 + $0x2c] sm:$0x1]  ;;  %v5641_v50 = vrot.slane %v5584_v23, 5  ;;  %v11328_v35 = vld [vmem:[#allocation4 + $0x3c] sm:$0xff] }
 0x3c1   : > { %v5145_v61 = vsel %vm10290_vm3, %v8195_v30, %v5144_v43  ;;  %v5146_v3 = vrot.slane %v5144_v43, 4  ;;  %v11324_v41 = vld [vmem:[#allocation4 + $0x30] sm:$0xff]  ;;  %v11330_v37 = vrot.slane %v6838_v22, 4  ;;  %v11332_v49 = vrot.slane %v6851_v38, 5  ;;  %v11336_v42 = vld [vmem:[#allocation3 + $0x34] sm:$0xf]  ;;  %9091 = vmatpush3.bf16.msra.mxu0 %v9462_v11 }
 0x3c2   : > { %5204 = vst [vmem:[#allocation4 + $0x38] sm:$0xf] %v5145_v61  ;;  %5317 = vst [vmem:[#allocation4 + $0x30] sm:$0xf] %v5301_v18  ;;  %v8203_v9 = vrot.slane %v5583_v6, 9  ;;  %v6849_v0 = vrot.slane %v6848_v62, 4 }
 0x3c3   : > { %5565 = vst [vmem:[#allocation4 + $0x34] sm:$0xf] %v5414_v44  ;;  %v5148_v4 = vsel %vm10290_vm3, %v5146_v3, %v5147_v28  ;;  %5318 = vst [vmem:[#allocation4 + $0x3c] sm:$0xf] %v5302_v57  ;;  %v11338_v7 = vld [vmem:[#allocation3 + $0x30] sm:$0xe]  ;;  %v6844_v45 = vsel %vm10275_vm1, %v11330_v37, %v11313_v5 }
 0x3c4   : > { %5566 = vst [vmem:[#allocation4 + $0x40] sm:$0xf] %v5424_v55  ;;  %5205 = vst [vmem:[#allocation4 + $0x44] sm:$0xf] %v5148_v4  ;;  %v9469_v27 = vld [vmem:[#allocation12 + $0x88] sm:$0xff]   ;;  %v5643_v58 = vrot.slane %v5641_v50, 4  ;;  %v5642_v29 = vsel %vm10290_vm3, %v8203_v9, %v5641_v50  ;;  %v6854_v5 = vsel %vm10275_vm1, %v6849_v0, %v11332_v49 }
 0x3c5   : > { %v5644_v24 = vrot.slane %v5585_v1, 5  ;;  %v11340_v19 = vld [vmem:[#allocation3 + $0x38] sm:$0x1]  ;;  %v5089_v17 = vld [vmem:[#allocation3 + $0x24] sm:$0xe]  ;;  %v7071_v13 = vrot.slane %v11336_v42, 5  ;;  %9092 = vmatprep.subr.bf16.mxu0 %v9469_v27 }
 0x3c6   : > { %v5090_v60 = vld [vmem:[#allocation3 + $0x28] sm:$0xf]  ;;  %v5091_v33 = vld [vmem:[#allocation3 + $0x2c] sm:$0x1]  ;;  %v8196_v25 = vrot.slane %v5089_v17, 9  ;;  %v8307_v43 = vrot.slane %v11338_v7, 9  ;;  %9093 = vmatpush3.bf16.msra.mxu0 %v9469_v27 }
 0x3c7   : > { %v5151_v63 = vrot.slane %v5090_v60, 5  ;;  %v5586_v21 = vld [vmem:[#allocation3 + $0x30] sm:$0xe]  ;;  %v6732_v40 = vld [vmem:[#allocation3 + $0x34] sm:$0xf]  ;;  %v5154_v16 = vrot.slane %v5091_v33, 5  ;;  %v5645_v10 = vsel %vm10290_vm3, %v5643_v58, %v5644_v24 }
 0x3c8   : > { %v6731_v54 = vld [vmem:[#allocation3 + $0x30] sm:$0xf]  ;;  %v5587_v47 = vld [vmem:[#allocation3 + $0x34] sm:$0xf]  ;;  %v5588_v34 = vld [vmem:[#allocation3 + $0x38] sm:$0x1] }
 0x3c9   : > { %v5152_v18 = vsel %vm10290_vm3, %v8196_v25, %v5151_v63  ;;  %v5153_v39 = vrot.slane %v5151_v63, 4  ;;  %v5648_v36 = vrot.slane %v5587_v47, 5  ;;  %v9470_v30 = vld [vmem:[#allocation12 + $0x80] sm:$0xff]   ;;  %v11360_v38 = vld [vmem:[#allocation4 + $0x38] sm:$0xf]  ;;  %v8204_v32 = vrot.slane %v5586_v21, 9 }
 0x3ca   : > { %v9473_v22 = vld [vmem:[#allocation12 + $0x40] sm:$0xff]   ;;  %5206 = vst [vmem:[#allocation4 + $0x50] sm:$0xf] %v5152_v18  ;;  %v11365_v44 = vld [vmem:[#allocation3 + $0x40] sm:$0xf]  ;;  %v7074_v28 = vrot.slane %v11340_v19, 5  ;;  %9094 = vmatprep.subr.bf16.mxu0 %v9470_v30 }
 0x3cb   : > { %v5721_v62 = vld [vmem:[#allocation4 + $0x30] sm:$0xff]  ;;  %5701 = vst [vmem:[#allocation4 + $0x38] sm:$0xf] %v5642_v29  ;;  %v5155_v6 = vsel %vm10290_vm3, %v5153_v39, %v5154_v16  ;;  %v5651_v23 = vrot.slane %v5588_v34, 5  ;;  %v11370_v11 = vld [vmem:[#allocation3 + $0x3c] sm:$0xe]  ;;  %8794 = vmatprep.subr.bf16.mxu1 %v9473_v22  ;;  %v5649_v27 = vsel %vm10290_vm3, %v8204_v32, %v5648_v36  ;;  %9095 = vmatpush3.bf16.msra.mxu0 %v9470_v30 }
 0x3cc   : > { %v4806_v57 = vld [vmem:[#allocation3 + $0x24] sm:$0xf]  ;;  %v9474_v55 = vld [vmem:[#allocation12] sm:$0xff]   ;;  %v5723_v61 = vld [vmem:[#allocation4 + $0x3c] sm:$0xff]  ;;  %5207 = vst [vmem:[#allocation4 + $0x5c] sm:$0xf] %v5155_v6  ;;  %v7072_v22 = vsel %vm10290_vm3, %v8307_v43, %v7071_v13 }
 0x3cd   : > { %v9437_v3 = vld [vmem:[#allocation4 + $0x34] ss:$12 sps:$4 sm:$0xff]   ;;  %v11372_v51 = vld [vmem:[#allocation4 + $0x44] sm:$0xf]  ;;  %v5650_v1 = vrot.slane %v5648_v36, 4  ;;  %v8215_v37 = vcombine.low %v5721_v62, %v5723_v61  ;;  %v7073_v49 = vrot.slane %v7071_v13, 4  ;;  %8795 = vmatpush3.bf16.msra.mxu1 %v9474_v55 }
 0x3ce   : > { %v11374_v50 = vld [vmem:[#allocation3 + $0x44] sm:$0x1]  ;;  %4822 = vst [vmem:[#allocation4 + $0x48] sm:$0xf] %v4806_v57  ;;  %6747 = vst [vmem:[#allocation4 + $0x30] sm:$0xf] %v6731_v54  ;;  %v8265_v7 = vcombine.low %v11360_v38, %v11372_v51  ;;  %6114 = vmatprep.mubr.bf16.mxu1 %v9437_v3 }
 0x3cf   : > { %6748 = vst [vmem:[#allocation4 + $0x3c] sm:$0xf] %v6732_v40  ;;  %6995 = vst [vmem:[#allocation4 + $0x34] sm:$0xf] %v6844_v45  ;;  %v4807_v4 = vld [vmem:[#allocation3 + $0x28] sm:$0xf]  ;;  %6115 = vmatmul.mubr.bf16.gmra.mxu1 %v8215_v37  ;;  %v5652_v54 = vsel %vm10290_vm3, %v5650_v1, %v5651_v23 }
 0x3d0   : > { %6996 = vst [vmem:[#allocation4 + $0x40] sm:$0xf] %v6854_v5  ;;  %5702 = vst [vmem:[#allocation4 + $0x44] sm:$0xf] %v5645_v10  ;;  %v4841_v9 = vld [vmem:[#allocation3 + $0x24] sm:$0xf]  ;;  %v7075_v5 = vsel %vm10290_vm3, %v7073_v49, %v7074_v28 }
 0x3d1   : > { %v9475_v0 = vld [vmem:[#allocation12 + $0x1f8] sm:$0xff]   ;;  %v7078_v58 = vrot.slane %v11365_v44, 5  ;;  %4823 = vst [vmem:[#allocation4 + $0x54] sm:$0xf] %v4807_v4  ;;  %v4842_v24 = vld [vmem:[#allocation3 + $0x28] sm:$0xf] }
 0x3d2   : > { %v4843_v19 = vld [vmem:[#allocation3 + $0x2c] sm:$0x1]  ;;  %v4929_v17 = vshrl.u32 %v4841_v9, 16  ;;  %v4932_v33 = vshll.u32 %v4841_v9, 16  ;;  %v4938_v25 = vshll.u32 %v4842_v24, 16  ;;  %v4942_v63 = vshrl.u32 %v4842_v24, 16  ;;  %8860 = vmatprep.subr.bf16.mxu0 %v9475_v0 }
 0x3d3   : > { %v4948_v21 = vshll.u32 %v4843_v19, 16  ;;  %v8308_v40 = vrot.slane %v11370_v11, 9  ;;  %v5338_v29 = vld [vmem:[#allocation3 + $0x30] sm:$0xf]  ;;  %v11390_v47 = vld [vmem:[#allocation4 + $0x50] sm:$0xf] }
 0x3d4   : > { %v4931_v45 = vrot.slane %v4929_v17, 4  ;;  %v7081_v34 = vrot.slane %v11374_v50, 5  ;;  %v4934_v18 = vrot.slane %v4932_v33, 5  ;;  %v4940_v39 = vrot.slane %v4938_v25, 5  ;;  %5703 = vst [vmem:[#allocation4 + $0x50] sm:$0xf] %v5649_v27 }
 0x3d5   : > { %v4944_v36 = vrot.slane %v4942_v63, 4  ;;  %v7080_v30 = vrot.slane %v7078_v58, 4  ;;  %v4950_v10 = vrot.slane %v4948_v21, 5  ;;  %v5339_v32 = vld [vmem:[#allocation3 + $0x34] sm:$0xf]  ;;  %v5426_v11 = vshrl.u32 %v5338_v29, 16 }
 0x3d6   : > { %v11399_v44 = vld [vmem:[#allocation4 + $0x5c] sm:$0xf]  ;;  %v4935_v62 = vor.u32 %v4934_v18, %v4931_v45  ;;  %v5340_v23 = vld [vmem:[#allocation3 + $0x38] sm:$0x1]  ;;  %v5429_v57 = vshll.u32 %v5338_v29, 16  ;;  %v7079_v42 = vsel %vm10290_vm3, %v8308_v40, %v7078_v58  ;;  %v5435_v13 = vshll.u32 %v5339_v32, 16 }
 0x3d7   : > { %v4945_v6 = vor.u32 %v4944_v36, %v4940_v39  ;;  %v9440_v55 = vld [vmem:[#allocation4 + $0x38] ss:$12 sps:$4 sm:$0xff]   ;;  %5704 = vst [vmem:[#allocation4 + $0x5c] sm:$0xf] %v5652_v54  ;;  %v5439_v43 = vshrl.u32 %v5339_v32, 16  ;;  %v8268_v28 = vcombine.low %v11390_v47, %v11399_v44  ;;  %v5428_v1 = vrot.slane %v5426_v11, 4 }
 0x3d8   : > { %7131 = vst [vmem:[#allocation4 + $0x38] sm:$0xf] %v7072_v22  ;;  %7132 = vst [vmem:[#allocation4 + $0x44] sm:$0xf] %v7075_v5  ;;  %v4936_v61 = vrot.slane %v4935_v62, 4  ;;  %v5431_v50 = vrot.slane %v5429_v57, 5  ;;  %9068 = vmatprep.mubr.bf16.mxu0 %v9440_v55  ;;  %v7082_v25 = vsel %vm10290_vm3, %v7080_v30, %v7081_v34 }
 0x3d9   : > { %v4946_v3 = vrot.slane %v4945_v6, 4  ;;  %v5437_v37 = vrot.slane %v5435_v13, 5  ;;  %v5441_v49 = vrot.slane %v5439_v43, 4  ;;  %v5445_v4 = vshll.u32 %v5340_v23, 16  ;;  %v6768_v9 = vld [vmem:[#allocation3 + $0x3c] sm:$0xf] }
 0x3da   : > { %v4941_v27 = vsel %vm10275_vm1, %v4936_v61, %v4940_v39  ;;  %v5432_v24 = vor.u32 %v5431_v50, %v5428_v1  ;;  %v6769_v19 = vld [vmem:[#allocation3 + $0x40] sm:$0xf]  ;;  %v6770_v17 = vld [vmem:[#allocation3 + $0x44] sm:$0x1]  ;;  %v6856_v33 = vshrl.u32 %v6768_v9, 16  ;;  %v6859_v21 = vshll.u32 %v6768_v9, 16 }
 0x3db   : > { %v4951_v58 = vsel %vm10275_vm1, %v4946_v3, %v4950_v10  ;;  %5070 = vst [vmem:[#allocation4 + $0x4c] sm:$0xf] %v4941_v27  ;;  %v5442_v63 = vor.u32 %v5441_v49, %v5437_v37  ;;  %v6865_v54 = vshll.u32 %v6769_v19, 16  ;;  %v9479_v40 = vld [vmem:[#allocation12 + $0x238] sm:$0xff]   ;;  %v5447_v29 = vrot.slane %v5445_v4, 5  ;;  %v9484_v38 = vld [vmem:[#allocation12 + $0x230] sm:$0xff]  }
 0x3dc   : > { %5071 = vst [vmem:[#allocation4 + $0x58] sm:$0xf] %v4951_v58  ;;  %v5433_v45 = vrot.slane %v5432_v24, 4  ;;  %v6858_v18 = vrot.slane %v6856_v33, 4  ;;  %v6869_v39 = vshrl.u32 %v6769_v19, 16  ;;  %v6861_v22 = vrot.slane %v6859_v21, 5  ;;  %9112 = vmatprep.subr.bf16.mxu1 %v9479_v40 }
 0x3dd   : > { %v5443_v36 = vrot.slane %v5442_v63, 4  ;;  %v11413_v5 = vrot.slane %v6865_v54, 5  ;;  %v5303_v34 = vld [vmem:[#allocation3 + $0x30] sm:$0xf]  ;;  %v5304_v30 = vld [vmem:[#allocation3 + $0x34] sm:$0xf] }
 0x3de   : > { %v9442_v32 = vld [vmem:[#allocation4 + $0x50] ss:$12 sps:$4 sm:$0xff]   ;;  %v6871_v62 = vrot.slane %v6869_v39, 4  ;;  %v6875_v6 = vshll.u32 %v6770_v17, 16  ;;  %v6862_v23 = vor.u32 %v6861_v22, %v6858_v18  ;;  %v5438_v11 = vsel %vm10275_vm1, %v5433_v45, %v5437_v37  ;;  %v4808_v43 = vld [vmem:[#allocation3 + $0x30] sm:$0xf] }
 0x3df   : > { %7133 = vst [vmem:[#allocation4 + $0x50] sm:$0xf] %v7079_v42  ;;  %7134 = vst [vmem:[#allocation4 + $0x5c] sm:$0xf] %v7082_v25  ;;  %9069 = vmatmul.mubr.bf16.gmra.mxu0 %v9442_v32  ;;  %v5448_v57 = vsel %vm10275_vm1, %v5443_v36, %v5447_v29  ;;  %v4809_v61 = vld [vmem:[#allocation3 + $0x34] sm:$0xf] }
 0x3e0   : > { %v6872_v55 = vor.u32 %v6871_v62, %v11413_v5  ;;  %v6863_v13 = vrot.slane %v6862_v23, 4  ;;  %v6877_v42 = vrot.slane %v6875_v6, 5  ;;  %4824 = vst [vmem:[#allocation4 + $0x60] sm:$0xf] %v4808_v43  ;;  %4825 = vst [vmem:[#allocation4 + $0x6c] sm:$0xf] %v4809_v61 }
 0x3e1   : > { %v4844_v49 = vld [vmem:[#allocation3 + $0x30] sm:$0xf]  ;;  %v4845_v37 = vld [vmem:[#allocation3 + $0x34] sm:$0xf]  ;;  %v4846_v4 = vld [vmem:[#allocation3 + $0x38] sm:$0x1] }
 0x3e2   : > { %v11422_v3 = vld [vmem:[#allocation4 + $0x48] sm:$0xff]  ;;  %v6873_v50 = vrot.slane %v6872_v55, 4  ;;  %v4953_v9 = vshrl.u32 %v4844_v49, 16  ;;  %v4956_v27 = vshll.u32 %v4844_v49, 16  ;;  %v4962_v24 = vshll.u32 %v4845_v37, 16  ;;  %v9487_v47 = vld [vmem:[#allocation12 + $0x1d0] sm:$0xff]  }
 0x3e3   : > { %v11424_v1 = vld [vmem:[#allocation4 + $0x54] sm:$0xff]  ;;  %5319 = vst [vmem:[#allocation4 + $0x48] sm:$0xf] %v5303_v34  ;;  %5567 = vst [vmem:[#allocation4 + $0x4c] sm:$0xf] %v5438_v11  ;;  %v4966_v19 = vshrl.u32 %v4845_v37, 16  ;;  %v6868_v33 = vsel %vm10275_vm1, %v6863_v13, %v11413_v5 }
 0x3e4   : > { %5320 = vst [vmem:[#allocation4 + $0x54] sm:$0xf] %v5304_v30  ;;  %5568 = vst [vmem:[#allocation4 + $0x58] sm:$0xf] %v5448_v57  ;;  %v4972_v17 = vshll.u32 %v4846_v4, 16  ;;  %v4955_v25 = vrot.slane %v4953_v9, 4  ;;  %v6878_v45 = vsel %vm10275_vm1, %v6873_v50, %v6877_v42 }
 0x3e5   : > { %v4958_v63 = vrot.slane %v4956_v27, 5  ;;  %v5341_v21 = vld [vmem:[#allocation3 + $0x3c] sm:$0xf]  ;;  %v4964_v29 = vrot.slane %v4962_v24, 5  ;;  %v4968_v18 = vrot.slane %v4966_v19, 4  ;;  %v9486_v51 = vld [vmem:[#allocation12 + $0x198] sm:$0xff]  }
 0x3e6   : > { %v6733_v40 = vld [vmem:[#allocation3 + $0x3c] sm:$0xf]  ;;  %v5342_v39 = vld [vmem:[#allocation3 + $0x40] sm:$0xf]  ;;  %v5450_v36 = vshrl.u32 %v5341_v21, 16  ;;  %v5453_v34 = vshll.u32 %v5341_v21, 16 }
 0x3e7   : > { %v4959_v22 = vor.u32 %v4958_v63, %v4955_v25  ;;  %v5343_v32 = vld [vmem:[#allocation3 + $0x44] sm:$0x1]  ;;  %v5459_v30 = vshll.u32 %v5342_v39, 16  ;;  %v5463_v62 = vshrl.u32 %v5342_v39, 16  ;;  %v6734_v5 = vld [vmem:[#allocation3 + $0x40] sm:$0xf]  ;;  %v4969_v6 = vor.u32 %v4968_v18, %v4964_v29 }
 0x3e8   : > { %v4974_v23 = vrot.slane %v4972_v17, 5  ;;  %v5452_v11 = vrot.slane %v5450_v36, 4  ;;  %v5469_v57 = vshll.u32 %v5343_v32, 16  ;;  %v5455_v13 = vrot.slane %v5453_v34, 5  ;;  %v6771_v50 = vld [vmem:[#allocation3 + $0x48] sm:$0xf] }
 0x3e9   : > { %v4960_v55 = vrot.slane %v4959_v22, 4  ;;  %v11435_v43 = vrot.slane %v5459_v30, 5  ;;  %v5465_v61 = vrot.slane %v5463_v62, 4  ;;  %v4970_v4 = vrot.slane %v4969_v6, 4  ;;  %v6772_v25 = vld [vmem:[#allocation3 + $0x4c] sm:$0xf] }
 0x3ea   : > { %v5725_v42 = vld [vmem:[#allocation4 + $0x48] sm:$0xff]  ;;  %v5471_v9 = vrot.slane %v5469_v57, 5  ;;  %v5456_v19 = vor.u32 %v5455_v13, %v5452_v11  ;;  %v6773_v63 = vld [vmem:[#allocation3 + $0x50] sm:$0x1]  ;;  %v6880_v18 = vshrl.u32 %v6771_v50, 16  ;;  %v6883_v39 = vshll.u32 %v6771_v50, 16 }
 0x3eb   : > { %v5727_v49 = vld [vmem:[#allocation4 + $0x54] sm:$0xff]  ;;  %6749 = vst [vmem:[#allocation4 + $0x48] sm:$0xf] %v6733_v40  ;;  %v4965_v24 = vsel %vm10275_vm1, %v4960_v55, %v4964_v29  ;;  %v5466_v17 = vor.u32 %v5465_v61, %v11435_v43  ;;  %v4975_v21 = vsel %vm10275_vm1, %v4970_v4, %v4974_v23  ;;  %v6889_v40 = vshll.u32 %v6772_v25, 16  ;;  %v5093_v62 = vld [vmem:[#allocation3 + $0x34] sm:$0xf] }
 0x3ec   : > { %v9443_v37 = vld [vmem:[#allocation4 + $0x4c] ss:$12 sps:$4 sm:$0xff]   ;;  %6750 = vst [vmem:[#allocation4 + $0x54] sm:$0xf] %v6734_v5  ;;  %v8218_v27 = vcombine.low %v5725_v42, %v5727_v49  ;;  %5072 = vst [vmem:[#allocation4 + $0x64] sm:$0xf] %v4965_v24 }
 0x3ed   : > { %6997 = vst [vmem:[#allocation4 + $0x4c] sm:$0xf] %v6868_v33  ;;  %6998 = vst [vmem:[#allocation4 + $0x58] sm:$0xf] %v6878_v45  ;;  %6122 = vmatprep.mubr.bf16.mxu1 %v9443_v37  ;;  %v5457_v33 = vrot.slane %v5456_v19, 4  ;;  %v5467_v45 = vrot.slane %v5466_v17, 4 }
 0x3ee   : > { %6123 = vmatmul.mubr.bf16.gmra.mxu1 %v8218_v27  ;;  %5073 = vst [vmem:[#allocation4 + $0x70] sm:$0xf] %v4975_v21  ;;  %v6893_v36 = vshrl.u32 %v6772_v25, 16  ;;  %v6899_v22 = vshll.u32 %v6773_v63, 16  ;;  %v5092_v29 = vld [vmem:[#allocation3 + $0x30] sm:$0xe] }
 0x3ef   : > { %v6882_v32 = vrot.slane %v6880_v18, 4  ;;  %v6885_v34 = vrot.slane %v6883_v39, 5  ;;  %v11442_v30 = vrot.slane %v6889_v40, 5  ;;  %v8197_v5 = vrot.slane %v5092_v29, 9  ;;  %v5305_v6 = vld [vmem:[#allocation3 + $0x3c] sm:$0xf] }
 0x3f0   : > { %v6895_v11 = vrot.slane %v6893_v36, 4  ;;  %v5094_v23 = vld [vmem:[#allocation3 + $0x38] sm:$0x1]  ;;  %v5589_v57 = vld [vmem:[#allocation3 + $0x3c] sm:$0xe]  ;;  %v5462_v55 = vsel %vm10275_vm1, %v5457_v33, %v11435_v43  ;;  %v5158_v61 = vrot.slane %v5093_v62, 5  ;;  %v5472_v17 = vsel %vm10275_vm1, %v5467_v45, %v5471_v9 }
 0x3f1   : > { %v6886_v13 = vor.u32 %v6885_v34, %v6882_v32  ;;  %v5161_v50 = vrot.slane %v5094_v23, 5  ;;  %v5590_v42 = vld [vmem:[#allocation3 + $0x40] sm:$0xf]  ;;  %v5591_v49 = vld [vmem:[#allocation3 + $0x44] sm:$0x1]  ;;  %v11448_v27 = vrot.slane %v6899_v22, 5 }
 0x3f2   : > { %v5306_v37 = vld [vmem:[#allocation3 + $0x40] sm:$0xf]  ;;  %v6896_v4 = vor.u32 %v6895_v11, %v11442_v30  ;;  %v8205_v24 = vrot.slane %v5589_v57, 9  ;;  %v5655_v19 = vrot.slane %v5590_v42, 5  ;;  %v5159_v25 = vsel %vm10290_vm3, %v8197_v5, %v5158_v61  ;;  %v11454_v21 = vld [vmem:[#allocation3 + $0x48] sm:$0xe] }
 0x3f3   : > { %v5160_v63 = vrot.slane %v5158_v61, 4  ;;  %v5658_v43 = vrot.slane %v5591_v49, 5  ;;  %v11456_v18 = vld [vmem:[#allocation3 + $0x4c] sm:$0xf]  ;;  %v11458_v39 = vld [vmem:[#allocation4 + $0x60] sm:$0xff]  ;;  %v6887_v40 = vrot.slane %v6886_v13, 4 }
 0x3f4   : > { %5208 = vst [vmem:[#allocation4 + $0x68] sm:$0xf] %v5159_v25  ;;  %v11460_v33 = vld [vmem:[#allocation3 + $0x50] sm:$0x1]  ;;  %5321 = vst [vmem:[#allocation4 + $0x60] sm:$0xf] %v5305_v6 }
 0x3f5   : > { %v11462_v36 = vld [vmem:[#allocation4 + $0x6c] sm:$0xff]  ;;  %5569 = vst [vmem:[#allocation4 + $0x64] sm:$0xf] %v5462_v55  ;;  %v6897_v9 = vrot.slane %v6896_v4, 4  ;;  %v5162_v45 = vsel %vm10290_vm3, %v5160_v63, %v5161_v50  ;;  %v5657_v22 = vrot.slane %v5655_v19, 4  ;;  %v7085_v29 = vrot.slane %v11456_v18, 5 }
 0x3f6   : > { %5322 = vst [vmem:[#allocation4 + $0x6c] sm:$0xf] %v5306_v37  ;;  %5570 = vst [vmem:[#allocation4 + $0x70] sm:$0xf] %v5472_v17  ;;  %v5095_v32 = vld [vmem:[#allocation3 + $0x3c] sm:$0xe]  ;;  %v6892_v49 = vsel %vm10275_vm1, %v6887_v40, %v11442_v30  ;;  %v5656_v37 = vsel %vm10290_vm3, %v8205_v24, %v5655_v19 }
 0x3f7   : > { %5209 = vst [vmem:[#allocation4 + $0x74] sm:$0xf] %v5162_v45  ;;  %v8309_v5 = vrot.slane %v11454_v21, 9  ;;  %v5096_v6 = vld [vmem:[#allocation3 + $0x40] sm:$0xf]  ;;  %v8198_v23 = vrot.slane %v5095_v32, 9  ;;  %v6902_v30 = vsel %vm10275_vm1, %v6897_v9, %v11448_v27  ;;  %v5659_v19 = vsel %vm10290_vm3, %v5657_v22, %v5658_v43 }
 0x3f8   : > { %v5097_v11 = vld [vmem:[#allocation3 + $0x44] sm:$0x1]  ;;  %v5165_v57 = vrot.slane %v5096_v6, 5  ;;  %v5592_v13 = vld [vmem:[#allocation3 + $0x48] sm:$0xe]  ;;  %v7088_v4 = vrot.slane %v11460_v33, 5 }
 0x3f9   : > { %v5168_v55 = vrot.slane %v5097_v11, 5  ;;  %v5593_v61 = vld [vmem:[#allocation3 + $0x4c] sm:$0xf]  ;;  %v6735_v50 = vld [vmem:[#allocation3 + $0x48] sm:$0xf]  ;;  %v7087_v45 = vrot.slane %v7085_v29, 4 }
 0x3fa   : > { %v6736_v42 = vld [vmem:[#allocation3 + $0x4c] sm:$0xf]  ;;  %v5594_v17 = vld [vmem:[#allocation3 + $0x50] sm:$0x1]  ;;  %v5662_v25 = vrot.slane %v5593_v61, 5  ;;  %v5166_v32 = vsel %vm10290_vm3, %v8198_v23, %v5165_v57  ;;  %v5167_v6 = vrot.slane %v5165_v57, 4 }
 0x3fb   : > { %v11478_v63 = vld [vmem:[#allocation3 + $0x54] sm:$0xe]  ;;  %v8206_v11 = vrot.slane %v5592_v13, 9  ;;  %v11484_v62 = vld [vmem:[#allocation3 + $0x58] sm:$0xf]  ;;  %v5665_v33 = vrot.slane %v5594_v17, 5 }
 0x3fc   : > { %v11489_v24 = vld [vmem:[#allocation4 + $0x68] sm:$0xf]  ;;  %5210 = vst [vmem:[#allocation4 + $0x80] sm:$0xf] %v5166_v32  ;;  %v5664_v40 = vrot.slane %v5662_v25, 4  ;;  %v5729_v34 = vld [vmem:[#allocation4 + $0x60] sm:$0xff]  ;;  %v5169_v23 = vsel %vm10290_vm3, %v5167_v6, %v5168_v55 }
 0x3fd   : > { %v11493_v61 = vld [vmem:[#allocation3 + $0x5c] sm:$0x1]  ;;  %5705 = vst [vmem:[#allocation4 + $0x68] sm:$0xf] %v5656_v37  ;;  %v8310_v57 = vrot.slane %v11478_v63, 9  ;;  %v5731_v13 = vld [vmem:[#allocation4 + $0x6c] sm:$0xff]  ;;  %v5663_v32 = vsel %vm10290_vm3, %v8206_v11, %v5662_v25 }
 0x3fe   : > { %v9449_v54 = vld [vmem:[#allocation4 + $0x64] ss:$12 sps:$4 sm:$0xff]   ;;  %v11498_v27 = vld [vmem:[#allocation4 + $0x74] sm:$0xf]  ;;  %5211 = vst [vmem:[#allocation4 + $0x8c] sm:$0xf] %v5169_v23  ;;  %v8221_v43 = vcombine.low %v5729_v34, %v5731_v13  ;;  %v5666_v23 = vsel %vm10290_vm3, %v5664_v40, %v5665_v33  ;;  %v7089_v40 = vsel %vm10290_vm3, %v7087_v45, %v7088_v4 }
 0x3ff   : > { %v7092_v9 = vrot.slane %v11484_v62, 5  ;;  %6751 = vst [vmem:[#allocation4 + $0x60] sm:$0xf] %v6735_v50  ;;  %6752 = vst [vmem:[#allocation4 + $0x6c] sm:$0xf] %v6736_v42  ;;  %6130 = vmatprep.mubr.bf16.mxu1 %v9449_v54  ;;  %v7095_v34 = vrot.slane %v11493_v61, 5  ;;  %v7086_v61 = vsel %vm10290_vm3, %v8309_v5, %v7085_v29  ;;  %v12101_v14 = vcombine.low %v11489_v24, %v11498_v27 }
 0x400   : > { %6999 = vst [vmem:[#allocation4 + $0x64] sm:$0xf] %v6892_v49  ;;  %7000 = vst [vmem:[#allocation4 + $0x70] sm:$0xf] %v6902_v30  ;;  %v4810_v22 = vld [vmem:[#allocation3 + $0x3c] sm:$0xf]  ;;  %6131 = vmatmul.mubr.bf16.gmra.mxu1 %v8221_v43 }
 0x401   : > { %5706 = vst [vmem:[#allocation4 + $0x74] sm:$0xf] %v5659_v19  ;;  %v4811_v37 = vld [vmem:[#allocation3 + $0x40] sm:$0xf]  ;;  %v4847_v17 = vld [vmem:[#allocation3 + $0x3c] sm:$0xf] }
 0x402   : > { %4826 = vst [vmem:[#allocation4 + $0x78] sm:$0xf] %v4810_v22  ;;  %4827 = vst [vmem:[#allocation4 + $0x84] sm:$0xf] %v4811_v37  ;;  %v4848_v6 = vld [vmem:[#allocation3 + $0x40] sm:$0xf] }
 0x403   : > { %v4849_v62 = vld [vmem:[#allocation3 + $0x44] sm:$0x1]  ;;  %v4977_v50 = vshrl.u32 %v4847_v17, 16  ;;  %v4980_v42 = vshll.u32 %v4847_v17, 16  ;;  %v4986_v49 = vshll.u32 %v4848_v6, 16  ;;  %v4990_v30 = vshrl.u32 %v4848_v6, 16 }
 0x404   : > { %v4996_v19 = vshll.u32 %v4849_v62, 16  ;;  %v7094_v13 = vrot.slane %v7092_v9, 4  ;;  %v5344_v10 = vld [vmem:[#allocation3 + $0x48] sm:$0xf]  ;;  %v11508_v25 = vld [vmem:[#allocation4 + $0x80] sm:$0xf] }
 0x405   : > { %v4979_v54 = vrot.slane %v4977_v50, 4  ;;  %v4982_v58 = vrot.slane %v4980_v42, 5  ;;  %v4988_v11 = vrot.slane %v4986_v49, 5  ;;  %v4992_v22 = vrot.slane %v4990_v30, 4  ;;  %5707 = vst [vmem:[#allocation4 + $0x80] sm:$0xf] %v5663_v32 }
 0x406   : > { %v4998_v37 = vrot.slane %v4996_v19, 5  ;;  %v5474_v0 = vshrl.u32 %v5344_v10, 16  ;;  %v5345_v43 = vld [vmem:[#allocation3 + $0x4c] sm:$0xf]  ;;  %v5346_v17 = vld [vmem:[#allocation3 + $0x50] sm:$0x1] }
 0x407   : > { %v4983_v33 = vor.u32 %v4982_v58, %v4979_v54  ;;  %v11518_v6 = vld [vmem:[#allocation4 + $0x8c] sm:$0xf]  ;;  %v4993_v62 = vor.u32 %v4992_v22, %v4988_v11  ;;  %v5477_v42 = vshll.u32 %v5344_v10, 16  ;;  %v5483_v49 = vshll.u32 %v5345_v43, 16  ;;  %v6774_v19 = vld [vmem:[#allocation3 + $0x54] sm:$0xf] }
 0x408   : > { %v5476_v50 = vrot.slane %v5474_v0, 4  ;;  %v9452_v30 = vld [vmem:[#allocation4 + $0x68] ss:$12 sps:$4 sm:$0xff]   ;;  %5708 = vst [vmem:[#allocation4 + $0x8c] sm:$0xf] %v5666_v23  ;;  %v5487_v21 = vshrl.u32 %v5345_v43, 16  ;;  %v7093_v0 = vsel %vm10290_vm3, %v8310_v57, %v7092_v9  ;;  %v7096_v23 = vsel %vm10290_vm3, %v7094_v13, %v7095_v34 }
 0x409   : > { %v4984_v18 = vrot.slane %v4983_v33, 4  ;;  %7135 = vst [vmem:[#allocation4 + $0x68] sm:$0xf] %v7086_v61  ;;  %7136 = vst [vmem:[#allocation4 + $0x74] sm:$0xf] %v7089_v40  ;;  %v4994_v5 = vrot.slane %v4993_v62, 4  ;;  %9072 = vmatprep.mubr.bf16.mxu0 %v9452_v30  ;;  %v12104_v24 = vcombine.low %v11508_v25, %v11518_v6  ;;  %v12106_v6 = vcombine.high %v11324_v41, %v11328_v35 }
 0x40a   : > { %v5479_v4 = vrot.slane %v5477_v42, 5  ;;  %v5485_v58 = vrot.slane %v5483_v49, 5  ;;  %v5493_v45 = vshll.u32 %v5346_v17, 16  ;;  %v5489_v32 = vrot.slane %v5487_v21, 4  ;;  %v6775_v61 = vld [vmem:[#allocation3 + $0x58] sm:$0xf] }
 0x40b   : > { %v4989_v10 = vsel %vm10275_vm1, %v4984_v18, %v4988_v11  ;;  %v4999_v54 = vsel %vm10275_vm1, %v4994_v5, %v4998_v37  ;;  %v6776_v40 = vld [vmem:[#allocation3 + $0x5c] sm:$0x1]  ;;  %v6904_v33 = vshrl.u32 %v6774_v19, 16  ;;  %v6907_v43 = vshll.u32 %v6774_v19, 16  ;;  %v5307_v49 = vld [vmem:[#allocation3 + $0x48] sm:$0xf] }
 0x40c   : > { %5074 = vst [vmem:[#allocation4 + $0x7c] sm:$0xf] %v4989_v10  ;;  %v5480_v22 = vor.u32 %v5479_v4, %v5476_v50  ;;  %5075 = vst [vmem:[#allocation4 + $0x88] sm:$0xf] %v4999_v54  ;;  %v5490_v63 = vor.u32 %v5489_v32, %v5485_v58  ;;  %v6913_v57 = vshll.u32 %v6775_v61, 16  ;;  %v6917_v9 = vshrl.u32 %v6775_v61, 16 }
 0x40d   : > { %v5495_v11 = vrot.slane %v5493_v45, 5  ;;  %v6906_v62 = vrot.slane %v6904_v33, 4  ;;  %v6923_v42 = vshll.u32 %v6776_v40, 16  ;;  %v6909_v34 = vrot.slane %v6907_v43, 5  ;;  %v5308_v50 = vld [vmem:[#allocation3 + $0x4c] sm:$0xf] }
 0x40e   : > { %v5481_v17 = vrot.slane %v5480_v22, 4  ;;  %v5491_v30 = vrot.slane %v5490_v63, 4  ;;  %v11532_v13 = vrot.slane %v6913_v57, 5  ;;  %v6919_v37 = vrot.slane %v6917_v9, 4  ;;  %v4812_v54 = vld [vmem:[#allocation3 + $0x48] sm:$0xf] }
 0x40f   : > { %v9455_v18 = vld [vmem:[#allocation4 + $0x80] ss:$12 sps:$4 sm:$0xff]   ;;  %v6910_v5 = vor.u32 %v6909_v34, %v6906_v62  ;;  %v6925_v19 = vrot.slane %v6923_v42, 5  ;;  %4828 = vst [vmem:[#allocation4 + $0x90] sm:$0xf] %v4812_v54  ;;  %v9489_v27 = vld [vmem:[#allocation12 + $0x228] sm:$0xff]  }
 0x410   : > { %7137 = vst [vmem:[#allocation4 + $0x80] sm:$0xf] %v7093_v0  ;;  %7138 = vst [vmem:[#allocation4 + $0x8c] sm:$0xf] %v7096_v23  ;;  %v5486_v21 = vsel %vm10275_vm1, %v5481_v17, %v5485_v58  ;;  %v6920_v4 = vor.u32 %v6919_v37, %v11532_v13  ;;  %9073 = vmatmul.mubr.bf16.gmra.mxu0 %v9455_v18  ;;  %v5496_v45 = vsel %vm10275_vm1, %v5491_v30, %v5495_v11  ;;  %v4813_v23 = vld [vmem:[#allocation3 + $0x4c] sm:$0xf] }
 0x411   : > { %v6911_v32 = vrot.slane %v6910_v5, 4  ;;  %v4850_v58 = vld [vmem:[#allocation3 + $0x48] sm:$0xf]  ;;  %4829 = vst [vmem:[#allocation4 + $0x9c] sm:$0xf] %v4813_v23  ;;  %v9531_v44 = vld [vmem:[#allocation12 + $0x238] sm:$0xff]  }
 0x412   : > { %v6921_v0 = vrot.slane %v6920_v4, 4  ;;  %v4851_v61 = vld [vmem:[#allocation3 + $0x4c] sm:$0xf]  ;;  %v4852_v40 = vld [vmem:[#allocation3 + $0x50] sm:$0x1]  ;;  %v5001_v33 = vshrl.u32 %v4850_v58, 16 }
 0x413   : > { %v11539_v10 = vld [vmem:[#allocation4 + $0x78] sm:$0xff]  ;;  %v11541_v22 = vld [vmem:[#allocation4 + $0x84] sm:$0xff]  ;;  %v5004_v63 = vshll.u32 %v4850_v58, 16  ;;  %v5010_v43 = vshll.u32 %v4851_v61, 16  ;;  %v5014_v57 = vshrl.u32 %v4851_v61, 16  ;;  %v5020_v9 = vshll.u32 %v4852_v40, 16 }
 0x414   : > { %5323 = vst [vmem:[#allocation4 + $0x78] sm:$0xf] %v5307_v49  ;;  %5571 = vst [vmem:[#allocation4 + $0x7c] sm:$0xf] %v5486_v21  ;;  %v6916_v11 = vsel %vm10275_vm1, %v6911_v32, %v11532_v13  ;;  %v5003_v62 = vrot.slane %v5001_v33, 4  ;;  %v6926_v37 = vsel %vm10275_vm1, %v6921_v0, %v6925_v19  ;;  %v9492_v25 = vld [vmem:[#allocation12 + $0x1c0] sm:$0xff]  }
 0x415   : > { %5324 = vst [vmem:[#allocation4 + $0x84] sm:$0xf] %v5308_v50  ;;  %5572 = vst [vmem:[#allocation4 + $0x88] sm:$0xf] %v5496_v45  ;;  %v5006_v42 = vrot.slane %v5004_v63, 5  ;;  %v5012_v18 = vrot.slane %v5010_v43, 5 }
 0x416   : > { %v5347_v49 = vld [vmem:[#allocation3 + $0x54] sm:$0xf]  ;;  %v5016_v50 = vrot.slane %v5014_v57, 4  ;;  %v5348_v21 = vld [vmem:[#allocation3 + $0x58] sm:$0xf]  ;;  %v5022_v61 = vrot.slane %v5020_v9, 5 }
 0x417   : > { %v6737_v34 = vld [vmem:[#allocation3 + $0x54] sm:$0xf]  ;;  %v5498_v5 = vshrl.u32 %v5347_v49, 16  ;;  %v5007_v4 = vor.u32 %v5006_v42, %v5003_v62  ;;  %v5349_v45 = vld [vmem:[#allocation3 + $0x5c] sm:$0x1]  ;;  %v5501_v54 = vshll.u32 %v5347_v49, 16 }
 0x418   : > { %v5507_v23 = vshll.u32 %v5348_v21, 16  ;;  %v5511_v58 = vshrl.u32 %v5348_v21, 16  ;;  %v6738_v13 = vld [vmem:[#allocation3 + $0x58] sm:$0xf]  ;;  %v5017_v32 = vor.u32 %v5016_v50, %v5012_v18  ;;  %v5517_v33 = vshll.u32 %v5349_v45, 16 }
 0x419   : > { %v5500_v40 = vrot.slane %v5498_v5, 4  ;;  %v5008_v30 = vrot.slane %v5007_v4, 4  ;;  %v5503_v17 = vrot.slane %v5501_v54, 5  ;;  %v6777_v50 = vld [vmem:[#allocation3 + $0x60] sm:$0xf] }
 0x41a   : > { %v5509_v16 = vrot.slane %v5507_v23, 5  ;;  %v5513_v29 = vrot.slane %v5511_v58, 4  ;;  %v5018_v43 = vrot.slane %v5017_v32, 4  ;;  %v5519_v57 = vrot.slane %v5517_v33, 5  ;;  %v6778_v21 = vld [vmem:[#allocation3 + $0x64] sm:$0xf] }
 0x41b   : > { %v5733_v63 = vld [vmem:[#allocation4 + $0x78] sm:$0xff]  ;;  %v5013_v42 = vsel %vm10275_vm1, %v5008_v30, %v5012_v18  ;;  %v5504_v9 = vor.u32 %v5503_v17, %v5500_v40  ;;  %v6779_v5 = vld [vmem:[#allocation3 + $0x68] sm:$0x1]  ;;  %v6928_v45 = vshrl.u32 %v6777_v50, 16  ;;  %v6931_v54 = vshll.u32 %v6777_v50, 16 }
 0x41c   : > { %v5735_v19 = vld [vmem:[#allocation4 + $0x84] sm:$0xff]  ;;  %6753 = vst [vmem:[#allocation4 + $0x78] sm:$0xf] %v6737_v34  ;;  %v5514_v49 = vor.u32 %v5513_v29, %v5509_v16  ;;  %v5023_v4 = vsel %vm10275_vm1, %v5018_v43, %v5022_v61  ;;  %5076 = vst [vmem:[#allocation4 + $0x94] sm:$0xf] %v5013_v42  ;;  %v6937_v34 = vshll.u32 %v6778_v21, 16 }
 0x41d   : > { %v9457_v0 = vld [vmem:[#allocation4 + $0x7c] ss:$12 sps:$4 sm:$0xff]   ;;  %6754 = vst [vmem:[#allocation4 + $0x84] sm:$0xf] %v6738_v13  ;;  %v8224_v62 = vcombine.low %v5733_v63, %v5735_v19  ;;  %v5098_v23 = vld [vmem:[#allocation3 + $0x48] sm:$0xe] }
 0x41e   : > { %7001 = vst [vmem:[#allocation4 + $0x7c] sm:$0xf] %v6916_v11  ;;  %7002 = vst [vmem:[#allocation4 + $0x88] sm:$0xf] %v6926_v37  ;;  %6138 = vmatprep.mubr.bf16.mxu1 %v9457_v0  ;;  %v5505_v11 = vrot.slane %v5504_v9, 4  ;;  %v5515_v37 = vrot.slane %v5514_v49, 4 }
 0x41f   : > { %6139 = vmatmul.mubr.bf16.gmra.mxu1 %v8224_v62  ;;  %5077 = vst [vmem:[#allocation4 + $0xa0] sm:$0xf] %v5023_v4  ;;  %v6941_v58 = vshrl.u32 %v6778_v21, 16  ;;  %v6947_v30 = vshll.u32 %v6779_v5, 16  ;;  %v5099_v17 = vld [vmem:[#allocation3 + $0x4c] sm:$0xf] }
 0x420   : > { %v6930_v29 = vrot.slane %v6928_v45, 4  ;;  %v6933_v18 = vrot.slane %v6931_v54, 5  ;;  %v11556_v13 = vrot.slane %v6937_v34, 5  ;;  %v5100_v32 = vld [vmem:[#allocation3 + $0x50] sm:$0x1]  ;;  %v8199_v40 = vrot.slane %v5098_v23, 9 }
 0x421   : > { %v6943_v33 = vrot.slane %v6941_v58, 4  ;;  %v5595_v61 = vld [vmem:[#allocation3 + $0x54] sm:$0xe]  ;;  %v5596_v63 = vld [vmem:[#allocation3 + $0x58] sm:$0xf]  ;;  %v5510_v19 = vsel %vm10275_vm1, %v5505_v11, %v5509_v16  ;;  %v5172_v43 = vrot.slane %v5099_v17, 5  ;;  %v5520_v50 = vsel %vm10275_vm1, %v5515_v37, %v5519_v57 }
 0x422   : > { %v6934_v0 = vor.u32 %v6933_v18, %v6930_v29  ;;  %v5175_v62 = vrot.slane %v5100_v32, 5  ;;  %v5597_v42 = vld [vmem:[#allocation3 + $0x5c] sm:$0x1]  ;;  %v5309_v9 = vld [vmem:[#allocation3 + $0x54] sm:$0xf]  ;;  %v11563_v5 = vrot.slane %v6947_v30, 5 }
 0x423   : > { %v5310_v49 = vld [vmem:[#allocation3 + $0x58] sm:$0xf]  ;;  %v6944_v21 = vor.u32 %v6943_v33, %v11556_v13  ;;  %v5669_v4 = vrot.slane %v5596_v63, 5  ;;  %v5173_v45 = vsel %vm10290_vm3, %v8199_v40, %v5172_v43  ;;  %v5174_v54 = vrot.slane %v5172_v43, 4  ;;  %v11567_v23 = vld [vmem:[#allocation3 + $0x64] sm:$0xf] }
 0x424   : > { %v8207_v34 = vrot.slane %v5595_v61, 9  ;;  %v5672_v16 = vrot.slane %v5597_v42, 5  ;;  %v11569_v11 = vld [vmem:[#allocation4 + $0x90] sm:$0xff]  ;;  %v6935_v58 = vrot.slane %v6934_v0, 4  ;;  %5212 = vst [vmem:[#allocation4 + $0x98] sm:$0xf] %v5173_v45 }
 0x425   : > { %v11571_v17 = vld [vmem:[#allocation3 + $0x60] sm:$0xe]  ;;  %5325 = vst [vmem:[#allocation4 + $0x90] sm:$0xf] %v5309_v9  ;;  %5573 = vst [vmem:[#allocation4 + $0x94] sm:$0xf] %v5510_v19  ;;  %v5176_v30 = vsel %vm10290_vm3, %v5174_v54, %v5175_v62 }
 0x426   : > { %v11573_v57 = vld [vmem:[#allocation4 + $0x9c] sm:$0xff]  ;;  %v6945_v37 = vrot.slane %v6944_v21, 4  ;;  %v11577_v29 = vld [vmem:[#allocation3 + $0x68] sm:$0x1]  ;;  %5213 = vst [vmem:[#allocation4 + $0xa4] sm:$0xf] %v5176_v30  ;;  %v5670_v54 = vsel %vm10290_vm3, %v8207_v34, %v5669_v4 }
 0x427   : > { %v5101_v18 = vld [vmem:[#allocation3 + $0x54] sm:$0xe]  ;;  %5326 = vst [vmem:[#allocation4 + $0x9c] sm:$0xf] %v5310_v49  ;;  %5574 = vst [vmem:[#allocation4 + $0xa0] sm:$0xf] %v5520_v50 }
 0x428   : > { %v5671_v32 = vrot.slane %v5669_v4, 4  ;;  %v7099_v40 = vrot.slane %v11567_v23, 5  ;;  %v5102_v33 = vld [vmem:[#allocation3 + $0x58] sm:$0xf]  ;;  %v5103_v61 = vld [vmem:[#allocation3 + $0x5c] sm:$0x1] }
 0x429   : > { %v8200_v63 = vrot.slane %v5101_v18, 9  ;;  %v5179_v0 = vrot.slane %v5102_v33, 5  ;;  %v5182_v43 = vrot.slane %v5103_v61, 5  ;;  %v5598_v42 = vld [vmem:[#allocation3 + $0x60] sm:$0xe]  ;;  %v8311_v62 = vrot.slane %v11571_v17, 9 }
 0x42a   : > { %v5599_v9 = vld [vmem:[#allocation3 + $0x64] sm:$0xf]  ;;  %v5600_v21 = vld [vmem:[#allocation3 + $0x68] sm:$0x1]  ;;  %v6739_v50 = vld [vmem:[#allocation3 + $0x60] sm:$0xf]  ;;  %v6940_v61 = vsel %vm10275_vm1, %v6935_v58, %v11556_v13  ;;  %v6950_v17 = vsel %vm10275_vm1, %v6945_v37, %v11563_v5 }
 0x42b   : > { %v6740_v45 = vld [vmem:[#allocation3 + $0x64] sm:$0xf]  ;;  %v5180_v30 = vsel %vm10290_vm3, %v8200_v63, %v5179_v0  ;;  %v5181_v18 = vrot.slane %v5179_v0, 4  ;;  %v5676_v33 = vrot.slane %v5599_v9, 5  ;;  %v7101_v49 = vrot.slane %v7099_v40, 4 }
 0x42c   : > { %v7102_v19 = vrot.slane %v11577_v29, 5  ;;  %5214 = vst [vmem:[#allocation4 + $0xb0] sm:$0xf] %v5180_v30  ;;  %v11598_v4 = vld [vmem:[#allocation3 + $0x70] sm:$0xf]  ;;  %v5673_v63 = vsel %vm10290_vm3, %v5671_v32, %v5672_v16  ;;  %v8208_v58 = vrot.slane %v5598_v42, 9 }
 0x42d   : > { %v11600_v34 = vld [vmem:[#allocation4 + $0x98] sm:$0xf]  ;;  %v5183_v13 = vsel %vm10290_vm3, %v5181_v18, %v5182_v43  ;;  %v5679_v0 = vrot.slane %v5600_v21, 5  ;;  %v5737_v9 = vld [vmem:[#allocation4 + $0x90] sm:$0xff]  ;;  %v5678_v5 = vrot.slane %v5676_v33, 4  ;;  %v7106_v55 = vrot.slane %v11598_v4, 5 }
 0x42e   : > { %5709 = vst [vmem:[#allocation4 + $0x98] sm:$0xf] %v5670_v54  ;;  %5215 = vst [vmem:[#allocation4 + $0xbc] sm:$0xf] %v5183_v13  ;;  %v5739_v37 = vld [vmem:[#allocation4 + $0x9c] sm:$0xff]  ;;  %v5677_v32 = vsel %vm10290_vm3, %v8208_v58, %v5676_v33 }
 0x42f   : > { %v9463_v60 = vld [vmem:[#allocation4 + $0x94] ss:$12 sps:$4 sm:$0xff]   ;;  %v11606_v29 = vld [vmem:[#allocation4 + $0xa4] sm:$0xf]  ;;  %v7030_v52 = vld [vmem:[#allocation3 + $0x74] sm:$0x1]  ;;  %v8227_v16 = vcombine.low %v5737_v9, %v5739_v37  ;;  %v7100_v37 = vsel %vm10290_vm3, %v8311_v62, %v7099_v40 }
 0x430   : > { %v7028_v30 = vld [vmem:[#allocation3 + $0x6c] sm:$0xe]  ;;  %6755 = vst [vmem:[#allocation4 + $0x90] sm:$0xf] %v6739_v50  ;;  %6756 = vst [vmem:[#allocation4 + $0x9c] sm:$0xf] %v6740_v45  ;;  %6146 = vmatprep.mubr.bf16.mxu1 %v9463_v60  ;;  %v5680_v45 = vsel %vm10290_vm3, %v5678_v5, %v5679_v0 }
 0x431   : > { %7003 = vst [vmem:[#allocation4 + $0x94] sm:$0xf] %v6940_v61  ;;  %7004 = vst [vmem:[#allocation4 + $0xa0] sm:$0xf] %v6950_v17  ;;  %v4814_v43 = vld [vmem:[#allocation3 + $0x54] sm:$0xf]  ;;  %6147 = vmatmul.mubr.bf16.gmra.mxu1 %v8227_v16  ;;  %v7103_v16 = vsel %vm10290_vm3, %v7101_v49, %v7102_v19 }
 0x432   : > { %5710 = vst [vmem:[#allocation4 + $0xa4] sm:$0xf] %v5673_v63  ;;  %v4815_v42 = vld [vmem:[#allocation3 + $0x58] sm:$0xf]  ;;  %v4853_v21 = vld [vmem:[#allocation3 + $0x54] sm:$0xf] }
 0x433   : > { %4830 = vst [vmem:[#allocation4 + $0xa8] sm:$0xf] %v4814_v43  ;;  %4831 = vst [vmem:[#allocation4 + $0xb4] sm:$0xf] %v4815_v42  ;;  %v4854_v54 = vld [vmem:[#allocation3 + $0x58] sm:$0xf] }
 0x434   : > { %v4855_v18 = vld [vmem:[#allocation3 + $0x5c] sm:$0x1]  ;;  %v5025_v13 = vshrl.u32 %v4853_v21, 16  ;;  %v5028_v4 = vshll.u32 %v4853_v21, 16  ;;  %v11611_v50 = vld [vmem:[#allocation4 + $0xb0] sm:$0xf] }
 0x435   : > { %v5034_v61 = vshll.u32 %v4854_v54, 16  ;;  %v5038_v60 = vshrl.u32 %v4854_v54, 16  ;;  %v5044_v17 = vshll.u32 %v4855_v18, 16  ;;  %5711 = vst [vmem:[#allocation4 + $0xb0] sm:$0xf] %v5677_v32  ;;  %v8312_v33 = vrot.slane %v7028_v30, 9 }
 0x436   : > { %v7109_v63 = vrot.slane %v7030_v52, 5  ;;  %v5027_v58 = vrot.slane %v5025_v13, 4  ;;  %v5030_v9 = vrot.slane %v5028_v4, 5  ;;  %v11621_v43 = vld [vmem:[#allocation4 + $0xbc] sm:$0xf]  ;;  %v7108_v5 = vrot.slane %v7106_v55, 4 }
 0x437   : > { %v5036_v42 = vrot.slane %v5034_v61, 5  ;;  %v5040_v0 = vrot.slane %v5038_v60, 4  ;;  %5712 = vst [vmem:[#allocation4 + $0xbc] sm:$0xf] %v5680_v45  ;;  %v5046_v32 = vrot.slane %v5044_v17, 5  ;;  %v7107_v19 = vsel %vm10290_vm3, %v8312_v33, %v7106_v55 }
 0x438   : > { %v5031_v21 = vor.u32 %v5030_v9, %v5027_v58  ;;  %v5350_v30 = vld [vmem:[#allocation3 + $0x60] sm:$0xf]  ;;  %v5351_v52 = vld [vmem:[#allocation3 + $0x64] sm:$0xf]  ;;  %v5352_v13 = vld [vmem:[#allocation3 + $0x68] sm:$0x1] }
 0x439   : > { %v9465_v54 = vld [vmem:[#allocation4 + $0x98] ss:$12 sps:$4 sm:$0xff]   ;;  %v5041_v18 = vor.u32 %v5040_v0, %v5036_v42  ;;  %v5522_v40 = vshrl.u32 %v5350_v30, 16  ;;  %v5525_v62 = vshll.u32 %v5350_v30, 16  ;;  %v5531_v4 = vshll.u32 %v5351_v52, 16 }
 0x43a   : > { %7139 = vst [vmem:[#allocation4 + $0x98] sm:$0xf] %v7100_v37  ;;  %7140 = vst [vmem:[#allocation4 + $0xa4] sm:$0xf] %v7103_v16  ;;  %v5032_v23 = vrot.slane %v5031_v21, 4  ;;  %9076 = vmatprep.mubr.bf16.mxu0 %v9465_v54  ;;  %v5535_v45 = vshrl.u32 %v5351_v52, 16  ;;  %v7110_v37 = vsel %vm10290_vm3, %v7108_v5, %v7109_v63 }
 0x43b   : > { %v5042_v49 = vrot.slane %v5041_v18, 4  ;;  %v5541_v61 = vshll.u32 %v5352_v13, 16  ;;  %v5524_v17 = vrot.slane %v5522_v40, 4  ;;  %v5527_v58 = vrot.slane %v5525_v62, 5  ;;  %v6780_v0 = vld [vmem:[#allocation3 + $0x6c] sm:$0xf] }
 0x43c   : > { %v5037_v60 = vsel %vm10275_vm1, %v5032_v23, %v5036_v42  ;;  %v5533_v9 = vrot.slane %v5531_v4, 5  ;;  %v5537_v21 = vrot.slane %v5535_v45, 4  ;;  %v6781_v55 = vld [vmem:[#allocation3 + $0x70] sm:$0xf]  ;;  %v6782_v52 = vld [vmem:[#allocation3 + $0x74] sm:$0x1] }
 0x43d   : > { %v5047_v16 = vsel %vm10275_vm1, %v5042_v49, %v5046_v32  ;;  %5078 = vst [vmem:[#allocation4 + $0xac] sm:$0xf] %v5037_v60  ;;  %v5543_v30 = vrot.slane %v5541_v61, 5  ;;  %v5528_v33 = vor.u32 %v5527_v58, %v5524_v17  ;;  %v6952_v54 = vshrl.u32 %v6780_v0, 16  ;;  %v5311_v26 = vld [vmem:[#allocation3 + $0x60] sm:$0xf] }
 0x43e   : > { %5079 = vst [vmem:[#allocation4 + $0xb8] sm:$0xf] %v5047_v16  ;;  %v6955_v18 = vshll.u32 %v6780_v0, 16  ;;  %v6961_v42 = vshll.u32 %v6781_v55, 16  ;;  %v9467_v13 = vld [vmem:[#allocation4 + $0xb0] ss:$12 sps:$4 sm:$0xff]   ;;  %v5538_v23 = vor.u32 %v5537_v21, %v5533_v9 }
 0x43f   : > { %v6965_v40 = vshrl.u32 %v6781_v55, 16  ;;  %v6971_v62 = vshll.u32 %v6782_v52, 16  ;;  %7141 = vst [vmem:[#allocation4 + $0xb0] sm:$0xf] %v7107_v19  ;;  %7142 = vst [vmem:[#allocation4 + $0xbc] sm:$0xf] %v7110_v37  ;;  %9077 = vmatmul.mubr.bf16.gmra.mxu0 %v9467_v13 }
 0x440   : > { %v5529_v63 = vrot.slane %v5528_v33, 4  ;;  %v6954_v5 = vrot.slane %v6952_v54, 4  ;;  %v6957_v32 = vrot.slane %v6955_v18, 5  ;;  %v6963_v4 = vrot.slane %v6961_v42, 5  ;;  %v5312_v49 = vld [vmem:[#allocation3 + $0x64] sm:$0xf]  ;;  %9096 = vmatprep.mubr.bf16.mxu0 %v8259_v56 }
 0x441   : > { %v5539_v45 = vrot.slane %v5538_v23, 4  ;;  %v6967_v61 = vrot.slane %v6965_v40, 4  ;;  %v6973_v60 = vrot.slane %v6971_v62, 5  ;;  %v9476_v21 = vld [vmem:[#allocation12 + $0x1b8] sm:$0xff]   ;;  %v9477_v52 = vld [vmem:[#allocation12 + $0x1f0] sm:$0xff]   ;;  %v9480_v54 = vld [vmem:[#allocation12 + $0x1e8] sm:$0xff]  }
 0x442   : > { %v5534_v17 = vsel %vm10275_vm1, %v5529_v63, %v5533_v9  ;;  %v6958_v58 = vor.u32 %v6957_v32, %v6954_v5  ;;  %v9478_v56 = vld [vmem:[#allocation12 + $0x1b0] sm:$0xff]   ;;  %v6741_v9 = vld [vmem:[#allocation3 + $0x6c] sm:$0xf]  ;;  %v9481_v23 = vld [vmem:[#allocation12 + $0x1a8] sm:$0xff]   ;;  %v12105_v32 = vcombine.low %v11291_v46, %v11294_v2 }
 0x443   : > { %v5544_v19 = vsel %vm10275_vm1, %v5539_v45, %v5543_v30  ;;  %v6968_v0 = vor.u32 %v6967_v61, %v6963_v4  ;;  %v6742_v30 = vld [vmem:[#allocation3 + $0x70] sm:$0xf]  ;;  %v9488_v63 = vld [vmem:[#allocation12 + $0x190] sm:$0xff]   ;;  %v12108_v45 = vcombine.high %v11422_v3, %v11424_v1 }
 0x444   : > { %v11638_v37 = vld [vmem:[#allocation4 + $0xa8] sm:$0xff]  ;;  %v6959_v16 = vrot.slane %v6958_v58, 4  ;;  %v9496_v5 = vld [vmem:[#allocation4 + $0x4] ss:$12 sps:$4 sm:$0xff]   ;;  %v9508_v61 = vld [vmem:[#allocation12 + $0x208] sm:$0xff]  }
 0x445   : > { %v11640_v55 = vld [vmem:[#allocation4 + $0xb4] sm:$0xff]  ;;  %5327 = vst [vmem:[#allocation4 + $0xa8] sm:$0xf] %v5311_v26  ;;  %5575 = vst [vmem:[#allocation4 + $0xac] sm:$0xf] %v5534_v17  ;;  %v6969_v33 = vrot.slane %v6968_v0, 4 }
 0x446   : > { %5328 = vst [vmem:[#allocation4 + $0xb4] sm:$0xf] %v5312_v49  ;;  %5576 = vst [vmem:[#allocation4 + $0xb8] sm:$0xf] %v5544_v19  ;;  %v8279_v53 = vcombine.high %v11638_v37, %v11640_v55  ;;  %v8278_v8 = vcombine.low %v11638_v37, %v11640_v55  ;;  %v6964_v18 = vsel %vm10275_vm1, %v6959_v16, %v6963_v4  ;;  %v9482_v26 = vld [vmem:[#allocation12 + $0x1e0] sm:$0xff]   ;;  %v9500_v4 = vld [vmem:[#allocation12 + $0x218] sm:$0xff]  }
 0x447   : > { %9097 = vmatmul.mubr.bf16.vlgmr.msra.gmra.mxu0 %v8262_v12  ;;  %v6974_v42 = vsel %vm10275_vm1, %v6969_v33, %v6973_v60  ;;  %v9485_v12 = vld [vmem:[#allocation12 + $0x1d8] sm:$0xff]   ;;  %v9493_v49 = vld [vmem:[#allocation12 + $0x180] sm:$0xff]   ;;  %v9501_v60 = vld [vmem:[#allocation4 + $0x18] ss:$12 sps:$4 sm:$0xff]   ;;  %v12109_v19 = vcombine.low %v11422_v3, %v11424_v1  ;;  %v12111_v3 = vcombine.low %v11458_v39, %v11462_v36 }
 0x448   : > { %8861 = vmatpush3.bf16.msra.mxu0 %v9476_v21  ;;  %9100 = vmatprep.mubr.bf16.mxu0 %v8265_v7  ;;  %v8277_v7 = vcombine.low %v11600_v34, %v11606_v29  ;;  %v9490_v34 = vld [vmem:[#allocation12 + $0x1c8] sm:$0xff]   ;;  %v9497_v29 = vld [vmem:[#allocation12 + $0x220] sm:$0xff]  }
 0x449   : > { %8862 = vmatprep.subr.bf16.mxu0 %v9477_v52  ;;  %v9512_v17 = vld [vmem:[#allocation12 + $0x200] sm:$0xff]   ;;  %v9506_v52 = vld [vmem:[#allocation4 + $0x4c] ss:$12 sps:$4 sm:$0xff]  }
 0x44a   : > { %v9502_v58 = vld [vmem:[#allocation4 + $0x34] ss:$12 sps:$4 sm:$0xff]   ;;  %v9505_v33 = vld [vmem:[#allocation4 + $0x30] ss:$12 sps:$4 sm:$0xff]  }
 0x44b   : > { %v9522_v37 = vld [vmem:[#allocation4 + $0x50] ss:$12 sps:$4 sm:$0xff]  }
 0x44c   : > { %v5741_v13 = vld [vmem:[#allocation4 + $0xa8] sm:$0xff]  ;;  %8863 = vmatpush3.bf16.msra.mxu0 %v9478_v56 }
 0x44d   : > { %v5743_v40 = vld [vmem:[#allocation4 + $0xb4] sm:$0xff]  ;;  %6757 = vst [vmem:[#allocation4 + $0xa8] sm:$0xf] %v6741_v9  ;;  %8864 = vmatprep.subr.bf16.mxu0 %v9480_v54  ;;  %v12112_v9 = vcombine.high %v11539_v10, %v11541_v22 }
 0x44e   : > { %v9471_v62 = vld [vmem:[#allocation4 + $0xac] ss:$12 sps:$4 sm:$0xff]   ;;  %6758 = vst [vmem:[#allocation4 + $0xb4] sm:$0xf] %v6742_v30  ;;  %v8230_v31 = vcombine.low %v5741_v13, %v5743_v40  ;;  %v9509_v30 = vld [vmem:[#allocation4 + $0x48] ss:$12 sps:$4 sm:$0xff]  }
 0x44f   : > { %7005 = vst [vmem:[#allocation4 + $0xac] sm:$0xf] %v6964_v18  ;;  %7006 = vst [vmem:[#allocation4 + $0xb8] sm:$0xf] %v6974_v42  ;;  %6154 = vmatprep.mubr.bf16.mxu1 %v9471_v62  ;;  %9101 = vmatmul.mubr.bf16.gmra.mxu0 %v8268_v28  ;;  %v12103_v28 = vcombine.high %v11291_v46, %v11294_v2  ;;  %v9498_v46 = vld [vmem:[#allocation4 + $0x1c] ss:$12 sps:$4 sm:$0xff]   ;;  %v12107_v2 = vcombine.low %v11324_v41, %v11328_v35 }
 0x450   : > { %6155 = vmatmul.mubr.bf16.gmra.mxu1 %v8230_v31  ;;  %8865 = vmatpush3.bf16.msra.mxu0 %v9481_v23  ;;  %v12110_v41 = vcombine.high %v11458_v39, %v11462_v36  ;;  %v9510_v18 = vld [vmem:[#allocation4 + $0x64] ss:$12 sps:$4 sm:$0xff]   ;;  %v12113_v42 = vcombine.low %v11539_v10, %v11541_v22  ;;  %v12114_v23 = vcombine.high %v11569_v11, %v11573_v57  ;;  %v9515_v31 = vld [vmem:[#allocation4 + $0x7c] ss:$12 sps:$4 sm:$0xff]  }
 0x451   : > { %6564 = vmatprep.mubr.bf16.mxu1 %v8258_v59  ;;  %9104 = vmatprep.mubr.bf16.mxu0 %v12101_v14  ;;  %v12102_v59 = vcombine.low %v11204_v20, %v11212_v48  ;;  %v9491_v20 = vld [vmem:[#allocation12 + $0x188] sm:$0xff]   ;;  %v8280_v48 = vcombine.low %v11611_v50, %v11621_v43  ;;  %v9494_v50 = vld [vmem:[#allocation4] ss:$12 sps:$4 sm:$0xff]   ;;  %v9514_v22 = vld [vmem:[#allocation4 + $0x8] ss:$12 sps:$4 sm:$0xff]  }
 0x452   : > { %8866 = vmatprep.subr.bf16.mxu0 %v9482_v26  ;;  %v9504_v43 = vld [vmem:[#allocation12 + $0x210] sm:$0xff]  }
 0x453   : > { %v9513_v26 = vld [vmem:[#allocation4 + $0x60] ss:$12 sps:$4 sm:$0xff]  }
 0x454   : > { %8867 = vmatpush3.bf16.msra.mxu0 %v9483_v15  ;;  %v12115_v15 = vcombine.low %v11569_v11, %v11573_v57 }
 0x455   : > { %8868 = vmatprep.subr.bf16.mxu0 %v9485_v12  ;;  %v9518_v12 = vld [vmem:[#allocation4 + $0x78] ss:$12 sps:$4 sm:$0xff]  }
 0x457   : > { %9105 = vmatmul.mubr.bf16.gmra.mxu0 %v12104_v24  ;;  %v9525_v24 = vld [vmem:[#allocation4 + $0xac] ss:$12 sps:$4 sm:$0xff]  }
 0x458   : > { %6565 = vmatmul.mubr.bf16.vlgmr.msra.gmra.mxu1 %v12102_v59  ;;  %8869 = vmatpush3.bf16.msra.mxu0 %v9486_v51  ;;  %v9520_v51 = vld [vmem:[#allocation4 + $0x94] ss:$12 sps:$4 sm:$0xff]  }
 0x459   : > { %9113 = vmatpush3.bf16.msra.mxu1 %v9531_v44  ;;  %6572 = vmatprep.mubr.bf16.mxu1 %v12103_v28  ;;  %v9519_v44 = vld [vmem:[#allocation4 + $0x38] ss:$12 sps:$4 sm:$0xff]   ;;  %v9523_v28 = vld [vmem:[#allocation4 + $0x90] ss:$12 sps:$4 sm:$0xff]  }
 0x45a   : > { %9114 = vmatprep.subr.bf16.mxu1 %v9484_v38  ;;  %9108 = vmatprep.mubr.bf16.mxu0 %v8277_v7 }
 0x45b   : > { %8870 = vmatprep.subr.bf16.mxu0 %v9487_v47 }
 0x45c   : > { %8871 = vmatpush3.bf16.msra.mxu0 %v9488_v63 }
 0x45d   : > { %9115 = vmatpush3.bf16.msra.mxu1 %v9484_v38  ;;  %8872 = vmatprep.subr.bf16.mxu0 %v9490_v34  ;;  %v9528_v34 = vld [vmem:[#allocation4 + $0xa8] ss:$12 sps:$4 sm:$0xff]  }
 0x45e   : > { %9116 = vmatprep.subr.bf16.mxu1 %v9489_v27 }
 0x45f   : > { %9109 = vmatmul.mubr.bf16.gmra.mxu0 %v8280_v48 }
 0x460   : > { %6573 = vmatmul.mubr.bf16.gmra.mxu1 %v12105_v32  ;;  %8873 = vmatpush3.bf16.msra.mxu0 %v9491_v20  ;;  %v9529_v32 = vld [vmem:[#allocation4 + $0x98] ss:$12 sps:$4 sm:$0xff]  }
 0x461   : > { %6580 = vmatprep.mubr.bf16.mxu1 %v12106_v6  ;;  %9117 = vmatpush3.bf16.msra.mxu1 %v9489_v27  ;;  %v8716_v35 = vpop.f32.mrf.mxu1 }
 0x462   : > { %9118 = vmatprep.subr.bf16.mxu1 %v9497_v29  ;;  %7528 = vmatprep.mubr.bf16.mxu0 %v9496_v5  ;;  %v9527_v5 = vld [vmem:[#allocation4 + $0x80] ss:$12 sps:$4 sm:$0xff]  }
 0x463   : > { %8874 = vmatprep.subr.bf16.mxu0 %v9492_v25  ;;  %v8717_v0 = vpop.f32.mrf.mxu1 }
 0x464   : > { %8875 = vmatpush3.bf16.msra.mxu0 %v9493_v49  ;;  %v8718_v16 = vadd.f32 %v8717_v0, %v8716_v35  ;;  %v9530_v49 = vld [vmem:[#allocation4 + $0xb0] ss:$12 sps:$4 sm:$0xff]  }
 0x465   : > { %9119 = vmatpush3.bf16.msra.mxu1 %v9497_v29  ;;  %v8719_v21 = vpop.f32.mrf.mxu1 }
 0x466   : > { %9120 = vmatprep.subr.bf16.mxu1 %v9500_v4 }
 0x467   : > { %7529 = vmatmul.mubr.bf16.vlgmr.msra.gmra.mxu0 %v9494_v50  ;;  %v8720_v56 = vpop.f32.mrf.mxu1 }
 0x468   : > { %6581 = vmatmul.mubr.bf16.gmra.mxu1 %v12107_v2  ;;  %7536 = vmatprep.mubr.bf16.mxu0 %v9498_v46  ;;  %v8721_v1 = vadd.f32 %v8720_v56, %v8719_v21 }
 0x469   : > { %6588 = vmatprep.mubr.bf16.mxu1 %v12108_v45  ;;  %9121 = vmatpush3.bf16.msra.mxu1 %v9500_v4 }
 0x46a   : > { %9122 = vmatprep.subr.bf16.mxu1 %v9504_v43 }
 0x46c   : > { %v9066_v54 = vpop.f32.mrf.mxu0 }
 0x46d   : > { %9123 = vmatpush3.bf16.msra.mxu1 %v9504_v43 }
 0x46e   : > { %9124 = vmatprep.subr.bf16.mxu1 %v9508_v61  ;;  %v6197_v13 = vpop.f32.mrf.mxu0 }
 0x46f   : > { %7537 = vmatmul.mubr.bf16.gmra.mxu0 %v9501_v60  ;;  %v11708_v39 = vadd.f32 %v8718_v16, %v6197_v13 }
 0x470   : > { %6589 = vmatmul.mubr.bf16.gmra.mxu1 %v12109_v19  ;;  %7544 = vmatprep.mubr.bf16.mxu0 %v9502_v58  ;;  %v9067_v36 = vpop.f32.mrf.mxu0 }
 0x471   : > { %6596 = vmatprep.mubr.bf16.mxu1 %v12110_v41  ;;  %9125 = vmatpush3.bf16.msra.mxu1 %v9508_v61 }
 0x472   : > { %9126 = vmatprep.subr.bf16.mxu1 %v9512_v17  ;;  %v6200_v40 = vpop.f32.mrf.mxu0 }
 0x473   : > { %v11710_v62 = vadd.f32 %v8721_v1, %v6200_v40 }
 0x475   : > { %9127 = vmatpush3.bf16.msra.mxu1 %v9512_v17 }
 0x477   : > { %7545 = vmatmul.mubr.bf16.gmra.mxu0 %v9505_v33 }
 0x478   : > { %6597 = vmatmul.mubr.bf16.gmra.mxu1 %v12111_v3  ;;  %7552 = vmatprep.mubr.bf16.mxu0 %v9506_v52 }
 0x479   : > { %6604 = vmatprep.mubr.bf16.mxu1 %v12112_v9 }
 0x47c   : > { %v8722_v10 = vpop.f32.mrf.mxu1 }
 0x47e   : > { %v8723_v14 = vpop.f32.mrf.mxu1 }
 0x47f   : > { %7553 = vmatmul.mubr.bf16.gmra.mxu0 %v9509_v30  ;;  %v8724_v38 = vadd.f32 %v8723_v14, %v8722_v10 }
 0x480   : > { %6605 = vmatmul.mubr.bf16.gmra.mxu1 %v12113_v42  ;;  %7560 = vmatprep.mubr.bf16.mxu0 %v9510_v18  ;;  %v8725_v7 = vpop.f32.mrf.mxu1 }
 0x481   : > { %6612 = vmatprep.mubr.bf16.mxu1 %v12114_v23  ;;  %v11721_v59 = vadd.f32 %v9066_v54, %v8724_v38 }
 0x482   : > { %v8726_v11 = vpop.f32.mrf.mxu1 }
 0x483   : > { %v8727_v57 = vadd.f32 %v8726_v11, %v8725_v7 }
 0x485   : > { %v11723_v47 = vadd.f32 %v9067_v36, %v8727_v57 }
 0x487   : > { %7561 = vmatmul.mubr.bf16.gmra.mxu0 %v9513_v26 }
 0x488   : > { %6613 = vmatmul.mubr.bf16.gmra.mxu1 %v12115_v15  ;;  %7568 = vmatprep.mubr.bf16.mxu0 %v9515_v31 }
 0x489   : > { %6620 = vmatprep.mubr.bf16.mxu1 %v8279_v53  ;;  %v9517_v53 = vld [vmem:[#allocation4 + $0x20] ss:$12 sps:$4 sm:$0xff]  }
 0x48f   : > { %7569 = vmatmul.mubr.bf16.gmra.mxu0 %v9518_v12  ;;  %v8728_v27 = vpop.f32.mrf.mxu1 }
 0x490   : > { %6621 = vmatmul.mubr.bf16.gmra.mxu1 %v8278_v8  ;;  %7576 = vmatprep.mubr.bf16.mxu0 %v9520_v51  ;;  %v9524_v8 = vld [vmem:[#allocation4 + $0x68] ss:$12 sps:$4 sm:$0xff]  }
 0x491   : > { %9128 = vmatprep.mubr.bf16.mxu1 %v9514_v22  ;;  %v8729_v55 = vpop.f32.mrf.mxu1 }
 0x492   : > { %v8730_v63 = vadd.f32 %v8729_v55, %v8728_v27 }
 0x493   : > { %v8731_v20 = vpop.f32.mrf.mxu1 }
 0x495   : > { %v8732_v48 = vpop.f32.mrf.mxu1 }
 0x496   : > { %v8733_v29 = vadd.f32 %v8732_v48, %v8731_v20 }
 0x497   : > { %7577 = vmatmul.mubr.bf16.gmra.mxu0 %v9523_v28 }
 0x498   : > { %9129 = vmatmul.mubr.bf16.vlgmr.msra.gmra.mxu1 %v9517_v53  ;;  %7584 = vmatprep.mubr.bf16.mxu0 %v9525_v24 }
 0x499   : > { %9132 = vmatprep.mubr.bf16.mxu1 %v9519_v44 }
 0x49f   : > { %7585 = vmatmul.mubr.bf16.gmra.mxu0 %v9528_v34  ;;  %v9070_v25 = vpop.f32.mrf.mxu0 }
 0x4a0   : > { %9133 = vmatmul.mubr.bf16.gmra.mxu1 %v9522_v37 }
 0x4a1   : > { %9136 = vmatprep.mubr.bf16.mxu1 %v9524_v8  ;;  %v6213_v6 = vpop.f32.mrf.mxu0 }
 0x4a2   : > { %v11725_v4 = vadd.f32 %v8730_v63, %v6213_v6 }
 0x4a3   : > { %v9071_v50 = vpop.f32.mrf.mxu0 }
 0x4a5   : > { %v6216_v43 = vpop.f32.mrf.mxu0 }
 0x4a6   : > { %v11727_v46 = vadd.f32 %v8733_v29, %v6216_v43 }
 0x4a8   : > { %9137 = vmatmul.mubr.bf16.gmra.mxu1 %v9527_v5 }
 0x4a9   : > { %9140 = vmatprep.mubr.bf16.mxu1 %v9529_v32 }
 0x4ae   : > { %v8734_v2 = vpop.f32.mrf.mxu1 }
 0x4b0   : > { %9141 = vmatmul.mubr.bf16.gmra.mxu1 %v9530_v49  ;;  %v8735_v45 = vpop.f32.mrf.mxu1 }
 0x4b1   : > { %v8736_v61 = vadd.f32 %v8735_v45, %v8734_v2 }
 0x4b2   : > { %v8737_v60 = vpop.f32.mrf.mxu1 }
 0x4b3   : > { %v11729_v17 = vadd.f32 %v9070_v25, %v8736_v61 }
 0x4b4   : > { %v8738_v58 = vpop.f32.mrf.mxu1 }
 0x4b5   : > { %v8739_v19 = vadd.f32 %v8738_v58, %v8737_v60 }
 0x4b7   : > { %v11731_v41 = vadd.f32 %v9071_v50, %v8739_v19 }
 0x4c0   : > { %v8740_v35 = vpop.f32.mrf.mxu1 }
 0x4c2   : > { %v8741_v0 = vpop.f32.mrf.mxu1 }
 0x4c3   : > { %v8742_v16 = vadd.f32 %v8741_v0, %v8740_v35 }
 0x4c4   : > { %v8743_v21 = vpop.f32.mrf.mxu1 }
 0x4c6   : > { %v8744_v33 = vpop.f32.mrf.mxu1 }
 0x4c7   : > { %v8745_v52 = vadd.f32 %v8744_v33, %v8743_v21 }
 0x4d0   : > { %v9074_v56 = vpop.f32.mrf.mxu0 }
 0x4d2   : > { %v6229_v3 = vpop.f32.mrf.mxu0 }
 0x4d3   : > { %v11733_v1 = vadd.f32 %v8742_v16, %v6229_v3 }
 0x4d4   : > { %v9075_v9 = vpop.f32.mrf.mxu0 }
 0x4d6   : > { %v6232_v30 = vpop.f32.mrf.mxu0 }
 0x4d7   : > { %v11735_v54 = vadd.f32 %v8745_v52, %v6232_v30 }
 0x4df   : > { %v8746_v18 = vpop.f32.mrf.mxu1 }
 0x4e1   : > { %v8747_v42 = vpop.f32.mrf.mxu1 }
 0x4e2   : > { %v8748_v13 = vadd.f32 %v8747_v42, %v8746_v18 }
 0x4e3   : > { %v8749_v23 = vpop.f32.mrf.mxu1 }
 0x4e4   : > { %v11737_v36 = vadd.f32 %v9074_v56, %v8748_v13 }
 0x4e5   : > { %v8750_v40 = vpop.f32.mrf.mxu1 }
 0x4e6   : > { %v8751_v26 = vadd.f32 %v8750_v40, %v8749_v23 }
 0x4e8   : > { %v11739_v31 = vadd.f32 %v9075_v9, %v8751_v26 }
 0x4f1   : > { %v8752_v15 = vpop.f32.mrf.mxu1 }
 0x4f3   : > { %v8753_v10 = vpop.f32.mrf.mxu1 }
 0x4f4   : > { %v8754_v22 = vadd.f32 %v8753_v10, %v8752_v15 }
 0x4f5   : > { %v8755_v14 = vpop.f32.mrf.mxu1 }
 0x4f7   : > { %v8756_v12 = vpop.f32.mrf.mxu1 }
 0x4f8   : > { %v8757_v38 = vadd.f32 %v8756_v12, %v8755_v14 }
 0x4ff   : > { %v9078_v51 = vpop.f32.mrf.mxu0 }
 0x501   : > { %v6245_v7 = vpop.f32.mrf.mxu0 }
 0x502   : > { %v11741_v11 = vadd.f32 %v8754_v22, %v6245_v7 }
 0x503   : > { %v9079_v57 = vpop.f32.mrf.mxu0 }
 0x505   : > { %v6248_v53 = vpop.f32.mrf.mxu0 }
 0x506   : > { %v11743_v44 = vadd.f32 %v8757_v38, %v6248_v53 }
 0x507   : > { %v9098_v28 = vpop.f32.mrf.mxu0 }
 0x509   : > { %v6663_v24 = vpop.f32.mrf.mxu0 }
 0x50b   : > { %v9099_v27 = vpop.f32.mrf.mxu0 }
 0x50d   : > { %v6666_v37 = vpop.f32.mrf.mxu0 }
 0x50f   : > { %v11745_v8 = vpop.f32.mrf.mxu0 }
 0x510   : > { %v8758_v55 = vpop.f32.mrf.mxu1 }
 0x511   : > { %v6679_v20 = vpop.f32.mrf.mxu0 }
 0x512   : > { %v8759_v63 = vpop.f32.mrf.mxu1 }
 0x513   : > { %v8760_v34 = vadd.f32 %v8759_v63, %v8758_v55  ;;  %v11749_v5 = vpop.f32.mrf.mxu0 }
 0x514   : > { %v8761_v48 = vpop.f32.mrf.mxu1 }
 0x515   : > { %v11747_v29 = vadd.f32 %v9078_v51, %v8760_v34  ;;  %v6682_v6 = vpop.f32.mrf.mxu0 }
 0x516   : > { %v8762_v32 = vpop.f32.mrf.mxu1 }
 0x517   : > { %v8763_v25 = vadd.f32 %v8762_v32, %v8761_v48  ;;  %v11753_v2 = vpop.f32.mrf.mxu0 }
 0x518   : > { %v8796_v49 = vpop.f32.mrf.mxu1 }
 0x519   : > { %v11751_v50 = vadd.f32 %v9079_v57, %v8763_v25  ;;  %v6695_v60 = vpop.f32.mrf.mxu0 }
 0x51a   : > { %v8797_v43 = vpop.f32.mrf.mxu1 }
 0x51b   : > { %v8798_v45 = vadd.f32 %v8797_v43, %v8796_v49  ;;  %v11756_v35 = vpop.f32.mrf.mxu0 }
 0x51c   : > { %v8799_v61 = vpop.f32.mrf.mxu1 }
 0x51d   : > { %v6567_v58 = vadd.f32 %v8798_v45, %v11708_v39  ;;  %v6698_v33 = vpop.f32.mrf.mxu0 }
 0x51e   : > { %v8800_v19 = vpop.f32.mrf.mxu1 }
 0x51f   : > { %v8801_v0 = vadd.f32 %v8800_v19, %v8799_v61  ;;  %v11758_v16 = vadd.f32 %v6663_v24, %v6567_v58  ;;  %v11761_v3 = vpop.f32.mrf.mxu0 }
 0x520   : > { %v8802_v21 = vpop.f32.mrf.mxu1 }
 0x521   : > { %v6570_v52 = vadd.f32 %v8801_v0, %v11710_v62  ;;  %v11765_v42 = vpop.f32.mrf.mxu0 }
 0x522   : > { %v8803_v56 = vpop.f32.mrf.mxu1 }
 0x523   : > { %v8804_v9 = vadd.f32 %v8803_v56, %v8802_v21  ;;  %v11763_v30 = vadd.f32 %v6666_v37, %v6570_v52  ;;  %v11768_v23 = vpop.f32.mrf.mxu0 }
 0x524   : > { %v8805_v18 = vpop.f32.mrf.mxu1 }
 0x525   : > { %v6575_v39 = vadd.f32 %v8804_v9, %v11721_v59  ;;  %v11772_v10 = vpop.f32.mrf.mxu0 }
 0x526   : > { %v8806_v13 = vpop.f32.mrf.mxu1 }
 0x527   : > { %v8807_v40 = vadd.f32 %v8806_v13, %v8805_v18  ;;  %v11770_v26 = vadd.f32 %v9098_v28, %v6575_v39  ;;  %v11775_v14 = vpop.f32.mrf.mxu0 }
 0x528   : > { %v8808_v15 = vpop.f32.mrf.mxu1 }
 0x529   : > { %v6578_v62 = vadd.f32 %v8807_v40, %v11723_v47  ;;  %v11779_v7 = vpop.f32.mrf.mxu0 }
 0x52a   : > { %v8809_v22 = vpop.f32.mrf.mxu1 }
 0x52b   : > { %v8810_v12 = vadd.f32 %v8809_v22, %v8808_v15  ;;  %v11777_v38 = vadd.f32 %v9099_v27, %v6578_v62  ;;  %v11782_v53 = vpop.f32.mrf.mxu0 }
 0x52c   : > { %v8811_v51 = vpop.f32.mrf.mxu1 }
 0x52d   : > { %v6583_v59 = vadd.f32 %v8810_v12, %v11725_v4  ;;  %v11786_v55 = vpop.f32.mrf.mxu0 }
 0x52e   : > { %v8812_v57 = vpop.f32.mrf.mxu1 }
 0x52f   : > { %v8813_v28 = vadd.f32 %v8812_v57, %v8811_v51  ;;  %v11784_v24 = vadd.f32 %v6679_v20, %v6583_v59  ;;  %v11789_v34 = vpop.f32.mrf.mxu0 }
 0x530   : > { %v8814_v37 = vpop.f32.mrf.mxu1 }
 0x531   : > { %v6586_v47 = vadd.f32 %v8813_v28, %v11727_v46  ;;  %v8883_v25 = vpop.f32.mrf.mxu0 }
 0x532   : > { %v8815_v63 = vpop.f32.mrf.mxu1 }
 0x533   : > { %v8816_v27 = vadd.f32 %v8815_v63, %v8814_v37  ;;  %v11791_v48 = vadd.f32 %v6682_v6, %v6586_v47  ;;  %v11794_v43 = vpop.f32.mrf.mxu0 }
 0x534   : > { %v8817_v32 = vpop.f32.mrf.mxu1 }
 0x535   : > { %v6591_v4 = vadd.f32 %v8816_v27, %v11729_v17  ;;  %v11799_v58 = vpop.f32.mrf.mxu0 }
 0x536   : > { %v8818_v49 = vpop.f32.mrf.mxu1 }
 0x537   : > { %v8819_v20 = vadd.f32 %v8818_v49, %v8817_v32  ;;  %v11797_v45 = vadd.f32 %v11745_v8, %v6591_v4  ;;  %v11802_v0 = vpop.f32.mrf.mxu0 }
 0x538   : > { %v8820_v61 = vpop.f32.mrf.mxu1 }
 0x539   : > { %v6594_v46 = vadd.f32 %v8819_v20, %v11731_v41  ;;  %v11807_v52 = vpop.f32.mrf.mxu0 }
 0x53a   : > { %v8821_v19 = vpop.f32.mrf.mxu1 }
 0x53b   : > { %v8822_v6 = vadd.f32 %v8821_v19, %v8820_v61  ;;  %v11805_v21 = vadd.f32 %v11749_v5, %v6594_v46  ;;  %v11810_v8 = vpop.f32.mrf.mxu0 }
 0x53c   : > { %v8823_v17 = vpop.f32.mrf.mxu1 }
 0x53d   : > { %v6599_v56 = vadd.f32 %v8822_v6, %v11733_v1  ;;  %v11814_v41 = vpop.f32.mrf.mxu0 }
 0x53e   : > { %v8824_v9 = vpop.f32.mrf.mxu1 }
 0x53f   : > { %v8825_v18 = vadd.f32 %v8824_v9, %v8823_v17  ;;  %v11812_v39 = vadd.f32 %v6695_v60, %v6599_v56  ;;  %v8894_v62 = vpop.f32.mrf.mxu0 }
 0x540   : > { %v8826_v13 = vpop.f32.mrf.mxu1 }
 0x541   : > { %v6602_v40 = vadd.f32 %v8825_v18, %v11735_v54  ;;  %v8895_v51 = vpop.f32.mrf.mxu0 }
 0x542   : > { %v8827_v15 = vpop.f32.mrf.mxu1 }
 0x543   : > { %v8828_v5 = vadd.f32 %v8827_v15, %v8826_v13  ;;  %v11817_v22 = vadd.f32 %v6698_v33, %v6602_v40  ;;  %v11820_v57 = vpop.f32.mrf.mxu0 }
 0x544   : > { %v8829_v12 = vpop.f32.mrf.mxu1 }
 0x545   : > { %v6607_v1 = vadd.f32 %v8828_v5, %v11737_v36  ;;  %v11825_v47 = vpop.f32.mrf.mxu0 }
 0x546   : > { %v8830_v59 = vpop.f32.mrf.mxu1 }
 0x547   : > { %v8831_v28 = vadd.f32 %v8830_v59, %v8829_v12  ;;  %v11823_v60 = vadd.f32 %v11753_v2, %v6607_v1  ;;  %v11828_v27 = vpop.f32.mrf.mxu0 }
 0x548   : > { %v8832_v37 = vpop.f32.mrf.mxu1 }
 0x549   : > { %v6610_v54 = vadd.f32 %v8831_v28, %v11739_v31  ;;  %v11833_v4 = vpop.f32.mrf.mxu0 }
 0x54a   : > { %v8833_v63 = vpop.f32.mrf.mxu1 }
 0x54b   : > { %v8834_v33 = vadd.f32 %v8833_v63, %v8832_v37  ;;  %v11831_v32 = vadd.f32 %v11756_v35, %v6610_v54  ;;  %v11836_v2 = vpop.f32.mrf.mxu0 }
 0x54c   : > { %v8835_v36 = vpop.f32.mrf.mxu1 }
 0x54d   : > { %v6615_v49 = vadd.f32 %v8834_v33, %v11741_v11  ;;  %v11841_v19 = vpop.f32.mrf.mxu0  ;;  %v8881_v33 = vadd.f32 %v11786_v55, %v11782_v53  ;;  %v8890_v53 = vadd.f32 %v11807_v52, %v11802_v0  ;;  %v7732_v55 = vld [vmem:[%s9972_s19 + $0x18] sm:$0xff] }
 0x54e   : > { %v8836_v20 = vpop.f32.mrf.mxu1 }
 0x54f   : > { %v8837_v61 = vadd.f32 %v8836_v20, %v8835_v36  ;;  %v11839_v46 = vadd.f32 %v11765_v42, %v6615_v49  ;;  %v11844_v35 = vpop.f32.mrf.mxu0  ;;  %v8884_v42 = vadd.f32 %v8883_v25, %v11789_v34 }
 0x550   : > { %v8838_v31 = vpop.f32.mrf.mxu1 }
 0x551   : > { %v6618_v6 = vadd.f32 %v8837_v61, %v11743_v44  ;;  %v8907_v18 = vpop.f32.mrf.mxu0 }
 0x552   : > { %v8839_v17 = vpop.f32.mrf.mxu1 }
 0x553   : > { %v8840_v56 = vadd.f32 %v8839_v17, %v8838_v31  ;;  %v11847_v9 = vadd.f32 %v11772_v10, %v6618_v6  ;;  %v11850_v15 = vpop.f32.mrf.mxu0  ;;  %v8878_v10 = vadd.f32 %v11779_v7, %v11775_v14 }
 0x554   : > { %v8841_v11 = vpop.f32.mrf.mxu1 }
 0x555   : > { %v6623_v13 = vadd.f32 %v8840_v56, %v11747_v29  ;;  %v11856_v1 = vpop.f32.mrf.mxu0  ;;  %v11864_v29 = vld [vmem:[%s12116_s7] ss:$0 sm:$0xff] }
 0x556   : > { %v8842_v40 = vpop.f32.mrf.mxu1 }
 0x557   : > { %v8843_v5 = vadd.f32 %v8842_v40, %v8841_v11  ;;  %v11854_v44 = vadd.f32 %v11761_v3, %v6623_v13  ;;  %v11866_v25 = vpop.f32.mrf.mxu0  ;;  %v8887_v3 = vadd.f32 %v11799_v58, %v11794_v43  ;;  %v8896_v58 = vadd.f32 %v8895_v51, %v8894_v62  ;;  %v7730_v40 = vld [vmem:[%s9972_s19 + $0x8] sm:$0xff] }
 0x558   : > { %v9130_v12 = vpop.f32.mrf.mxu1 }
 0x559   : > { %v6626_v59 = vadd.f32 %v8843_v5, %v11751_v50  ;;  %v7636_v28 = vadd.f32 %v9130_v12, %v8884_v42  ;;  %v7731_v50 = vld [vmem:[%s9972_s19 + $0x10] sm:$0xff]  ;;  %v11875_v63 = vpop.f32.mrf.mxu0 }
 0x55a   : > { %v7627_v34 = vpop.f32.mrf.mxu1 }
 0x55b   : > { %v7692_v37 = vadd.f32 %v7636_v28, %v11770_v26  ;;  %v7628_v54 = vadd.f32 %v8878_v10, %v7627_v34  ;;  %v11872_v14 = vadd.f32 %v11768_v23, %v6626_v59  ;;  %v7729_v26 = vld [vmem:[%s9972_s19] sm:$0xff]  ;;  %v11882_v23 = vpop.f32.mrf.mxu0  ;;  %v8893_v59 = vadd.f32 %v11814_v41, %v11810_v8 }
 0x55c   : > { %v9131_v7 = vpop.f32.mrf.mxu1 }
 0x55d   : > { %v7715_v36 = vadd.f32 %v11864_v29, %v7692_v37  ;;  %v7690_v49 = vadd.f32 %v7628_v54, %v11758_v16  ;;  %v7639_v43 = vadd.f32 %v9131_v7, %v8887_v3  ;;  %v11889_v16 = vpop.f32.mrf.mxu0  ;;  %v8908_v37 = vadd.f32 %v8907_v18, %v11844_v35  ;;  %v7733_v54 = vld [vmem:[%s9972_s19 + $0x20] sm:$0xff] }
 0x55e   : > { %v7630_v20 = vpop.f32.mrf.mxu1 }
 0x55f   : > { %v7747_v61 = vadd.f32 %v7731_v50, %v7715_v36  ;;  %v7713_v31 = vadd.f32 %v11864_v29, %v7690_v49  ;;  %v7693_v6 = vadd.f32 %v7639_v43, %v11777_v38  ;;  %v7631_v17 = vadd.f32 %v8881_v33, %v7630_v20  ;;  %v8918_v10 = vpop.f32.mrf.mxu0  ;;  %v7736_v49 = vld [vmem:[%s9972_s19 + $0x38] sm:$0xff] }
 0x560   : > { %v9134_v56 = vpop.f32.mrf.mxu1  ;;  %v8899_v38 = vadd.f32 %v11825_v47, %v11820_v57  ;;  %v8902_v36 = vadd.f32 %v11833_v4, %v11828_v27 }
 0x561   : > { %7763 = vst [vmem:[%s10150_s15 + $0x10] sm:$0xff] %v7747_v61  ;;  %v7745_v62 = vadd.f32 %v7729_v26, %v7713_v31  ;;  %v7716_v51 = vadd.f32 %v11864_v29, %v7693_v6  ;;  %v7691_v11 = vadd.f32 %v7631_v17, %v11763_v30  ;;  %v7652_v13 = vadd.f32 %v9134_v56, %v8896_v58  ;;  %v7735_v30 = vld [vmem:[%s9972_s19 + $0x30] sm:$0xff]  ;;  %v8919_v33 = vpop.f32.mrf.mxu0 }
 0x562   : > { %v7643_v42 = vpop.f32.mrf.mxu1  ;;  %v8911_v26 = vadd.f32 %v11856_v1, %v11850_v15  ;;  %v8905_v17 = vadd.f32 %v11841_v19, %v11836_v2 }
 0x563   : > { %7761 = vst [vmem:[%s10150_s15] sm:$0xff] %v7745_v62  ;;  %v7748_v0 = vadd.f32 %v7732_v55, %v7716_v51  ;;  %v7714_v52 = vadd.f32 %v11864_v29, %v7691_v11  ;;  %v7696_v5 = vadd.f32 %v7652_v13, %v11797_v45  ;;  %v7644_v12 = vadd.f32 %v8890_v53, %v7643_v42  ;;  %v8921_v6 = vpop.f32.mrf.mxu0  ;;  %v7737_v51 = vld [vmem:[%s9972_s19 + $0x40] sm:$0xff]  ;;  %v7740_v42 = vld [vmem:[%s9972_s19 + $0x58] sm:$0xff] }
 0x564   : > { %v9135_v28 = vpop.f32.mrf.mxu1  ;;  %v8920_v53 = vadd.f32 %v8919_v33, %v8918_v10  ;;  %v7738_v10 = vld [vmem:[%s9972_s19 + $0x48] sm:$0xff] }
 0x565   : > { %7764 = vst [vmem:[%s10150_s15 + $0x18] sm:$0xff] %v7748_v0  ;;  %v7746_v57 = vadd.f32 %v7730_v40, %v7714_v52  ;;  %v7719_v47 = vadd.f32 %v11864_v29, %v7696_v5  ;;  %v7694_v34 = vadd.f32 %v7644_v12, %v11784_v24  ;;  %v7655_v3 = vadd.f32 %v9135_v28, %v8899_v38  ;;  %v8922_v38 = vpop.f32.mrf.mxu0 }
 0x566   : > { %v7646_v45 = vpop.f32.mrf.mxu1  ;;  %v8914_v40 = vadd.f32 %v11875_v63, %v11866_v25 }
 0x567   : > { %7762 = vst [vmem:[%s10150_s15 + $0x8] sm:$0xff] %v7746_v57  ;;  %v7751_v50 = vadd.f32 %v7735_v30, %v7719_v47  ;;  %v7717_v8 = vadd.f32 %v11864_v29, %v7694_v34  ;;  %v7697_v41 = vadd.f32 %v7655_v3, %v11805_v21  ;;  %v7647_v7 = vadd.f32 %v8893_v59, %v7646_v45  ;;  %v7734_v21 = vld [vmem:[%s9972_s19 + $0x28] sm:$0xff] }
 0x568   : > { %v9138_v24 = vpop.f32.mrf.mxu1  ;;  %v8917_v57 = vadd.f32 %v11889_v16, %v11882_v23 }
 0x569   : > { %7767 = vst [vmem:[%s10150_s15 + $0x30] sm:$0xff] %v7751_v50  ;;  %v7749_v35 = vadd.f32 %v7733_v54, %v7717_v8  ;;  %v7720_v18 = vadd.f32 %v11864_v29, %v7697_v41  ;;  %v7695_v43 = vadd.f32 %v7647_v7, %v11791_v48  ;;  %v7668_v58 = vadd.f32 %v9138_v24, %v8908_v37  ;;  %v7739_v48 = vld [vmem:[%s9972_s19 + $0x50] sm:$0xff]  ;;  %v7744_v41 = vld [vmem:[%s9972_s19 + $0x78] sm:$0xff] }
 0x56a   : > { %v7659_v20 = vpop.f32.mrf.mxu1 }
 0x56b   : > { %7765 = vst [vmem:[%s10150_s15 + $0x20] sm:$0xff] %v7749_v35  ;;  %v7752_v61 = vadd.f32 %v7736_v49, %v7720_v18  ;;  %v7718_v27 = vadd.f32 %v11864_v29, %v7695_v43  ;;  %v7700_v4 = vadd.f32 %v7668_v58, %v11823_v60  ;;  %v7660_v31 = vadd.f32 %v8902_v36, %v7659_v20  ;;  %v7742_v36 = vld [vmem:[%s9972_s19 + $0x68] sm:$0xff] }
 0x56c   : > { %v9139_v55 = vpop.f32.mrf.mxu1 }
 0x56d   : > { %7768 = vst [vmem:[%s10150_s15 + $0x38] sm:$0xff] %v7752_v61  ;;  %v7750_v15 = vadd.f32 %v7734_v21, %v7718_v27  ;;  %v7723_v1 = vadd.f32 %v11864_v29, %v7700_v4  ;;  %v7698_v56 = vadd.f32 %v7660_v31, %v11812_v39  ;;  %v7671_v62 = vadd.f32 %v9139_v55, %v8911_v26 }
 0x56e   : > { %v7662_v60 = vpop.f32.mrf.mxu1 }
 0x56f   : > { %7766 = vst [vmem:[%s10150_s15 + $0x28] sm:$0xff] %v7750_v15  ;;  %v7755_v11 = vadd.f32 %v7739_v48, %v7723_v1  ;;  %v7721_v2 = vadd.f32 %v11864_v29, %v7698_v56  ;;  %v7701_v19 = vadd.f32 %v7671_v62, %v11831_v32  ;;  %v7663_v13 = vadd.f32 %v8905_v17, %v7662_v60 }
 0x570   : > { %v9142_v39 = vpop.f32.mrf.mxu1  ;;  %v8923_v32 = vadd.f32 %v8922_v38, %v8921_v6 }
 0x571   : > { %7771 = vst [vmem:[%s10150_s15 + $0x50] sm:$0xff] %v7755_v11  ;;  %v7753_v0 = vadd.f32 %v7737_v51, %v7721_v2  ;;  %v7724_v52 = vadd.f32 %v11864_v29, %v7701_v19  ;;  %v7699_v5 = vadd.f32 %v7663_v13, %v11817_v22  ;;  %v7684_v12 = vadd.f32 %v9142_v39, %v8920_v53  ;;  %v7743_v22 = vld [vmem:[%s9972_s19 + $0x70] sm:$0xff] }
 0x572   : > { %v7675_v59 = vpop.f32.mrf.mxu1 }
 0x573   : > { %7769 = vst [vmem:[%s10150_s15 + $0x40] sm:$0xff] %v7753_v0  ;;  %v7756_v30 = vadd.f32 %v7740_v42, %v7724_v52  ;;  %v7722_v25 = vadd.f32 %v11864_v29, %v7699_v5  ;;  %v7704_v63 = vadd.f32 %v7684_v12, %v11854_v44  ;;  %v7676_v28 = vadd.f32 %v8914_v40, %v7675_v59  ;;  %v7741_v44 = vld [vmem:[%s9972_s19 + $0x60] sm:$0xff]  ;;  %s9784_s19 = smov [#allocation13]  }
 0x574   : > { %v9143_v47 = vpop.f32.mrf.mxu1  ;;  %s9669_s5 = sshll.u32 %s9784_s19, 4  ;;  %s9670_s5 = int_to_ptr.vmem [resolvable:$false] %s9669_s5 }
 0x575   : > { %7772 = vst [vmem:[%s10150_s15 + $0x58] sm:$0xff] %v7756_v30  ;;  %v7754_v34 = vadd.f32 %v7738_v10, %v7722_v25  ;;  %v7727_v3 = vadd.f32 %v11864_v29, %v7704_v63  ;;  %v7702_v37 = vadd.f32 %v7676_v28, %v11839_v46  ;;  %v7687_v54 = vadd.f32 %v9143_v47, %v8923_v32  ;;  %s9671_s16 = scalar_lea.vmem %s9670_s5, 4096  ;;  %p9672_p7 = scmp.lt.s32.totalorder %s11968_s2, %s9670_s5 }
 0x576   : > { %v7678_v45 = vpop.f32.mrf.mxu1  ;;  %p9673_p2 = scmp.lt.s32.totalorder %s9671_s16, %s9665_s3 }
 0x577   : > { %7770 = vst [vmem:[%s10150_s15 + $0x48] sm:$0xff] %v7754_v34  ;;  %v7759_v50 = vadd.f32 %v7743_v22, %v7727_v3  ;;  %v7725_v23 = vadd.f32 %v11864_v29, %v7702_v37  ;;  %v7705_v16 = vadd.f32 %v7687_v54, %v11872_v14  ;;  %v7679_v8 = vadd.f32 %v8917_v57, %v7678_v45 }
 0x578   : > { %p9674_p12 = por %p9673_p2, %p9672_p7 }
 0x579   : > { %7775 = vst [vmem:[%s10150_s15 + $0x70] sm:$0xff] %v7759_v50  ;;  %v7757_v46 = vadd.f32 %v7741_v44, %v7725_v23  ;;  %v7728_v7 = vadd.f32 %v11864_v29, %v7705_v16  ;;  %v7703_v33 = vadd.f32 %v7679_v8, %v11847_v9 }
 0x57a   : > { %p9675_p3 = pnand %p9674_p12, %p9668_p11 }
 0x57b   : > { %7773 = vst [vmem:[%s10150_s15 + $0x60] sm:$0xff] %v7757_v46  ;;  %v7760_v49 = vadd.f32 %v7744_v41, %v7728_v7  ;;  %v7726_v24 = vadd.f32 %v11864_v29, %v7703_v33 }
 0x57d   : > { %7776 = vst [vmem:[%s10150_s15 + $0x78] sm:$0xff] %v7760_v49  ;;  %v7758_v14 = vadd.f32 %v7742_v36, %v7726_v24 }
 0x57f   : > { %7774 = vst [vmem:[%s10150_s15 + $0x68] sm:$0xff] %v7758_v14 }
 0x580   : > { %9678 = shalt.err (!%p9675_p3)
}
 0x581   : > { %s9679_s15 = scalar_lea.hbm %s11966_s21, 2048  ;;  %s9683_s30 = scalar_lea.hbm %s12118_s6, 8192 }
 0x582   : > { %p9680_p9 = scmp.ne.s32.totalorder %s11966_s21, %s9679_s15  ;;  %p9684_p13 = scmp.lt.s32.totalorder %s11966_s21, %s12118_s6 }
 0x583   : > { %p9685_p0 = scmp.lt.s32.totalorder %s9683_s30, %s9679_s15 }
 0x584   : > { %p9681_p1 = pnand %p9680_p9, %p9933_p5 }
 0x585   : > { %p9686_p4 = por %p9685_p0, %p9684_p13 }
 0x586   : > { %p9682_p8 = pneg %p9681_p1 }
 0x588   : > { %p9687_p6 = pnand %p9686_p4, %p9682_p8 }
 0x58a   : > { %9690 = shalt.err (!%p9687_p6)
}
 0x58b   : > { %s9785_s8 = smov 128   ;;  %s9786_s20 = smov 8  }
 0x58c   : > { %9158 = dma.vmem_to_hbm [thread:$0]  (%p9933_p5), %s11968_s2, 2048, %s11966_s21, %s7778_s18, %s9785_s8, %s9785_s8, %s9786_s20  }
 0x58d PF: > { %s12119_s24 = sld [smem:[#allocation25_spill]]  ;;  %p9182_p10 = scmp.ge.s32.totalorder %s9769_s28, 2 }
 0x58e   : > { %s12120_s11 = sld [smem:[#allocation26_spill]] }
 0x593   : > { %s7809_s4 = sand.u32 1, %s12119_s24  }
 0x594   : > { %p12121_p11 = scmp.ne.s32.totalorder %s12120_s11, 0  ;;  %s7810_s13 = scalar_lea.sflag [#allocation9], %s7809_s4 }
 0x596   : > { %p9172_p7 = pnand %p9182_p10, %p12121_p11 }
 0x598   : > { %p9173_p2 = pneg %p9172_p7 }
 0x59a   : > { %9736 = dma.done.wait (%p9173_p2), %s7810_s13, 2048  }
 0x59b   : > { %9738 = vsyncadd (%p9173_p2), %s7810_s13, 4294965248  ;;  %s23_s28 = sadd.s32 1, %s9769_s28   ;;  %s12122_s29 = sld [smem:[#allocation27_spill]] }
 0x59c   : > { %p20_p12 = scmp.ge.s32.totalorder %s23_s28, 6   ;;  %s12123_s21 = smov %s9745_s22 }
 0x59d   : > { %s12124_s22 = smov %s9749_s23  ;;  %s12125_s23 = smov %s9946_s10 }
 0x59e   : > { %s12126_s24 = smov %s9761_s26  ;;  %s12127_s25 = smov %s9765_s27 }
 0x59f   : > { %s12129_s27 = smov %s12135_s17  ;;  %22 = sbr.rel (!%p20_p12) target bundleno = 14 (0xe), region = 151 }
 0x5a1   : > { %s12128_s26 = smov %s12122_s29 }
 0x5a4   :  { %7815 = vsyncpa [#allocation8], 1 }
 0x5a5   :  { %7817 = vsyncpa [#allocation8 + $0x1], 1 }
 0x5a6   :  { %7818 = vsyncpa [#allocation11], 1 }
 0x5a7   :  { %7819 = vsyncpa [#allocation9], 1 }
 0x5a8   :  { %7821 = vsyncpa [#allocation9 + $0x1], 1 }
 0x5a9   :  { %7822 = vsyncmov [#allocation6] }
 0x5ac   :  { %s7823_s2 = vpop.sfrf %7822 }
 0x5ad   :  { %p8369_p5 = scmp.ne.s32.totalorder %s7823_s2, 0 }
 0x5af   :  { %7827 = shalt.err (%p8369_p5)  }
 0x5b0   :  { %7829 = vsyncmov [#allocation6 + $0x1] }
 0x5b3   :  { %s7830_s10 = vpop.sfrf %7829 }
 0x5b4   :  { %p8370_p3 = scmp.ne.s32.totalorder %s7830_s10, 0 }
 0x5b6   :  { %7834 = shalt.err (%p8370_p3)  }

</bundles_post_ra>
